<compile_context>
chip_gen: v6e
topology: v6e:2x2x1
jax: 0.10.0
libtpu: 0.0.40
codegen_flags: <defaults>
</compile_context>

<pallas_src>
import functools
import math

import jax
import jax.numpy as jnp
from jax.experimental import pallas as pl
from jax.experimental.pallas import tpu as pltpu


# ----------------------------------------------------------------------------
# Fused Pallas kernel
# ----------------------------------------------------------------------------
def _fused_kernel(*refs, H, W, in_ch, inter_chs):
    n = len(inter_chs)
    n_in = 2 + 2 * n + 6
    in_refs = refs[:n_in]
    disp_ref, up_ref = refs[n_in], refs[n_in + 1]
    feat_ref, hid_ref, dpad_ref = refs[n_in + 2:]

    x_ref, last_ref = in_refs[0], in_refs[1]
    layer_refs = in_refs[2:2 + 2 * n]                 # w0, b0, w1, b1, ...
    wd0_ref, bd0_ref = in_refs[2 + 2 * n], in_refs[3 + 2 * n]
    wd1_ref, bd1_ref = in_refs[4 + 2 * n], in_refs[5 + 2 * n]
    upw_ref, upb_ref = in_refs[6 + 2 * n], in_refs[7 + 2 * n]

    c_total = in_ch + sum(inter_chs)
    hid_ch = wd0_ref.shape[-1]

    # Zero the padded scratch buffers (gives the SAME-padding halo for free).
    # Re-zeroed every grid step so megacore sharding of the batch axis is safe.
    feat_ref[...] = jnp.zeros_like(feat_ref)
    hid_ref[...] = jnp.zeros_like(hid_ref)
    dpad_ref[...] = jnp.zeros_like(dpad_ref)

    # Place x at the END of the channel range: torch.cat((y, x), 1) prepends
    # new features, so writing y_i at decreasing offsets reproduces the exact
    # PyTorch channel order without any weight permutation.
    feat_ref[1:H + 1, 1:W + 1, c_total - in_ch:c_total] = x_ref[0]

    def conv3x3(xp, w_ref, b_ref, cout, leaky):
        # xp: (H+2, W+2, cin) f32 value; w_ref: (9*cin, cout) bf16
        cin = xp.shape[-1]
        taps = [xp[dy:dy + H, dx:dx + W, :]
                for dy in range(3) for dx in range(3)]
        pat = jnp.concatenate(taps, axis=-1)          # (H, W, 9*cin) im2col
        pat = pat.reshape(H * W, 9 * cin).astype(jnp.bfloat16)
        acc = jnp.dot(pat, w_ref[...],                # single K=9*cin matmul
                      preferred_element_type=jnp.float32)
        acc = acc + b_ref[...]
        if leaky:
            acc = jnp.where(acc > 0, acc, 0.1 * acc)  # LeakyReLU(0.1)
        return acc.reshape(H, W, cout)

    # --- CostRegulator (dense connections, all in VMEM) ----------------------
    off = c_total - in_ch
    for i in range(n):
        w_ref, b_ref = layer_refs[2 * i], layer_refs[2 * i + 1]
        cout = inter_chs[i]
        y = conv3x3(feat_ref[:, :, off:c_total], w_ref, b_ref, cout, leaky=True)
        off -= cout
        feat_ref[1:H + 1, 1:W + 1, off:off + cout] = y

    # --- PredictDisparity conv1: c_total -> 64, LeakyReLU --------------------
    h = conv3x3(feat_ref[...], wd0_ref, bd0_ref, hid_ch, leaky=True)
    hid_ref[1:H + 1, 1:W + 1, :] = h

    # --- PredictDisparity conv2: 64 -> 1 as a VPU reduction, + lastDisp ------
    hp = hid_ref[...]
    taps = [hp[dy:dy + H, dx:dx + W, :] for dy in range(3) for dx in range(3)]
    pat3 = jnp.concatenate(taps, axis=-1)             # (H, W, 9*64) f32
    disp2d = jnp.sum(pat3 * wd1_ref[0], axis=-1)      # (H, W)
    disp2d = disp2d + bd1_ref[0] + last_ref[0]
    disp_ref[0] = disp2d.astype(disp_ref.dtype)       # lane-dense (H, W) store

    # --- UpDisparity: ConvTranspose2d(1,1,k=4,s=2,p=1), 4-phase decomposition
    # out[2a+pi, 2b+pj] = sum over the 2x2 sub-kernel of w picked by parity.
    dpad_ref[1:H + 1, 1:W + 1] = disp2d
    d = dpad_ref[...]                                 # (H+2, W+2), zero border
    w = upw_ref                                       # (4, 4) in SMEM
    ub = upb_ref[0]
    p00 = (w[1, 1] * d[1:H + 1, 1:W + 1] + w[1, 3] * d[1:H + 1, 0:W] +
           w[3, 1] * d[0:H, 1:W + 1] + w[3, 3] * d[0:H, 0:W] + ub)
    p01 = (w[1, 0] * d[1:H + 1, 2:W + 2] + w[1, 2] * d[1:H + 1, 1:W + 1] +
           w[3, 0] * d[0:H, 2:W + 2] + w[3, 2] * d[0:H, 1:W + 1] + ub)
    p10 = (w[0, 1] * d[2:H + 2, 1:W + 1] + w[0, 3] * d[2:H + 2, 0:W] +
           w[2, 1] * d[1:H + 1, 1:W + 1] + w[2, 3] * d[1:H + 1, 0:W] + ub)
    p11 = (w[0, 0] * d[2:H + 2, 2:W + 2] + w[0, 2] * d[2:H + 2, 1:W + 1] +
           w[2, 0] * d[1:H + 1, 2:W + 2] + w[2, 2] * d[1:H + 1, 1:W + 1] + ub)
    up_ref[0, 0, 0] = p00.astype(up_ref.dtype)
    up_ref[0, 0, 1] = p01.astype(up_ref.dtype)
    up_ref[0, 1, 0] = p10.astype(up_ref.dtype)
    up_ref[0, 1, 1] = p11.astype(up_ref.dtype)


# ----------------------------------------------------------------------------
# Wrapper
# ----------------------------------------------------------------------------
def cost2disp_forward(params, x, last_disp):
    """Cost2DisparityAndFeatureRes.forward with flagUp=True.

    x:         (B, H, W, inCh)   NHWC cost volume features
    last_disp: (B, H, W, 1)
    returns (disp, upDisp) with shapes (B,H,W,1), (B,2H,2W,1).
    """
    B, H, W, in_ch = x.shape
    inter_chs = tuple(w.shape[-1] for (w, _) in params["regulator"])
    c_total = in_ch + sum(inter_chs)
    hid_ch = params["disp0"][0].shape[-1]

    inputs = [x, last_disp[..., 0]]
    in_specs = [
        pl.BlockSpec((1, H, W, in_ch), lambda b: (b, 0, 0, 0)),
        pl.BlockSpec((1, H, W), lambda b: (b, 0, 0)),
    ]

    def add_mxu_conv(w, bias):
        kh, kw, ci, co = w.shape
        inputs.append(w.reshape(9 * ci, co).astype(jnp.bfloat16))
        in_specs.append(pl.BlockSpec((9 * ci, co), lambda b: (0, 0)))
        inputs.append(bias.reshape(1, co))
        in_specs.append(pl.BlockSpec((1, co), lambda b: (0, 0)))

    for (w, bias) in params["regulator"]:
        add_mxu_conv(w, bias)
    add_mxu_conv(*params["disp0"])

    # disp1 (64 -> 1): VPU reduction weights stay in f32.
    wd1, bd1 = params["disp1"]
    inputs.append(wd1.reshape(1, 9 * wd1.shape[2]))
    in_specs.append(pl.BlockSpec((1, 9 * wd1.shape[2]), lambda b: (0, 0)))
    inputs.append(bd1)
    in_specs.append(pl.BlockSpec(memory_space=pltpu.MemorySpace.SMEM))

    inputs += [params["up_w"], params["up_b"]]
    in_specs += [pl.BlockSpec(memory_space=pltpu.MemorySpace.SMEM)] * 2

    out_shape = (jax.ShapeDtypeStruct((B, H, W), x.dtype),
                 jax.ShapeDtypeStruct((B, 2, 2, H, W), x.dtype))
    out_specs = (pl.BlockSpec((1, H, W), lambda b: (b, 0, 0)),
                 pl.BlockSpec((1, 2, 2, H, W), lambda b: (b, 0, 0, 0, 0)))
    scratch = [pltpu.VMEM((H + 2, W + 2, c_total), jnp.float32),  # dense feat
               pltpu.VMEM((H + 2, W + 2, hid_ch), jnp.float32),   # disp0 hid
               pltpu.VMEM((H + 2, W + 2), jnp.float32)]           # padded disp

    kern = functools.partial(_fused_kernel, H=H, W=W, in_ch=in_ch,
                             inter_chs=inter_chs)
    disp3, phases = pl.pallas_call(
        kern,
        out_shape=out_shape,
        grid=(B,),
        in_specs=in_specs,
        out_specs=out_specs,
        scratch_shapes=scratch,
        compiler_params=pltpu.CompilerParams(
            dimension_semantics=("parallel",)),
    )(*inputs)

    disp = disp3[..., None]                                   # (B,H,W,1)
    up = phases.transpose(0, 3, 1, 4, 2).reshape(B, 2 * H, 2 * W, 1)
    return disp, up


# ----------------------------------------------------------------------------
# Parameters
# ----------------------------------------------------------------------------
def _init_conv(key, cin, cout):
    kw, kb = jax.random.split(key)
    w = jax.random.normal(kw, (3, 3, cin, cout), jnp.float32)
    w = w * (1.0 / math.sqrt(9.0 * cin))
    b = jax.random.normal(kb, (cout,), jnp.float32) * 0.01
    return w, b


def init_params(key, in_ch, inter_ch_list):
    n = len(inter_ch_list)
    keys = jax.random.split(key, n + 3)
    regulator = []
    c = in_ch
    for i, oc in enumerate(inter_ch_list):
        regulator.append(_init_conv(keys[i], c, oc))
        c = c + oc                                    # dense concat growth
    disp0 = _init_conv(keys[n], c, 64)                # PredictDisparity conv1
    disp1 = _init_conv(keys[n + 1], 64, 1)            # PredictDisparity conv2
    kw, kb = jax.random.split(keys[n + 2])
    up_w = jax.random.normal(kw, (4, 4), jnp.float32) * 0.25
    up_b = jax.random.normal(kb, (1,), jnp.float32) * 0.01
    return {"regulator": regulator, "disp0": disp0, "disp1": disp1,
            "up_w": up_w, "up_b": up_b}


# ----------------------------------------------------------------------------
# Pure-JAX reference (module semantics, fp32)
# ----------------------------------------------------------------------------
def _ref_conv3x3(x, w, b, leaky):
    y = jax.lax.conv_general_dilated(
        x, w, (1, 1), ((1, 1), (1, 1)),
        dimension_numbers=("NHWC", "HWIO", "NHWC"),
        precision=jax.lax.Precision.HIGHEST) + b
    if leaky:
        y = jnp.where(y > 0, y, 0.1 * y)
    return y


def ref_forward(params, x, last_disp):
    for (w, b) in params["regulator"]:
        x = jnp.concatenate([_ref_conv3x3(x, w, b, True), x], axis=-1)
    h = _ref_conv3x3(x, *params["disp0"], True)
    disp = _ref_conv3x3(h, *params["disp1"], False) + last_disp
    wflip = params["up_w"][::-1, ::-1].reshape(4, 4, 1, 1)
    up = jax.lax.conv_general_dilated(
        disp, wflip, (1, 1), ((2, 2), (2, 2)),
        lhs_dilation=(2, 2),
        dimension_numbers=("NHWC", "HWIO", "NHWC"),
        precision=jax.lax.Precision.HIGHEST) + params["up_b"][0]
    return disp, up


# ----------------------------------------------------------------------------
if __name__ == "__main__":
    key = jax.random.PRNGKey(0)
    B, H, W = 2, 16, 16
    in_ch = 8
    inter_ch_list = [8, 8]                 # CostRegulator(inCh=8, [8, 8])

    kp, kx, kd = jax.random.split(key, 3)
    params = init_params(kp, in_ch, inter_ch_list)
    x = jax.random.normal(kx, (B, H, W, in_ch), jnp.float32)
    last_disp = jax.random.normal(kd, (B, H, W, 1), jnp.float32)

    fwd = jax.jit(cost2disp_forward)
    disp, up_disp = fwd(params, x, last_disp)
    jax.block_until_ready((disp, up_disp))

    assert disp.shape == (B, H, W, 1)
    assert up_disp.shape == (B, 2 * H, 2 * W, 1)

    ref_disp, ref_up = ref_forward(params, x, last_disp)
    # bf16 MXU path with fp32 accumulation vs. fp32 reference.
    err_d = float(jnp.max(jnp.abs(disp - ref_disp)))
    err_u = float(jnp.max(jnp.abs(up_disp - ref_up)))
    assert err_d < 5e-2, err_d
    assert err_u < 5e-2, err_u

    print("KERNEL_OK")
</pallas_src>

<mosaic_0001>
module attributes {stable_mosaic.version = 11 : i64} {
  func.func @_fused_kernel(%arg0: i32, %arg1: memref<1x16x16x8xf32, #tpu.memory_space<vmem>>, %arg2: memref<1x16x16xf32, #tpu.memory_space<vmem>>, %arg3: memref<72x8xbf16, #tpu.memory_space<vmem>>, %arg4: memref<1x8xf32, #tpu.memory_space<vmem>>, %arg5: memref<144x8xbf16, #tpu.memory_space<vmem>>, %arg6: memref<1x8xf32, #tpu.memory_space<vmem>>, %arg7: memref<216x64xbf16, #tpu.memory_space<vmem>>, %arg8: memref<1x64xf32, #tpu.memory_space<vmem>>, %arg9: memref<1x576xf32, #tpu.memory_space<vmem>>, %arg10: memref<1xf32, #tpu.memory_space<smem>>, %arg11: memref<4x4xf32, #tpu.memory_space<smem>>, %arg12: memref<1xf32, #tpu.memory_space<smem>>, %arg13: memref<1x16x16xf32, #tpu.memory_space<vmem>>, %arg14: memref<1x2x2x16x16xf32, #tpu.memory_space<vmem>>, %arg15: memref<18x18x24xf32, #tpu.memory_space<vmem>>, %arg16: memref<18x18x64xf32, #tpu.memory_space<vmem>>, %arg17: memref<18x18xf32, #tpu.memory_space<vmem>>) attributes {dimension_semantics = [#tpu.dimension_semantics<parallel>], iteration_bounds = array<i64: 2>, scalar_prefetch = 0 : i64, scratch_operands = 3 : i64, tpu.core_type = #tpu.core_type<tc>, window_params = [{transform_indices = @transform_0, window_bounds = array<i64: 1, 16, 16, 8>}, {transform_indices = @transform_1, window_bounds = array<i64: 1, 16, 16>}, {pipeline_mode = #tpu.pipeline_mode<synchronous>, transform_indices = @transform_2, window_bounds = array<i64: 72, 8>}, {pipeline_mode = #tpu.pipeline_mode<synchronous>, transform_indices = @transform_3, window_bounds = array<i64: 1, 8>}, {pipeline_mode = #tpu.pipeline_mode<synchronous>, transform_indices = @transform_4, window_bounds = array<i64: 144, 8>}, {pipeline_mode = #tpu.pipeline_mode<synchronous>, transform_indices = @transform_5, window_bounds = array<i64: 1, 8>}, {pipeline_mode = #tpu.pipeline_mode<synchronous>, transform_indices = @transform_6, window_bounds = array<i64: 216, 64>}, {pipeline_mode = #tpu.pipeline_mode<synchronous>, transform_indices = @transform_7, window_bounds = array<i64: 1, 64>}, {pipeline_mode = #tpu.pipeline_mode<synchronous>, transform_indices = @transform_8, window_bounds = array<i64: 1, 576>}, {transform_indices = @transform_9, window_bounds = array<i64: 1>}, {transform_indices = @transform_10, window_bounds = array<i64: 4, 4>}, {transform_indices = @transform_11, window_bounds = array<i64: 1>}, {transform_indices = @transform_12, window_bounds = array<i64: 1, 16, 16>}, {transform_indices = @transform_13, window_bounds = array<i64: 1, 2, 2, 16, 16>}]} {
    %cst = arith.constant 0.000000e+00 : f32
    %0 = vector.broadcast %cst : f32 to vector<18x18x24xf32>
    %c0 = arith.constant 0 : index
    %c0_0 = arith.constant 0 : index
    %c0_1 = arith.constant 0 : index
    %1 = vector.load %arg15[%c0, %c0_0, %c0_1] : memref<18x18x24xf32, #tpu.memory_space<vmem>>, vector<18x18x24xf32>
    tpu.vector_store %arg15[%c0, %c0_0, %c0_1], %0 {strides = array<i32>} : memref<18x18x24xf32, #tpu.memory_space<vmem>>, vector<18x18x24xf32>,
    %cst_2 = arith.constant 0.000000e+00 : f32
    %2 = vector.broadcast %cst_2 : f32 to vector<18x18x64xf32>
    %c0_3 = arith.constant 0 : index
    %c0_4 = arith.constant 0 : index
    %c0_5 = arith.constant 0 : index
    %3 = vector.load %arg16[%c0_3, %c0_4, %c0_5] : memref<18x18x64xf32, #tpu.memory_space<vmem>>, vector<18x18x64xf32>
    tpu.vector_store %arg16[%c0_3, %c0_4, %c0_5], %2 {strides = array<i32>} : memref<18x18x64xf32, #tpu.memory_space<vmem>>, vector<18x18x64xf32>,
    %cst_6 = arith.constant 0.000000e+00 : f32
    %4 = vector.broadcast %cst_6 : f32 to vector<18x18xf32>
    %c0_7 = arith.constant 0 : index
    %c0_8 = arith.constant 0 : index
    %5 = vector.load %arg17[%c0_7, %c0_8] : memref<18x18xf32, #tpu.memory_space<vmem>>, vector<18x18xf32>
    tpu.vector_store %arg17[%c0_7, %c0_8], %4 {strides = array<i32>} : memref<18x18xf32, #tpu.memory_space<vmem>>, vector<18x18xf32>,
    %c0_9 = arith.constant 0 : index
    %c0_10 = arith.constant 0 : index
    %c0_11 = arith.constant 0 : index
    %c0_12 = arith.constant 0 : index
    %6 = vector.load %arg1[%c0_9, %c0_10, %c0_11, %c0_12] : memref<1x16x16x8xf32, #tpu.memory_space<vmem>>, vector<1x16x16x8xf32>
    %7 = vector.shape_cast %6 : vector<1x16x16x8xf32> to vector<16x16x8xf32>
    %c1 = arith.constant 1 : index
    %c1_13 = arith.constant 1 : index
    %c16 = arith.constant 16 : index
    %8 = vector.load %arg15[%c1, %c1_13, %c16] : memref<18x18x24xf32, #tpu.memory_space<vmem>>, vector<16x16x8xf32>
    tpu.vector_store %arg15[%c1, %c1_13, %c16], %7 {strides = array<i32>} : memref<18x18x24xf32, #tpu.memory_space<vmem>>, vector<16x16x8xf32>,
    %c0_14 = arith.constant 0 : index
    %c0_15 = arith.constant 0 : index
    %c16_16 = arith.constant 16 : index
    %9 = vector.load %arg15[%c0_14, %c0_15, %c16_16] : memref<18x18x24xf32, #tpu.memory_space<vmem>>, vector<18x18x8xf32>
    %10 = vector.extract_strided_slice %9 {offsets = [0, 0, 0], sizes = [16, 16, 8], strides = [1, 1, 1]} : vector<18x18x8xf32> to vector<16x16x8xf32>
    %11 = vector.extract_strided_slice %9 {offsets = [0, 1, 0], sizes = [16, 16, 8], strides = [1, 1, 1]} : vector<18x18x8xf32> to vector<16x16x8xf32>
    %12 = vector.extract_strided_slice %9 {offsets = [0, 2, 0], sizes = [16, 16, 8], strides = [1, 1, 1]} : vector<18x18x8xf32> to vector<16x16x8xf32>
    %13 = vector.extract_strided_slice %9 {offsets = [1, 0, 0], sizes = [16, 16, 8], strides = [1, 1, 1]} : vector<18x18x8xf32> to vector<16x16x8xf32>
    %14 = vector.extract_strided_slice %9 {offsets = [1, 1, 0], sizes = [16, 16, 8], strides = [1, 1, 1]} : vector<18x18x8xf32> to vector<16x16x8xf32>
    %15 = vector.extract_strided_slice %9 {offsets = [1, 2, 0], sizes = [16, 16, 8], strides = [1, 1, 1]} : vector<18x18x8xf32> to vector<16x16x8xf32>
    %16 = vector.extract_strided_slice %9 {offsets = [2, 0, 0], sizes = [16, 16, 8], strides = [1, 1, 1]} : vector<18x18x8xf32> to vector<16x16x8xf32>
    %17 = vector.extract_strided_slice %9 {offsets = [2, 1, 0], sizes = [16, 16, 8], strides = [1, 1, 1]} : vector<18x18x8xf32> to vector<16x16x8xf32>
    %18 = vector.extract_strided_slice %9 {offsets = [2, 2, 0], sizes = [16, 16, 8], strides = [1, 1, 1]} : vector<18x18x8xf32> to vector<16x16x8xf32>
    %19 = tpu.concatenate %10, %11, %12, %13, %14, %15, %16, %17, %18 in 2 : vector<16x16x8xf32>, vector<16x16x8xf32>, vector<16x16x8xf32>, vector<16x16x8xf32>, vector<16x16x8xf32>, vector<16x16x8xf32>, vector<16x16x8xf32>, vector<16x16x8xf32>, vector<16x16x8xf32> -> vector<16x16x72xf32>
    %20 = vector.shape_cast %19 : vector<16x16x72xf32> to vector<256x72xf32>
    %21 = arith.truncf %20 : vector<256x72xf32> to vector<256x72xbf16>
    %c0_17 = arith.constant 0 : index
    %c0_18 = arith.constant 0 : index
    %22 = vector.load %arg3[%c0_17, %c0_18] : memref<72x8xbf16, #tpu.memory_space<vmem>>, vector<72x8xbf16>
    %cst_19 = arith.constant dense<0.000000e+00> : vector<256x8xf32>
    %23 = tpu.matmul %21, %22, %cst_19 {dimension_numbers = #tpu.dot_dimension_numbers<[1], [0], [0], [1], [0, 0, 1, 1], [], []>} : vector<256x72xbf16>, vector<72x8xbf16>, vector<256x8xf32> -> vector<256x8xf32>
    %c0_20 = arith.constant 0 : index
    %c0_21 = arith.constant 0 : index
    %24 = vector.load %arg4[%c0_20, %c0_21] : memref<1x8xf32, #tpu.memory_space<vmem>>, vector<1x8xf32>
    %25 = vector.broadcast %24 : vector<1x8xf32> to vector<256x8xf32>
    %26 = arith.addf %23, %25 : vector<256x8xf32>
    %cst_22 = arith.constant 0.000000e+00 : f32
    %27 = vector.broadcast %cst_22 : f32 to vector<256x8xf32>
    %28 = arith.cmpf ogt, %26, %27 : vector<256x8xf32>
    %cst_23 = arith.constant 1.000000e-01 : f32
    %29 = vector.broadcast %cst_23 : f32 to vector<256x8xf32>
    %30 = arith.mulf %29, %26 : vector<256x8xf32>
    %31 = arith.select %28, %26, %30 : vector<256x8xi1>, vector<256x8xf32>
    %32 = vector.shape_cast %31 : vector<256x8xf32> to vector<16x16x8xf32>
    %c1_24 = arith.constant 1 : index
    %c1_25 = arith.constant 1 : index
    %c8 = arith.constant 8 : index
    %33 = vector.load %arg15[%c1_24, %c1_25, %c8] : memref<18x18x24xf32, #tpu.memory_space<vmem>>, vector<16x16x8xf32>
    tpu.vector_store %arg15[%c1_24, %c1_25, %c8], %32 {strides = array<i32>} : memref<18x18x24xf32, #tpu.memory_space<vmem>>, vector<16x16x8xf32>,
    %c0_26 = arith.constant 0 : index
    %c0_27 = arith.constant 0 : index
    %c8_28 = arith.constant 8 : index
    %34 = vector.load %arg15[%c0_26, %c0_27, %c8_28] : memref<18x18x24xf32, #tpu.memory_space<vmem>>, vector<18x18x16xf32>
    %35 = vector.extract_strided_slice %34 {offsets = [0, 0, 0], sizes = [16, 16, 16], strides = [1, 1, 1]} : vector<18x18x16xf32> to vector<16x16x16xf32>
    %36 = vector.extract_strided_slice %34 {offsets = [0, 1, 0], sizes = [16, 16, 16], strides = [1, 1, 1]} : vector<18x18x16xf32> to vector<16x16x16xf32>
    %37 = vector.extract_strided_slice %34 {offsets = [0, 2, 0], sizes = [16, 16, 16], strides = [1, 1, 1]} : vector<18x18x16xf32> to vector<16x16x16xf32>
    %38 = vector.extract_strided_slice %34 {offsets = [1, 0, 0], sizes = [16, 16, 16], strides = [1, 1, 1]} : vector<18x18x16xf32> to vector<16x16x16xf32>
    %39 = vector.extract_strided_slice %34 {offsets = [1, 1, 0], sizes = [16, 16, 16], strides = [1, 1, 1]} : vector<18x18x16xf32> to vector<16x16x16xf32>
    %40 = vector.extract_strided_slice %34 {offsets = [1, 2, 0], sizes = [16, 16, 16], strides = [1, 1, 1]} : vector<18x18x16xf32> to vector<16x16x16xf32>
    %41 = vector.extract_strided_slice %34 {offsets = [2, 0, 0], sizes = [16, 16, 16], strides = [1, 1, 1]} : vector<18x18x16xf32> to vector<16x16x16xf32>
    %42 = vector.extract_strided_slice %34 {offsets = [2, 1, 0], sizes = [16, 16, 16], strides = [1, 1, 1]} : vector<18x18x16xf32> to vector<16x16x16xf32>
    %43 = vector.extract_strided_slice %34 {offsets = [2, 2, 0], sizes = [16, 16, 16], strides = [1, 1, 1]} : vector<18x18x16xf32> to vector<16x16x16xf32>
    %44 = tpu.concatenate %35, %36, %37, %38, %39, %40, %41, %42, %43 in 2 : vector<16x16x16xf32>, vector<16x16x16xf32>, vector<16x16x16xf32>, vector<16x16x16xf32>, vector<16x16x16xf32>, vector<16x16x16xf32>, vector<16x16x16xf32>, vector<16x16x16xf32>, vector<16x16x16xf32> -> vector<16x16x144xf32>
    %45 = vector.shape_cast %44 : vector<16x16x144xf32> to vector<256x144xf32>
    %46 = arith.truncf %45 : vector<256x144xf32> to vector<256x144xbf16>
    %c0_29 = arith.constant 0 : index
    %c0_30 = arith.constant 0 : index
    %47 = vector.load %arg5[%c0_29, %c0_30] : memref<144x8xbf16, #tpu.memory_space<vmem>>, vector<144x8xbf16>
    %cst_31 = arith.constant dense<0.000000e+00> : vector<256x8xf32>
    %48 = tpu.matmul %46, %47, %cst_31 {dimension_numbers = #tpu.dot_dimension_numbers<[1], [0], [0], [1], [0, 0, 1, 1], [], []>} : vector<256x144xbf16>, vector<144x8xbf16>, vector<256x8xf32> -> vector<256x8xf32>
    %c0_32 = arith.constant 0 : index
    %c0_33 = arith.constant 0 : index
    %49 = vector.load %arg6[%c0_32, %c0_33] : memref<1x8xf32, #tpu.memory_space<vmem>>, vector<1x8xf32>
    %50 = vector.broadcast %49 : vector<1x8xf32> to vector<256x8xf32>
    %51 = arith.addf %48, %50 : vector<256x8xf32>
    %cst_34 = arith.constant 0.000000e+00 : f32
    %52 = vector.broadcast %cst_34 : f32 to vector<256x8xf32>
    %53 = arith.cmpf ogt, %51, %52 : vector<256x8xf32>
    %cst_35 = arith.constant 1.000000e-01 : f32
    %54 = vector.broadcast %cst_35 : f32 to vector<256x8xf32>
    %55 = arith.mulf %54, %51 : vector<256x8xf32>
    %56 = arith.select %53, %51, %55 : vector<256x8xi1>, vector<256x8xf32>
    %57 = vector.shape_cast %56 : vector<256x8xf32> to vector<16x16x8xf32>
    %c1_36 = arith.constant 1 : index
    %c1_37 = arith.constant 1 : index
    %c0_38 = arith.constant 0 : index
    %58 = vector.load %arg15[%c1_36, %c1_37, %c0_38] : memref<18x18x24xf32, #tpu.memory_space<vmem>>, vector<16x16x8xf32>
    tpu.vector_store %arg15[%c1_36, %c1_37, %c0_38], %57 {strides = array<i32>} : memref<18x18x24xf32, #tpu.memory_space<vmem>>, vector<16x16x8xf32>,
    %c0_39 = arith.constant 0 : index
    %c0_40 = arith.constant 0 : index
    %c0_41 = arith.constant 0 : index
    %59 = vector.load %arg15[%c0_39, %c0_40, %c0_41] : memref<18x18x24xf32, #tpu.memory_space<vmem>>, vector<18x18x24xf32>
    %60 = vector.extract_strided_slice %59 {offsets = [0, 0, 0], sizes = [16, 16, 24], strides = [1, 1, 1]} : vector<18x18x24xf32> to vector<16x16x24xf32>
    %61 = vector.extract_strided_slice %59 {offsets = [0, 1, 0], sizes = [16, 16, 24], strides = [1, 1, 1]} : vector<18x18x24xf32> to vector<16x16x24xf32>
    %62 = vector.extract_strided_slice %59 {offsets = [0, 2, 0], sizes = [16, 16, 24], strides = [1, 1, 1]} : vector<18x18x24xf32> to vector<16x16x24xf32>
    %63 = vector.extract_strided_slice %59 {offsets = [1, 0, 0], sizes = [16, 16, 24], strides = [1, 1, 1]} : vector<18x18x24xf32> to vector<16x16x24xf32>
    %64 = vector.extract_strided_slice %59 {offsets = [1, 1, 0], sizes = [16, 16, 24], strides = [1, 1, 1]} : vector<18x18x24xf32> to vector<16x16x24xf32>
    %65 = vector.extract_strided_slice %59 {offsets = [1, 2, 0], sizes = [16, 16, 24], strides = [1, 1, 1]} : vector<18x18x24xf32> to vector<16x16x24xf32>
    %66 = vector.extract_strided_slice %59 {offsets = [2, 0, 0], sizes = [16, 16, 24], strides = [1, 1, 1]} : vector<18x18x24xf32> to vector<16x16x24xf32>
    %67 = vector.extract_strided_slice %59 {offsets = [2, 1, 0], sizes = [16, 16, 24], strides = [1, 1, 1]} : vector<18x18x24xf32> to vector<16x16x24xf32>
    %68 = vector.extract_strided_slice %59 {offsets = [2, 2, 0], sizes = [16, 16, 24], strides = [1, 1, 1]} : vector<18x18x24xf32> to vector<16x16x24xf32>
    %69 = tpu.concatenate %60, %61, %62, %63, %64, %65, %66, %67, %68 in 2 : vector<16x16x24xf32>, vector<16x16x24xf32>, vector<16x16x24xf32>, vector<16x16x24xf32>, vector<16x16x24xf32>, vector<16x16x24xf32>, vector<16x16x24xf32>, vector<16x16x24xf32>, vector<16x16x24xf32> -> vector<16x16x216xf32>
    %70 = vector.shape_cast %69 : vector<16x16x216xf32> to vector<256x216xf32>
    %71 = arith.truncf %70 : vector<256x216xf32> to vector<256x216xbf16>
    %c0_42 = arith.constant 0 : index
    %c0_43 = arith.constant 0 : index
    %72 = vector.load %arg7[%c0_42, %c0_43] : memref<216x64xbf16, #tpu.memory_space<vmem>>, vector<216x64xbf16>
    %cst_44 = arith.constant dense<0.000000e+00> : vector<256x64xf32>
    %73 = tpu.matmul %71, %72, %cst_44 {dimension_numbers = #tpu.dot_dimension_numbers<[1], [0], [0], [1], [0, 0, 1, 1], [], []>} : vector<256x216xbf16>, vector<216x64xbf16>, vector<256x64xf32> -> vector<256x64xf32>
    %c0_45 = arith.constant 0 : index
    %c0_46 = arith.constant 0 : index
    %74 = vector.load %arg8[%c0_45, %c0_46] : memref<1x64xf32, #tpu.memory_space<vmem>>, vector<1x64xf32>
    %75 = vector.broadcast %74 : vector<1x64xf32> to vector<256x64xf32>
    %76 = arith.addf %73, %75 : vector<256x64xf32>
    %cst_47 = arith.constant 0.000000e+00 : f32
    %77 = vector.broadcast %cst_47 : f32 to vector<256x64xf32>
    %78 = arith.cmpf ogt, %76, %77 : vector<256x64xf32>
    %cst_48 = arith.constant 1.000000e-01 : f32
    %79 = vector.broadcast %cst_48 : f32 to vector<256x64xf32>
    %80 = arith.mulf %79, %76 : vector<256x64xf32>
    %81 = arith.select %78, %76, %80 : vector<256x64xi1>, vector<256x64xf32>
    %82 = vector.shape_cast %81 : vector<256x64xf32> to vector<16x16x64xf32>
    %c1_49 = arith.constant 1 : index
    %c1_50 = arith.constant 1 : index
    %c0_51 = arith.constant 0 : index
    %83 = vector.load %arg16[%c1_49, %c1_50, %c0_51] : memref<18x18x64xf32, #tpu.memory_space<vmem>>, vector<16x16x64xf32>
    tpu.vector_store %arg16[%c1_49, %c1_50, %c0_51], %82 {strides = array<i32>} : memref<18x18x64xf32, #tpu.memory_space<vmem>>, vector<16x16x64xf32>,
    %c0_52 = arith.constant 0 : index
    %c0_53 = arith.constant 0 : index
    %c0_54 = arith.constant 0 : index
    %84 = vector.load %arg16[%c0_52, %c0_53, %c0_54] : memref<18x18x64xf32, #tpu.memory_space<vmem>>, vector<18x18x64xf32>
    %85 = vector.extract_strided_slice %84 {offsets = [0, 0, 0], sizes = [16, 16, 64], strides = [1, 1, 1]} : vector<18x18x64xf32> to vector<16x16x64xf32>
    %86 = vector.extract_strided_slice %84 {offsets = [0, 1, 0], sizes = [16, 16, 64], strides = [1, 1, 1]} : vector<18x18x64xf32> to vector<16x16x64xf32>
    %87 = vector.extract_strided_slice %84 {offsets = [0, 2, 0], sizes = [16, 16, 64], strides = [1, 1, 1]} : vector<18x18x64xf32> to vector<16x16x64xf32>
    %88 = vector.extract_strided_slice %84 {offsets = [1, 0, 0], sizes = [16, 16, 64], strides = [1, 1, 1]} : vector<18x18x64xf32> to vector<16x16x64xf32>
    %89 = vector.extract_strided_slice %84 {offsets = [1, 1, 0], sizes = [16, 16, 64], strides = [1, 1, 1]} : vector<18x18x64xf32> to vector<16x16x64xf32>
    %90 = vector.extract_strided_slice %84 {offsets = [1, 2, 0], sizes = [16, 16, 64], strides = [1, 1, 1]} : vector<18x18x64xf32> to vector<16x16x64xf32>
    %91 = vector.extract_strided_slice %84 {offsets = [2, 0, 0], sizes = [16, 16, 64], strides = [1, 1, 1]} : vector<18x18x64xf32> to vector<16x16x64xf32>
    %92 = vector.extract_strided_slice %84 {offsets = [2, 1, 0], sizes = [16, 16, 64], strides = [1, 1, 1]} : vector<18x18x64xf32> to vector<16x16x64xf32>
    %93 = vector.extract_strided_slice %84 {offsets = [2, 2, 0], sizes = [16, 16, 64], strides = [1, 1, 1]} : vector<18x18x64xf32> to vector<16x16x64xf32>
    %94 = tpu.concatenate %85, %86, %87, %88, %89, %90, %91, %92, %93 in 2 : vector<16x16x64xf32>, vector<16x16x64xf32>, vector<16x16x64xf32>, vector<16x16x64xf32>, vector<16x16x64xf32>, vector<16x16x64xf32>, vector<16x16x64xf32>, vector<16x16x64xf32>, vector<16x16x64xf32> -> vector<16x16x576xf32>
    %c0_55 = arith.constant 0 : index
    %c0_56 = arith.constant 0 : index
    %95 = vector.load %arg9[%c0_55, %c0_56] : memref<1x576xf32, #tpu.memory_space<vmem>>, vector<1x576xf32>
    %96 = vector.shape_cast %95 : vector<1x576xf32> to vector<576xf32>
    %97 = vector.shape_cast %96 : vector<576xf32> to vector<1x1x576xf32>
    %98 = vector.broadcast %97 : vector<1x1x576xf32> to vector<16x16x576xf32>
    %99 = arith.mulf %94, %98 : vector<16x16x576xf32>
    %cst_57 = arith.constant dense<0.000000e+00> : vector<16x16xf32>
    %100 = vector.multi_reduction <add>, %99, %cst_57 [2] : vector<16x16x576xf32> to vector<16x16xf32>
    %c0_58 = arith.constant 0 : index
    %101 = memref.load %arg10[%c0_58] : memref<1xf32, #tpu.memory_space<smem>>
    %102 = vector.broadcast %101 : f32 to vector<16x16xf32>
    %103 = arith.addf %100, %102 : vector<16x16xf32>
    %c0_59 = arith.constant 0 : index
    %c0_60 = arith.constant 0 : index
    %c0_61 = arith.constant 0 : index
    %104 = vector.load %arg2[%c0_59, %c0_60, %c0_61] : memref<1x16x16xf32, #tpu.memory_space<vmem>>, vector<1x16x16xf32>
    %105 = vector.shape_cast %104 : vector<1x16x16xf32> to vector<16x16xf32>
    %106 = arith.addf %103, %105 : vector<16x16xf32>
    %c0_62 = arith.constant 0 : index
    %c0_63 = arith.constant 0 : index
    %c0_64 = arith.constant 0 : index
    %107 = vector.load %arg13[%c0_62, %c0_63, %c0_64] : memref<1x16x16xf32, #tpu.memory_space<vmem>>, vector<1x16x16xf32>
    %108 = vector.shape_cast %107 : vector<1x16x16xf32> to vector<16x16xf32>
    %109 = vector.shape_cast %106 : vector<16x16xf32> to vector<1x16x16xf32>
    tpu.vector_store %arg13[%c0_62, %c0_63, %c0_64], %109 {strides = array<i32>} : memref<1x16x16xf32, #tpu.memory_space<vmem>>, vector<1x16x16xf32>,
    %c1_65 = arith.constant 1 : index
    %c1_66 = arith.constant 1 : index
    %110 = vector.load %arg17[%c1_65, %c1_66] : memref<18x18xf32, #tpu.memory_space<vmem>>, vector<16x16xf32>
    tpu.vector_store %arg17[%c1_65, %c1_66], %106 {strides = array<i32>} : memref<18x18xf32, #tpu.memory_space<vmem>>, vector<16x16xf32>,
    %c0_67 = arith.constant 0 : index
    %c0_68 = arith.constant 0 : index
    %111 = vector.load %arg17[%c0_67, %c0_68] : memref<18x18xf32, #tpu.memory_space<vmem>>, vector<18x18xf32>
    %c0_69 = arith.constant 0 : index
    %112 = memref.load %arg12[%c0_69] : memref<1xf32, #tpu.memory_space<smem>>
    %c1_70 = arith.constant 1 : index
    %c1_71 = arith.constant 1 : index
    %113 = memref.load %arg11[%c1_70, %c1_71] : memref<4x4xf32, #tpu.memory_space<smem>>
    %114 = vector.extract_strided_slice %111 {offsets = [1, 1], sizes = [16, 16], strides = [1, 1]} : vector<18x18xf32> to vector<16x16xf32>
    %115 = vector.broadcast %113 : f32 to vector<16x16xf32>
    %116 = arith.mulf %115, %114 : vector<16x16xf32>
    %c1_72 = arith.constant 1 : index
    %c3 = arith.constant 3 : index
    %117 = memref.load %arg11[%c1_72, %c3] : memref<4x4xf32, #tpu.memory_space<smem>>
    %118 = vector.extract_strided_slice %111 {offsets = [1, 0], sizes = [16, 16], strides = [1, 1]} : vector<18x18xf32> to vector<16x16xf32>
    %119 = vector.broadcast %117 : f32 to vector<16x16xf32>
    %120 = arith.mulf %119, %118 : vector<16x16xf32>
    %121 = arith.addf %116, %120 : vector<16x16xf32>
    %c3_73 = arith.constant 3 : index
    %c1_74 = arith.constant 1 : index
    %122 = memref.load %arg11[%c3_73, %c1_74] : memref<4x4xf32, #tpu.memory_space<smem>>
    %123 = vector.extract_strided_slice %111 {offsets = [0, 1], sizes = [16, 16], strides = [1, 1]} : vector<18x18xf32> to vector<16x16xf32>
    %124 = vector.broadcast %122 : f32 to vector<16x16xf32>
    %125 = arith.mulf %124, %123 : vector<16x16xf32>
    %126 = arith.addf %121, %125 : vector<16x16xf32>
    %c3_75 = arith.constant 3 : index
    %c3_76 = arith.constant 3 : index
    %127 = memref.load %arg11[%c3_75, %c3_76] : memref<4x4xf32, #tpu.memory_space<smem>>
    %128 = vector.extract_strided_slice %111 {offsets = [0, 0], sizes = [16, 16], strides = [1, 1]} : vector<18x18xf32> to vector<16x16xf32>
    %129 = vector.broadcast %127 : f32 to vector<16x16xf32>
    %130 = arith.mulf %129, %128 : vector<16x16xf32>
    %131 = arith.addf %126, %130 : vector<16x16xf32>
    %132 = vector.broadcast %112 : f32 to vector<16x16xf32>
    %133 = arith.addf %131, %132 : vector<16x16xf32>
    %c1_77 = arith.constant 1 : index
    %c0_78 = arith.constant 0 : index
    %134 = memref.load %arg11[%c1_77, %c0_78] : memref<4x4xf32, #tpu.memory_space<smem>>
    %135 = vector.extract_strided_slice %111 {offsets = [1, 2], sizes = [16, 16], strides = [1, 1]} : vector<18x18xf32> to vector<16x16xf32>
    %136 = vector.broadcast %134 : f32 to vector<16x16xf32>
    %137 = arith.mulf %136, %135 : vector<16x16xf32>
    %c1_79 = arith.constant 1 : index
    %c2 = arith.constant 2 : index
    %138 = memref.load %arg11[%c1_79, %c2] : memref<4x4xf32, #tpu.memory_space<smem>>
    %139 = vector.extract_strided_slice %111 {offsets = [1, 1], sizes = [16, 16], strides = [1, 1]} : vector<18x18xf32> to vector<16x16xf32>
    %140 = vector.broadcast %138 : f32 to vector<16x16xf32>
    %141 = arith.mulf %140, %139 : vector<16x16xf32>
    %142 = arith.addf %137, %141 : vector<16x16xf32>
    %c3_80 = arith.constant 3 : index
    %c0_81 = arith.constant 0 : index
    %143 = memref.load %arg11[%c3_80, %c0_81] : memref<4x4xf32, #tpu.memory_space<smem>>
    %144 = vector.extract_strided_slice %111 {offsets = [0, 2], sizes = [16, 16], strides = [1, 1]} : vector<18x18xf32> to vector<16x16xf32>
    %145 = vector.broadcast %143 : f32 to vector<16x16xf32>
    %146 = arith.mulf %145, %144 : vector<16x16xf32>
    %147 = arith.addf %142, %146 : vector<16x16xf32>
    %c3_82 = arith.constant 3 : index
    %c2_83 = arith.constant 2 : index
    %148 = memref.load %arg11[%c3_82, %c2_83] : memref<4x4xf32, #tpu.memory_space<smem>>
    %149 = vector.extract_strided_slice %111 {offsets = [0, 1], sizes = [16, 16], strides = [1, 1]} : vector<18x18xf32> to vector<16x16xf32>
    %150 = vector.broadcast %148 : f32 to vector<16x16xf32>
    %151 = arith.mulf %150, %149 : vector<16x16xf32>
    %152 = arith.addf %147, %151 : vector<16x16xf32>
    %153 = vector.broadcast %112 : f32 to vector<16x16xf32>
    %154 = arith.addf %152, %153 : vector<16x16xf32>
    %c0_84 = arith.constant 0 : index
    %c1_85 = arith.constant 1 : index
    %155 = memref.load %arg11[%c0_84, %c1_85] : memref<4x4xf32, #tpu.memory_space<smem>>
    %156 = vector.extract_strided_slice %111 {offsets = [2, 1], sizes = [16, 16], strides = [1, 1]} : vector<18x18xf32> to vector<16x16xf32>
    %157 = vector.broadcast %155 : f32 to vector<16x16xf32>
    %158 = arith.mulf %157, %156 : vector<16x16xf32>
    %c0_86 = arith.constant 0 : index
    %c3_87 = arith.constant 3 : index
    %159 = memref.load %arg11[%c0_86, %c3_87] : memref<4x4xf32, #tpu.memory_space<smem>>
    %160 = vector.extract_strided_slice %111 {offsets = [2, 0], sizes = [16, 16], strides = [1, 1]} : vector<18x18xf32> to vector<16x16xf32>
    %161 = vector.broadcast %159 : f32 to vector<16x16xf32>
    %162 = arith.mulf %161, %160 : vector<16x16xf32>
    %163 = arith.addf %158, %162 : vector<16x16xf32>
    %c2_88 = arith.constant 2 : index
    %c1_89 = arith.constant 1 : index
    %164 = memref.load %arg11[%c2_88, %c1_89] : memref<4x4xf32, #tpu.memory_space<smem>>
    %165 = vector.extract_strided_slice %111 {offsets = [1, 1], sizes = [16, 16], strides = [1, 1]} : vector<18x18xf32> to vector<16x16xf32>
    %166 = vector.broadcast %164 : f32 to vector<16x16xf32>
    %167 = arith.mulf %166, %165 : vector<16x16xf32>
    %168 = arith.addf %163, %167 : vector<16x16xf32>
    %c2_90 = arith.constant 2 : index
    %c3_91 = arith.constant 3 : index
    %169 = memref.load %arg11[%c2_90, %c3_91] : memref<4x4xf32, #tpu.memory_space<smem>>
    %170 = vector.extract_strided_slice %111 {offsets = [1, 0], sizes = [16, 16], strides = [1, 1]} : vector<18x18xf32> to vector<16x16xf32>
    %171 = vector.broadcast %169 : f32 to vector<16x16xf32>
    %172 = arith.mulf %171, %170 : vector<16x16xf32>
    %173 = arith.addf %168, %172 : vector<16x16xf32>
    %174 = vector.broadcast %112 : f32 to vector<16x16xf32>
    %175 = arith.addf %173, %174 : vector<16x16xf32>
    %c0_92 = arith.constant 0 : index
    %c0_93 = arith.constant 0 : index
    %176 = memref.load %arg11[%c0_92, %c0_93] : memref<4x4xf32, #tpu.memory_space<smem>>
    %177 = vector.extract_strided_slice %111 {offsets = [2, 2], sizes = [16, 16], strides = [1, 1]} : vector<18x18xf32> to vector<16x16xf32>
    %178 = vector.broadcast %176 : f32 to vector<16x16xf32>
    %179 = arith.mulf %178, %177 : vector<16x16xf32>
    %c0_94 = arith.constant 0 : index
    %c2_95 = arith.constant 2 : index
    %180 = memref.load %arg11[%c0_94, %c2_95] : memref<4x4xf32, #tpu.memory_space<smem>>
    %181 = vector.extract_strided_slice %111 {offsets = [2, 1], sizes = [16, 16], strides = [1, 1]} : vector<18x18xf32> to vector<16x16xf32>
    %182 = vector.broadcast %180 : f32 to vector<16x16xf32>
    %183 = arith.mulf %182, %181 : vector<16x16xf32>
    %184 = arith.addf %179, %183 : vector<16x16xf32>
    %c2_96 = arith.constant 2 : index
    %c0_97 = arith.constant 0 : index
    %185 = memref.load %arg11[%c2_96, %c0_97] : memref<4x4xf32, #tpu.memory_space<smem>>
    %186 = vector.extract_strided_slice %111 {offsets = [1, 2], sizes = [16, 16], strides = [1, 1]} : vector<18x18xf32> to vector<16x16xf32>
    %187 = vector.broadcast %185 : f32 to vector<16x16xf32>
    %188 = arith.mulf %187, %186 : vector<16x16xf32>
    %189 = arith.addf %184, %188 : vector<16x16xf32>
    %c2_98 = arith.constant 2 : index
    %c2_99 = arith.constant 2 : index
    %190 = memref.load %arg11[%c2_98, %c2_99] : memref<4x4xf32, #tpu.memory_space<smem>>
    %191 = vector.extract_strided_slice %111 {offsets = [1, 1], sizes = [16, 16], strides = [1, 1]} : vector<18x18xf32> to vector<16x16xf32>
    %192 = vector.broadcast %190 : f32 to vector<16x16xf32>
    %193 = arith.mulf %192, %191 : vector<16x16xf32>
    %194 = arith.addf %189, %193 : vector<16x16xf32>
    %195 = vector.broadcast %112 : f32 to vector<16x16xf32>
    %196 = arith.addf %194, %195 : vector<16x16xf32>
    %c0_100 = arith.constant 0 : index
    %c0_101 = arith.constant 0 : index
    %c0_102 = arith.constant 0 : index
    %c0_103 = arith.constant 0 : index
    %c0_104 = arith.constant 0 : index
    %197 = vector.load %arg14[%c0_100, %c0_101, %c0_102, %c0_103, %c0_104] : memref<1x2x2x16x16xf32, #tpu.memory_space<vmem>>, vector<1x1x1x16x16xf32>
    %198 = vector.shape_cast %197 : vector<1x1x1x16x16xf32> to vector<16x16xf32>
    %199 = vector.shape_cast %133 : vector<16x16xf32> to vector<1x1x1x16x16xf32>
    tpu.vector_store %arg14[%c0_100, %c0_101, %c0_102, %c0_103, %c0_104], %199 {strides = array<i32>} : memref<1x2x2x16x16xf32, #tpu.memory_space<vmem>>, vector<1x1x1x16x16xf32>,
    %c0_105 = arith.constant 0 : index
    %c0_106 = arith.constant 0 : index
    %c1_107 = arith.constant 1 : index
    %c0_108 = arith.constant 0 : index
    %c0_109 = arith.constant 0 : index
    %200 = vector.load %arg14[%c0_105, %c0_106, %c1_107, %c0_108, %c0_109] : memref<1x2x2x16x16xf32, #tpu.memory_space<vmem>>, vector<1x1x1x16x16xf32>
    %201 = vector.shape_cast %200 : vector<1x1x1x16x16xf32> to vector<16x16xf32>
    %202 = vector.shape_cast %154 : vector<16x16xf32> to vector<1x1x1x16x16xf32>
    tpu.vector_store %arg14[%c0_105, %c0_106, %c1_107, %c0_108, %c0_109], %202 {strides = array<i32>} : memref<1x2x2x16x16xf32, #tpu.memory_space<vmem>>, vector<1x1x1x16x16xf32>,
    %c0_110 = arith.constant 0 : index
    %c1_111 = arith.constant 1 : index
    %c0_112 = arith.constant 0 : index
    %c0_113 = arith.constant 0 : index
    %c0_114 = arith.constant 0 : index
    %203 = vector.load %arg14[%c0_110, %c1_111, %c0_112, %c0_113, %c0_114] : memref<1x2x2x16x16xf32, #tpu.memory_space<vmem>>, vector<1x1x1x16x16xf32>
    %204 = vector.shape_cast %203 : vector<1x1x1x16x16xf32> to vector<16x16xf32>
    %205 = vector.shape_cast %175 : vector<16x16xf32> to vector<1x1x1x16x16xf32>
    tpu.vector_store %arg14[%c0_110, %c1_111, %c0_112, %c0_113, %c0_114], %205 {strides = array<i32>} : memref<1x2x2x16x16xf32, #tpu.memory_space<vmem>>, vector<1x1x1x16x16xf32>,
    %c0_115 = arith.constant 0 : index
    %c1_116 = arith.constant 1 : index
    %c1_117 = arith.constant 1 : index
    %c0_118 = arith.constant 0 : index
    %c0_119 = arith.constant 0 : index
    %206 = vector.load %arg14[%c0_115, %c1_116, %c1_117, %c0_118, %c0_119] : memref<1x2x2x16x16xf32, #tpu.memory_space<vmem>>, vector<1x1x1x16x16xf32>
    %207 = vector.shape_cast %206 : vector<1x1x1x16x16xf32> to vector<16x16xf32>
    %208 = vector.shape_cast %196 : vector<16x16xf32> to vector<1x1x1x16x16xf32>
    tpu.vector_store %arg14[%c0_115, %c1_116, %c1_117, %c0_118, %c0_119], %208 {strides = array<i32>} : memref<1x2x2x16x16xf32, #tpu.memory_space<vmem>>, vector<1x1x1x16x16xf32>,
    return
  }
  func.func @transform_0(%arg0: i32) -> (i32, i32, i32, i32) {
    %c0_i32 = arith.constant 0 : i32
    %c0_i32_0 = arith.constant 0 : i32
    %c0_i32_1 = arith.constant 0 : i32
    %c0_i32_2 = arith.constant 0 : i32
    return %arg0, %c0_i32, %c0_i32_0, %c0_i32_1 : i32, i32, i32, i32
  }
  func.func @transform_1(%arg0: i32) -> (i32, i32, i32) {
    %c0_i32 = arith.constant 0 : i32
    %c0_i32_0 = arith.constant 0 : i32
    %c0_i32_1 = arith.constant 0 : i32
    return %arg0, %c0_i32, %c0_i32_0 : i32, i32, i32
  }
  func.func @transform_2(%arg0: i32) -> (i32, i32) {
    %c0_i32 = arith.constant 0 : i32
    %c0_i32_0 = arith.constant 0 : i32
    %c0_i32_1 = arith.constant 0 : i32
    return %c0_i32, %c0_i32_0 : i32, i32
  }
  func.func @transform_3(%arg0: i32) -> (i32, i32) {
    %c0_i32 = arith.constant 0 : i32
    %c0_i32_0 = arith.constant 0 : i32
    %c0_i32_1 = arith.constant 0 : i32
    return %c0_i32, %c0_i32_0 : i32, i32
  }
  func.func @transform_4(%arg0: i32) -> (i32, i32) {
    %c0_i32 = arith.constant 0 : i32
    %c0_i32_0 = arith.constant 0 : i32
    %c0_i32_1 = arith.constant 0 : i32
    return %c0_i32, %c0_i32_0 : i32, i32
  }
  func.func @transform_5(%arg0: i32) -> (i32, i32) {
    %c0_i32 = arith.constant 0 : i32
    %c0_i32_0 = arith.constant 0 : i32
    %c0_i32_1 = arith.constant 0 : i32
    return %c0_i32, %c0_i32_0 : i32, i32
  }
  func.func @transform_6(%arg0: i32) -> (i32, i32) {
    %c0_i32 = arith.constant 0 : i32
    %c0_i32_0 = arith.constant 0 : i32
    %c0_i32_1 = arith.constant 0 : i32
    return %c0_i32, %c0_i32_0 : i32, i32
  }
  func.func @transform_7(%arg0: i32) -> (i32, i32) {
    %c0_i32 = arith.constant 0 : i32
    %c0_i32_0 = arith.constant 0 : i32
    %c0_i32_1 = arith.constant 0 : i32
    return %c0_i32, %c0_i32_0 : i32, i32
  }
  func.func @transform_8(%arg0: i32) -> (i32, i32) {
    %c0_i32 = arith.constant 0 : i32
    %c0_i32_0 = arith.constant 0 : i32
    %c0_i32_1 = arith.constant 0 : i32
    return %c0_i32, %c0_i32_0 : i32, i32
  }
  func.func @transform_9(%arg0: i32) -> i32 {
    %c0_i32 = arith.constant 0 : i32
    %c0_i32_0 = arith.constant 0 : i32
    return %c0_i32 : i32
  }
  func.func @transform_10(%arg0: i32) -> (i32, i32) {
    %c0_i32 = arith.constant 0 : i32
    %c0_i32_0 = arith.constant 0 : i32
    %c0_i32_1 = arith.constant 0 : i32
    return %c0_i32, %c0_i32_0 : i32, i32
  }
  func.func @transform_11(%arg0: i32) -> i32 {
    %c0_i32 = arith.constant 0 : i32
    %c0_i32_0 = arith.constant 0 : i32
    return %c0_i32 : i32
  }
  func.func @transform_12(%arg0: i32) -> (i32, i32, i32) {
    %c0_i32 = arith.constant 0 : i32
    %c0_i32_0 = arith.constant 0 : i32
    %c0_i32_1 = arith.constant 0 : i32
    return %arg0, %c0_i32, %c0_i32_0 : i32, i32, i32
  }
  func.func @transform_13(%arg0: i32) -> (i32, i32, i32, i32, i32) {
    %c0_i32 = arith.constant 0 : i32
    %c0_i32_0 = arith.constant 0 : i32
    %c0_i32_1 = arith.constant 0 : i32
    %c0_i32_2 = arith.constant 0 : i32
    %c0_i32_3 = arith.constant 0 : i32
    return %arg0, %c0_i32, %c0_i32_0, %c0_i32_1, %c0_i32_2 : i32, i32, i32, i32, i32
  }
}

</mosaic_0001>

<bundles_post_ra>
// kernel: cost2disp_forward.1
= control target key start
LH: loop header
LB: loop body
LE: loop exit
PB: predicated region body
PF: predicated region fallthrough
CT: control target
= control target key end

     0   :  { %s17848_s0 = inlined_call_operand.vmem [shape: f32[2,16,16,8], index: 0, kind: input, shape index: {}]   ;;  %s17849_s1 = inlined_call_operand.vmem [shape: f32[2,16,16], index: 1, kind: input, shape index: {}]   ;;  %s17850_s2 = inlined_call_operand.vmem [shape: bf16[72,8], index: 2, kind: input, shape index: {}]   ;;  %s17851_s3 = inlined_call_operand.vmem [shape: f32[1,8], index: 3, kind: input, shape index: {}]   ;;  %s17852_s4 = inlined_call_operand.vmem [shape: bf16[144,8], index: 4, kind: input, shape index: {}]   ;;  %s17853_s5 = inlined_call_operand.vmem [shape: f32[1,8], index: 5, kind: input, shape index: {}]   ;;  %s17854_s6 = inlined_call_operand.vmem [shape: bf16[216,64], index: 6, kind: input, shape index: {}]   ;;  %s17855_s7 = inlined_call_operand.vmem [shape: f32[1,64], index: 7, kind: input, shape index: {}]   ;;  %s17856_s8 = inlined_call_operand.vmem [shape: f32[1,576], index: 8, kind: input, shape index: {}]   ;;  %s17857_s9 = inlined_call_operand.<no memory space> [shape: f32[1], index: 9, kind: input, shape index: {}]   ;;  %s17858_s10 = inlined_call_operand.vmem [shape: f32[4,4], index: 10, kind: input, shape index: {}]   ;;  %s17859_s11 = inlined_call_operand.<no memory space> [shape: f32[1], index: 11, kind: input, shape index: {}]   ;;  %s17860_s12 = inlined_call_operand.hbm [shape: f32[2,16,16], index: 12, kind: output, shape index: {0}]   ;;  %s17861_s13 = inlined_call_operand.vmem [shape: f32[2,2,2,16,16], index: 13, kind: output, shape index: {1}]  }
   0x1   :  { %18148 = sst [smem:[#allocation134_spill]] %s17848_s0 }
   0x2   :  { %18149 = sst [smem:[#allocation135_spill]] %s17849_s1 }
   0x3   :  { %19 = sst [smem:[#allocation5]] %s17857_s9 }
   0x4   :  { %20 = sst [smem:[#allocation6]] %s17859_s11 }
   0x5   :  { %21 = vsyncpa [#allocation9], 0 }
   0x6   :  { %22 = vsyncpa [#allocation8], 0 }
   0x7   :  { %24 = vsyncpa [#allocation8 + $0x1], 0  ;;  %s11259_s29 = smov 0   ;;  %s11261_s30 = smov 0  }
   0x8   :  { %s11263_s14 = smov 0   ;;  %s11265_s15 = smov 0  }
   0x9 LB: > { %s11280_s9 = sadd.s32 4294967295, %s11159_s15   ;;  %s8700_s11 = sadd.s32 4294967294, %s11159_s15   ;;  %s11159_s15 = sphi %s11265_s15, %s18861_s15   ;;  %s11155_s14 = sphi %s11263_s14, %s18860_s14   ;;  %s11151_s30 = sphi %s11261_s30, %s18859_s30   ;;  %s11147_s29 = sphi %s11259_s29, %s18858_s29  }
   0xa   : > { %s11284_s16 = sadd.s32 1, %s11159_s15   ;;  %s299_s17 = sadd.s32 1, %s11155_s14 }
   0xb   : > { %s296_s18 = ssub.s32 %s11159_s15, %s11284_s16  ;;  %p309_p0 = scmp.ne.s32.totalorder %s11155_s14, %s11151_s30 }
   0xc   : > { %p297_p1 = scmp.eq.s32.totalorder %s296_s18, 0  ;;  %p310_p2 = scmp.eq.s32.totalorder %s11280_s9, 1 }
   0xd   : > { %p315_p3 = scmp.ne.s32.totalorder %s11151_s30, %s11147_s29  ;;  %p316_p4 = scmp.eq.s32.totalorder %s8700_s11, 1 }
   0xe   : > { %s11295_s19 = scalar_select %p297_p1, %s11155_s14, %s299_s17  }
   0xf   : > { %p11297_p5 = por %p310_p2, %p309_p0  ;;  %p11301_p6 = por %p316_p4, %p315_p3 }
  0x10   : > { %p8701_p7 = scmp.ge.s32.totalorder %s11159_s15, 1  ;;  %p349_p8 = scmp.lt.s32.totalorder %s11159_s15, 3 }
  0x11   : > { %p8931_p9 = scmp.eq.s32.totalorder %s11280_s9, 0  ;;  %s386_s25 = sshll.u32 %s17858_s10, 4  ;;  %s387_s25 = int_to_ptr.vmem [resolvable:$true] %s386_s25 }
  0x12   : > { %p11308_p10 = pnand %p8701_p7, %p349_p8  ;;  %s11080_s26 = scalar_lea.vmem %s387_s25, 64 }
  0x13   : > { %p11081_p13 = scmp.ne.s32.totalorder %s387_s25, %s11080_s26  ;;  %p11088_p3 = scmp.lt.s32.totalorder %s387_s25, %s387_s25 }
  0x14   : > { %p8923_p11 = pneg %p11308_p10  ;;  %p11089_p4 = scmp.lt.s32.totalorder %s11080_s26, %s11080_s26 }
  0x16   : > { %p8924_p12 = pnand %p8931_p9, %p8923_p11  ;;  %p11090_p7 = por %p11089_p4, %p11088_p3 }
  0x18   : > { %p11082_p0 = pneg %p8924_p12 }
  0x1a   : > { %p11083_p1 = pnand %p11082_p0, %p11081_p13 }
  0x1c   : > { %p11084_p2 = pneg %p11083_p1 }
  0x1e   : > { %p11091_p8 = pnand %p11090_p7, %p11084_p2 }
  0x20   : > { %11094 = shalt.err (!%p11091_p8)
}
  0x21   : > { %s11161_s27 = smov [#allocation7]   ;;  %418 = sbr.rel (%p11308_p10) target bundleno = 2685 (0xa7d), region = 68 }
  0x22   : > { %8926 = dma.vmem_to_smem (!%p8924_p12), %s387_s25, 64, %s11161_s27, [#allocation9]  }
  0x26   : > { %11138 = dma.done.wait (%p8931_p9), [#allocation9], 64  }
  0x27   : > { %11140 = vsyncadd (%p8931_p9), [#allocation9], 4294967232 }
  0x28   : > { %424 = sfence }
  0x29   : > { %p473_p11 = scmp.lt.s32.totalorder %s11280_s9, 1  ;;  %vm489_vm0 = vcmask 195584   ;;  %vm492_vm1 = vcmask 189440   ;;  %v17862_v0 = vmov 0.0   ;;  %s18153_s0 = sld [smem:[#allocation134_spill]]  ;;  %vm998_vm2 = vcmask 1046528  }
  0x2a   : > { %497 = vst.msk [vmem:[#allocation2 + $0x30] sm:$0xff] %vm489_vm0, %v17862_v0  ;;  %498 = vst.msk [vmem:[#allocation2 + $0x38] sm:$0xff] %vm489_vm0, %v17862_v0  ;;  %s18000_s23 = smov 16   ;;  %s11164_s24 = smov 112   ;;  %vm767_vm3 = vcmask 195712   ;;  %vm1175_vm4 = vcmask 1045504  }
  0x2b   : > { %490 = vst.msk [vmem:[#allocation2] sm:$0xff] %vm489_vm0, %v17862_v0  ;;  %491 = vst.msk [vmem:[#allocation2 + $0x8] sm:$0xff] %vm489_vm0, %v17862_v0  ;;  %s11437_s28 = scalar_select %p473_p11, %s11280_s9, 1  ;;  %vm2260_vm5 = vcmask 1043456   ;;  %vm545_vm6 = vcmask 523264   ;;  %vm1890_vm7 = vcmask 64512  }
  0x2c   : > { %494 = vst.msk [vmem:[#allocation2 + $0x18] sm:$0xff] %vm489_vm0, %v17862_v0  ;;  %495 = vst.msk [vmem:[#allocation2 + $0x20] sm:$0xff] %vm489_vm0, %v17862_v0  ;;  %s18024_s25 = smov 120   ;;  %s18023_s26 = smov 8   ;;  %vm1923_vm8 = vcmask 130048   ;;  %vm1988_vm9 = vcmask 261120  }
  0x2d   : > { %500 = vst.msk [vmem:[#allocation2 + $0x48] sm:$0xff] %vm489_vm0, %v17862_v0  ;;  %501 = vst.msk [vmem:[#allocation2 + $0x50] sm:$0xff] %vm489_vm0, %v17862_v0  ;;  %s8821_s11 = sshll.u32 %s11437_s28, 8  ;;  %s18026_s27 = smov 24   ;;  %vm2021_vm10 = vcmask 326656   ;;  %vm2054_vm11 = vcmask 392192  }
  0x2e   : > { %503 = vst.msk [vmem:[#allocation2 + $0x60] sm:$0xff] %vm489_vm0, %v17862_v0  ;;  %504 = vst.msk [vmem:[#allocation2 + $0x68] sm:$0xff] %vm489_vm0, %v17862_v0  ;;  %s18006_s17 = smov 40   ;;  %vm2087_vm12 = vcmask 457728   ;;  %vm2211_vm13 = vcmask 588800   ;;  %s18008_s18 = smov 104  }
  0x2f   : > { %506 = vst.msk [vmem:[#allocation2 + $0x78] sm:$0xff] %vm489_vm0, %v17862_v0  ;;  %507 = vst.msk [vmem:[#allocation2 + $0x80] sm:$0xff] %vm489_vm0, %v17862_v0  ;;  %s11443_s22 = scalar_lea.vmem %s18153_s0, %s8821_s11  ;;  %s11168_s11 = smov 32  }
  0x30   : > { %509 = vst.msk [vmem:[#allocation2 + $0x90] sm:$0xff] %vm489_vm0, %v17862_v0  ;;  %510 = vst.msk [vmem:[#allocation2 + $0x98] sm:$0xff] %vm489_vm0, %v17862_v0  ;;  %v608_v1 = vld [vmem:[%s11443_s22 + $0x10] sm:$0xff]  ;;  %v606_v2 = vld [vmem:[%s11443_s22] sm:$0xff]  ;;  %s18491_s1 = sld [smem:[#allocation135_spill]] }
  0x31   : > { %512 = vst.msk [vmem:[#allocation2 + $0xa8] sm:$0xff] %vm489_vm0, %v17862_v0  ;;  %513 = vst.msk [vmem:[#allocation2 + $0xb0] sm:$0xff] %vm489_vm0, %v17862_v0  ;;  %674 = vrot.lane.b32.xlu1 %v608_v1, %s18000_s23  ;;  %670 = vrot.lane.b32.xlu0 %v606_v2, %s18000_s23  ;;  %v609_v3 = vld [vmem:[%s11443_s22 + $0x18] sm:$0xff]  ;;  %v607_v4 = vld [vmem:[%s11443_s22 + $0x8] sm:$0xff]  ;;  %s8804_s0 = sld [smem:[#allocation7 + $0x2]] }
  0x32   : > { %515 = vst.msk [vmem:[#allocation2 + $0xc0] sm:$0xff] %vm489_vm0, %v17862_v0  ;;  %516 = vst.msk [vmem:[#allocation2 + $0xc8] sm:$0xff] %vm489_vm0, %v17862_v0  ;;  %v611_v5 = vld [vmem:[%s11443_s22 + $0x28] sm:$0xff]  ;;  %v610_v6 = vld [vmem:[%s11443_s22 + $0x20] sm:$0xff] }
  0x33   : > { %518 = vst.msk [vmem:[#allocation2 + $0xd8] sm:$0xff] %vm489_vm0, %v17862_v0  ;;  %519 = vst.msk [vmem:[#allocation2 + $0xe0] sm:$0xff] %vm489_vm0, %v17862_v0  ;;  %v613_v7 = vld [vmem:[%s11443_s22 + $0x38] sm:$0xff]  ;;  %v612_v8 = vld [vmem:[%s11443_s22 + $0x30] sm:$0xff] }
  0x34   : > { %521 = vst.msk [vmem:[#allocation2 + $0xf0] sm:$0xff] %vm489_vm0, %v17862_v0  ;;  %522 = vst.msk [vmem:[#allocation2 + $0xf8] sm:$0xff] %vm489_vm0, %v17862_v0  ;;  %v615_v9 = vld [vmem:[%s11443_s22 + $0x48] sm:$0xff]  ;;  %v614_v10 = vld [vmem:[%s11443_s22 + $0x40] sm:$0xff] }
  0x35   : > { %524 = vst.msk [vmem:[#allocation2 + $0x108] sm:$0xff] %vm489_vm0, %v17862_v0  ;;  %525 = vst.msk [vmem:[#allocation2 + $0x110] sm:$0xff] %vm489_vm0, %v17862_v0  ;;  %676 = vrot.lane.b32.xlu1 %v609_v3, %s18000_s23  ;;  %672 = vrot.lane.b32.xlu0 %v607_v4, %s18000_s23  ;;  %v617_v11 = vld [vmem:[%s11443_s22 + $0x58] sm:$0xff]  ;;  %v616_v12 = vld [vmem:[%s11443_s22 + $0x50] sm:$0xff] }
  0x36   : > { %527 = vst.msk [vmem:[#allocation2 + $0x120] sm:$0xff] %vm489_vm0, %v17862_v0  ;;  %528 = vst.msk [vmem:[#allocation2 + $0x128] sm:$0xff] %vm489_vm0, %v17862_v0  ;;  %v619_v13 = vld [vmem:[%s11443_s22 + $0x68] sm:$0xff]  ;;  %v618_v14 = vld [vmem:[%s11443_s22 + $0x60] sm:$0xff] }
  0x37   : > { %530 = vst.msk [vmem:[#allocation2 + $0x138] sm:$0xff] %vm489_vm0, %v17862_v0  ;;  %531 = vst.msk [vmem:[#allocation2 + $0x140] sm:$0xff] %vm489_vm0, %v17862_v0  ;;  %v621_v15 = vld [vmem:[%s11443_s22 + $0x78] sm:$0xff]  ;;  %v620_v16 = vld [vmem:[%s11443_s22 + $0x70] sm:$0xff] }
  0x38   : > { %533 = vst.msk [vmem:[#allocation2 + $0x150] sm:$0xff] %vm489_vm0, %v17862_v0  ;;  %534 = vst.msk [vmem:[#allocation2 + $0x158] sm:$0xff] %vm489_vm0, %v17862_v0  ;;  %v623_v17 = vld [vmem:[%s11443_s22 + $0x88] sm:$0xff]  ;;  %v622_v18 = vld [vmem:[%s11443_s22 + $0x80] sm:$0xff] }
  0x39   : > { %536 = vst.msk [vmem:[#allocation2 + $0x168] sm:$0xff] %vm489_vm0, %v17862_v0  ;;  %537 = vst.msk [vmem:[#allocation2 + $0x170] sm:$0xff] %vm489_vm0, %v17862_v0  ;;  %680 = vrot.lane.b32.xlu1 %v611_v5, %s18000_s23  ;;  %678 = vrot.lane.b32.xlu0 %v610_v6, %s18000_s23  ;;  %v625_v19 = vld [vmem:[%s11443_s22 + $0x98] sm:$0xff]  ;;  %v624_v20 = vld [vmem:[%s11443_s22 + $0x90] sm:$0xff] }
  0x3a   : > { %539 = vst.msk [vmem:[#allocation2 + $0x180] sm:$0xff] %vm489_vm0, %v17862_v0  ;;  %540 = vst.msk [vmem:[#allocation2 + $0x188] sm:$0xff] %vm489_vm0, %v17862_v0  ;;  %v627_v21 = vld [vmem:[%s11443_s22 + $0xa8] sm:$0xff]  ;;  %v626_v22 = vld [vmem:[%s11443_s22 + $0xa0] sm:$0xff] }
  0x3b   : > { %542 = vst.msk [vmem:[#allocation2 + $0x198] sm:$0xff] %vm489_vm0, %v17862_v0  ;;  %543 = vst.msk [vmem:[#allocation2 + $0x1a0] sm:$0xff] %vm489_vm0, %v17862_v0  ;;  %v629_v23 = vld [vmem:[%s11443_s22 + $0xb8] sm:$0xff]  ;;  %v628_v24 = vld [vmem:[%s11443_s22 + $0xb0] sm:$0xff] }
  0x3c   : > { %499 = vst.msk [vmem:[#allocation2 + $0x40] sm:$0x3] %vm492_vm1, %v17862_v0  ;;  %493 = vst.msk [vmem:[#allocation2 + $0x10] sm:$0x3] %vm492_vm1, %v17862_v0  ;;  %v631_v25 = vld [vmem:[%s11443_s22 + $0xc8] sm:$0xff]  ;;  %v630_v26 = vld [vmem:[%s11443_s22 + $0xc0] sm:$0xff] }
  0x3d   : > { %496 = vst.msk [vmem:[#allocation2 + $0x28] sm:$0x3] %vm492_vm1, %v17862_v0  ;;  %502 = vst.msk [vmem:[#allocation2 + $0x58] sm:$0x3] %vm492_vm1, %v17862_v0  ;;  %684 = vrot.lane.b32.xlu1 %v613_v7, %s18000_s23  ;;  %682 = vrot.lane.b32.xlu0 %v612_v8, %s18000_s23  ;;  %v633_v27 = vld [vmem:[%s11443_s22 + $0xd8] sm:$0xff]  ;;  %v632_v28 = vld [vmem:[%s11443_s22 + $0xd0] sm:$0xff] }
  0x3e   : > { %505 = vst.msk [vmem:[#allocation2 + $0x70] sm:$0x3] %vm492_vm1, %v17862_v0  ;;  %508 = vst.msk [vmem:[#allocation2 + $0x88] sm:$0x3] %vm492_vm1, %v17862_v0  ;;  %v635_v29 = vld [vmem:[%s11443_s22 + $0xe8] sm:$0xff]  ;;  %v634_v30 = vld [vmem:[%s11443_s22 + $0xe0] sm:$0xff] }
  0x3f   : > { %511 = vst.msk [vmem:[#allocation2 + $0xa0] sm:$0x3] %vm492_vm1, %v17862_v0  ;;  %514 = vst.msk [vmem:[#allocation2 + $0xb8] sm:$0x3] %vm492_vm1, %v17862_v0  ;;  %v11503_v31 = vld [vmem:[#allocation2] sm:$0xff]  ;;  %v11505_v32 = vld [vmem:[#allocation2 + $0x8] sm:$0xff] }
  0x40   : > { %517 = vst.msk [vmem:[#allocation2 + $0xd0] sm:$0x3] %vm492_vm1, %v17862_v0  ;;  %520 = vst.msk [vmem:[#allocation2 + $0xe8] sm:$0x3] %vm492_vm1, %v17862_v0  ;;  %v636_v34 = vld [vmem:[%s11443_s22 + $0xf0] sm:$0xff]  ;;  %v637_v35 = vld [vmem:[%s11443_s22 + $0xf8] sm:$0xff]  ;;  %v8987_v39 = vpack.i.bf16 %v11505_v32, %v11503_v31 }
  0x41   : > { %523 = vst.msk [vmem:[#allocation2 + $0x100] sm:$0x3] %vm492_vm1, %v17862_v0  ;;  %526 = vst.msk [vmem:[#allocation2 + $0x118] sm:$0x3] %vm492_vm1, %v17862_v0  ;;  %688 = vrot.lane.b32.xlu1 %v615_v9, %s18000_s23  ;;  %686 = vrot.lane.b32.xlu0 %v614_v10, %s18000_s23  ;;  %v1000_v36 = vrot.slane %v11505_v32, 1  ;;  %v999_v37 = vrot.slane %v11503_v31, 1 }
  0x42   : > { %529 = vst.msk [vmem:[#allocation2 + $0x130] sm:$0x3] %vm492_vm1, %v17862_v0  ;;  %532 = vst.msk [vmem:[#allocation2 + $0x148] sm:$0x3] %vm492_vm1, %v17862_v0  ;;  %s18477_s22 = smov 104  }
  0x43   : > { %535 = vst.msk [vmem:[#allocation2 + $0x160] sm:$0x3] %vm492_vm1, %v17862_v0  ;;  %538 = vst.msk [vmem:[#allocation2 + $0x178] sm:$0x3] %vm492_vm1, %v17862_v0  ;;  %v11507_v33 = vld [vmem:[#allocation2 + $0x10] sm:$0x3]  ;;  %v1001_v40 = vsel %vm998_vm2, %v999_v37, %v1000_v36 }
  0x44   : > { %541 = vst.msk [vmem:[#allocation2 + $0x190] sm:$0x3] %vm492_vm1, %v17862_v0  ;;  %544 = vst.msk [vmem:[#allocation2 + $0x1a8] sm:$0x3] %vm492_vm1, %v17862_v0  ;;  %v1002_v38 = vrot.slane %v11507_v33, 1 }
  0x45   : > { %692 = vrot.lane.b32.xlu1 %v617_v11, %s18000_s23  ;;  %690 = vrot.lane.b32.xlu0 %v616_v12, %s18000_s23 }
  0x46   : > { %v1003_v41 = vsel %vm998_vm2, %v1000_v36, %v1002_v38 }
  0x47   : > { %v8992_v42 = vpack.i.bf16 %v1003_v41, %v1001_v40 }
  0x49   : > { %696 = vrot.lane.b32.xlu1 %v619_v13, %s18000_s23  ;;  %694 = vrot.lane.b32.xlu0 %v618_v14, %s18000_s23 }
  0x4d   : > { %700 = vrot.lane.b32.xlu1 %v621_v15, %s18000_s23  ;;  %698 = vrot.lane.b32.xlu0 %v620_v16, %s18000_s23 }
  0x51   : > { %704 = vrot.lane.b32.xlu1 %v623_v17, %s18000_s23  ;;  %702 = vrot.lane.b32.xlu0 %v622_v18, %s18000_s23 }
  0x55   : > { %708 = vrot.lane.b32.xlu1 %v625_v19, %s18000_s23  ;;  %706 = vrot.lane.b32.xlu0 %v624_v20, %s18000_s23 }
  0x59   : > { %712 = vrot.lane.b32.xlu1 %v627_v21, %s18000_s23  ;;  %710 = vrot.lane.b32.xlu0 %v626_v22, %s18000_s23 }
  0x5d   : > { %716 = vrot.lane.b32.xlu1 %v629_v23, %s18000_s23  ;;  %714 = vrot.lane.b32.xlu0 %v628_v24, %s18000_s23 }
  0x61   : > { %720 = vrot.lane.b32.xlu1 %v631_v25, %s18000_s23  ;;  %718 = vrot.lane.b32.xlu0 %v630_v26, %s18000_s23 }
  0x65   : > { %724 = vrot.lane.b32.xlu1 %v633_v27, %s18000_s23  ;;  %722 = vrot.lane.b32.xlu0 %v632_v28, %s18000_s23 }
  0x69   : > { %728 = vrot.lane.b32.xlu1 %v635_v29, %s18000_s23  ;;  %726 = vrot.lane.b32.xlu0 %v634_v30, %s18000_s23  ;;  %v1177_v29 = vrot.slane %v11505_v32, 2  ;;  %v1176_v30 = vrot.slane %v11503_v31, 2 }
  0x6b   : > { %v11650_v31 = vsel %vm1175_vm4, %v1176_v30, %v1177_v29 }
  0x6c   : > { %18174 = vst [vmem:[#allocation33_spill] sm:$0xff] %v11650_v31 }
  0x6d   : > { %730 = vrot.lane.b32.xlu0 %v636_v34, %s18000_s23  ;;  %732 = vrot.lane.b32.xlu1 %v637_v35, %s18000_s23  ;;  %v1179_v34 = vrot.slane %v11507_v33, 2 }
  0x6f   : > { %v11655_v33 = vsel %vm1175_vm4, %v1177_v29, %v1179_v34 }
  0x70   : > { %18175 = vst [vmem:[#allocation34_spill] sm:$0xff] %v11655_v33 }
  0x71   : > { %8988 = vrot.lane.b32.xlu0 %v8987_v39, %s11164_s24 }
  0x75   : > { %8993 = vrot.lane.b32.xlu0 %v8992_v42, %s18024_s25 }
  0xa3   : > { %v675_v43 = vpop.permute.xlu1 %674  ;;  %v671_v44 = vpop.permute.xlu0 %670 }
  0xa4   : > { %770 = vst.msk [vmem:[#allocation2 + $0x31] sm:$0xff] %vm767_vm3, %v675_v43  ;;  %768 = vst.msk [vmem:[#allocation2 + $0x19] sm:$0xff] %vm767_vm3, %v671_v44 }
  0xa7   : > { %v677_v45 = vpop.permute.xlu1 %676  ;;  %v673_v46 = vpop.permute.xlu0 %672 }
  0xa8   : > { %771 = vst.msk [vmem:[#allocation2 + $0x39] sm:$0xff] %vm767_vm3, %v677_v45  ;;  %769 = vst.msk [vmem:[#allocation2 + $0x21] sm:$0xff] %vm767_vm3, %v673_v46 }
  0xab   : > { %v681_v47 = vpop.permute.xlu1 %680  ;;  %v679_v48 = vpop.permute.xlu0 %678  ;;  %v11530_v49 = vld [vmem:[#allocation2 + $0x30] sm:$0xff]  ;;  %v11534_v53 = vld [vmem:[#allocation2 + $0x18] sm:$0xff] }
  0xac   : > { %773 = vst.msk [vmem:[#allocation2 + $0x51] sm:$0xff] %vm767_vm3, %v681_v47  ;;  %772 = vst.msk [vmem:[#allocation2 + $0x49] sm:$0xff] %vm767_vm3, %v679_v48 }
  0xad   : > { %18154 = vst [vmem:[#allocation13_spill] sm:$0xff] %v11530_v49 }
  0xaf   : > { %v685_v50 = vpop.permute.xlu1 %684  ;;  %v683_v51 = vpop.permute.xlu0 %682  ;;  %v11532_v52 = vld [vmem:[#allocation2 + $0x38] sm:$0xff]  ;;  %v11536_v54 = vld [vmem:[#allocation2 + $0x20] sm:$0xff]  ;;  %v11669_v45 = vld [vmem:[#allocation2 + $0x28] sm:$0x3] }
  0xb0   : > { %18155 = vst [vmem:[#allocation14_spill] sm:$0xff] %v11532_v52  ;;  %775 = vst.msk [vmem:[#allocation2 + $0x69] sm:$0xff] %vm767_vm3, %v685_v50  ;;  %v11542_v55 = vpack.i.bf16 %v11532_v52, %v11530_v49  ;;  %v11546_v56 = vpack.i.bf16 %v11536_v54, %v11534_v53  ;;  %v11667_v44 = vld [vmem:[#allocation2 + $0x40] sm:$0x3] }
  0xb1   : > { %774 = vst.msk [vmem:[#allocation2 + $0x61] sm:$0xff] %vm767_vm3, %v683_v51  ;;  %18178 = vst [vmem:[#allocation37_spill] sm:$0xff] %v11667_v44  ;;  %v1010_v51 = vrot.slane %v11532_v52, 1 }
  0xb2   : > { %18156 = vst [vmem:[#allocation15_spill] sm:$0xff] %v11542_v55  ;;  %9003 = vrot.lane.b32.xlu0 %v11542_v55, %s11164_s24  ;;  %8998 = vrot.lane.b32.xlu1 %v11546_v56, %s11164_s24 }
  0xb3   : > { %v689_v57 = vpop.permute.xlu1 %688  ;;  %v687_v58 = vpop.permute.xlu0 %686  ;;  %v11552_v59 = vld [vmem:[#allocation2 + $0x48] sm:$0xff]  ;;  %v11554_v60 = vld [vmem:[#allocation2 + $0x50] sm:$0xff] }
  0xb4   : > { %18157 = vst [vmem:[#allocation16_spill] sm:$0xff] %v11552_v59  ;;  %18158 = vst [vmem:[#allocation17_spill] sm:$0xff] %v11554_v60  ;;  %v11560_v61 = vpack.i.bf16 %v11554_v60, %v11552_v59  ;;  %v1015_v34 = vrot.slane %v11554_v60, 1 }
  0xb5   : > { %777 = vst.msk [vmem:[#allocation2 + $0x81] sm:$0xff] %vm767_vm3, %v689_v57  ;;  %776 = vst.msk [vmem:[#allocation2 + $0x79] sm:$0xff] %vm767_vm3, %v687_v58  ;;  %v1012_v57 = vrot.slane %v11667_v44, 1 }
  0xb6   : > { %18159 = vst [vmem:[#allocation18_spill] sm:$0xff] %v11560_v61  ;;  %9008 = vrot.lane.b32.xlu1 %v11560_v61, %s11164_s24 }
  0xb7   : > { %v693_v62 = vpop.permute.xlu1 %692  ;;  %v691_v63 = vpop.permute.xlu0 %690  ;;  %v1013_v29 = vsel %vm998_vm2, %v1010_v51, %v1012_v57 }
  0xb8   : > { %v11564_v1 = vld [vmem:[#allocation2 + $0x60] sm:$0xff]  ;;  %v11566_v2 = vld [vmem:[#allocation2 + $0x68] sm:$0xff]  ;;  %779 = vst.msk [vmem:[#allocation2 + $0x99] sm:$0xff] %vm767_vm3, %v693_v62  ;;  %778 = vst.msk [vmem:[#allocation2 + $0x91] sm:$0xff] %vm767_vm3, %v691_v63  ;;  %v1005_v62 = vrot.slane %v11536_v54, 1  ;;  %v1007_v63 = vrot.slane %v11669_v45, 1 }
  0xb9   : > { %18160 = vst [vmem:[#allocation19_spill] sm:$0xff] %v11564_v1  ;;  %18161 = vst [vmem:[#allocation20_spill] sm:$0xff] %v11566_v2  ;;  %v11572_v3 = vpack.i.bf16 %v11566_v2, %v11564_v1 }
  0xbb   : > { %9013 = vrot.lane.b32.xlu0 %v11572_v3, %s11164_s24  ;;  %v697_v4 = vpop.permute.xlu1 %696  ;;  %v695_v5 = vpop.permute.xlu0 %694 }
  0xbc   : > { %v11576_v6 = vld [vmem:[#allocation2 + $0x78] sm:$0xff]  ;;  %v11578_v7 = vld [vmem:[#allocation2 + $0x80] sm:$0xff]  ;;  %781 = vst.msk [vmem:[#allocation2 + $0xb1] sm:$0xff] %vm767_vm3, %v697_v4  ;;  %780 = vst.msk [vmem:[#allocation2 + $0xa9] sm:$0xff] %vm767_vm3, %v695_v5  ;;  %v1009_v5 = vrot.slane %v11530_v49, 1 }
  0xbd   : > { %18162 = vst [vmem:[#allocation21_spill] sm:$0xff] %v11576_v6  ;;  %18163 = vst [vmem:[#allocation22_spill] sm:$0xff] %v11578_v7  ;;  %v11584_v8 = vpack.i.bf16 %v11578_v7, %v11576_v6  ;;  %v11687_v4 = vld [vmem:[#allocation2 + $0x58] sm:$0x3] }
  0xbe   : > { %18181 = vst [vmem:[#allocation40_spill] sm:$0xff] %v11687_v4 }
  0xbf   : > { %9018 = vrot.lane.b32.xlu1 %v11584_v8, %s11164_s24  ;;  %v701_v9 = vpop.permute.xlu1 %700  ;;  %v699_v10 = vpop.permute.xlu0 %698  ;;  %v11588_v11 = vld [vmem:[#allocation2 + $0x90] sm:$0xff]  ;;  %v11590_v12 = vld [vmem:[#allocation2 + $0x98] sm:$0xff]  ;;  %v11702_v30 = vld [vmem:[#allocation2 + $0xa0] sm:$0x3] }
  0xc0   : > { %18164 = vst [vmem:[#allocation23_spill] sm:$0xff] %v11588_v11  ;;  %18165 = vst [vmem:[#allocation24_spill] sm:$0xff] %v11590_v12  ;;  %v11596_v13 = vpack.i.bf16 %v11590_v12, %v11588_v11  ;;  %v1029_v57 = vrot.slane %v11588_v11, 1 }
  0xc1   : > { %783 = vst.msk [vmem:[#allocation2 + $0xc9] sm:$0xff] %vm767_vm3, %v701_v9  ;;  %782 = vst.msk [vmem:[#allocation2 + $0xc1] sm:$0xff] %vm767_vm3, %v699_v10  ;;  %v11692_v9 = vld [vmem:[#allocation2 + $0x70] sm:$0x3]  ;;  %v1004_v10 = vrot.slane %v11534_v53, 1 }
  0xc2   : > { %9023 = vrot.lane.b32.xlu0 %v11596_v13, %s11164_s24  ;;  %18182 = vst [vmem:[#allocation41_spill] sm:$0xff] %v11692_v9  ;;  %18184 = vst [vmem:[#allocation43_spill] sm:$0xff] %v11702_v30 }
  0xc3   : > { %v705_v14 = vpop.permute.xlu1 %704  ;;  %v703_v15 = vpop.permute.xlu0 %702  ;;  %v11600_v16 = vld [vmem:[#allocation2 + $0xa8] sm:$0xff]  ;;  %v11602_v17 = vld [vmem:[#allocation2 + $0xb0] sm:$0xff] }
  0xc4   : > { %18166 = vst [vmem:[#allocation25_spill] sm:$0xff] %v11600_v16  ;;  %18167 = vst [vmem:[#allocation26_spill] sm:$0xff] %v11602_v17  ;;  %v11608_v18 = vpack.i.bf16 %v11602_v17, %v11600_v16  ;;  %v1035_v49 = vrot.slane %v11602_v17, 1 }
  0xc5   : > { %785 = vst.msk [vmem:[#allocation2 + $0xe1] sm:$0xff] %vm767_vm3, %v705_v14  ;;  %784 = vst.msk [vmem:[#allocation2 + $0xd9] sm:$0xff] %vm767_vm3, %v703_v15  ;;  %v1014_v14 = vrot.slane %v11552_v59, 1 }
  0xc6   : > { %9028 = vrot.lane.b32.xlu1 %v11608_v18, %s11164_s24 }
  0xc7   : > { %v709_v19 = vpop.permute.xlu1 %708  ;;  %v707_v20 = vpop.permute.xlu0 %706  ;;  %v1016_v33 = vsel %vm998_vm2, %v1014_v14, %v1015_v34 }
  0xc8   : > { %v11612_v21 = vld [vmem:[#allocation2 + $0xc0] sm:$0xff]  ;;  %v11614_v22 = vld [vmem:[#allocation2 + $0xc8] sm:$0xff]  ;;  %787 = vst.msk [vmem:[#allocation2 + $0xf9] sm:$0xff] %vm767_vm3, %v709_v19  ;;  %786 = vst.msk [vmem:[#allocation2 + $0xf1] sm:$0xff] %vm767_vm3, %v707_v20 }
  0xc9   : > { %18168 = vst [vmem:[#allocation27_spill] sm:$0xff] %v11612_v21  ;;  %18169 = vst [vmem:[#allocation28_spill] sm:$0xff] %v11614_v22  ;;  %v11620_v23 = vpack.i.bf16 %v11614_v22, %v11612_v21 }
  0xcb   : > { %9033 = vrot.lane.b32.xlu0 %v11620_v23, %s11164_s24  ;;  %v713_v24 = vpop.permute.xlu1 %712  ;;  %v711_v25 = vpop.permute.xlu0 %710 }
  0xcc   : > { %v11624_v26 = vld [vmem:[#allocation2 + $0xd8] sm:$0xff]  ;;  %v11626_v27 = vld [vmem:[#allocation2 + $0xe0] sm:$0xff]  ;;  %789 = vst.msk [vmem:[#allocation2 + $0x111] sm:$0xff] %vm767_vm3, %v713_v24  ;;  %788 = vst.msk [vmem:[#allocation2 + $0x109] sm:$0xff] %vm767_vm3, %v711_v25  ;;  %v1011_v25 = vsel %vm998_vm2, %v1009_v5, %v1010_v51  ;;  %v1022_v51 = vrot.slane %v11692_v9, 1  ;;  %v1030_v5 = vrot.slane %v11590_v12, 1 }
  0xcd   : > { %18170 = vst [vmem:[#allocation29_spill] sm:$0xff] %v11624_v26  ;;  %18171 = vst [vmem:[#allocation30_spill] sm:$0xff] %v11626_v27  ;;  %v11632_v28 = vpack.i.bf16 %v11626_v27, %v11624_v26  ;;  %v11734_v12 = vld [vmem:[#allocation2 + $0xb8] sm:$0x3] }
  0xce   : > { %18188 = vst [vmem:[#allocation47_spill] sm:$0xff] %v11734_v12 }
  0xcf   : > { %9038 = vrot.lane.b32.xlu1 %v11632_v28, %s11164_s24  ;;  %v717_v35 = vpop.permute.xlu1 %716  ;;  %v715_v36 = vpop.permute.xlu0 %714  ;;  %v11639_v37 = vld [vmem:[#allocation2 + $0xf0] sm:$0xff]  ;;  %v11641_v38 = vld [vmem:[#allocation2 + $0xf8] sm:$0xff] }
  0xd0   : > { %18172 = vst [vmem:[#allocation31_spill] sm:$0xff] %v11639_v37  ;;  %18173 = vst [vmem:[#allocation32_spill] sm:$0xff] %v11641_v38  ;;  %v11647_v32 = vpack.i.bf16 %v11641_v38, %v11639_v37 }
  0xd1   : > { %791 = vst.msk [vmem:[#allocation2 + $0x129] sm:$0xff] %vm767_vm3, %v717_v35  ;;  %790 = vst.msk [vmem:[#allocation2 + $0x121] sm:$0xff] %vm767_vm3, %v715_v36  ;;  %v1017_v35 = vrot.slane %v11687_v4, 1 }
  0xd2   : > { %9043 = vrot.lane.b32.xlu0 %v11647_v32, %s11164_s24 }
  0xd3   : > { %v721_v39 = vpop.permute.xlu1 %720  ;;  %v719_v40 = vpop.permute.xlu0 %718  ;;  %v11657_v41 = vld [vmem:[#allocation2 + $0x108] sm:$0xff]  ;;  %v11659_v42 = vld [vmem:[#allocation2 + $0x110] sm:$0xff]  ;;  %v1018_v31 = vsel %vm998_vm2, %v1015_v34, %v1017_v35  ;;  %v1031_v35 = vsel %vm998_vm2, %v1029_v57, %v1030_v5  ;;  %v1040_v57 = vrot.slane %v11614_v22, 1  ;;  %v1044_v22 = vrot.slane %v11624_v26, 1 }
  0xd4   : > { %18176 = vst [vmem:[#allocation35_spill] sm:$0xff] %v11657_v41  ;;  %18177 = vst [vmem:[#allocation36_spill] sm:$0xff] %v11659_v42  ;;  %v11665_v43 = vpack.i.bf16 %v11659_v42, %v11657_v41 }
  0xd5   : > { %793 = vst.msk [vmem:[#allocation2 + $0x141] sm:$0xff] %vm767_vm3, %v721_v39  ;;  %792 = vst.msk [vmem:[#allocation2 + $0x139] sm:$0xff] %vm767_vm3, %v719_v40  ;;  %v1019_v39 = vrot.slane %v11564_v1, 1  ;;  %v1006_v40 = vsel %vm998_vm2, %v1004_v10, %v1005_v62  ;;  %v1024_v1 = vrot.slane %v11576_v6, 1 }
  0xd6   : > { %9048 = vrot.lane.b32.xlu1 %v11665_v43, %s11164_s24 }
  0xd7   : > { %v725_v46 = vpop.permute.xlu1 %724  ;;  %v723_v47 = vpop.permute.xlu0 %722 }
  0xd8   : > { %v11673_v48 = vld [vmem:[#allocation2 + $0x120] sm:$0xff]  ;;  %v11675_v50 = vld [vmem:[#allocation2 + $0x128] sm:$0xff]  ;;  %795 = vst.msk [vmem:[#allocation2 + $0x159] sm:$0xff] %vm767_vm3, %v725_v46  ;;  %794 = vst.msk [vmem:[#allocation2 + $0x151] sm:$0xff] %vm767_vm3, %v723_v47  ;;  %v1008_v46 = vsel %vm998_vm2, %v1005_v62, %v1007_v63  ;;  %v1020_v47 = vrot.slane %v11566_v2, 1  ;;  %v11728_v62 = vpack.i.bf16 %v1013_v29, %v1011_v25  ;;  %v1025_v25 = vrot.slane %v11578_v7, 1 }
  0xd9   : > { %18179 = vst [vmem:[#allocation38_spill] sm:$0xff] %v11673_v48  ;;  %18180 = vst [vmem:[#allocation39_spill] sm:$0xff] %v11675_v50  ;;  %v11683_v58 = vpack.i.bf16 %v11675_v50, %v11673_v48  ;;  %v11730_v63 = vpack.i.bf16 %v1008_v46, %v1006_v40  ;;  %v1034_v46 = vrot.slane %v11600_v16, 1  ;;  %v11786_v7 = vld [vmem:[#allocation2 + $0x118] sm:$0x3] }
  0xda   : > { %v1021_v14 = vsel %vm998_vm2, %v1019_v39, %v1020_v47  ;;  %v1023_v34 = vsel %vm998_vm2, %v1020_v47, %v1022_v51  ;;  %v11762_v47 = vpack.i.bf16 %v1018_v31, %v1016_v33  ;;  %v1039_v51 = vrot.slane %v11612_v21, 1  ;;  %v11779_v31 = vld [vmem:[#allocation2 + $0x100] sm:$0x3]  ;;  %18192 = vst [vmem:[#allocation51_spill] sm:$0xff] %v11786_v7 }
  0xdb   : > { %9053 = vrot.lane.b32.xlu0 %v11683_v58, %s11164_s24  ;;  %v729_v15 = vpop.permute.xlu1 %728  ;;  %v727_v19 = vpop.permute.xlu0 %726  ;;  %v11771_v17 = vpack.i.bf16 %v1023_v34, %v1021_v14  ;;  %18191 = vst [vmem:[#allocation50_spill] sm:$0xff] %v11779_v31  ;;  %v11796_v34 = vld [vmem:[#allocation2 + $0x130] sm:$0x3]  ;;  %v1057_v6 = vrot.slane %v11786_v7, 1 }
  0xdc   : > { %v11696_v20 = vld [vmem:[#allocation2 + $0x138] sm:$0xff]  ;;  %v11698_v24 = vld [vmem:[#allocation2 + $0x140] sm:$0xff]  ;;  %797 = vst.msk [vmem:[#allocation2 + $0x171] sm:$0xff] %vm767_vm3, %v729_v15  ;;  %796 = vst.msk [vmem:[#allocation2 + $0x169] sm:$0xff] %vm767_vm3, %v727_v19  ;;  %v1032_v19 = vrot.slane %v11702_v30, 1 }
  0xdd   : > { %18183 = vst [vmem:[#allocation42_spill] sm:$0xff] %v11698_v24  ;;  %v11710_v36 = vpack.i.bf16 %v11698_v24, %v11696_v20  ;;  %v11719_v15 = vld [vmem:[#allocation2 + $0x88] sm:$0x3]  ;;  %v11740_v30 = vld [vmem:[#allocation2 + $0xd0] sm:$0x3]  ;;  %18193 = vst [vmem:[#allocation52_spill] sm:$0xff] %v11796_v34 }
  0xde   : > { %18185 = vst [vmem:[#allocation44_spill] sm:$0xff] %v11719_v15  ;;  %18189 = vst [vmem:[#allocation48_spill] sm:$0xff] %v11740_v30  ;;  %v1027_v29 = vrot.slane %v11719_v15, 1  ;;  %v1033_v40 = vsel %vm998_vm2, %v1030_v5, %v1032_v19  ;;  %v1037_v15 = vrot.slane %v11734_v12, 1  ;;  %v1042_v5 = vrot.slane %v11740_v30, 1 }
  0xdf   : > { %9058 = vrot.lane.b32.xlu1 %v11710_v36, %s11164_s24  ;;  %v11724_v0 = vld [vmem:[#allocation2 + $0x150] sm:$0xff]  ;;  %v11726_v10 = vld [vmem:[#allocation2 + $0x158] sm:$0xff]  ;;  %v731_v11 = vpop.permute.xlu0 %730  ;;  %v733_v9 = vpop.permute.xlu1 %732  ;;  %v11774_v12 = vsel %vm998_vm2, %v1024_v1, %v1025_v25  ;;  %v11781_v33 = vpack.i.bf16 %v1033_v40, %v1031_v35  ;;  %v1045_v30 = vrot.slane %v11626_v27, 1  ;;  %v1049_v1 = vrot.slane %v11639_v37, 1  ;;  %v11798_v35 = vld [vmem:[#allocation2 + $0x148] sm:$0x3] }
  0xe0   : > { %18186 = vst [vmem:[#allocation45_spill] sm:$0xff] %v11724_v0  ;;  %18187 = vst [vmem:[#allocation46_spill] sm:$0xff] %v11726_v10  ;;  %v11738_v2 = vpack.i.bf16 %v11726_v10, %v11724_v0  ;;  %v11777_v16 = vsel %vm998_vm2, %v1025_v25, %v1027_v29  ;;  %v1050_v25 = vrot.slane %v11641_v38, 1  ;;  %v1036_v29 = vsel %vm998_vm2, %v1034_v46, %v1035_v49 }
  0xe1   : > { %798 = vst.msk [vmem:[#allocation2 + $0x181] sm:$0xff] %vm767_vm3, %v731_v11  ;;  %799 = vst.msk [vmem:[#allocation2 + $0x189] sm:$0xff] %vm767_vm3, %v733_v9  ;;  %v11756_v11 = vld [vmem:[#allocation2 + $0xe8] sm:$0x3]  ;;  %v1038_v14 = vsel %vm998_vm2, %v1035_v49, %v1037_v15  ;;  %v1041_v40 = vsel %vm998_vm2, %v1039_v51, %v1040_v57  ;;  %v1054_v27 = vrot.slane %v11657_v41, 1  ;;  %v1059_v46 = vrot.slane %v11673_v48, 1 }
  0xe2   : > { %9063 = vrot.lane.b32.xlu0 %v11738_v2, %s11164_s24  ;;  %18190 = vst [vmem:[#allocation49_spill] sm:$0xff] %v11756_v11  ;;  %v1047_v21 = vrot.slane %v11756_v11, 1  ;;  %18194 = vst [vmem:[#allocation53_spill] sm:$0xff] %v11798_v35  ;;  %v1043_v11 = vsel %vm998_vm2, %v1040_v57, %v1042_v5  ;;  %v11809_v49 = vld [vmem:[#allocation2 + $0x160] sm:$0x3]  ;;  %v1055_v15 = vrot.slane %v11659_v42, 1 }
  0xe3   : > { %v11758_v9 = vld [vmem:[#allocation2 + $0x168] sm:$0xff]  ;;  %v11760_v39 = vld [vmem:[#allocation2 + $0x170] sm:$0xff]  ;;  %18195 = vst [vmem:[#allocation54_spill] sm:$0xff] %v11809_v49  ;;  %v1060_v57 = vrot.slane %v11675_v50, 1  ;;  %v1062_v5 = vrot.slane %v11796_v34, 1  ;;  %v1069_v48 = vrot.slane %v11724_v0, 1 }
  0xe4   : > { %v11769_v19 = vpack.i.bf16 %v11760_v39, %v11758_v9  ;;  %v1064_v7 = vrot.slane %v11696_v20, 1  ;;  %v1065_v42 = vrot.slane %v11698_v24, 1  ;;  %v1067_v50 = vrot.slane %v11798_v35, 1 }
  0xe5   : > { %v1070_v34 = vrot.slane %v11726_v10, 1  ;;  %v1072_v52 = vrot.slane %v11809_v49, 1  ;;  %v1051_v24 = vsel %vm998_vm2, %v1049_v1, %v1050_v25  ;;  %v1046_v10 = vsel %vm998_vm2, %v1044_v22, %v1045_v30 }
  0xe6   : > { %9073 = vrot.lane.b32.xlu0 %v11546_v56, %s18023_s26  ;;  %9068 = vrot.lane.b32.xlu1 %v11769_v19, %s11164_s24  ;;  %v1052_v56 = vrot.slane %v11779_v31, 1  ;;  %v11816_v31 = vld [vmem:[#allocation2 + $0x178] sm:$0x3]  ;;  %v1048_v49 = vsel %vm998_vm2, %v1045_v30, %v1047_v21  ;;  %v1066_v22 = vsel %vm998_vm2, %v1064_v7, %v1065_v42  ;;  %v1068_v21 = vsel %vm998_vm2, %v1065_v42, %v1067_v50  ;;  %s17998_s24 = smov 48  }
  0xe7   : > { %v1077_v0 = vrot.slane %v11816_v31, 1  ;;  %v1071_v1 = vsel %vm998_vm2, %v1069_v48, %v1070_v34  ;;  %v1073_v30 = vsel %vm998_vm2, %v1070_v34, %v1072_v52  ;;  %v11864_v52 = vpack.i.bf16 %v1043_v11, %v1041_v40 }
  0xe8   : > { %v11804_v26 = vld [vmem:[#allocation2 + $0x180] sm:$0xff]  ;;  %v11806_v37 = vld [vmem:[#allocation2 + $0x188] sm:$0xff]  ;;  %v850_v38 = vld [vmem:[#allocation2 + $0x190] sm:$0x3]  ;;  %v1053_v35 = vsel %vm998_vm2, %v1050_v25, %v1052_v56  ;;  %v11876_v42 = vpack.i.bf16 %v1073_v30, %v1071_v1  ;;  %v11878_v48 = vpack.i.bf16 %v1068_v21, %v1066_v22  ;;  %v1184_v11 = vrot.slane %v11669_v45, 2 }
  0xe9   : > { %v1387_v51 = vrot.slane %v11804_v26, 1  ;;  %v1388_v41 = vrot.slane %v11806_v37, 1  ;;  %v1390_v44 = vrot.slane %v850_v38, 1  ;;  %v18205_v21 = vld [vmem:[#allocation21_spill] sm:$0xff] }
  0xea   : > { %9083 = vrot.lane.b32.xlu0 %v11560_v61, %s18023_s26  ;;  %9078 = vrot.lane.b32.xlu1 %v11542_v55, %s18023_s26  ;;  %v1074_v61 = vrot.slane %v11758_v9, 1  ;;  %v1075_v55 = vrot.slane %v11760_v39, 1  ;;  %v1201_v30 = vrot.slane %v18205_v21, 2 }
  0xeb   : > { %v1389_v4 = vsel %vm998_vm2, %v1387_v51, %v1388_v41  ;;  %v1391_v60 = vsel %vm998_vm2, %v1388_v41, %v1390_v44  ;;  %v1061_v41 = vsel %vm998_vm2, %v1059_v46, %v1060_v57  ;;  %v1056_v44 = vsel %vm998_vm2, %v1054_v27, %v1055_v15 }
  0xec   : > { %v11834_v59 = vpack.i.bf16 %v1391_v60, %v1389_v4  ;;  %v1058_v60 = vsel %vm998_vm2, %v1055_v15, %v1057_v6  ;;  %v1063_v4 = vsel %vm998_vm2, %v1060_v57, %v1062_v5  ;;  %v1076_v25 = vsel %vm998_vm2, %v1074_v61, %v1075_v55  ;;  %v18200_v57 = vld [vmem:[#allocation40_spill] sm:$0xff] }
  0xed   : > { %v1078_v56 = vsel %vm998_vm2, %v1075_v55, %v1077_v0  ;;  %v1488_v46 = vrot.slane %v11804_v26, 2  ;;  %v1489_v27 = vrot.slane %v11806_v37, 2  ;;  %v1491_v51 = vrot.slane %v850_v38, 2 }
  0xee   : > { %9098 = vrot.lane.b32.xlu0 %v11728_v62, %s18024_s25  ;;  %9088 = vrot.lane.b32.xlu1 %v11572_v3, %s18023_s26  ;;  %v11862_v6 = vpack.i.bf16 %v11777_v16, %v11774_v12  ;;  %v11866_v61 = vpack.i.bf16 %v1038_v14, %v1036_v29  ;;  %v11868_v0 = vpack.i.bf16 %v1053_v35, %v1051_v24  ;;  %v1181_v14 = vrot.slane %v11534_v53, 2  ;;  %v18201_v53 = vld [vmem:[#allocation14_spill] sm:$0xff] }
  0xef   : > { %v11870_v55 = vpack.i.bf16 %v1048_v49, %v1046_v10  ;;  %v11872_v7 = vpack.i.bf16 %v1063_v4, %v1061_v41  ;;  %v11874_v38 = vpack.i.bf16 %v1058_v60, %v1056_v44  ;;  %v1490_v50 = vsel %vm1175_vm4, %v1488_v46, %v1489_v27  ;;  %v18199_v49 = vld [vmem:[#allocation17_spill] sm:$0xff] }
  0xf0   : > { %v1492_v12 = vsel %vm1175_vm4, %v1489_v27, %v1491_v51  ;;  %v11882_v16 = vpack.i.bf16 %v1078_v56, %v1076_v25  ;;  %v11936_v10 = vpack.i.bf16 %v11806_v37, %v11804_v26  ;;  %v11950_v26 = vpop.permute.xlu0 %8988  ;;  %v1192_v15 = vrot.slane %v18199_v49, 2  ;;  %v18202_v44 = vld [vmem:[#allocation37_spill] sm:$0xff]  ;;  %v18206_v25 = vld [vmem:[#allocation22_spill] sm:$0xff]  ;;  %v18209_v51 = vld [vmem:[#allocation44_spill] sm:$0xff] }
  0xf1   : > { %v11888_v24 = vpack.i.bf16 %v1492_v12, %v1490_v50  ;;  %v1194_v5 = vrot.slane %v18200_v57, 2  ;;  %v1187_v41 = vrot.slane %v18201_v53, 2  ;;  %v1189_v60 = vrot.slane %v18202_v44, 2  ;;  %v18210_v12 = vld [vmem:[#allocation13_spill] sm:$0xff] }
  0xf2   : > { %9108 = vrot.lane.b32.xlu0 %v11771_v17, %s18024_s25  ;;  %9093 = vrot.lane.b32.xlu1 %v11730_v63, %s18024_s25  ;;  %v1202_v56 = vrot.slane %v18206_v25, 2  ;;  %v1204_v50 = vrot.slane %v18209_v51, 2  ;;  %v18213_v57 = vld [vmem:[#allocation41_spill] sm:$0xff] }
  0xf3   : > { %v12000_v27 = vsel %vm1175_vm4, %v1192_v15, %v1194_v5  ;;  %v12025_v21 = vsel %vm1175_vm4, %v1187_v41, %v1189_v60  ;;  %v18220_v51 = vld [vmem:[#allocation25_spill] sm:$0xff]  ;;  %v18225_v60 = vld [vmem:[#allocation23_spill] sm:$0xff] }
  0xf4   : > { %v11956_v37 = vpop.permute.xlu0 %8993  ;;  %18208 = vst [vmem:[#allocation14_spill] sm:$0xff] %v12000_v27  ;;  %18218 = vst [vmem:[#allocation13_spill] sm:$0xff] %v12025_v21  ;;  %v12028_v25 = vsel %vm1175_vm4, %v1202_v56, %v1204_v50  ;;  %v18226_v50 = vld [vmem:[#allocation24_spill] sm:$0xff] }
  0xf6   : > { %9118 = vrot.lane.b32.xlu0 %v11781_v33, %s18024_s25  ;;  %9103 = vrot.lane.b32.xlu1 %v11762_v47, %s18024_s25 }
  0xfa   : > { %9128 = vrot.lane.b32.xlu0 %v11864_v52, %s18024_s25  ;;  %9113 = vrot.lane.b32.xlu1 %v11862_v6, %s18024_s25 }
  0xfe   : > { %9138 = vrot.lane.b32.xlu0 %v11868_v0, %s18024_s25  ;;  %9123 = vrot.lane.b32.xlu1 %v11866_v61, %s18024_s25 }
 0x102   : > { %9148 = vrot.lane.b32.xlu0 %v11872_v7, %s18024_s25  ;;  %9133 = vrot.lane.b32.xlu1 %v11870_v55, %s18024_s25 }
 0x106   : > { %9158 = vrot.lane.b32.xlu0 %v11876_v42, %s18024_s25  ;;  %9143 = vrot.lane.b32.xlu1 %v11874_v38, %s18024_s25 }
 0x10a   : > { %9163 = vrot.lane.b32.xlu0 %v11584_v8, %s18023_s26  ;;  %9153 = vrot.lane.b32.xlu1 %v11878_v48, %s18024_s25 }
 0x10e   : > { %9178 = vrot.lane.b32.xlu0 %v11608_v18, %s18023_s26  ;;  %9168 = vrot.lane.b32.xlu1 %v11882_v16, %s18024_s25 }
 0x112   : > { %9188 = vrot.lane.b32.xlu0 %v11632_v28, %s18023_s26  ;;  %9173 = vrot.lane.b32.xlu1 %v11596_v13, %s18023_s26 }
 0x116   : > { %9198 = vrot.lane.b32.xlu0 %v11665_v43, %s18023_s26  ;;  %9183 = vrot.lane.b32.xlu1 %v11620_v23, %s18023_s26 }
 0x11a   : > { %9208 = vrot.lane.b32.xlu0 %v11710_v36, %s18023_s26  ;;  %9193 = vrot.lane.b32.xlu1 %v11647_v32, %s18023_s26 }
 0x11e   : > { %9218 = vrot.lane.b32.xlu0 %v11769_v19, %s18023_s26  ;;  %9203 = vrot.lane.b32.xlu1 %v11683_v58, %s18023_s26 }
 0x122   : > { %9228 = vrot.lane.b32.xlu0 %v11730_v63, %s18000_s23  ;;  %9213 = vrot.lane.b32.xlu1 %v11738_v2, %s18023_s26  ;;  %v1182_v63 = vrot.slane %v11536_v54, 2  ;;  %v18198_v54 = vld [vmem:[#allocation16_spill] sm:$0xff] }
 0x123   : > { %v1191_v45 = vrot.slane %v18198_v54, 2  ;;  %v18212_v54 = vld [vmem:[#allocation20_spill] sm:$0xff] }
 0x124   : > { %v11964_v29 = vpop.permute.xlu1 %8998  ;;  %v11971_v34 = vpop.permute.xlu0 %9003  ;;  %v11974_v35 = vsel %vm1175_vm4, %v1181_v14, %v1182_v63  ;;  %v11977_v40 = vsel %vm1175_vm4, %v1182_v63, %v1184_v11  ;;  %v1186_v63 = vrot.slane %v18210_v12, 2  ;;  %v18211_v11 = vld [vmem:[#allocation19_spill] sm:$0xff]  ;;  %v1197_v49 = vrot.slane %v18212_v54, 2 }
 0x125   : > { %18196 = vst [vmem:[#allocation55_spill] sm:$0xff] %v11974_v35  ;;  %18197 = vst [vmem:[#allocation56_spill] sm:$0xff] %v11977_v40  ;;  %v9307_v22 = vpack.i.bf16 %v11977_v40, %v11974_v35  ;;  %v11997_v46 = vsel %vm1175_vm4, %v1191_v45, %v1192_v15  ;;  %v1196_v14 = vrot.slane %v18211_v11, 2  ;;  %v1199_v45 = vrot.slane %v18213_v57, 2  ;;  %v18222_v54 = vld [vmem:[#allocation47_spill] sm:$0xff]  ;;  %v18229_v35 = vld [vmem:[#allocation49_spill] sm:$0xff] }
 0x126   : > { %9238 = vrot.lane.b32.xlu0 %v11762_v47, %s18000_s23  ;;  %9223 = vrot.lane.b32.xlu1 %v11936_v10, %s18023_s26  ;;  %18207 = vst [vmem:[#allocation40_spill] sm:$0xff] %v11997_v46  ;;  %v12011_v53 = vsel %vm1175_vm4, %v1186_v63, %v1187_v41  ;;  %v12019_v44 = vpack.i.bf16 %v12000_v27, %v11997_v46  ;;  %18219 = vst [vmem:[#allocation19_spill] sm:$0xff] %v12028_v25  ;;  %v1211_v12 = vrot.slane %v18220_v51, 2  ;;  %v18221_v63 = vld [vmem:[#allocation26_spill] sm:$0xff]  ;;  %v18227_v27 = vld [vmem:[#allocation29_spill] sm:$0xff] }
 0x127   : > { %18214 = vst [vmem:[#allocation37_spill] sm:$0xff] %v12011_v53  ;;  %v1212_v11 = vrot.slane %v18221_v63, 2  ;;  %v1214_v57 = vrot.slane %v18222_v54, 2  ;;  %v12041_v41 = vsel %vm1175_vm4, %v1197_v49, %v1199_v45  ;;  %v1207_v51 = vrot.slane %v18226_v50, 2  ;;  %v18228_v46 = vld [vmem:[#allocation30_spill] sm:$0xff] }
 0x128   : > { %v11988_v4 = vpop.permute.xlu1 %9008  ;;  %18224 = vst [vmem:[#allocation41_spill] sm:$0xff] %v12041_v41  ;;  %v1221_v63 = vrot.slane %v18227_v27, 2  ;;  %v1222_v54 = vrot.slane %v18228_v46, 2  ;;  %v1224_v40 = vrot.slane %v18229_v35, 2 }
 0x129   : > { %18203 = vst [vmem:[#allocation16_spill] sm:$0xff] %v11988_v4  ;;  %v12062_v27 = vsel %vm1175_vm4, %v1211_v12, %v1212_v11  ;;  %v12065_v46 = vsel %vm1175_vm4, %v1212_v11, %v1214_v57  ;;  %v18236_v12 = vld [vmem:[#allocation28_spill] sm:$0xff] }
 0x12a   : > { %9248 = vrot.lane.b32.xlu0 %v11862_v6, %s18000_s23  ;;  %9233 = vrot.lane.b32.xlu1 %v11728_v62, %s18000_s23  ;;  %18232 = vst [vmem:[#allocation26_spill] sm:$0xff] %v12062_v27  ;;  %18233 = vst [vmem:[#allocation47_spill] sm:$0xff] %v12065_v46  ;;  %v1217_v50 = vrot.slane %v18236_v12, 2  ;;  %v12081_v11 = vsel %vm1175_vm4, %v1221_v63, %v1222_v54  ;;  %v12084_v57 = vsel %vm1175_vm4, %v1222_v54, %v1224_v40  ;;  %v18244_v63 = vld [vmem:[#allocation36_spill] sm:$0xff] }
 0x12b   : > { %18237 = vst [vmem:[#allocation24_spill] sm:$0xff] %v12081_v11  ;;  %18238 = vst [vmem:[#allocation29_spill] sm:$0xff] %v12084_v57 }
 0x12d   : > { %v11990_v1 = vpop.permute.xlu0 %9013 }
 0x12e   : > { %9258 = vrot.lane.b32.xlu0 %v11866_v61, %s18000_s23  ;;  %9243 = vrot.lane.b32.xlu1 %v11771_v17, %s18000_s23  ;;  %18204 = vst [vmem:[#allocation17_spill] sm:$0xff] %v11990_v1 }
 0x131   : > { %v12013_v15 = vpop.permute.xlu1 %9018 }
 0x132   : > { %9268 = vrot.lane.b32.xlu0 %v11870_v55, %s18000_s23  ;;  %9253 = vrot.lane.b32.xlu1 %v11781_v33, %s18000_s23  ;;  %18215 = vst [vmem:[#allocation21_spill] sm:$0xff] %v12013_v15 }
 0x134   : > { %v12015_v5 = vpop.permute.xlu0 %9023 }
 0x135   : > { %18216 = vst [vmem:[#allocation22_spill] sm:$0xff] %v12015_v5  ;;  %v18230_v5 = vld [vmem:[#allocation43_spill] sm:$0xff] }
 0x136   : > { %9278 = vrot.lane.b32.xlu0 %v11874_v38, %s18000_s23  ;;  %9263 = vrot.lane.b32.xlu1 %v11864_v52, %s18000_s23  ;;  %v1209_v15 = vrot.slane %v18230_v5, 2  ;;  %v18235_v5 = vld [vmem:[#allocation27_spill] sm:$0xff] }
 0x138   : > { %v12049_v1 = vpop.permute.xlu1 %9028 }
 0x13a   : > { %9288 = vrot.lane.b32.xlu0 %v11878_v48, %s18000_s23  ;;  %9273 = vrot.lane.b32.xlu1 %v11868_v0, %s18000_s23 }
 0x13d   : > { %v12051_v4 = vpop.permute.xlu0 %9033 }
 0x13e   : > { %9298 = vrot.lane.b32.xlu0 %v11882_v16, %s18000_s23  ;;  %9283 = vrot.lane.b32.xlu1 %v11872_v7, %s18000_s23  ;;  %18231 = vst [vmem:[#allocation25_spill] sm:$0xff] %v12051_v4  ;;  %v18245_v4 = vld [vmem:[#allocation51_spill] sm:$0xff] }
 0x13f   : > { %v1234_v40 = vrot.slane %v18245_v4, 2  ;;  %v18248_v4 = vld [vmem:[#allocation31_spill] sm:$0xff] }
 0x142   : > { %9308 = vrot.lane.b32.xlu0 %v9307_v22, %s18026_s27  ;;  %9293 = vrot.lane.b32.xlu1 %v11876_v42, %s18000_s23  ;;  %v12022_v22 = vsel %vm1175_vm4, %v1201_v30, %v1202_v56  ;;  %v12038_v30 = vsel %vm1175_vm4, %v1196_v14, %v1197_v49  ;;  %v1206_v56 = vrot.slane %v18225_v60, 2  ;;  %v12059_v49 = vpack.i.bf16 %v12025_v21, %v12011_v53 }
 0x143   : > { %18217 = vst [vmem:[#allocation44_spill] sm:$0xff] %v12022_v22  ;;  %18223 = vst [vmem:[#allocation20_spill] sm:$0xff] %v12038_v30  ;;  %v12055_v14 = vpack.i.bf16 %v12028_v25, %v12022_v22  ;;  %v12073_v35 = vpack.i.bf16 %v12041_v41, %v12038_v30  ;;  %v1216_v60 = vrot.slane %v18235_v5, 2  ;;  %v12087_v25 = vsel %vm1175_vm4, %v1207_v51, %v1209_v15  ;;  %v18240_v22 = vld [vmem:[#allocation48_spill] sm:$0xff]  ;;  %v12090_v41 = vpop.permute.xlu1 %9038  ;;  %v18243_v5 = vld [vmem:[#allocation35_spill] sm:$0xff] }
 0x144   : > { %v12076_v45 = vsel %vm1175_vm4, %v1206_v56, %v1207_v51  ;;  %18239 = vst [vmem:[#allocation30_spill] sm:$0xff] %v12087_v25  ;;  %v1219_v21 = vrot.slane %v18240_v22, 2  ;;  %18241 = vst [vmem:[#allocation49_spill] sm:$0xff] %v12090_v41  ;;  %v12092_v30 = vpop.permute.xlu0 %9043  ;;  %v12096_v56 = vpack.i.bf16 %v12065_v46, %v12062_v27  ;;  %v1231_v12 = vrot.slane %v18243_v5, 2  ;;  %v18250_v27 = vld [vmem:[#allocation50_spill] sm:$0xff] }
 0x145   : > { %18234 = vst [vmem:[#allocation23_spill] sm:$0xff] %v12076_v45  ;;  %18242 = vst [vmem:[#allocation43_spill] sm:$0xff] %v12092_v30  ;;  %v1232_v53 = vrot.slane %v18244_v63, 2  ;;  %v12107_v15 = vpack.i.bf16 %v12084_v57, %v12081_v11  ;;  %v12111_v22 = vpack.i.bf16 %v12087_v25, %v12076_v45  ;;  %v12114_v51 = vsel %vm1175_vm4, %v1216_v60, %v1217_v50  ;;  %v18249_v63 = vld [vmem:[#allocation32_spill] sm:$0xff]  ;;  %v18256_v45 = vld [vmem:[#allocation53_spill] sm:$0xff] }
 0x146   : > { %9318 = vrot.lane.b32.xlu0 %v12019_v44, %s18026_s27  ;;  %9303 = vrot.lane.b32.xlu1 %v11834_v59, %s18000_s23  ;;  %18246 = vst [vmem:[#allocation27_spill] sm:$0xff] %v12114_v51  ;;  %v12117_v54 = vsel %vm1175_vm4, %v1217_v50, %v1219_v21  ;;  %v1226_v5 = vrot.slane %v18248_v4, 2  ;;  %v1227_v46 = vrot.slane %v18249_v63, 2  ;;  %v1229_v30 = vrot.slane %v18250_v27, 2  ;;  %v18255_v21 = vld [vmem:[#allocation42_spill] sm:$0xff]  ;;  %s18004_s23 = smov 56  }
 0x147   : > { %18247 = vst [vmem:[#allocation28_spill] sm:$0xff] %v12117_v54  ;;  %v12127_v11 = vsel %vm1175_vm4, %v1231_v12, %v1232_v53  ;;  %v12130_v25 = vsel %vm1175_vm4, %v1232_v53, %v1234_v40  ;;  %v1241_v60 = vrot.slane %v11696_v20, 2  ;;  %v1242_v50 = vrot.slane %v18255_v21, 2  ;;  %v18262_v21 = vld [vmem:[#allocation38_spill] sm:$0xff] }
 0x148   : > { %v12122_v41 = vpop.permute.xlu1 %9048  ;;  %18253 = vst [vmem:[#allocation36_spill] sm:$0xff] %v12127_v11  ;;  %18254 = vst [vmem:[#allocation51_spill] sm:$0xff] %v12130_v25  ;;  %v1244_v4 = vrot.slane %v18256_v45, 2  ;;  %v12141_v27 = vpack.i.bf16 %v12130_v25, %v12127_v11  ;;  %v12145_v53 = vpack.i.bf16 %v12117_v54, %v12114_v51  ;;  %v12148_v20 = vsel %vm1175_vm4, %v1226_v5, %v1227_v46  ;;  %v18263_v11 = vld [vmem:[#allocation39_spill] sm:$0xff] }
 0x149   : > { %18251 = vst [vmem:[#allocation48_spill] sm:$0xff] %v12122_v41  ;;  %18257 = vst [vmem:[#allocation31_spill] sm:$0xff] %v12148_v20  ;;  %v12151_v12 = vsel %vm1175_vm4, %v1227_v46, %v1229_v30  ;;  %v12158_v63 = vsel %vm1175_vm4, %v1241_v60, %v1242_v50  ;;  %v1236_v25 = vrot.slane %v18262_v21, 2  ;;  %v18264_v41 = vld [vmem:[#allocation52_spill] sm:$0xff]  ;;  %v1251_v5 = vrot.slane %v11758_v9, 2 }
 0x14a   : > { %9328 = vrot.lane.b32.xlu0 %v12055_v14, %s18026_s27  ;;  %9313 = vrot.lane.b32.xlu1 %v12059_v49, %s18026_s27  ;;  %18258 = vst [vmem:[#allocation32_spill] sm:$0xff] %v12151_v12  ;;  %18261 = vst [vmem:[#allocation53_spill] sm:$0xff] %v12158_v63  ;;  %v1239_v54 = vrot.slane %v18264_v41, 2  ;;  %v12164_v51 = vsel %vm1175_vm4, %v1242_v50, %v1244_v4  ;;  %v1252_v30 = vrot.slane %v11760_v39, 2  ;;  %v1254_v46 = vrot.slane %v11816_v31, 2  ;;  %v18267_v50 = vld [vmem:[#allocation45_spill] sm:$0xff] }
 0x14b   : > { %18265 = vst [vmem:[#allocation38_spill] sm:$0xff] %v12164_v51  ;;  %v12183_v9 = vpack.i.bf16 %v12164_v51, %v12158_v63  ;;  %v1246_v4 = vrot.slane %v18267_v50, 2 }
 0x14c   : > { %v12193_v21 = vsel %vm1175_vm4, %v1251_v5, %v1252_v30 }
 0x14d   : > { %v12124_v57 = vpop.permute.xlu0 %9053  ;;  %18268 = vst [vmem:[#allocation52_spill] sm:$0xff] %v12193_v21 }
 0x14e   : > { %9338 = vrot.lane.b32.xlu0 %v12096_v56, %s18026_s27  ;;  %9323 = vrot.lane.b32.xlu1 %v12073_v35, %s18026_s27  ;;  %18252 = vst [vmem:[#allocation35_spill] sm:$0xff] %v12124_v57  ;;  %v1237_v57 = vrot.slane %v18263_v11, 2  ;;  %v12175_v11 = vpack.i.bf16 %v12151_v12, %v12148_v20  ;;  %v12196_v12 = vsel %vm1175_vm4, %v1252_v30, %v1254_v46  ;;  %v18270_v20 = vld [vmem:[#allocation46_spill] sm:$0xff] }
 0x14f   : > { %18269 = vst [vmem:[#allocation45_spill] sm:$0xff] %v12196_v12 }
 0x150   : > { %v12186_v39 = vsel %vm1175_vm4, %v1236_v25, %v1237_v57  ;;  %v12189_v31 = vsel %vm1175_vm4, %v1237_v57, %v1239_v54  ;;  %v12210_v54 = vpack.i.bf16 %v12196_v12, %v12193_v21 }
 0x151   : > { %v12153_v45 = vpop.permute.xlu1 %9058  ;;  %v12214_v5 = vpack.i.bf16 %v12189_v31, %v12186_v39 }
 0x152   : > { %9348 = vrot.lane.b32.xlu0 %v12107_v15, %s18026_s27  ;;  %9333 = vrot.lane.b32.xlu1 %v12111_v22, %s18026_s27  ;;  %18259 = vst [vmem:[#allocation50_spill] sm:$0xff] %v12153_v45 }
 0x154   : > { %v12155_v40 = vpop.permute.xlu0 %9063 }
 0x155   : > { %18260 = vst [vmem:[#allocation42_spill] sm:$0xff] %v12155_v40  ;;  %v18271_v40 = vld [vmem:[#allocation54_spill] sm:$0xff] }
 0x156   : > { %9358 = vrot.lane.b32.xlu0 %v12141_v27, %s18026_s27  ;;  %9343 = vrot.lane.b32.xlu1 %v12145_v53, %s18026_s27  ;;  %v1249_v45 = vrot.slane %v18271_v40, 2 }
 0x158   : > { %v12177_v41 = vpop.permute.xlu1 %9068  ;;  %v12179_v60 = vpop.permute.xlu0 %9073 }
 0x159   : > { %18266 = vst [vmem:[#allocation39_spill] sm:$0xff] %v12177_v41  ;;  %v1247_v41 = vrot.slane %v18270_v20, 2 }
 0x15a   : > { %9368 = vrot.lane.b32.xlu0 %v12183_v9, %s18026_s27  ;;  %9353 = vrot.lane.b32.xlu1 %v12175_v11, %s18026_s27 }
 0x15b   : > { %v12217_v20 = vsel %vm1175_vm4, %v1246_v4, %v1247_v41  ;;  %v12220_v40 = vsel %vm1175_vm4, %v1247_v41, %v1249_v45  ;;  %v18274_v4 = vld [vmem:[#allocation15_spill] sm:$0xff] }
 0x15c   : > { %v12204_v25 = vpop.permute.xlu1 %9078  ;;  %v12206_v57 = vpop.permute.xlu0 %9083  ;;  %18272 = vst [vmem:[#allocation46_spill] sm:$0xff] %v12217_v20  ;;  %18273 = vst [vmem:[#allocation54_spill] sm:$0xff] %v12220_v40  ;;  %v12232_v50 = vpack.i.bf16 %v12220_v40, %v12217_v20 }
 0x15e   : > { %9378 = vrot.lane.b32.xlu0 %v12210_v54, %s18026_s27  ;;  %9363 = vrot.lane.b32.xlu1 %v12214_v5, %s18026_s27 }
 0x160   : > { %v12226_v30 = vpop.permute.xlu1 %9088  ;;  %v12228_v46 = vpop.permute.xlu0 %9098 }
 0x162   : > { %9388 = vrot.lane.b32.xlu0 %v18274_v4, %s11168_s11  ;;  %9373 = vrot.lane.b32.xlu1 %v12232_v50, %s18026_s27  ;;  %v18275_v4 = vld [vmem:[#allocation18_spill] sm:$0xff] }
 0x164   : > { %v12238_v45 = vpop.permute.xlu1 %9093  ;;  %v12240_v41 = vpop.permute.xlu0 %9108 }
 0x166   : > { %9398 = vrot.lane.b32.xlu0 %v11572_v3, %s11168_s11  ;;  %9383 = vrot.lane.b32.xlu1 %v11888_v24, %s18026_s27 }
 0x168   : > { %v12246_v12 = vpop.permute.xlu1 %9103  ;;  %v12248_v21 = vpop.permute.xlu0 %9118 }
 0x16a   : > { %9408 = vrot.lane.b32.xlu0 %v11596_v13, %s11168_s11  ;;  %9393 = vrot.lane.b32.xlu1 %v18275_v4, %s11168_s11 }
 0x16c   : > { %v12254_v51 = vpop.permute.xlu1 %9113  ;;  %v12256_v63 = vpop.permute.xlu0 %9128 }
 0x16e   : > { %9418 = vrot.lane.b32.xlu0 %v11620_v23, %s11168_s11  ;;  %9403 = vrot.lane.b32.xlu1 %v11584_v8, %s11168_s11 }
 0x170   : > { %v12262_v3 = vpop.permute.xlu1 %9123  ;;  %v12264_v40 = vpop.permute.xlu0 %9138 }
 0x172   : > { %9428 = vrot.lane.b32.xlu0 %v11647_v32, %s11168_s11  ;;  %9413 = vrot.lane.b32.xlu1 %v11608_v18, %s11168_s11 }
 0x174   : > { %v12270_v13 = vpop.permute.xlu1 %9133  ;;  %v12272_v4 = vpop.permute.xlu0 %9148 }
 0x176   : > { %9438 = vrot.lane.b32.xlu0 %v11683_v58, %s11168_s11  ;;  %9423 = vrot.lane.b32.xlu1 %v11632_v28, %s11168_s11  ;;  %v12294_v28 = vld [vmem:[#allocation2 + $0x198] sm:$0xff]  ;;  %v12296_v58 = vld [vmem:[#allocation2 + $0x1a0] sm:$0xff] }
 0x178   : > { %v12278_v8 = vpop.permute.xlu1 %9143  ;;  %v12280_v23 = vpop.permute.xlu0 %9158 }
 0x17a   : > { %9448 = vrot.lane.b32.xlu0 %v11738_v2, %s11168_s11  ;;  %9433 = vrot.lane.b32.xlu1 %v11665_v43, %s11168_s11  ;;  %v9462_v43 = vpack.i.bf16 %v12296_v58, %v12294_v28 }
 0x17c   : > { %v12286_v18 = vpop.permute.xlu1 %9153  ;;  %v12288_v32 = vpop.permute.xlu0 %9163 }
 0x17d   : > { %18276 = vst [vmem:[#allocation15_spill] sm:$0xff] %v12288_v32 }
 0x17e   : > { %9458 = vrot.lane.b32.xlu0 %v11936_v10, %s11168_s11  ;;  %9443 = vrot.lane.b32.xlu1 %v11710_v36, %s11168_s11 }
 0x180   : > { %v12298_v20 = vpop.permute.xlu1 %9168  ;;  %v12300_v2 = vpop.permute.xlu0 %9178 }
 0x181   : > { %18277 = vst [vmem:[#allocation18_spill] sm:$0xff] %v12300_v2 }
 0x182   : > { %9468 = vrot.lane.b32.xlu0 %v11728_v62, %s18006_s17  ;;  %9453 = vrot.lane.b32.xlu1 %v11769_v19, %s11168_s11 }
 0x184   : > { %v12308_v10 = vpop.permute.xlu1 %9173  ;;  %v12310_v36 = vpop.permute.xlu0 %9188 }
 0x186   : > { %9463 = vrot.lane.b32.xlu1 %v9462_v43, %s11168_s11  ;;  %9478 = vrot.lane.b32.xlu0 %v11771_v17, %s18006_s17  ;;  %v10989_v17 = vld [vmem:[%s17850_s2 + $0x20] ss:$0 sps:$4 sm:$0xff]   ;;  %s18002_s11 = smov 88  }
 0x187   : > { %8916 = vmatprep.subr.msk.bf16.mxu0 %vm2260_vm5, %v10989_v17 }
 0x188   : > { %v12315_v2 = vpop.permute.xlu1 %9183  ;;  %v12317_v32 = vpop.permute.xlu0 %9198 }
 0x18a   : > { %9473 = vrot.lane.b32.xlu1 %v11762_v47, %s18006_s17  ;;  %9488 = vrot.lane.b32.xlu0 %v11781_v33, %s18006_s17  ;;  %v2262_v33 = vsel %vm2260_vm5, %v10989_v17, 0 }
 0x18b   : > { %8847 = vmatpush3.bf16.msra.mxu0 %v2262_v33  ;;  %v12362_v33 = vld [vmem:[#allocation2 + $0x1a8] sm:$0x3] }
 0x18c   : > { %v12323_v62 = vpop.permute.xlu1 %9193  ;;  %v12325_v19 = vpop.permute.xlu0 %9208 }
 0x18e   : > { %9483 = vrot.lane.b32.xlu1 %v11862_v6, %s18006_s17  ;;  %9498 = vrot.lane.b32.xlu0 %v11864_v52, %s18006_s17  ;;  %v10990_v6 = vld [vmem:[%s17850_s2 + $0x18] sm:$0xff]  }
 0x18f   : > { %8848 = vmatprep.subr.bf16.mxu0 %v10990_v6 }
 0x190   : > { %v12334_v43 = vpop.permute.xlu1 %9203  ;;  %v12336_v47 = vpop.permute.xlu0 %9218  ;;  %8849 = vmatpush3.bf16.msra.mxu0 %v10990_v6  ;;  %v1691_v6 = vrot.slane %v12362_v33, 1 }
 0x191   : > { %18278 = vst [vmem:[#allocation57_spill] sm:$0xff] %v12334_v43 }
 0x192   : > { %9493 = vrot.lane.b32.xlu1 %v11866_v61, %s18006_s17  ;;  %9508 = vrot.lane.b32.xlu0 %v11868_v0, %s18006_s17  ;;  %v10991_v61 = vld [vmem:[%s17850_s2 + $0x10] sm:$0xff]  }
 0x193   : > { %8850 = vmatprep.subr.bf16.mxu0 %v10991_v61 }
 0x194   : > { %v12347_v52 = vpop.permute.xlu1 %9213  ;;  %v12349_v43 = vpop.permute.xlu0 %9228  ;;  %8851 = vmatpush3.bf16.msra.mxu0 %v10991_v61 }
 0x195   : > { %18279 = vst [vmem:[#allocation58_spill] sm:$0xff] %v12347_v52  ;;  %18280 = vst [vmem:[#allocation59_spill] sm:$0xff] %v12349_v43 }
 0x196   : > { %9503 = vrot.lane.b32.xlu1 %v11870_v55, %s18006_s17  ;;  %9518 = vrot.lane.b32.xlu0 %v11872_v7, %s18006_s17  ;;  %v1689_v55 = vrot.slane %v12296_v58, 1  ;;  %v1688_v7 = vrot.slane %v12294_v28, 1 }
 0x198   : > { %v12358_v0 = vpop.permute.xlu1 %9223  ;;  %v12360_v17 = vpop.permute.xlu0 %9238  ;;  %v1692_v61 = vsel %vm998_vm2, %v1689_v55, %v1691_v6  ;;  %v1792_v6 = vrot.slane %v12362_v33, 2 }
 0x199   : > { %18281 = vst [vmem:[#allocation60_spill] sm:$0xff] %v12358_v0  ;;  %18282 = vst [vmem:[#allocation61_spill] sm:$0xff] %v12360_v17  ;;  %v10992_v0 = vld [vmem:[%s17850_s2 + $0x8] sm:$0xff]  }
 0x19a   : > { %9513 = vrot.lane.b32.xlu1 %v11874_v38, %s18006_s17  ;;  %9528 = vrot.lane.b32.xlu0 %v11876_v42, %s18006_s17  ;;  %v18285_v38 = vmov 0.0   ;;  %v1690_v42 = vsel %vm998_vm2, %v1688_v7, %v1689_v55 }
 0x19b   : > { %546 = vst.msk [vmem:[#allocation3] sm:$0xff] %vm545_vm6, %v18285_v38  ;;  %547 = vst.msk [vmem:[#allocation3 + $0x8] sm:$0xff] %vm545_vm6, %v18285_v38  ;;  %8852 = vmatprep.subr.bf16.mxu0 %v10992_v0 }
 0x19c   : > { %v12374_v17 = vpop.permute.xlu1 %9233  ;;  %v12376_v43 = vpop.permute.xlu0 %9248  ;;  %550 = vst.msk [vmem:[#allocation3 + $0x18] sm:$0xff] %vm545_vm6, %v18285_v38  ;;  %551 = vst.msk [vmem:[#allocation3 + $0x20] sm:$0xff] %vm545_vm6, %v18285_v38  ;;  %8853 = vmatpush3.bf16.msra.mxu0 %v10992_v0 }
 0x19d   : > { %18283 = vst [vmem:[#allocation62_spill] sm:$0xff] %v12374_v17  ;;  %18284 = vst [vmem:[#allocation63_spill] sm:$0xff] %v12376_v43  ;;  %v10993_v43 = vld [vmem:[%s17850_s2] sm:$0xff]  }
 0x19e   : > { %553 = vst.msk [vmem:[#allocation3 + $0x30] sm:$0xff] %vm545_vm6, %v18285_v38  ;;  %554 = vst.msk [vmem:[#allocation3 + $0x38] sm:$0xff] %vm545_vm6, %v18285_v38  ;;  %9523 = vrot.lane.b32.xlu1 %v11878_v48, %s18006_s17  ;;  %9538 = vrot.lane.b32.xlu0 %v11834_v59, %s18006_s17  ;;  %v9542_v59 = vpack.i.bf16 %v1692_v61, %v1690_v42 }
 0x19f   : > { %556 = vst.msk [vmem:[#allocation3 + $0x48] sm:$0xff] %vm545_vm6, %v18285_v38  ;;  %557 = vst.msk [vmem:[#allocation3 + $0x50] sm:$0xff] %vm545_vm6, %v18285_v38  ;;  %8854 = vmatprep.subr.bf16.mxu0 %v10993_v43 }
 0x1a0   : > { %559 = vst.msk [vmem:[#allocation3 + $0x60] sm:$0xff] %vm545_vm6, %v18285_v38  ;;  %560 = vst.msk [vmem:[#allocation3 + $0x68] sm:$0xff] %vm545_vm6, %v18285_v38  ;;  %v12459_v17 = vpop.permute.xlu1 %9243  ;;  %v12461_v52 = vpop.permute.xlu0 %9258  ;;  %8855 = vmatpush3.bf16.msra.mxu0 %v10993_v43 }
 0x1a1   : > { %562 = vst.msk [vmem:[#allocation3 + $0x78] sm:$0xff] %vm545_vm6, %v18285_v38  ;;  %563 = vst.msk [vmem:[#allocation3 + $0x80] sm:$0xff] %vm545_vm6, %v18285_v38 }
 0x1a2   : > { %565 = vst.msk [vmem:[#allocation3 + $0x90] sm:$0xff] %vm545_vm6, %v18285_v38  ;;  %566 = vst.msk [vmem:[#allocation3 + $0x98] sm:$0xff] %vm545_vm6, %v18285_v38  ;;  %9533 = vrot.lane.b32.xlu1 %v11882_v16, %s18006_s17  ;;  %9548 = vrot.lane.b32.xlu0 %v12059_v49, %s17998_s24 }
 0x1a3   : > { %568 = vst.msk [vmem:[#allocation3 + $0xa8] sm:$0xff] %vm545_vm6, %v18285_v38  ;;  %569 = vst.msk [vmem:[#allocation3 + $0xb0] sm:$0xff] %vm545_vm6, %v18285_v38 }
 0x1a4   : > { %571 = vst.msk [vmem:[#allocation3 + $0xc0] sm:$0xff] %vm545_vm6, %v18285_v38  ;;  %572 = vst.msk [vmem:[#allocation3 + $0xc8] sm:$0xff] %vm545_vm6, %v18285_v38  ;;  %v12467_v48 = vpop.permute.xlu1 %9253  ;;  %v12469_v0 = vpop.permute.xlu0 %9268 }
 0x1a5   : > { %574 = vst.msk [vmem:[#allocation3 + $0xd8] sm:$0xff] %vm545_vm6, %v18285_v38  ;;  %575 = vst.msk [vmem:[#allocation3 + $0xe0] sm:$0xff] %vm545_vm6, %v18285_v38 }
 0x1a6   : > { %577 = vst.msk [vmem:[#allocation3 + $0xf0] sm:$0xff] %vm545_vm6, %v18285_v38  ;;  %578 = vst.msk [vmem:[#allocation3 + $0xf8] sm:$0xff] %vm545_vm6, %v18285_v38  ;;  %9543 = vrot.lane.b32.xlu1 %v9542_v59, %s18006_s17  ;;  %9558 = vrot.lane.b32.xlu0 %v12073_v35, %s17998_s24  ;;  %v8996_v59 = vunpack.i.h.bf16 %v11956_v37 }
 0x1a7   : > { %580 = vst.msk [vmem:[#allocation3 + $0x108] sm:$0xff] %vm545_vm6, %v18285_v38  ;;  %581 = vst.msk [vmem:[#allocation3 + $0x110] sm:$0xff] %vm545_vm6, %v18285_v38 }
 0x1a8   : > { %583 = vst.msk [vmem:[#allocation3 + $0x120] sm:$0xff] %vm545_vm6, %v18285_v38  ;;  %584 = vst.msk [vmem:[#allocation3 + $0x128] sm:$0xff] %vm545_vm6, %v18285_v38  ;;  %v12474_v55 = vpop.permute.xlu1 %9263  ;;  %v12476_v7 = vpop.permute.xlu0 %9278 }
 0x1a9   : > { %586 = vst.msk [vmem:[#allocation3 + $0x138] sm:$0xff] %vm545_vm6, %v18285_v38  ;;  %587 = vst.msk [vmem:[#allocation3 + $0x140] sm:$0xff] %vm545_vm6, %v18285_v38 }
 0x1aa   : > { %589 = vst.msk [vmem:[#allocation3 + $0x150] sm:$0xff] %vm545_vm6, %v18285_v38  ;;  %590 = vst.msk [vmem:[#allocation3 + $0x158] sm:$0xff] %vm545_vm6, %v18285_v38  ;;  %9553 = vrot.lane.b32.xlu1 %v12019_v44, %s17998_s24  ;;  %9568 = vrot.lane.b32.xlu0 %v12111_v22, %s17998_s24 }
 0x1ab   : > { %592 = vst.msk [vmem:[#allocation3 + $0x168] sm:$0xff] %vm545_vm6, %v18285_v38  ;;  %593 = vst.msk [vmem:[#allocation3 + $0x170] sm:$0xff] %vm545_vm6, %v18285_v38 }
 0x1ac   : > { %595 = vst.msk [vmem:[#allocation3 + $0x180] sm:$0xff] %vm545_vm6, %v18285_v38  ;;  %596 = vst.msk [vmem:[#allocation3 + $0x188] sm:$0xff] %vm545_vm6, %v18285_v38  ;;  %v12482_v16 = vpop.permute.xlu1 %9273  ;;  %v12484_v49 = vpop.permute.xlu0 %9288 }
 0x1ad   : > { %598 = vst.msk [vmem:[#allocation3 + $0x198] sm:$0xff] %vm545_vm6, %v18285_v38  ;;  %599 = vst.msk [vmem:[#allocation3 + $0x1a0] sm:$0xff] %vm545_vm6, %v18285_v38  ;;  %v18310_v38 = vld [vmem:[#allocation33_spill] sm:$0xff] }
 0x1ae   : > { %18286 = vst [vmem:[#allocation64_spill] sm:$0xff] %v12459_v17  ;;  %18287 = vst [vmem:[#allocation65_spill] sm:$0xff] %v12461_v52  ;;  %9563 = vrot.lane.b32.xlu1 %v12055_v14, %s17998_s24  ;;  %9578 = vrot.lane.b32.xlu0 %v12145_v53, %s17998_s24 }
 0x1af   : > { %18288 = vst [vmem:[#allocation66_spill] sm:$0xff] %v12467_v48  ;;  %18289 = vst [vmem:[#allocation67_spill] sm:$0xff] %v12469_v0  ;;  %v9111_v0 = vunpack.i.h.bf16 %v12240_v41  ;;  %v2684_v48 = vld [vmem:[#allocation2 + $0x10] sm:$0x3] }
 0x1b0   : > { %18290 = vst [vmem:[#allocation68_spill] sm:$0xff] %v12474_v55  ;;  %18291 = vst [vmem:[#allocation69_spill] sm:$0xff] %v12476_v7  ;;  %v12490_v35 = vpop.permute.xlu1 %9283  ;;  %v12492_v43 = vpop.permute.xlu0 %9298  ;;  %v18326_v7 = vld [vmem:[#allocation42_spill] sm:$0xff]  ;;  %v18327_v55 = vld [vmem:[#allocation39_spill] sm:$0xff] }
 0x1b1   : > { %18292 = vst [vmem:[#allocation70_spill] sm:$0xff] %v12482_v16  ;;  %18293 = vst [vmem:[#allocation71_spill] sm:$0xff] %v12484_v49  ;;  %v18325_v49 = vld [vmem:[#allocation50_spill] sm:$0xff]  ;;  %v18330_v16 = vld [vmem:[#allocation37_spill] sm:$0xff] }
 0x1b2   : > { %18294 = vst [vmem:[#allocation72_spill] sm:$0xff] %v12490_v35  ;;  %18295 = vst [vmem:[#allocation73_spill] sm:$0xff] %v12492_v43  ;;  %9573 = vrot.lane.b32.xlu1 %v12096_v56, %s17998_s24  ;;  %9588 = vrot.lane.b32.xlu0 %v12175_v11, %s17998_s24  ;;  %v1790_v56 = vrot.slane %v12296_v58, 2  ;;  %v1789_v11 = vrot.slane %v12294_v28, 2  ;;  %v18324_v35 = vld [vmem:[#allocation35_spill] sm:$0xff] }
 0x1b4   : > { %v12498_v44 = vpop.permute.xlu1 %9293  ;;  %v12500_v22 = vpop.permute.xlu0 %9308 }
 0x1b5   : > { %18296 = vst [vmem:[#allocation74_spill] sm:$0xff] %v12498_v44  ;;  %18297 = vst [vmem:[#allocation75_spill] sm:$0xff] %v12500_v22  ;;  %v18320_v22 = vld [vmem:[#allocation43_spill] sm:$0xff]  ;;  %v9076_v44 = vunpack.i.h.bf16 %v12179_v60 }
 0x1b6   : > { %9583 = vrot.lane.b32.xlu1 %v12107_v15, %s17998_s24  ;;  %9598 = vrot.lane.b32.xlu0 %v12214_v5, %s17998_s24  ;;  %v1793_v5 = vsel %vm1175_vm4, %v1790_v56, %v1792_v6 }
 0x1b8   : > { %v12506_v14 = vpop.permute.xlu1 %9303  ;;  %v12508_v53 = vpop.permute.xlu0 %9318 }
 0x1b9   : > { %18298 = vst [vmem:[#allocation76_spill] sm:$0xff] %v12506_v14  ;;  %18299 = vst [vmem:[#allocation77_spill] sm:$0xff] %v12508_v53  ;;  %v18319_v53 = vld [vmem:[#allocation49_spill] sm:$0xff]  ;;  %v9095_v14 = vunpack.i.l.bf16 %v12238_v45 }
 0x1ba   : > { %9593 = vrot.lane.b32.xlu1 %v12141_v27, %s17998_s24  ;;  %9608 = vrot.lane.b32.xlu0 %v12232_v50, %s17998_s24  ;;  %v1791_v27 = vsel %vm1175_vm4, %v1789_v11, %v1790_v56  ;;  %v8995_v56 = vunpack.i.l.bf16 %v11956_v37 }
 0x1bb   : > { %v9622_v28 = vpack.i.bf16 %v1793_v5, %v1791_v27 }
 0x1bc   : > { %v12517_v15 = vpop.permute.xlu1 %9313  ;;  %v12519_v42 = vpop.permute.xlu0 %9328 }
 0x1bd   : > { %18300 = vst [vmem:[#allocation78_spill] sm:$0xff] %v12517_v15  ;;  %18301 = vst [vmem:[#allocation79_spill] sm:$0xff] %v12519_v42  ;;  %v18318_v42 = vld [vmem:[#allocation25_spill] sm:$0xff]  ;;  %v18323_v15 = vld [vmem:[#allocation48_spill] sm:$0xff] }
 0x1be   : > { %9603 = vrot.lane.b32.xlu1 %v12183_v9, %s17998_s24  ;;  %9618 = vrot.lane.b32.xlu0 %v11888_v24, %s17998_s24  ;;  %v8991_v24 = vunpack.i.h.bf16 %v11950_v26  ;;  %v8990_v9 = vunpack.i.l.bf16 %v11950_v26 }
 0x1c0   : > { %v12527_v50 = vpop.permute.xlu1 %9323  ;;  %v12529_v58 = vpop.permute.xlu0 %9338  ;;  %v1892_v27 = vsel %vm1890_vm7, %v8991_v24, %v8996_v59  ;;  %v18312_v24 = vld [vmem:[#allocation16_spill] sm:$0xff]  ;;  %v9075_v59 = vunpack.i.l.bf16 %v12179_v60 }
 0x1c1   : > { %18302 = vst [vmem:[#allocation80_spill] sm:$0xff] %v12527_v50  ;;  %18303 = vst [vmem:[#allocation81_spill] sm:$0xff] %v12529_v58  ;;  %v18317_v50 = vld [vmem:[#allocation22_spill] sm:$0xff] }
 0x1c2   : > { %9613 = vrot.lane.b32.xlu1 %v12210_v54, %s17998_s24  ;;  %v1891_v54 = vsel %vm1890_vm7, %v8990_v9, %v8995_v56  ;;  %v9005_v9 = vunpack.i.l.bf16 %v11971_v34  ;;  %v9101_v56 = vunpack.i.h.bf16 %v12228_v46 }
 0x1c3   : > { %v1924_v26 = vsel %vm1923_vm8, %v1891_v54, %v18310_v38 }
 0x1c4   : > { %v12533_v33 = vpop.permute.xlu1 %9333  ;;  %v12535_v61 = vpop.permute.xlu0 %9348 }
 0x1c5   : > { %18304 = vst [vmem:[#allocation82_spill] sm:$0xff] %v12533_v33  ;;  %18305 = vst [vmem:[#allocation83_spill] sm:$0xff] %v12535_v61  ;;  %v18311_v61 = vld [vmem:[#allocation34_spill] sm:$0xff]  ;;  %v9001_v33 = vunpack.i.h.bf16 %v11964_v29 }
 0x1c6   : > { %9623 = vrot.lane.b32.xlu1 %v9622_v28, %s17998_s24  ;;  %v1925_v37 = vsel %vm1923_vm8, %v1892_v27, %v18311_v61  ;;  %v18316_v61 = vld [vmem:[#allocation21_spill] sm:$0xff]  ;;  %v12601_v27 = vsel %vm489_vm0, %v1924_v26, %v9075_v59  ;;  %v9110_v26 = vunpack.i.l.bf16 %v12240_v41  ;;  %v2683_v59 = vld [vmem:[#allocation2 + $0x8] sm:$0xff]  ;;  %v9106_v41 = vunpack.i.h.bf16 %v12246_v12  ;;  %s18475_s24 = smov 56  }
 0x1c7   : > { %18328 = vst [vmem:[#allocation21_spill] sm:$0xff] %v12601_v27  ;;  %v2881_v52 = vrot.slane %v2683_v59, 1  ;;  %v18337_v27 = vunpack.i.l.bf16 %v11964_v29  ;;  %v9121_v29 = vunpack.i.h.bf16 %v12248_v21 }
 0x1c8   : > { %v12542_v11 = vpop.permute.xlu1 %9343  ;;  %v12544_v6 = vpop.permute.xlu0 %9358 }
 0x1c9   : > { %18306 = vst [vmem:[#allocation84_spill] sm:$0xff] %v12542_v11  ;;  %18307 = vst [vmem:[#allocation85_spill] sm:$0xff] %v12544_v6  ;;  %v9006_v6 = vunpack.i.h.bf16 %v11971_v34  ;;  %v9100_v34 = vunpack.i.l.bf16 %v12228_v46 }
 0x1cb   : > { %v1895_v11 = vsel %vm1890_vm7, %v9005_v9, %v9100_v34  ;;  %v12604_v9 = vsel %vm489_vm0, %v1925_v37, %v9076_v44  ;;  %v1896_v34 = vsel %vm1890_vm7, %v9006_v6, %v9101_v56  ;;  %v9080_v44 = vunpack.i.l.bf16 %v12204_v25  ;;  %v18333_v56 = vld [vmem:[#allocation13_spill] sm:$0xff] }
 0x1cc   : > { %v12548_v5 = vpop.permute.xlu1 %9353  ;;  %v12550_v28 = vpop.permute.xlu0 %9368  ;;  %18329 = vst [vmem:[#allocation22_spill] sm:$0xff] %v12604_v9  ;;  %v1928_v60 = vsel %vm1923_vm8, %v1895_v11, %v18330_v16  ;;  %v9086_v37 = vunpack.i.h.bf16 %v12206_v57  ;;  %v9090_v16 = vunpack.i.l.bf16 %v12226_v30  ;;  %v2682_v11 = vld [vmem:[#allocation2] sm:$0xff] }
 0x1cd   : > { %18308 = vst [vmem:[#allocation86_spill] sm:$0xff] %v12548_v5  ;;  %18309 = vst [vmem:[#allocation87_spill] sm:$0xff] %v12550_v28  ;;  %v18313_v5 = vld [vmem:[#allocation17_spill] sm:$0xff]  ;;  %v9627_v17 = vpack.i.bf16 %v2683_v59, %v2682_v11  ;;  %v2880_v9 = vrot.slane %v2682_v11, 1 }
 0x1ce   : > { %v9015_v58 = vunpack.i.l.bf16 %v18313_v5 }
 0x1cf   : > { %9628 = vrot.lane.b32.xlu0 %v9627_v17, %s18024_s25  ;;  %v18341_v17 = vunpack.i.l.bf16 %v18312_v24 }
 0x1d0   : > { %v12564_v38 = vpop.permute.xlu1 %9363  ;;  %v12566_v54 = vpop.permute.xlu0 %9378 }
 0x1d1   : > { %18314 = vst [vmem:[#allocation33_spill] sm:$0xff] %v12564_v38  ;;  %18315 = vst [vmem:[#allocation34_spill] sm:$0xff] %v12566_v54  ;;  %v9096_v54 = vunpack.i.h.bf16 %v12238_v45  ;;  %v9085_v38 = vunpack.i.l.bf16 %v12206_v57 }
 0x1d3   : > { %v12626_v45 = vsel %vm489_vm0, %v1928_v60, %v9085_v38  ;;  %v3057_v38 = vrot.slane %v2683_v59, 2  ;;  %v3056_v60 = vrot.slane %v2682_v11, 2  ;;  %v18343_v59 = vunpack.i.h.bf16 %v18312_v24 }
 0x1d4   : > { %v12584_v43 = vpop.permute.xlu1 %9373  ;;  %v12586_v28 = vpop.permute.xlu0 %9388  ;;  %18334 = vst [vmem:[#allocation43_spill] sm:$0xff] %v12626_v45  ;;  %v9116_v24 = vunpack.i.h.bf16 %v12254_v51 }
 0x1d5   : > { %18321 = vst [vmem:[#allocation16_spill] sm:$0xff] %v12584_v43  ;;  %18322 = vst [vmem:[#allocation17_spill] sm:$0xff] %v12586_v28  ;;  %v9081_v28 = vunpack.i.h.bf16 %v12204_v25  ;;  %v9105_v25 = vunpack.i.l.bf16 %v12246_v12  ;;  %v18339_v12 = vld [vmem:[#allocation56_spill] sm:$0xff] }
 0x1d8   : > { %v12609_v46 = vpop.permute.xlu1 %9383  ;;  %v12611_v43 = vpop.permute.xlu0 %9398 }
 0x1d9   : > { %18331 = vst [vmem:[#allocation25_spill] sm:$0xff] %v12609_v46  ;;  %18332 = vst [vmem:[#allocation49_spill] sm:$0xff] %v12611_v43  ;;  %v1929_v46 = vsel %vm1923_vm8, %v1896_v34, %v18333_v56  ;;  %v1894_v43 = vsel %vm1890_vm7, %v9001_v33, %v9096_v54  ;;  %v1893_v34 = vsel %vm1890_vm7, %v18337_v27, %v9095_v14  ;;  %v9120_v54 = vunpack.i.l.bf16 %v12248_v21 }
 0x1da   : > { %v1899_v33 = vsel %vm1890_vm7, %v9015_v58, %v9110_v26  ;;  %v2883_v56 = vrot.slane %v2684_v48, 1  ;;  %v12645_v14 = vsel %vm489_vm0, %v1929_v46, %v9086_v37  ;;  %v2882_v58 = vsel %vm998_vm2, %v2880_v9, %v2881_v52  ;;  %v18340_v26 = vld [vmem:[#allocation55_spill] sm:$0xff]  ;;  %v18342_v37 = vld [vmem:[#allocation20_spill] sm:$0xff] }
 0x1db   : > { %v1927_v27 = vsel %vm1923_vm8, %v1894_v43, %v18339_v12  ;;  %v1926_v11 = vsel %vm1923_vm8, %v1893_v34, %v18340_v26  ;;  %v9115_v46 = vunpack.i.l.bf16 %v12254_v51  ;;  %v12663_v9 = vsel %vm1923_vm8, %v1899_v33, %v18342_v37  ;;  %v18345_v26 = vld [vmem:[#allocation41_spill] sm:$0xff] }
 0x1dc   : > { %v12629_v57 = vpop.permute.xlu1 %9393  ;;  %v12631_v6 = vpop.permute.xlu0 %9408  ;;  %v2884_v21 = vsel %vm998_vm2, %v2881_v52, %v2883_v56  ;;  %v3058_v43 = vsel %vm1175_vm4, %v3056_v60, %v3057_v38  ;;  %v18344_v34 = vunpack.i.l.bf16 %v18317_v50  ;;  %v18347_v60 = vunpack.i.h.bf16 %v18317_v50 }
 0x1dd   : > { %18335 = vst [vmem:[#allocation48_spill] sm:$0xff] %v12629_v57  ;;  %18336 = vst [vmem:[#allocation35_spill] sm:$0xff] %v12631_v6  ;;  %v3059_v57 = vrot.slane %v2684_v48, 2  ;;  %v18338_v6 = vunpack.i.h.bf16 %v18313_v5  ;;  %v1897_v48 = vsel %vm1890_vm7, %v18341_v17, %v9105_v25  ;;  %v1898_v25 = vsel %vm1890_vm7, %v18343_v59, %v9106_v41  ;;  %v18346_v17 = vld [vmem:[#allocation40_spill] sm:$0xff]  ;;  %v18351_v59 = vld [vmem:[#allocation30_spill] sm:$0xff] }
 0x1de   : > { %v1903_v12 = vsel %vm1890_vm7, %v18344_v34, %v9120_v54  ;;  %v9632_v56 = vpack.i.bf16 %v2884_v21, %v2882_v58  ;;  %v1930_v33 = vsel %vm1923_vm8, %v1897_v48, %v18346_v17  ;;  %v9130_v41 = vunpack.i.l.bf16 %v12256_v63 }
 0x1df   : > { %v1900_v45 = vsel %vm1890_vm7, %v18338_v6, %v9111_v0  ;;  %v3060_v6 = vsel %vm1175_vm4, %v3057_v38, %v3059_v57  ;;  %v1904_v57 = vsel %vm1890_vm7, %v18347_v60, %v9121_v29  ;;  %v9131_v38 = vunpack.i.h.bf16 %v12256_v63  ;;  %v18348_v29 = vld [vmem:[#allocation14_spill] sm:$0xff] }
 0x1e0   : > { %v12655_v5 = vpop.permute.xlu1 %9403  ;;  %v12657_v0 = vpop.permute.xlu0 %9418  ;;  %v12675_v52 = vsel %vm1923_vm8, %v1900_v45, %v18345_v26  ;;  %v12686_v54 = vsel %vm489_vm0, %v1926_v11, %v9080_v44  ;;  %v12689_v45 = vsel %vm489_vm0, %v1927_v27, %v9081_v28  ;;  %9633 = vrot.lane.b32.xlu0 %v9632_v56, %s18023_s26  ;;  %v9637_v50 = vpack.i.bf16 %v3060_v6, %v3058_v43  ;;  %v18350_v27 = vld [vmem:[#allocation23_spill] sm:$0xff] }
 0x1e1   : > { %v1931_v51 = vsel %vm1923_vm8, %v1898_v25, %v18348_v29  ;;  %v18349_v48 = vunpack.i.l.bf16 %v18316_v61  ;;  %v9126_v44 = vunpack.i.h.bf16 %v12262_v3  ;;  %v9125_v11 = vunpack.i.l.bf16 %v12262_v3 }
 0x1e2   : > { %v9140_v28 = vunpack.i.l.bf16 %v12264_v40  ;;  %v12706_v37 = vsel %vm1923_vm8, %v1903_v12, %v18350_v27  ;;  %v12710_v43 = vsel %vm1923_vm8, %v1904_v57, %v18351_v59  ;;  %v12713_v6 = vsel %vm489_vm0, %v1930_v33, %v9090_v16  ;;  %v18355_v16 = vld [vmem:[#allocation44_spill] sm:$0xff]  ;;  %v18361_v27 = vld [vmem:[#allocation19_spill] sm:$0xff] }
 0x1e3   : > { %v1901_v63 = vsel %vm1890_vm7, %v18349_v48, %v9115_v46  ;;  %v18352_v25 = vunpack.i.h.bf16 %v18316_v61  ;;  %v18353_v34 = vunpack.i.l.bf16 %v18318_v42  ;;  %v9141_v26 = vunpack.i.h.bf16 %v12264_v40  ;;  %v18362_v59 = vld [vmem:[#allocation27_spill] sm:$0xff] }
 0x1e4   : > { %v12691_v58 = vpop.permute.xlu1 %9413  ;;  %v12693_v21 = vpop.permute.xlu0 %9428  ;;  %v9135_v12 = vunpack.i.l.bf16 %v12270_v13  ;;  %v18354_v56 = vunpack.i.h.bf16 %v18318_v42  ;;  %v9136_v60 = vunpack.i.h.bf16 %v12270_v13  ;;  %v12729_v33 = vsel %vm1923_vm8, %v1901_v63, %v18355_v16  ;;  %9638 = vrot.lane.b32.xlu0 %v9637_v50, %s18026_s27 }
 0x1e5   : > { %v1902_v46 = vsel %vm1890_vm7, %v18352_v25, %v9116_v24  ;;  %v1907_v3 = vsel %vm1890_vm7, %v18353_v34, %v9130_v41  ;;  %v18356_v61 = vunpack.i.h.bf16 %v12226_v30  ;;  %v18358_v42 = vunpack.i.h.bf16 %v12049_v1 }
 0x1e6   : > { %v1908_v17 = vsel %vm1890_vm7, %v18354_v56, %v9131_v38  ;;  %v18359_v13 = vunpack.i.l.bf16 %v12049_v1  ;;  %v9151_v29 = vunpack.i.h.bf16 %v12272_v4  ;;  %v9150_v30 = vunpack.i.l.bf16 %v12272_v4  ;;  %v18365_v56 = vld [vmem:[#allocation28_spill] sm:$0xff] }
 0x1e7   : > { %v12734_v57 = vsel %vm489_vm0, %v1931_v51, %v18356_v61  ;;  %v1906_v41 = vsel %vm1890_vm7, %v18358_v42, %v9126_v44  ;;  %v18360_v51 = vunpack.i.l.bf16 %v18320_v22  ;;  %v9145_v63 = vunpack.i.l.bf16 %v12278_v8 }
 0x1e8   : > { %v12736_v24 = vpop.permute.xlu1 %9423  ;;  %v12738_v40 = vpop.permute.xlu0 %9438  ;;  %v1905_v38 = vsel %vm1890_vm7, %v18359_v13, %v9125_v11  ;;  %v1935_v50 = vsel %vm1923_vm8, %v1902_v46, %v18361_v27  ;;  %v1940_v44 = vsel %vm1923_vm8, %v1907_v3, %v18362_v59  ;;  %v18363_v1 = vunpack.i.h.bf16 %v18320_v22  ;;  %v18367_v3 = vld [vmem:[#allocation26_spill] sm:$0xff] }
 0x1e9   : > { %18357 = vst [vmem:[#allocation50_spill] sm:$0xff] %v12738_v40  ;;  %v1911_v48 = vsel %vm1890_vm7, %v18360_v51, %v9140_v28  ;;  %v18364_v25 = vunpack.i.l.bf16 %v18319_v53  ;;  %v9146_v34 = vunpack.i.h.bf16 %v12278_v8  ;;  %v1941_v28 = vsel %vm1923_vm8, %v1908_v17, %v18365_v56 }
 0x1ea   : > { %v1912_v11 = vsel %vm1890_vm7, %v18363_v1, %v9141_v26  ;;  %v18366_v16 = vunpack.i.h.bf16 %v18319_v53  ;;  %v9160_v61 = vunpack.i.l.bf16 %v12280_v23  ;;  %v12772_v22 = vsel %vm1923_vm8, %v1905_v38, %v18367_v3  ;;  %v18368_v26 = vld [vmem:[#allocation47_spill] sm:$0xff]  ;;  %v18378_v3 = vld [vmem:[#allocation29_spill] sm:$0xff] }
 0x1eb   : > { %v1909_v4 = vsel %vm1890_vm7, %v18364_v25, %v9135_v12  ;;  %v12776_v42 = vsel %vm1923_vm8, %v1906_v41, %v18368_v26  ;;  %v18371_v17 = vunpack.i.l.bf16 %v18324_v35  ;;  %v9161_v51 = vunpack.i.h.bf16 %v12280_v23  ;;  %v18373_v38 = vld [vmem:[#allocation31_spill] sm:$0xff]  ;;  %v18375_v25 = vld [vmem:[#allocation32_spill] sm:$0xff] }
 0x1ec   : > { %v1910_v46 = vsel %vm1890_vm7, %v18366_v16, %v9136_v60  ;;  %v12778_v12 = vpop.permute.xlu1 %9433  ;;  %v12780_v8 = vpop.permute.xlu0 %9448  ;;  %v18372_v60 = vunpack.i.h.bf16 %v18324_v35  ;;  %v12791_v27 = vsel %vm1923_vm8, %v1911_v48, %v18373_v38  ;;  %v18374_v41 = vunpack.i.l.bf16 %v18323_v15  ;;  %v18383_v38 = vld [vmem:[#allocation15_spill] sm:$0xff] }
 0x1ed   : > { %18369 = vst [vmem:[#allocation42_spill] sm:$0xff] %v12778_v12  ;;  %18370 = vst [vmem:[#allocation39_spill] sm:$0xff] %v12780_v8  ;;  %v1915_v53 = vsel %vm1890_vm7, %v18371_v17, %v9150_v30  ;;  %v9155_v1 = vunpack.i.l.bf16 %v12286_v18  ;;  %v12799_v56 = vsel %vm1923_vm8, %v1912_v11, %v18375_v25  ;;  %v18376_v30 = vld [vmem:[#allocation24_spill] sm:$0xff]  ;;  %v18377_v23 = vunpack.i.h.bf16 %v18323_v15 }
 0x1ee   : > { %v1916_v13 = vsel %vm1890_vm7, %v18372_v60, %v9151_v29  ;;  %v1913_v59 = vsel %vm1890_vm7, %v18374_v41, %v9145_v63  ;;  %v12803_v35 = vsel %vm1923_vm8, %v1909_v4, %v18376_v30  ;;  %v9156_v48 = vunpack.i.h.bf16 %v12286_v18  ;;  %v18384_v41 = vld [vmem:[#allocation36_spill] sm:$0xff] }
 0x1ef   : > { %v1914_v29 = vsel %vm1890_vm7, %v18377_v23, %v9146_v34  ;;  %v9170_v16 = vunpack.i.l.bf16 %v12298_v20  ;;  %v12812_v63 = vsel %vm1923_vm8, %v1910_v46, %v18378_v3  ;;  %v18379_v26 = vunpack.i.l.bf16 %v18326_v7  ;;  %v18387_v23 = vld [vmem:[#allocation51_spill] sm:$0xff] }
 0x1f0   : > { %v9171_v17 = vunpack.i.h.bf16 %v12298_v20  ;;  %v12820_v4 = vsel %vm1923_vm8, %v1915_v53, %v12186_v39  ;;  %v12824_v15 = vsel %vm1923_vm8, %v1916_v13, %v12189_v31  ;;  %v12826_v18 = vpop.permute.xlu1 %9443  ;;  %v12828_v34 = vpop.permute.xlu0 %9458  ;;  %v18382_v46 = vunpack.i.h.bf16 %v18326_v7  ;;  %v18386_v13 = vld [vmem:[#allocation18_spill] sm:$0xff] }
 0x1f1   : > { %v1919_v11 = vsel %vm1890_vm7, %v18379_v26, %v9160_v61  ;;  %18380 = vst [vmem:[#allocation37_spill] sm:$0xff] %v12826_v18  ;;  %18381 = vst [vmem:[#allocation13_spill] sm:$0xff] %v12828_v34  ;;  %v9166_v61 = vunpack.i.h.bf16 %v18383_v38  ;;  %v9165_v20 = vunpack.i.l.bf16 %v18383_v38  ;;  %v1946_v39 = vsel %vm1923_vm8, %v1913_v59, %v18384_v41  ;;  %v18390_v38 = vld [vmem:[#allocation46_spill] sm:$0xff]  ;;  %v18413_v34 = vld [vmem:[#allocation43_spill] sm:$0xff] }
 0x1f2   : > { %v1920_v60 = vsel %vm1890_vm7, %v18382_v46, %v9161_v51  ;;  %v18385_v53 = vunpack.i.l.bf16 %v18325_v49  ;;  %v9181_v25 = vunpack.i.h.bf16 %v18386_v13  ;;  %v9180_v30 = vunpack.i.l.bf16 %v18386_v13  ;;  %v18414_v18 = vld [vmem:[#allocation67_spill] sm:$0xff] }
 0x1f3   : > { %v1947_v7 = vsel %vm1923_vm8, %v1914_v29, %v18387_v23  ;;  %v18388_v51 = vunpack.i.h.bf16 %v18325_v49  ;;  %v18389_v26 = vunpack.i.l.bf16 %v18327_v55  ;;  %v9176_v59 = vunpack.i.h.bf16 %v12308_v10 }
 0x1f4   : > { %v1917_v31 = vsel %vm1890_vm7, %v18385_v53, %v9155_v1  ;;  %v1952_v1 = vsel %vm1923_vm8, %v1919_v11, %v18390_v38  ;;  %v18391_v41 = vunpack.i.h.bf16 %v18327_v55  ;;  %v9175_v13 = vunpack.i.l.bf16 %v12308_v10  ;;  %v12861_v23 = vpop.permute.xlu0 %9468  ;;  %v18393_v55 = vld [vmem:[#allocation54_spill] sm:$0xff]  ;;  %v18394_v10 = vld [vmem:[#allocation53_spill] sm:$0xff] }
 0x1f5   : > { %v1918_v3 = vsel %vm1890_vm7, %v18388_v51, %v9156_v48  ;;  %v1921_v46 = vsel %vm1890_vm7, %v18389_v26, %v9170_v16  ;;  %v9191_v29 = vunpack.i.h.bf16 %v12310_v36  ;;  %v9190_v49 = vunpack.i.l.bf16 %v12310_v36  ;;  %v12859_v48 = vpop.permute.xlu1 %9453 }
 0x1f6   : > { %v1922_v53 = vsel %vm1890_vm7, %v18391_v41, %v9171_v17  ;;  %18392 = vst [vmem:[#allocation56_spill] sm:$0xff] %v12859_v48  ;;  %v12865_v16 = vsel %vm489_vm0, %v12663_v9, %v9165_v20  ;;  %v12869_v11 = vsel %vm489_vm0, %v12675_v52, %v9166_v61  ;;  %v1953_v17 = vsel %vm1923_vm8, %v1920_v60, %v18393_v55  ;;  %v18395_v9 = vld [vmem:[#allocation38_spill] sm:$0xff]  ;;  %v18396_v52 = vld [vmem:[#allocation52_spill] sm:$0xff] }
 0x1f7   : > { %v1950_v51 = vsel %vm1923_vm8, %v1917_v31, %v18394_v10  ;;  %v12877_v36 = vsel %vm489_vm0, %v12706_v37, %v9180_v30  ;;  %v12881_v26 = vsel %vm489_vm0, %v12710_v43, %v9181_v25  ;;  %v1951_v20 = vsel %vm1923_vm8, %v1918_v3, %v18395_v9  ;;  %v18398_v37 = vld [vmem:[#allocation45_spill] sm:$0xff]  ;;  %v18402_v10 = vld [vmem:[#allocation58_spill] sm:$0xff] }
 0x1f8   : > { %v12887_v61 = vsel %vm1923_vm8, %v1921_v46, %v18396_v52  ;;  %v12890_v60 = vsel %vm489_vm0, %v1935_v50, %v9176_v59  ;;  %v9186_v31 = vunpack.i.h.bf16 %v12315_v2  ;;  %v9185_v38 = vunpack.i.l.bf16 %v12315_v2  ;;  %v12911_v59 = vpop.permute.xlu0 %9478 }
 0x1f9   : > { %18397 = vst [vmem:[#allocation55_spill] sm:$0xff] %v12887_v61  ;;  %v12896_v30 = vsel %vm1923_vm8, %v1922_v53, %v18398_v37  ;;  %v12900_v43 = vsel %vm489_vm0, %v12729_v33, %v9175_v13  ;;  %v12903_v25 = vsel %vm489_vm0, %v1940_v44, %v9190_v49  ;;  %v12906_v3 = vsel %vm489_vm0, %v1941_v28, %v9191_v29  ;;  %v12909_v46 = vpop.permute.xlu1 %9463  ;;  %v18401_v13 = vld [vmem:[#allocation57_spill] sm:$0xff]  ;;  %v18403_v37 = vld [vmem:[#allocation59_spill] sm:$0xff] }
 0x1fa   : > { %18399 = vst [vmem:[#allocation20_spill] sm:$0xff] %v12896_v30  ;;  %v9200_v50 = vunpack.i.l.bf16 %v12317_v32  ;;  %18400 = vst [vmem:[#allocation41_spill] sm:$0xff] %v12909_v46  ;;  %v9201_v2 = vunpack.i.h.bf16 %v12317_v32  ;;  %v9196_v41 = vunpack.i.h.bf16 %v12323_v62  ;;  %v9195_v53 = vunpack.i.l.bf16 %v12323_v62 }
 0x1fb   : > { %v9210_v33 = vunpack.i.l.bf16 %v12325_v19  ;;  %v9211_v44 = vunpack.i.h.bf16 %v12325_v19  ;;  %v9206_v49 = vunpack.i.h.bf16 %v18401_v13  ;;  %v9205_v28 = vunpack.i.l.bf16 %v18401_v13 }
 0x1fc   : > { %v9220_v29 = vunpack.i.l.bf16 %v12336_v47  ;;  %v12923_v55 = vsel %vm489_vm0, %v12776_v42, %v9186_v31  ;;  %v12927_v32 = vsel %vm489_vm0, %v12772_v22, %v9185_v38  ;;  %v9221_v62 = vunpack.i.h.bf16 %v12336_v47  ;;  %v12940_v31 = vpop.permute.xlu0 %9488 }
 0x1fd   : > { %v9216_v9 = vunpack.i.h.bf16 %v18402_v10  ;;  %v12933_v19 = vsel %vm489_vm0, %v12791_v27, %v9200_v50  ;;  %v9215_v52 = vunpack.i.l.bf16 %v18402_v10  ;;  %v9231_v13 = vunpack.i.h.bf16 %v18403_v37  ;;  %v12938_v42 = vpop.permute.xlu1 %9473 }
 0x1fe   : > { %v9230_v46 = vunpack.i.l.bf16 %v18403_v37  ;;  %v12944_v22 = vsel %vm489_vm0, %v12799_v56, %v9201_v2  ;;  %v12948_v47 = vsel %vm489_vm0, %v12812_v63, %v9196_v41  ;;  %v12952_v27 = vsel %vm489_vm0, %v12803_v35, %v9195_v53  ;;  %v18410_v37 = vld [vmem:[#allocation65_spill] sm:$0xff] }
 0x1ff   : > { %v12956_v38 = vsel %vm489_vm0, %v12820_v4, %v9210_v33  ;;  %v12960_v50 = vsel %vm489_vm0, %v12824_v15, %v9211_v44  ;;  %v12963_v10 = vsel %vm489_vm0, %v1947_v7, %v9206_v49  ;;  %v12966_v56 = vsel %vm489_vm0, %v1946_v39, %v9205_v28  ;;  %v18404_v4 = vld [vmem:[#allocation61_spill] sm:$0xff]  ;;  %v18406_v33 = vld [vmem:[#allocation22_spill] sm:$0xff] }
 0x200   : > { %v12969_v63 = vsel %vm489_vm0, %v1952_v1, %v9220_v29  ;;  %v12972_v35 = vsel %vm489_vm0, %v1953_v17, %v9221_v62  ;;  %v12975_v2 = vsel %vm489_vm0, %v1951_v20, %v9216_v9  ;;  %v9241_v41 = vunpack.i.h.bf16 %v18404_v4  ;;  %v18405_v7 = vld [vmem:[#allocation21_spill] sm:$0xff]  ;;  %v18407_v17 = vld [vmem:[#allocation62_spill] sm:$0xff]  ;;  %v12993_v20 = vpop.permute.xlu0 %9498  ;;  %v18408_v29 = vld [vmem:[#allocation63_spill] sm:$0xff] }
 0x201   : > { %v9240_v15 = vunpack.i.l.bf16 %v18404_v4  ;;  %v12980_v53 = vsel %vm489_vm0, %v1950_v51, %v9215_v52  ;;  %v12984_v39 = vsel %vm1988_vm9, %v18405_v7, %v9230_v46  ;;  %v12988_v1 = vsel %vm1988_vm9, %v18406_v33, %v9231_v13  ;;  %v12991_v49 = vpop.permute.xlu1 %9483  ;;  %v18409_v9 = vld [vmem:[#allocation64_spill] sm:$0xff]  ;;  %v18411_v7 = vld [vmem:[#allocation66_spill] sm:$0xff] }
 0x202   : > { %v9236_v44 = vunpack.i.h.bf16 %v18407_v17  ;;  %v9235_v28 = vunpack.i.l.bf16 %v18407_v17  ;;  %v9251_v62 = vunpack.i.h.bf16 %v18408_v29  ;;  %v9250_v51 = vunpack.i.l.bf16 %v18408_v29 }
 0x203   : > { %v9246_v52 = vunpack.i.h.bf16 %v18409_v9  ;;  %v9245_v46 = vunpack.i.l.bf16 %v18409_v9  ;;  %v9261_v4 = vunpack.i.h.bf16 %v18410_v37  ;;  %v9260_v13 = vunpack.i.l.bf16 %v18410_v37 }
 0x204   : > { %v9256_v33 = vunpack.i.h.bf16 %v18411_v7  ;;  %v13007_v17 = vsel %vm1988_vm9, %v18413_v34, %v9240_v15  ;;  %v13011_v29 = vsel %vm1988_vm9, %v12645_v14, %v9241_v41  ;;  %v13015_v9 = vsel %vm1988_vm9, %v12689_v45, %v9236_v44  ;;  %v13022_v48 = vpop.permute.xlu0 %9508  ;;  %v18415_v15 = vld [vmem:[#allocation68_spill] sm:$0xff] }
 0x205   : > { %v9255_v37 = vunpack.i.l.bf16 %v18411_v7  ;;  %v9271_v8 = vunpack.i.h.bf16 %v18414_v18  ;;  %v9270_v30 = vunpack.i.l.bf16 %v18414_v18  ;;  %v13020_v12 = vpop.permute.xlu1 %9493  ;;  %v13026_v34 = vsel %vm1988_vm9, %v12686_v54, %v9235_v28  ;;  %v18416_v28 = vld [vmem:[#allocation69_spill] sm:$0xff]  ;;  %v18420_v7 = vld [vmem:[#allocation71_spill] sm:$0xff] }
 0x206   : > { %v13030_v14 = vsel %vm1988_vm9, %v12865_v16, %v9250_v51  ;;  %v13034_v45 = vsel %vm1988_vm9, %v12869_v11, %v9251_v62  ;;  %v13038_v41 = vsel %vm1988_vm9, %v12734_v57, %v9246_v52  ;;  %v13042_v18 = vsel %vm1988_vm9, %v12713_v6, %v9245_v46  ;;  %v18417_v51 = vld [vmem:[#allocation70_spill] sm:$0xff] }
 0x207   : > { %v13046_v54 = vsel %vm1988_vm9, %v12877_v36, %v9260_v13  ;;  %v13050_v16 = vsel %vm1988_vm9, %v12881_v26, %v9261_v4  ;;  %v13054_v11 = vsel %vm1988_vm9, %v12890_v60, %v9256_v33  ;;  %v9266_v57 = vunpack.i.h.bf16 %v18415_v15 }
 0x208   : > { %v9265_v44 = vunpack.i.l.bf16 %v18415_v15  ;;  %v9281_v62 = vunpack.i.h.bf16 %v18416_v28  ;;  %v9280_v6 = vunpack.i.l.bf16 %v18416_v28  ;;  %v13062_v36 = vsel %vm1988_vm9, %v12900_v43, %v9255_v37  ;;  %v13075_v4 = vpop.permute.xlu0 %9518  ;;  %v18421_v37 = vld [vmem:[#allocation72_spill] sm:$0xff] }
 0x209   : > { %v13066_v26 = vsel %vm1988_vm9, %v12903_v25, %v9270_v30  ;;  %v13070_v60 = vsel %vm1988_vm9, %v12906_v3, %v9271_v8  ;;  %v9276_v52 = vunpack.i.h.bf16 %v18417_v51  ;;  %v13073_v46 = vpop.permute.xlu1 %9503  ;;  %18419 = vst [vmem:[#allocation14_spill] sm:$0xff] %v13075_v4  ;;  %v9275_v13 = vunpack.i.l.bf16 %v18417_v51  ;;  %v18422_v25 = vld [vmem:[#allocation73_spill] sm:$0xff]  ;;  %v18423_v3 = vld [vmem:[#allocation74_spill] sm:$0xff] }
 0x20a   : > { %18418 = vst [vmem:[#allocation40_spill] sm:$0xff] %v13073_v46  ;;  %v9291_v33 = vunpack.i.h.bf16 %v18420_v7  ;;  %v9290_v43 = vunpack.i.l.bf16 %v18420_v7  ;;  %v9286_v15 = vunpack.i.h.bf16 %v18421_v37  ;;  %v9285_v30 = vunpack.i.l.bf16 %v18421_v37 }
 0x20b   : > { %v9301_v28 = vunpack.i.h.bf16 %v18422_v25  ;;  %v9300_v8 = vunpack.i.l.bf16 %v18422_v25  ;;  %v9296_v61 = vunpack.i.h.bf16 %v18423_v3  ;;  %v13087_v4 = vsel %vm1988_vm9, %v12923_v55, %v9266_v57  ;;  %v18424_v57 = vld [vmem:[#allocation75_spill] sm:$0xff] }
 0x20c   : > { %v13091_v51 = vsel %vm1988_vm9, %v12927_v32, %v9265_v44  ;;  %v13095_v7 = vsel %vm1988_vm9, %v12933_v19, %v9280_v6  ;;  %v13099_v37 = vsel %vm1988_vm9, %v12944_v22, %v9281_v62  ;;  %v13103_v25 = vsel %vm1988_vm9, %v12948_v47, %v9276_v52  ;;  %v13110_v46 = vpop.permute.xlu0 %9528  ;;  %v18428_v52 = vld [vmem:[#allocation77_spill] sm:$0xff] }
 0x20d   : > { %v9295_v55 = vunpack.i.l.bf16 %v18423_v3  ;;  %v9311_v40 = vunpack.i.h.bf16 %v18424_v57  ;;  %v9310_v32 = vunpack.i.l.bf16 %v18424_v57  ;;  %v13108_v44 = vpop.permute.xlu1 %9513  ;;  %v13114_v19 = vsel %vm1988_vm9, %v12952_v27, %v9275_v13 }
 0x20e   : > { %v13118_v22 = vsel %vm1988_vm9, %v12956_v38, %v9290_v43  ;;  %v13122_v47 = vsel %vm1988_vm9, %v12960_v50, %v9291_v33  ;;  %v13126_v62 = vsel %vm1988_vm9, %v12963_v10, %v9286_v15  ;;  %v13130_v6 = vsel %vm1988_vm9, %v12966_v56, %v9285_v30  ;;  %v18429_v33 = vld [vmem:[#allocation78_spill] sm:$0xff] }
 0x20f   : > { %v13134_v27 = vsel %vm1988_vm9, %v12969_v63, %v9300_v8  ;;  %v13138_v38 = vsel %vm1988_vm9, %v12972_v35, %v9301_v28  ;;  %v13142_v50 = vsel %vm1988_vm9, %v12975_v2, %v9296_v61  ;;  %v9321_v13 = vunpack.i.h.bf16 %v18428_v52  ;;  %v18431_v2 = vld [vmem:[#allocation79_spill] sm:$0xff] }
 0x210   : > { %18425 = vst [vmem:[#allocation23_spill] sm:$0xff] %v13134_v27  ;;  %18426 = vst [vmem:[#allocation30_spill] sm:$0xff] %v13138_v38  ;;  %v9320_v10 = vunpack.i.l.bf16 %v18428_v52  ;;  %v9316_v43 = vunpack.i.h.bf16 %v18429_v33  ;;  %v9315_v56 = vunpack.i.l.bf16 %v18429_v33  ;;  %v13150_v63 = vsel %vm1988_vm9, %v12980_v53, %v9295_v55  ;;  %v13159_v28 = vpop.permute.xlu0 %9538  ;;  %v18433_v52 = vld [vmem:[#allocation17_spill] sm:$0xff] }
 0x211   : > { %18427 = vst [vmem:[#allocation44_spill] sm:$0xff] %v13142_v50  ;;  %18430 = vst [vmem:[#allocation19_spill] sm:$0xff] %v13150_v63  ;;  %v2022_v35 = vsel %vm2021_vm10, %v12984_v39, %v9310_v32  ;;  %v2023_v61 = vsel %vm2021_vm10, %v12988_v1, %v9311_v40  ;;  %v9330_v15 = vunpack.i.l.bf16 %v18431_v2  ;;  %v13157_v30 = vpop.permute.xlu1 %9523  ;;  %v9391_v33 = vunpack.i.h.bf16 %v18433_v52  ;;  %v18434_v39 = vld [vmem:[#allocation80_spill] sm:$0xff]  ;;  %v18435_v27 = vld [vmem:[#allocation81_spill] sm:$0xff] }
 0x212   : > { %v9390_v53 = vunpack.i.l.bf16 %v18433_v52  ;;  %v9331_v55 = vunpack.i.h.bf16 %v18431_v2  ;;  %v9326_v32 = vunpack.i.h.bf16 %v18434_v39  ;;  %v9471_v40 = vunpack.i.h.bf16 %v12861_v23 }
 0x213   : > { %v9470_v1 = vunpack.i.l.bf16 %v12861_v23  ;;  %v2026_v38 = vsel %vm2021_vm10, %v13007_v17, %v9320_v10  ;;  %v2027_v3 = vsel %vm2021_vm10, %v13011_v29, %v9321_v13  ;;  %v2025_v57 = vsel %vm2021_vm10, %v13015_v9, %v9316_v43 }
 0x214   : > { %v2024_v52 = vsel %vm2021_vm10, %v13026_v34, %v9315_v56  ;;  %v13179_v2 = vsel %vm2021_vm10, %v13030_v14, %v9330_v15  ;;  %v9325_v8 = vunpack.i.l.bf16 %v18434_v39  ;;  %v9341_v23 = vunpack.i.h.bf16 %v18435_v27  ;;  %v9549_v10 = vpop.permute.xlu0 %9548  ;;  %v18436_v15 = vld [vmem:[#allocation49_spill] sm:$0xff] }
 0x215   : > { %v9340_v63 = vunpack.i.l.bf16 %v18435_v27  ;;  %v13184_v17 = vpop.permute.xlu1 %9533  ;;  %v9551_v29 = vunpack.i.h.bf16 %v9549_v10  ;;  %v9550_v13 = vunpack.i.l.bf16 %v9549_v10  ;;  %v2055_v9 = vsel %vm2054_vm11, %v2022_v35, %v9390_v53 }
 0x216   : > { %v2056_v43 = vsel %vm2054_vm11, %v2023_v61, %v9391_v33  ;;  %v13190_v34 = vsel %vm2021_vm10, %v13034_v45, %v9331_v55  ;;  %v2029_v14 = vsel %vm2021_vm10, %v13038_v41, %v9326_v32  ;;  %v2088_v56 = vsel %vm2087_vm12, %v2055_v9, %v9470_v1  ;;  %v18437_v45 = vld [vmem:[#allocation48_spill] sm:$0xff] }
 0x217   : > { %v2089_v27 = vsel %vm2087_vm12, %v2056_v43, %v9471_v40  ;;  %v9401_v39 = vunpack.i.h.bf16 %v18436_v15  ;;  %v9400_v50 = vunpack.i.l.bf16 %v18436_v15  ;;  %v2120_v10 = vsel %vm545_vm6, %v2088_v56, %v9550_v13  ;;  %v18439_v56 = vld [vmem:[#allocation82_spill] sm:$0xff]  ;;  %v18440_v15 = vld [vmem:[#allocation35_spill] sm:$0xff] }
 0x218   : > { %v2121_v35 = vsel %vm545_vm6, %v2089_v27, %v9551_v29  ;;  %v2028_v61 = vsel %vm2021_vm10, %v13042_v18, %v9325_v8  ;;  %v9396_v33 = vunpack.i.h.bf16 %v18437_v45  ;;  %v9395_v53 = vunpack.i.l.bf16 %v18437_v45  ;;  %v9559_v55 = vpop.permute.xlu0 %9558 }
 0x219   : > { %v13204_v41 = vpop.permute.xlu1 %9543  ;;  %v2152_v32 = vpack.c.bf16 %v2121_v35, %v2120_v10  ;;  %v13208_v40 = vsel %vm2021_vm10, %v13046_v54, %v9340_v63  ;;  %v13212_v1 = vsel %vm2021_vm10, %v13050_v16, %v9341_v23  ;;  %v9481_v29 = vunpack.i.h.bf16 %v12911_v59 }
 0x21a   : > { %18438 = vst [vmem:[#allocation27_spill] sm:$0xff] %v13204_v41  ;;  %v9480_v18 = vunpack.i.l.bf16 %v12911_v59  ;;  %v9476_v8 = vunpack.i.h.bf16 %v12938_v42  ;;  %v9475_v13 = vunpack.i.l.bf16 %v12938_v42  ;;  %v9561_v9 = vunpack.i.h.bf16 %v9559_v55 }
 0x21b   : > { %v9560_v43 = vunpack.i.l.bf16 %v9559_v55  ;;  %8856 = vmatprep.mubr.msk.bf16.mxu0 %vm2211_vm13, %v2152_v32  ;;  %v9336_v27 = vunpack.i.h.bf16 %v18439_v56  ;;  %v9335_v54 = vunpack.i.l.bf16 %v18439_v56  ;;  %v2059_v63 = vsel %vm2054_vm11, %v2026_v38, %v9400_v50 }
 0x21c   : > { %v2060_v16 = vsel %vm2054_vm11, %v2027_v3, %v9401_v39  ;;  %v2057_v23 = vsel %vm2054_vm11, %v2024_v52, %v9395_v53  ;;  %v2058_v59 = vsel %vm2054_vm11, %v2025_v57, %v9396_v33  ;;  %v9411_v10 = vunpack.i.h.bf16 %v18440_v15  ;;  %v9569_v53 = vpop.permute.xlu0 %9568 }
 0x21d   : > { %v9410_v42 = vunpack.i.l.bf16 %v18440_v15  ;;  %v9554_v35 = vpop.permute.xlu1 %9553  ;;  %v2092_v45 = vsel %vm2087_vm12, %v2059_v63, %v9480_v18  ;;  %v2093_v55 = vsel %vm2087_vm12, %v2060_v16, %v9481_v29  ;;  %v2090_v56 = vsel %vm2087_vm12, %v2057_v23, %v9475_v13 }
 0x21e   : > { %v9556_v32 = vunpack.i.h.bf16 %v9554_v35  ;;  %v9555_v41 = vunpack.i.l.bf16 %v9554_v35  ;;  %v2091_v38 = vsel %vm2087_vm12, %v2058_v59, %v9476_v8  ;;  %v2124_v50 = vsel %vm545_vm6, %v2092_v45, %v9560_v43  ;;  %v18441_v59 = vld [vmem:[#allocation83_spill] sm:$0xff] }
 0x21f   : > { %v2125_v3 = vsel %vm545_vm6, %v2093_v55, %v9561_v9  ;;  %v9406_v57 = vunpack.i.h.bf16 %v12655_v5  ;;  %v9405_v52 = vunpack.i.l.bf16 %v12655_v5  ;;  %v9491_v29 = vunpack.i.h.bf16 %v12940_v31 }
 0x220   : > { %v2122_v39 = vsel %vm545_vm6, %v2090_v56, %v9555_v41  ;;  %v2123_v33 = vsel %vm545_vm6, %v2091_v38, %v9556_v32  ;;  %v9486_v18 = vunpack.i.h.bf16 %v12991_v49  ;;  %v9485_v13 = vunpack.i.l.bf16 %v12991_v49 }
 0x221   : > { %v9564_v8 = vpop.permute.xlu1 %9563  ;;  %v2153_v63 = vpack.c.bf16 %v2123_v33, %v2122_v39  ;;  %v9490_v43 = vunpack.i.l.bf16 %v12940_v31  ;;  %v2154_v23 = vpack.c.bf16 %v2125_v3, %v2124_v50  ;;  %v9351_v5 = vunpack.i.h.bf16 %v18441_v59  ;;  %v9579_v39 = vpop.permute.xlu0 %9578 }
 0x222   : > { %v9566_v9 = vunpack.i.h.bf16 %v9564_v8  ;;  %v9565_v16 = vunpack.i.l.bf16 %v9564_v8  ;;  %v9350_v41 = vunpack.i.l.bf16 %v18441_v59  ;;  %v9571_v15 = vunpack.i.h.bf16 %v9569_v53 }
 0x223   : > { %v9570_v35 = vunpack.i.l.bf16 %v9569_v53  ;;  %8857 = vmatmul.mubr.msk.bf16.vlgmr.msra.gmra.mxu0 %vm2211_vm13, %v2153_v63  ;;  %v2033_v45 = vsel %vm2021_vm10, %v13054_v11, %v9336_v27  ;;  %v2032_v49 = vsel %vm2021_vm10, %v13062_v36, %v9335_v54  ;;  %v2061_v55 = vsel %vm2054_vm11, %v2028_v61, %v9405_v52  ;;  %v18442_v63 = vld [vmem:[#allocation84_spill] sm:$0xff] }
 0x224   : > { %v2062_v31 = vsel %vm2054_vm11, %v2029_v14, %v9406_v57  ;;  %8860 = vmatprep.mubr.msk.bf16.mxu0 %vm2211_vm13, %v2154_v23  ;;  %v2063_v32 = vsel %vm2054_vm11, %v13179_v2, %v9410_v42  ;;  %v2064_v56 = vsel %vm2054_vm11, %v13190_v34, %v9411_v10  ;;  %v2094_v38 = vsel %vm2087_vm12, %v2061_v55, %v9485_v13 }
 0x225   : > { %v2095_v50 = vsel %vm2087_vm12, %v2062_v31, %v9486_v18  ;;  %v2096_v11 = vsel %vm2087_vm12, %v2063_v32, %v9490_v43  ;;  %v2097_v36 = vsel %vm2087_vm12, %v2064_v56, %v9491_v29  ;;  %v2126_v61 = vsel %vm545_vm6, %v2094_v38, %v9565_v16  ;;  %v9574_v10 = vpop.permute.xlu1 %9573 }
 0x226   : > { %v2127_v14 = vsel %vm545_vm6, %v2095_v50, %v9566_v9  ;;  %v13263_v27 = vsel %vm2021_vm10, %v13066_v26, %v9350_v41  ;;  %v13267_v2 = vsel %vm2021_vm10, %v13070_v60, %v9351_v5  ;;  %v2128_v34 = vsel %vm545_vm6, %v2096_v11, %v9570_v35 }
 0x227   : > { %v2129_v54 = vsel %vm545_vm6, %v2097_v36, %v9571_v15  ;;  %v9421_v42 = vunpack.i.h.bf16 %v12657_v0  ;;  %v9420_v3 = vunpack.i.l.bf16 %v12657_v0  ;;  %v9416_v57 = vunpack.i.h.bf16 %v12691_v58 }
 0x228   : > { %v9415_v52 = vunpack.i.l.bf16 %v12691_v58  ;;  %v9501_v26 = vunpack.i.h.bf16 %v12993_v20  ;;  %v9496_v33 = vunpack.i.h.bf16 %v13020_v12  ;;  %v9495_v60 = vunpack.i.l.bf16 %v13020_v12  ;;  %v18443_v58 = vld [vmem:[#allocation85_spill] sm:$0xff] }
 0x229   : > { %v2155_v53 = vpack.c.bf16 %v2127_v14, %v2126_v61  ;;  %v9500_v29 = vunpack.i.l.bf16 %v12993_v20  ;;  %v9576_v18 = vunpack.i.h.bf16 %v9574_v10  ;;  %v9575_v13 = vunpack.i.l.bf16 %v9574_v10  ;;  %v9584_v38 = vpop.permute.xlu1 %9583  ;;  %v9589_v14 = vpop.permute.xlu0 %9588 }
 0x22a   : > { %v2156_v8 = vpack.c.bf16 %v2129_v54, %v2128_v34  ;;  %v9346_v43 = vunpack.i.h.bf16 %v18442_v63  ;;  %v9345_v0 = vunpack.i.l.bf16 %v18442_v63  ;;  %v9581_v9 = vunpack.i.h.bf16 %v9579_v39 }
 0x22b   : > { %v9580_v16 = vunpack.i.l.bf16 %v9579_v39  ;;  %8861 = vmatmul.mubr.msk.bf16.gmra.mxu0 %vm2211_vm13, %v2155_v53  ;;  %v9361_v23 = vunpack.i.h.bf16 %v18443_v58  ;;  %v9360_v59 = vunpack.i.l.bf16 %v18443_v58  ;;  %v2065_v12 = vsel %vm2054_vm11, %v2032_v49, %v9415_v52 }
 0x22c   : > { %v2066_v5 = vsel %vm2054_vm11, %v2033_v45, %v9416_v57  ;;  %8864 = vmatprep.mubr.msk.bf16.mxu0 %vm2211_vm13, %v2156_v8  ;;  %v2067_v20 = vsel %vm2054_vm11, %v13208_v40, %v9420_v3  ;;  %v2068_v41 = vsel %vm2054_vm11, %v13212_v1, %v9421_v42  ;;  %v2098_v15 = vsel %vm2087_vm12, %v2065_v12, %v9495_v60 }
 0x22d   : > { %v2099_v35 = vsel %vm2087_vm12, %v2066_v5, %v9496_v33  ;;  %v2100_v55 = vsel %vm2087_vm12, %v2067_v20, %v9500_v29  ;;  %v2101_v31 = vsel %vm2087_vm12, %v2068_v41, %v9501_v26  ;;  %v2130_v49 = vsel %vm545_vm6, %v2098_v15, %v9575_v13  ;;  %v18445_v33 = vld [vmem:[#allocation86_spill] sm:$0xff] }
 0x22e   : > { %v2131_v45 = vsel %vm545_vm6, %v2099_v35, %v9576_v18  ;;  %v2037_v32 = vsel %vm2021_vm10, %v13087_v4, %v9346_v43  ;;  %v2036_v40 = vsel %vm2021_vm10, %v13091_v51, %v9345_v0  ;;  %v2132_v1 = vsel %vm545_vm6, %v2100_v55, %v9580_v16  ;;  %v18444_v4 = vld [vmem:[#allocation40_spill] sm:$0xff]  ;;  %v18448_v20 = vld [vmem:[#allocation42_spill] sm:$0xff]  ;;  %v9599_v35 = vpop.permute.xlu0 %9598 }
 0x22f   : > { %v2133_v56 = vsel %vm545_vm6, %v2101_v31, %v9581_v9  ;;  %v9431_v50 = vunpack.i.h.bf16 %v12693_v21  ;;  %v9430_v11 = vunpack.i.l.bf16 %v12693_v21  ;;  %v9426_v36 = vunpack.i.h.bf16 %v12736_v24  ;;  %v18446_v9 = vld [vmem:[#allocation87_spill] sm:$0xff]  ;;  %v18449_v55 = vld [vmem:[#allocation14_spill] sm:$0xff] }
 0x230   : > { %v9425_v61 = vunpack.i.l.bf16 %v12736_v24  ;;  %v9511_v34 = vunpack.i.h.bf16 %v13022_v48  ;;  %v9506_v54 = vunpack.i.h.bf16 %v18444_v4  ;;  %v9505_v51 = vunpack.i.l.bf16 %v18444_v4 }
 0x231   : > { %v2157_v10 = vpack.c.bf16 %v2131_v45, %v2130_v49  ;;  %v9510_v42 = vunpack.i.l.bf16 %v13022_v48  ;;  %v9586_v3 = vunpack.i.h.bf16 %v9584_v38  ;;  %v9585_v57 = vunpack.i.l.bf16 %v9584_v38 }
 0x232   : > { %v2158_v52 = vpack.c.bf16 %v2133_v56, %v2132_v1  ;;  %v2042_v21 = vsel %vm2021_vm10, %v13095_v7, %v9360_v59  ;;  %v2043_v39 = vsel %vm2021_vm10, %v13099_v37, %v9361_v23  ;;  %v9591_v24 = vunpack.i.h.bf16 %v9589_v14  ;;  %v9594_v23 = vpop.permute.xlu1 %9593  ;;  %v18447_v59 = vld [vmem:[#allocation50_spill] sm:$0xff] }
 0x233   : > { %v9590_v26 = vunpack.i.l.bf16 %v9589_v14  ;;  %8865 = vmatmul.mubr.msk.bf16.gmra.mxu0 %vm2211_vm13, %v2157_v10  ;;  %v9356_v60 = vunpack.i.h.bf16 %v18445_v33  ;;  %v9355_v53 = vunpack.i.l.bf16 %v18445_v33  ;;  %v2069_v29 = vsel %vm2054_vm11, %v2036_v40, %v9425_v61 }
 0x234   : > { %v2070_v48 = vsel %vm2054_vm11, %v2037_v32, %v9426_v36  ;;  %8868 = vmatprep.mubr.msk.bf16.mxu0 %vm2211_vm13, %v2158_v52  ;;  %v2071_v7 = vsel %vm2054_vm11, %v13263_v27, %v9430_v11  ;;  %v2072_v37 = vsel %vm2054_vm11, %v13267_v2, %v9431_v50  ;;  %v2102_v18 = vsel %vm2087_vm12, %v2069_v29, %v9505_v51 }
 0x235   : > { %v2103_v13 = vsel %vm2087_vm12, %v2070_v48, %v9506_v54  ;;  %v2104_v8 = vsel %vm2087_vm12, %v2071_v7, %v9510_v42  ;;  %v2105_v63 = vsel %vm2087_vm12, %v2072_v37, %v9511_v34  ;;  %v2134_v43 = vsel %vm545_vm6, %v2102_v18, %v9585_v57  ;;  %v9609_v7 = vpop.permute.xlu0 %9608 }
 0x236   : > { %v2135_v0 = vsel %vm545_vm6, %v2103_v13, %v9586_v3  ;;  %v9371_v16 = vunpack.i.h.bf16 %v18446_v9  ;;  %v9370_v58 = vunpack.i.l.bf16 %v18446_v9  ;;  %v2136_v27 = vsel %vm545_vm6, %v2104_v8, %v9590_v26  ;;  %v18450_v3 = vld [vmem:[#allocation33_spill] sm:$0xff]  ;;  %v18451_v26 = vld [vmem:[#allocation39_spill] sm:$0xff] }
 0x237   : > { %v2137_v2 = vsel %vm545_vm6, %v2105_v63, %v9591_v24  ;;  %v9441_v12 = vunpack.i.h.bf16 %v18447_v59  ;;  %v9440_v5 = vunpack.i.l.bf16 %v18447_v59  ;;  %v9436_v41 = vunpack.i.h.bf16 %v18448_v20  ;;  %v9604_v24 = vpop.permute.xlu1 %9603 }
 0x238   : > { %v9435_v15 = vunpack.i.l.bf16 %v18448_v20  ;;  %v9521_v31 = vunpack.i.h.bf16 %v18449_v55  ;;  %v9516_v49 = vunpack.i.h.bf16 %v13108_v44  ;;  %v9515_v45 = vunpack.i.l.bf16 %v13108_v44 }
 0x239   : > { %v2159_v32 = vpack.c.bf16 %v2135_v0, %v2134_v43  ;;  %v9520_v40 = vunpack.i.l.bf16 %v18449_v55  ;;  %v9596_v1 = vunpack.i.h.bf16 %v9594_v23  ;;  %v9595_v56 = vunpack.i.l.bf16 %v9594_v23  ;;  %v18453_v23 = vld [vmem:[#allocation34_spill] sm:$0xff] }
 0x23a   : > { %v2160_v38 = vpack.c.bf16 %v2137_v2, %v2136_v27  ;;  %v2041_v50 = vsel %vm2021_vm10, %v13103_v25, %v9356_v60  ;;  %v2040_v11 = vsel %vm2021_vm10, %v13114_v19, %v9355_v53  ;;  %v9601_v36 = vunpack.i.h.bf16 %v9599_v35  ;;  %v18452_v53 = vld [vmem:[#allocation37_spill] sm:$0xff] }
 0x23b   : > { %v9600_v61 = vunpack.i.l.bf16 %v9599_v35  ;;  %8869 = vmatmul.mubr.msk.bf16.gmra.mxu0 %vm2211_vm13, %v2159_v32  ;;  %v2046_v14 = vsel %vm2021_vm10, %v13118_v22, %v9370_v58  ;;  %v2047_v44 = vsel %vm2021_vm10, %v13122_v47, %v9371_v16  ;;  %v2073_v34 = vsel %vm2054_vm11, %v2040_v11, %v9435_v15  ;;  %v18456_v11 = vld [vmem:[#allocation56_spill] sm:$0xff] }
 0x23c   : > { %v2074_v4 = vsel %vm2054_vm11, %v2041_v50, %v9436_v41  ;;  %8872 = vmatprep.mubr.msk.bf16.mxu0 %vm2211_vm13, %v2160_v38  ;;  %v2075_v25 = vsel %vm2054_vm11, %v2042_v21, %v9440_v5  ;;  %v2076_v19 = vsel %vm2054_vm11, %v2043_v39, %v9441_v12  ;;  %v2106_v54 = vsel %vm2087_vm12, %v2073_v34, %v9515_v45 }
 0x23d   : > { %v2107_v51 = vsel %vm2087_vm12, %v2074_v4, %v9516_v49  ;;  %v2108_v10 = vsel %vm2087_vm12, %v2075_v25, %v9520_v40  ;;  %v2109_v22 = vsel %vm2087_vm12, %v2076_v19, %v9521_v31  ;;  %v2138_v47 = vsel %vm545_vm6, %v2106_v54, %v9595_v56  ;;  %v18454_v31 = vld [vmem:[#allocation16_spill] sm:$0xff]  ;;  %v18455_v56 = vld [vmem:[#allocation13_spill] sm:$0xff] }
 0x23e   : > { %v2139_v42 = vsel %vm545_vm6, %v2107_v51, %v9596_v1  ;;  %v9366_v57 = vunpack.i.h.bf16 %v18450_v3  ;;  %v9365_v52 = vunpack.i.l.bf16 %v18450_v3  ;;  %v2140_v21 = vsel %vm545_vm6, %v2108_v10, %v9600_v61  ;;  %v9614_v1 = vpop.permute.xlu1 %9613 }
 0x23f   : > { %v2141_v39 = vsel %vm545_vm6, %v2109_v22, %v9601_v36  ;;  %v9451_v33 = vunpack.i.h.bf16 %v18451_v26  ;;  %v9450_v60 = vunpack.i.l.bf16 %v18451_v26  ;;  %v9446_v29 = vunpack.i.h.bf16 %v18452_v53  ;;  %v18457_v22 = vld [vmem:[#allocation44_spill] sm:$0xff] }
 0x240   : > { %v9445_v48 = vunpack.i.l.bf16 %v18452_v53  ;;  %v9531_v37 = vunpack.i.h.bf16 %v13110_v46  ;;  %v9526_v18 = vunpack.i.h.bf16 %v13157_v30  ;;  %v9525_v13 = vunpack.i.l.bf16 %v13157_v30 }
 0x241   : > { %v2161_v8 = vpack.c.bf16 %v2139_v42, %v2138_v47  ;;  %v9530_v63 = vunpack.i.l.bf16 %v13110_v46  ;;  %v9606_v43 = vunpack.i.h.bf16 %v9604_v24  ;;  %v9605_v0 = vunpack.i.l.bf16 %v9604_v24  ;;  %v18458_v42 = vld [vmem:[#allocation19_spill] sm:$0xff] }
 0x242   : > { %v2162_v9 = vpack.c.bf16 %v2141_v39, %v2140_v21  ;;  %v2045_v16 = vsel %vm2021_vm10, %v13126_v62, %v9366_v57  ;;  %v2044_v58 = vsel %vm2021_vm10, %v13130_v6, %v9365_v52  ;;  %v9611_v27 = vunpack.i.h.bf16 %v9609_v7  ;;  %v18459_v21 = vld [vmem:[#allocation23_spill] sm:$0xff] }
 0x243   : > { %v9610_v2 = vunpack.i.l.bf16 %v9609_v7  ;;  %8873 = vmatmul.mubr.msk.bf16.gmra.mxu0 %vm2211_vm13, %v2161_v8  ;;  %v9381_v59 = vunpack.i.h.bf16 %v18453_v23  ;;  %v9380_v30 = vunpack.i.l.bf16 %v18453_v23  ;;  %v2077_v12 = vsel %vm2054_vm11, %v2044_v58, %v9445_v48 }
 0x244   : > { %v2078_v46 = vsel %vm2054_vm11, %v2045_v16, %v9446_v29  ;;  %8876 = vmatprep.mubr.msk.bf16.mxu0 %vm2211_vm13, %v2162_v9  ;;  %v2079_v5 = vsel %vm2054_vm11, %v2046_v14, %v9450_v60  ;;  %v2080_v62 = vsel %vm2054_vm11, %v2047_v44, %v9451_v33  ;;  %v2110_v6 = vsel %vm2087_vm12, %v2077_v12, %v9525_v13  ;;  %v9619_v14 = vpop.permute.xlu0 %9618  ;;  %v18461_v13 = vld [vmem:[#allocation25_spill] sm:$0xff]  ;;  %v9624_v9 = vpop.permute.xlu1 %9623  ;;  %v18462_v16 = vld [vmem:[#allocation60_spill] sm:$0xff] }
 0x245   : > { %v2111_v20 = vsel %vm2087_vm12, %v2078_v46, %v9526_v18  ;;  %v2112_v41 = vsel %vm2087_vm12, %v2079_v5, %v9530_v63  ;;  %v2113_v15 = vsel %vm2087_vm12, %v2080_v62, %v9531_v37  ;;  %v2142_v35 = vsel %vm545_vm6, %v2110_v6, %v9605_v0  ;;  %v18467_v12 = vld [vmem:[#allocation41_spill] sm:$0xff]  ;;  %v18468_v62 = vld [vmem:[#allocation76_spill] sm:$0xff] }
 0x246   : > { %v2143_v55 = vsel %vm545_vm6, %v2111_v20, %v9606_v43  ;;  %v9376_v49 = vunpack.i.h.bf16 %v18454_v31  ;;  %v9375_v45 = vunpack.i.l.bf16 %v18454_v31  ;;  %v2144_v32 = vsel %vm545_vm6, %v2112_v41, %v9610_v2  ;;  %v18470_v41 = vld [vmem:[#allocation27_spill] sm:$0xff] }
 0x247   : > { %v2145_v40 = vsel %vm545_vm6, %v2113_v15, %v9611_v27  ;;  %v9461_v38 = vunpack.i.h.bf16 %v18455_v56  ;;  %v9460_v50 = vunpack.i.l.bf16 %v18455_v56  ;;  %v9456_v36 = vunpack.i.h.bf16 %v18456_v11  ;;  %v18464_v27 = vld [vmem:[#allocation20_spill] sm:$0xff] }
 0x248   : > { %v9455_v61 = vunpack.i.l.bf16 %v18456_v11  ;;  %v9541_v44 = vunpack.i.h.bf16 %v13159_v28  ;;  %v9536_v34 = vunpack.i.h.bf16 %v13184_v17  ;;  %v9535_v4 = vunpack.i.l.bf16 %v13184_v17  ;;  %v18460_v17 = vld [vmem:[#allocation30_spill] sm:$0xff] }
 0x249   : > { %v2163_v25 = vpack.c.bf16 %v2143_v55, %v2142_v35  ;;  %v9540_v19 = vunpack.i.l.bf16 %v13159_v28  ;;  %v9616_v54 = vunpack.i.h.bf16 %v9614_v1  ;;  %v9615_v51 = vunpack.i.l.bf16 %v9614_v1 }
 0x24a   : > { %v2164_v10 = vpack.c.bf16 %v2145_v40, %v2144_v32  ;;  %v2049_v47 = vsel %vm2021_vm10, %v18457_v22, %v9376_v49  ;;  %v2048_v3 = vsel %vm2021_vm10, %v18458_v42, %v9375_v45  ;;  %v9621_v57 = vunpack.i.h.bf16 %v9619_v14 }
 0x24b   : > { %v9620_v52 = vunpack.i.l.bf16 %v9619_v14  ;;  %8877 = vmatmul.mubr.msk.bf16.gmra.mxu0 %vm2211_vm13, %v2163_v25  ;;  %v2050_v39 = vsel %vm2021_vm10, %v18459_v21, %v9380_v30  ;;  %v2051_v24 = vsel %vm2021_vm10, %v18460_v17, %v9381_v59  ;;  %v2081_v28 = vsel %vm2054_vm11, %v2048_v3, %v9455_v61  ;;  %v18466_v59 = vld [vmem:[#allocation55_spill] sm:$0xff]  ;;  %v13465_v3 = vld [vmem:[%s17851_s3] ss:$0 sm:$0xff] }
 0x24c   : > { %v2082_v26 = vsel %vm2054_vm11, %v2049_v47, %v9456_v36  ;;  %8880 = vmatprep.mubr.msk.bf16.mxu0 %vm2211_vm13, %v2164_v10  ;;  %v2083_v33 = vsel %vm2054_vm11, %v2050_v39, %v9460_v50  ;;  %v2084_v60 = vsel %vm2054_vm11, %v2051_v24, %v9461_v38  ;;  %v2114_v53 = vsel %vm2087_vm12, %v2081_v28, %v9535_v4  ;;  %v2734_v4 = vld [vmem:[#allocation2 + $0x1a0] sm:$0xff] }
 0x24d   : > { %v2115_v29 = vsel %vm2087_vm12, %v2082_v26, %v9536_v34  ;;  %v2116_v48 = vsel %vm2087_vm12, %v2083_v33, %v9540_v19  ;;  %v2117_v7 = vsel %vm2087_vm12, %v2084_v60, %v9541_v44  ;;  %v2146_v37 = vsel %vm545_vm6, %v2114_v53, %v9615_v51  ;;  %v2733_v34 = vld [vmem:[#allocation2 + $0x198] sm:$0xff]  ;;  %v2735_v51 = vld [vmem:[#allocation2 + $0x1a8] sm:$0x3] }
 0x24e   : > { %v2147_v18 = vsel %vm545_vm6, %v2115_v29, %v9616_v54  ;;  %v9386_v8 = vunpack.i.h.bf16 %v18461_v13  ;;  %v9385_v63 = vunpack.i.l.bf16 %v18461_v13  ;;  %v2148_v43 = vsel %vm545_vm6, %v2116_v48, %v9620_v52 }
 0x24f   : > { %v2149_v0 = vsel %vm545_vm6, %v2117_v7, %v9621_v57  ;;  %v18463_v58 = vunpack.i.h.bf16 %v18462_v16  ;;  %v18465_v23 = vunpack.i.l.bf16 %v18462_v16  ;;  %v9466_v46 = vunpack.i.h.bf16 %v18467_v12 }
 0x250   : > { %v9465_v5 = vunpack.i.l.bf16 %v18467_v12  ;;  %v18469_v6 = vunpack.i.h.bf16 %v18468_v62  ;;  %v9546_v15 = vunpack.i.h.bf16 %v18470_v41  ;;  %v9545_v35 = vunpack.i.l.bf16 %v18470_v41 }
 0x251   : > { %v1987_v2 = vsel %vm489_vm0, %v18464_v27, %v18463_v58  ;;  %v1986_v30 = vsel %vm489_vm0, %v18466_v59, %v18465_v23  ;;  %v2165_v55 = vpack.c.bf16 %v2147_v18, %v2146_v37  ;;  %v18471_v31 = vunpack.i.l.bf16 %v18468_v62 }
 0x252   : > { %v2020_v20 = vsel %vm1988_vm9, %v1987_v2, %v18469_v6  ;;  %v9626_v45 = vunpack.i.h.bf16 %v9624_v9  ;;  %v9625_v32 = vunpack.i.l.bf16 %v9624_v9  ;;  %v2166_v40 = vpack.c.bf16 %v2149_v0, %v2148_v43 }
 0x253   : > { %v2019_v49 = vsel %vm1988_vm9, %v1986_v30, %v18471_v31  ;;  %v2053_v56 = vsel %vm2021_vm10, %v2020_v20, %v9386_v8  ;;  %8881 = vmatmul.mubr.msk.bf16.gmra.mxu0 %vm2211_vm13, %v2165_v55  ;;  %v3633_v25 = vrot.slane %v2734_v4, 1  ;;  %v9642_v19 = vpack.i.bf16 %v2734_v4, %v2733_v34 }
 0x254   : > { %v2052_v1 = vsel %vm2021_vm10, %v2019_v49, %v9385_v63  ;;  %v2086_v50 = vsel %vm2054_vm11, %v2053_v56, %v9466_v46  ;;  %8884 = vmatprep.mubr.msk.bf16.mxu0 %vm2211_vm13, %v2166_v40  ;;  %v3632_v54 = vrot.slane %v2733_v34, 1  ;;  %v3635_v22 = vrot.slane %v2735_v51, 1 }
 0x255   : > { %v2085_v38 = vsel %vm2054_vm11, %v2052_v1, %v9465_v5  ;;  %v2119_v36 = vsel %vm2087_vm12, %v2086_v50, %v9546_v15  ;;  %9643 = vrot.lane.b32.xlu1 %v9642_v19, %s18002_s11 }
 0x256   : > { %v2118_v11 = vsel %vm2087_vm12, %v2085_v38, %v9545_v35  ;;  %v2151_v14 = vsel %vm545_vm6, %v2119_v36, %v9626_v45  ;;  %v3634_v10 = vsel %vm998_vm2, %v3632_v54, %v3633_v25  ;;  %v3636_v47 = vsel %vm998_vm2, %v3633_v25, %v3635_v22 }
 0x257   : > { %v2150_v61 = vsel %vm545_vm6, %v2118_v11, %v9625_v32  ;;  %v9647_v42 = vpack.i.bf16 %v3636_v47, %v3634_v10 }
 0x258   : > { %v2167_v44 = vpack.c.bf16 %v2151_v14, %v2150_v61 }
 0x259   : > { %9648 = vrot.lane.b32.xlu1 %v9647_v42, %s18008_s18 }
 0x25b   : > { %8885 = vmatmul.mubr.msk.bf16.gmra.mxu0 %vm2211_vm13, %v2167_v44 }
 0x2e3   : > { %v8858_v57 = vpop.f32.mrf.mxu0 }
 0x2e4   : > { %v2307_v52 = vadd.f32 %v8858_v57, %v13465_v3 }
 0x2e5   : > { %v2298_v21 = vpop.f32.mrf.mxu0 }
 0x2e6   : > { %vm2427_vm14 = vcmp.gt.f32.partialorder %v2307_v52, 0.0  ;;  %v2459_v39 = vmul.f32 0.1, %v2307_v52  ;;  %v2299_v17 = vadd.f32 %v13465_v3, %v2298_v21 }
 0x2e7   : > { %v8859_v24 = vpop.f32.mrf.mxu0 }
 0x2e8   : > { %v2457_v28 = vmul.f32 0.1, %v2299_v17  ;;  %v2310_v26 = vadd.f32 %v8859_v24, %v13465_v3  ;;  %v2491_v33 = vsel %vm2427_vm14, %v2307_v52, %v2459_v39  ;;  %vm2425_vm15 = vcmp.gt.f32.partialorder %v2299_v17, 0.0 }
 0x2e9   : > { %2557 = vrot.lane.b32.xlu0 %v2491_v33, %s18023_s26  ;;  %v2301_v60 = vpop.f32.mrf.mxu0 }
 0x2ea   : > { %vm2428_vm1 = vcmp.gt.f32.partialorder %v2310_v26, 0.0  ;;  %v2460_v53 = vmul.f32 0.1, %v2310_v26  ;;  %v2302_v29 = vadd.f32 %v13465_v3, %v2301_v60  ;;  %v2489_v13 = vsel %vm2425_vm15, %v2299_v17, %v2457_v28 }
 0x2eb   : > { %v8862_v48 = vpop.f32.mrf.mxu0 }
 0x2ec   : > { %v2458_v7 = vmul.f32 0.1, %v2302_v29  ;;  %v2323_v37 = vadd.f32 %v8862_v48, %v13465_v3  ;;  %v2492_v18 = vsel %vm2428_vm1, %v2310_v26, %v2460_v53  ;;  %vm2426_vm3 = vcmp.gt.f32.partialorder %v2302_v29, 0.0 }
 0x2ed   : > { %2559 = vrot.lane.b32.xlu1 %v2492_v18, %s18023_s26  ;;  %v2314_v8 = vpop.f32.mrf.mxu0  ;;  %2553 = vrot.lane.b32.xlu0 %v2489_v13, %s18023_s26 }
 0x2ee   : > { %vm2431_vm12 = vcmp.gt.f32.partialorder %v2323_v37, 0.0  ;;  %v2463_v63 = vmul.f32 0.1, %v2323_v37  ;;  %v2315_v43 = vadd.f32 %v13465_v3, %v2314_v8  ;;  %v2490_v58 = vsel %vm2426_vm3, %v2302_v29, %v2458_v7 }
 0x2ef   : > { %v8863_v0 = vpop.f32.mrf.mxu0 }
 0x2f0   : > { %v2461_v9 = vmul.f32 0.1, %v2315_v43  ;;  %v2326_v16 = vadd.f32 %v8863_v0, %v13465_v3  ;;  %v2495_v27 = vsel %vm2431_vm12, %v2323_v37, %v2463_v63  ;;  %vm2429_vm14 = vcmp.gt.f32.partialorder %v2315_v43, 0.0 }
 0x2f1   : > { %v2317_v2 = vpop.f32.mrf.mxu0  ;;  %2555 = vrot.lane.b32.xlu1 %v2490_v58, %s18023_s26  ;;  %2565 = vrot.lane.b32.xlu0 %v2495_v27, %s18023_s26 }
 0x2f2   : > { %vm2432_vm15 = vcmp.gt.f32.partialorder %v2326_v16, 0.0  ;;  %v2464_v23 = vmul.f32 0.1, %v2326_v16  ;;  %v2318_v59 = vadd.f32 %v13465_v3, %v2317_v2  ;;  %v2493_v62 = vsel %vm2429_vm14, %v2315_v43, %v2461_v9 }
 0x2f3   : > { %v8866_v30 = vpop.f32.mrf.mxu0 }
 0x2f4   : > { %v2462_v12 = vmul.f32 0.1, %v2318_v59  ;;  %v2339_v46 = vadd.f32 %v8866_v30, %v13465_v3  ;;  %v2496_v5 = vsel %vm2432_vm15, %v2326_v16, %v2464_v23  ;;  %vm2430_vm1 = vcmp.gt.f32.partialorder %v2318_v59, 0.0 }
 0x2f5   : > { %v2330_v6 = vpop.f32.mrf.mxu0  ;;  %2567 = vrot.lane.b32.xlu1 %v2496_v5, %s18023_s26  ;;  %2561 = vrot.lane.b32.xlu0 %v2493_v62, %s18023_s26 }
 0x2f6   : > { %vm2435_vm3 = vcmp.gt.f32.partialorder %v2339_v46, 0.0  ;;  %v2467_v20 = vmul.f32 0.1, %v2339_v46  ;;  %v2331_v41 = vadd.f32 %v13465_v3, %v2330_v6  ;;  %v2494_v31 = vsel %vm2430_vm1, %v2318_v59, %v2462_v12 }
 0x2f7   : > { %v8867_v15 = vpop.f32.mrf.mxu0 }
 0x2f8   : > { %v2465_v35 = vmul.f32 0.1, %v2331_v41  ;;  %v2342_v55 = vadd.f32 %v8867_v15, %v13465_v3  ;;  %v2499_v49 = vsel %vm2435_vm3, %v2339_v46, %v2467_v20  ;;  %vm2433_vm12 = vcmp.gt.f32.partialorder %v2331_v41, 0.0 }
 0x2f9   : > { %v2333_v45 = vpop.f32.mrf.mxu0  ;;  %2563 = vrot.lane.b32.xlu1 %v2494_v31, %s18023_s26  ;;  %2573 = vrot.lane.b32.xlu0 %v2499_v49, %s18023_s26 }
 0x2fa   : > { %vm2436_vm14 = vcmp.gt.f32.partialorder %v2342_v55, 0.0  ;;  %v2468_v32 = vmul.f32 0.1, %v2342_v55  ;;  %v2334_v40 = vadd.f32 %v13465_v3, %v2333_v45  ;;  %v2497_v11 = vsel %vm2433_vm12, %v2331_v41, %v2465_v35 }
 0x2fb   : > { %v8870_v1 = vpop.f32.mrf.mxu0 }
 0x2fc   : > { %v2466_v56 = vmul.f32 0.1, %v2334_v40  ;;  %v2355_v38 = vadd.f32 %v8870_v1, %v13465_v3  ;;  %v2500_v50 = vsel %vm2436_vm14, %v2342_v55, %v2468_v32  ;;  %vm2434_vm15 = vcmp.gt.f32.partialorder %v2334_v40, 0.0 }
 0x2fd   : > { %v2346_v36 = vpop.f32.mrf.mxu0  ;;  %2575 = vrot.lane.b32.xlu1 %v2500_v50, %s18023_s26  ;;  %2569 = vrot.lane.b32.xlu0 %v2497_v11, %s18023_s26 }
 0x2fe   : > { %vm2439_vm1 = vcmp.gt.f32.partialorder %v2355_v38, 0.0  ;;  %v2471_v61 = vmul.f32 0.1, %v2355_v38  ;;  %v2347_v14 = vadd.f32 %v13465_v3, %v2346_v36  ;;  %v2498_v25 = vsel %vm2434_vm15, %v2334_v40, %v2466_v56 }
 0x2ff   : > { %v8871_v44 = vpop.f32.mrf.mxu0 }
 0x300   : > { %v2469_v34 = vmul.f32 0.1, %v2347_v14  ;;  %v2358_v4 = vadd.f32 %v8871_v44, %v13465_v3  ;;  %v2503_v19 = vsel %vm2439_vm1, %v2355_v38, %v2471_v61  ;;  %vm2437_vm3 = vcmp.gt.f32.partialorder %v2347_v14, 0.0 }
 0x301   : > { %v2349_v54 = vpop.f32.mrf.mxu0  ;;  %2571 = vrot.lane.b32.xlu1 %v2498_v25, %s18023_s26  ;;  %2581 = vrot.lane.b32.xlu0 %v2503_v19, %s18023_s26 }
 0x302   : > { %vm2440_vm12 = vcmp.gt.f32.partialorder %v2358_v4, 0.0  ;;  %v2472_v51 = vmul.f32 0.1, %v2358_v4  ;;  %v2350_v10 = vadd.f32 %v13465_v3, %v2349_v54  ;;  %v2501_v52 = vsel %vm2437_vm3, %v2347_v14, %v2469_v34 }
 0x303   : > { %v8874_v22 = vpop.f32.mrf.mxu0 }
 0x304   : > { %v2470_v47 = vmul.f32 0.1, %v2350_v10  ;;  %v2371_v42 = vadd.f32 %v8874_v22, %v13465_v3  ;;  %v2504_v57 = vsel %vm2440_vm12, %v2358_v4, %v2472_v51  ;;  %vm2438_vm14 = vcmp.gt.f32.partialorder %v2350_v10, 0.0 }
 0x305   : > { %v2362_v21 = vpop.f32.mrf.mxu0  ;;  %2583 = vrot.lane.b32.xlu1 %v2504_v57, %s18023_s26  ;;  %2577 = vrot.lane.b32.xlu0 %v2501_v52, %s18023_s26 }
 0x306   : > { %vm2443_vm15 = vcmp.gt.f32.partialorder %v2371_v42, 0.0  ;;  %v2475_v39 = vmul.f32 0.1, %v2371_v42  ;;  %v2363_v17 = vadd.f32 %v13465_v3, %v2362_v21  ;;  %v2502_v33 = vsel %vm2438_vm14, %v2350_v10, %v2470_v47  ;;  %v13531_v21 = vpop.permute.xlu0 %9628 }
 0x307   : > { %v8875_v24 = vpop.f32.mrf.mxu0 }
 0x308   : > { %v2473_v28 = vmul.f32 0.1, %v2363_v17  ;;  %v2374_v26 = vadd.f32 %v8875_v24, %v13465_v3  ;;  %v2507_v60 = vsel %vm2443_vm15, %v2371_v42, %v2475_v39  ;;  %vm2441_vm1 = vcmp.gt.f32.partialorder %v2363_v17, 0.0 }
 0x309   : > { %v2365_v53 = vpop.f32.mrf.mxu0  ;;  %2579 = vrot.lane.b32.xlu1 %v2502_v33, %s18023_s26  ;;  %2589 = vrot.lane.b32.xlu0 %v2507_v60, %s18023_s26  ;;  %v18010_v60 = vmov 0  }
 0x30a   : > { %vm2444_vm3 = vcmp.gt.f32.partialorder %v2374_v26, 0.0  ;;  %v2476_v29 = vmul.f32 0.1, %v2374_v26  ;;  %v2366_v48 = vadd.f32 %v13465_v3, %v2365_v53  ;;  %v2505_v8 = vsel %vm2441_vm1, %v2363_v17, %v2473_v28  ;;  %v13533_v39 = vpop.permute.xlu0 %9633  ;;  %v13535_v17 = vpop.permute.xlu1 %9643  ;;  %4220 = vmatprep.subr.bf16.mxu1 %v18010_v60  ;;  %6021 = vmatprep.subr.bf16.mxu0 %v18010_v60  ;;  %v10994_v53 = vld [vmem:[%s17852_s4 + $0x38] sm:$0xff]  }
 0x30b   : > { %v8878_v7 = vpop.f32.mrf.mxu0  ;;  %18472 = vst [vmem:[#allocation28_spill] sm:$0xff] %v13535_v17  ;;  %10987 = vset.pattern.permute.xlu0 %v18010_v60  ;;  %10988 = vset.pattern.permute.xlu1 %v18010_v60 }
 0x30c   : > { %v2474_v37 = vmul.f32 0.1, %v2366_v48  ;;  %v2387_v18 = vadd.f32 %v8878_v7, %v13465_v3  ;;  %v2508_v13 = vsel %vm2444_vm3, %v2374_v26, %v2476_v29  ;;  %vm2442_vm12 = vcmp.gt.f32.partialorder %v2366_v48, 0.0  ;;  %4221 = vmatpush1.bf16.msra.mxu1 %v10994_v53  ;;  %v11001_v53 = vld [vmem:[%s17852_s4] sm:$0xff]  }
 0x30d   : > { %v2378_v63 = vpop.f32.mrf.mxu0  ;;  %2591 = vrot.lane.b32.xlu1 %v2508_v13, %s18023_s26  ;;  %2585 = vrot.lane.b32.xlu0 %v2505_v8, %s18023_s26 }
 0x30e   : > { %vm2447_vm14 = vcmp.gt.f32.partialorder %v2387_v18, 0.0  ;;  %v2479_v43 = vmul.f32 0.1, %v2387_v18  ;;  %v2379_v0 = vadd.f32 %v13465_v3, %v2378_v63  ;;  %v2506_v27 = vsel %vm2442_vm12, %v2366_v48, %v2474_v37  ;;  %v13537_v24 = vpop.permute.xlu0 %9638  ;;  %4222 = vmatprep.subr.bf16.mxu1 %v18010_v60 }
 0x30f   : > { %v8879_v9 = vpop.f32.mrf.mxu0 }
 0x310   : > { %v2477_v16 = vmul.f32 0.1, %v2379_v0  ;;  %v2390_v58 = vadd.f32 %v8879_v9, %v13465_v3  ;;  %v2511_v2 = vsel %vm2447_vm14, %v2387_v18, %v2479_v43  ;;  %vm2445_vm15 = vcmp.gt.f32.partialorder %v2379_v0, 0.0  ;;  %v10995_v43 = vld [vmem:[%s17852_s4 + $0x30] sm:$0xff]  }
 0x311   : > { %v2381_v23 = vpop.f32.mrf.mxu0  ;;  %2587 = vrot.lane.b32.xlu1 %v2506_v27, %s18023_s26  ;;  %2597 = vrot.lane.b32.xlu0 %v2511_v2, %s18023_s26 }
 0x312   : > { %vm2448_vm1 = vcmp.gt.f32.partialorder %v2390_v58, 0.0  ;;  %v2480_v59 = vmul.f32 0.1, %v2390_v58  ;;  %v2382_v30 = vadd.f32 %v13465_v3, %v2381_v23  ;;  %v2509_v6 = vsel %vm2445_vm15, %v2379_v0, %v2477_v16  ;;  %4223 = vmatpush1.bf16.msra.mxu1 %v10995_v43 }
 0x313   : > { %v8882_v12 = vpop.f32.mrf.mxu0  ;;  %4224 = vmatprep.subr.bf16.mxu1 %v18010_v60 }
 0x314   : > { %v2478_v46 = vmul.f32 0.1, %v2382_v30  ;;  %v2403_v5 = vadd.f32 %v8882_v12, %v13465_v3  ;;  %v2512_v62 = vsel %vm2448_vm1, %v2390_v58, %v2480_v59  ;;  %vm2446_vm3 = vcmp.gt.f32.partialorder %v2382_v30, 0.0 }
 0x315   : > { %v2394_v20 = vpop.f32.mrf.mxu0  ;;  %2599 = vrot.lane.b32.xlu1 %v2512_v62, %s18023_s26  ;;  %2593 = vrot.lane.b32.xlu0 %v2509_v6, %s18023_s26 }
 0x316   : > { %vm2451_vm12 = vcmp.gt.f32.partialorder %v2403_v5, 0.0  ;;  %v2483_v41 = vmul.f32 0.1, %v2403_v5  ;;  %v2395_v15 = vadd.f32 %v13465_v3, %v2394_v20  ;;  %v2510_v49 = vsel %vm2446_vm3, %v2382_v30, %v2478_v46  ;;  %v10996_v30 = vld [vmem:[%s17852_s4 + $0x28] sm:$0xff]  }
 0x317   : > { %v8883_v35 = vpop.f32.mrf.mxu0  ;;  %4225 = vmatpush1.bf16.msra.mxu1 %v10996_v30 }
 0x318   : > { %v2481_v55 = vmul.f32 0.1, %v2395_v15  ;;  %v2406_v31 = vadd.f32 %v8883_v35, %v13465_v3  ;;  %v2515_v45 = vsel %vm2451_vm12, %v2403_v5, %v2483_v41  ;;  %vm2449_vm14 = vcmp.gt.f32.partialorder %v2395_v15, 0.0  ;;  %4226 = vmatprep.subr.bf16.mxu1 %v18010_v60 }
 0x319   : > { %v2397_v32 = vpop.f32.mrf.mxu0  ;;  %2595 = vrot.lane.b32.xlu1 %v2510_v49, %s18023_s26  ;;  %2605 = vrot.lane.b32.xlu0 %v2515_v45, %s18023_s26 }
 0x31a   : > { %vm2452_vm15 = vcmp.gt.f32.partialorder %v2406_v31, 0.0  ;;  %v2484_v40 = vmul.f32 0.1, %v2406_v31  ;;  %v2398_v1 = vadd.f32 %v13465_v3, %v2397_v32  ;;  %v2513_v36 = vsel %vm2449_vm14, %v2395_v15, %v2481_v55  ;;  %v10997_v55 = vld [vmem:[%s17852_s4 + $0x20] sm:$0xff]  }
 0x31b   : > { %v8886_v56 = vpop.f32.mrf.mxu0  ;;  %4227 = vmatpush1.bf16.msra.mxu1 %v10997_v55 }
 0x31c   : > { %v2482_v38 = vmul.f32 0.1, %v2398_v1  ;;  %v2419_v50 = vadd.f32 %v8886_v56, %v13465_v3  ;;  %v2516_v11 = vsel %vm2452_vm15, %v2406_v31, %v2484_v40  ;;  %vm2450_vm1 = vcmp.gt.f32.partialorder %v2398_v1, 0.0  ;;  %4228 = vmatprep.subr.bf16.mxu1 %v18010_v60 }
 0x31d   : > { %v2410_v61 = vpop.f32.mrf.mxu0  ;;  %2607 = vrot.lane.b32.xlu1 %v2516_v11, %s18023_s26  ;;  %2601 = vrot.lane.b32.xlu0 %v2513_v36, %s18023_s26 }
 0x31e   : > { %vm2455_vm3 = vcmp.gt.f32.partialorder %v2419_v50, 0.0  ;;  %v2487_v14 = vmul.f32 0.1, %v2419_v50  ;;  %v2411_v44 = vadd.f32 %v13465_v3, %v2410_v61  ;;  %v2514_v19 = vsel %vm2450_vm1, %v2398_v1, %v2482_v38 }
 0x31f   : > { %v8887_v34 = vpop.f32.mrf.mxu0  ;;  %vm2649_vm1 = vcmask 130112  }
 0x320   : > { %v2485_v4 = vmul.f32 0.1, %v2411_v44  ;;  %v2422_v25 = vadd.f32 %v8887_v34, %v13465_v3  ;;  %v2519_v54 = vsel %vm2455_vm3, %v2419_v50, %v2487_v14  ;;  %vm2453_vm12 = vcmp.gt.f32.partialorder %v2411_v44, 0.0  ;;  %v10998_v50 = vld [vmem:[%s17852_s4 + $0x18] sm:$0xff]  }
 0x321   : > { %v2413_v51 = vpop.f32.mrf.mxu0  ;;  %2603 = vrot.lane.b32.xlu1 %v2514_v19, %s18023_s26  ;;  %2613 = vrot.lane.b32.xlu0 %v2519_v54, %s18023_s26  ;;  %vm3962_vm3 = vcmask 654336  }
 0x322   : > { %vm2456_vm14 = vcmp.gt.f32.partialorder %v2422_v25, 0.0  ;;  %v2488_v10 = vmul.f32 0.1, %v2422_v25  ;;  %v2414_v22 = vadd.f32 %v13465_v3, %v2413_v51  ;;  %v2517_v57 = vsel %vm2453_vm12, %v2411_v44, %v2485_v4  ;;  %v13539_v3 = vpop.permute.xlu1 %9648  ;;  %4229 = vmatpush1.bf16.msra.mxu1 %v10998_v50 }
 0x323   : > { %18473 = vst [vmem:[#allocation26_spill] sm:$0xff] %v13539_v3  ;;  %4230 = vmatprep.subr.bf16.mxu1 %v18010_v60  ;;  %vm3995_vm12 = vcmask 785408  }
 0x324   : > { %v2486_v47 = vmul.f32 0.1, %v2414_v22  ;;  %v2520_v42 = vsel %vm2456_vm14, %v2422_v25, %v2488_v10  ;;  %vm2454_vm15 = vcmp.gt.f32.partialorder %v2414_v22, 0.0  ;;  %v10999_v25 = vld [vmem:[%s17852_s4 + $0x10] sm:$0xff]   ;;  %vm4028_vm14 = vcmask 916480  }
 0x325   : > { %2615 = vrot.lane.b32.xlu1 %v2520_v42, %s18023_s26  ;;  %2609 = vrot.lane.b32.xlu0 %v2517_v57, %s18023_s26  ;;  %v11000_v42 = vld [vmem:[%s17852_s4 + $0x8] sm:$0xff]  }
 0x326   : > { %v2518_v52 = vsel %vm2454_vm15, %v2414_v22, %v2486_v47  ;;  %4231 = vmatpush1.bf16.msra.mxu1 %v10999_v25  ;;  %vm548_vm15 = vcmask 517120  }
 0x327   : > { %4232 = vmatprep.subr.bf16.mxu1 %v18010_v60 }
 0x329   : > { %2611 = vrot.lane.b32.xlu1 %v2518_v52, %s18023_s26 }
 0x32a   : > { %4233 = vmatpush1.bf16.msra.mxu1 %v11000_v42 }
 0x32b   : > { %4234 = vmatprep.subr.bf16.mxu1 %v18010_v60 }
 0x32e   : > { %4235 = vmatpush1.bf16.msra.mxu1 %v11001_v53 }
 0x32f   : > { %4250 = vmatprep.subr.bf16.mxu1 %v18010_v60 }
 0x35b   : > { %v2558_v28 = vpop.permute.xlu0 %2557 }
 0x35c   : > { %2652 = vst.msk [vmem:[#allocation2 + $0x31] sm:$0xff] %vm2649_vm1, %v2558_v28 }
 0x35f   : > { %v2560_v26 = vpop.permute.xlu1 %2559  ;;  %v2554_v33 = vpop.permute.xlu0 %2553 }
 0x360   : > { %2653 = vst.msk [vmem:[#allocation2 + $0x39] sm:$0xff] %vm2649_vm1, %v2560_v26  ;;  %2650 = vst.msk [vmem:[#allocation2 + $0x19] sm:$0xff] %vm2649_vm1, %v2554_v33 }
 0x363   : > { %v2556_v29 = vpop.permute.xlu1 %2555  ;;  %v2566_v48 = vpop.permute.xlu0 %2565  ;;  %v2688_v18 = vld [vmem:[#allocation2 + $0x30] sm:$0xff] }
 0x364   : > { %2651 = vst.msk [vmem:[#allocation2 + $0x21] sm:$0xff] %vm2649_vm1, %v2556_v29  ;;  %2656 = vst.msk [vmem:[#allocation2 + $0x61] sm:$0xff] %vm2649_vm1, %v2566_v48  ;;  %v2890_v23 = vrot.slane %v2688_v18, 1  ;;  %v3066_v15 = vrot.slane %v2688_v18, 2 }
 0x367   : > { %v2568_v7 = vpop.permute.xlu1 %2567  ;;  %v2562_v37 = vpop.permute.xlu0 %2561  ;;  %v2689_v13 = vld [vmem:[#allocation2 + $0x38] sm:$0xff]  ;;  %v2690_v8 = vld [vmem:[#allocation2 + $0x40] sm:$0x3] }
 0x368   : > { %2657 = vst.msk [vmem:[#allocation2 + $0x69] sm:$0xff] %vm2649_vm1, %v2568_v7  ;;  %2654 = vst.msk [vmem:[#allocation2 + $0x49] sm:$0xff] %vm2649_vm1, %v2562_v37  ;;  %v9657_v63 = vpack.i.bf16 %v2689_v13, %v2688_v18  ;;  %v2891_v0 = vrot.slane %v2689_v13, 1  ;;  %v2893_v9 = vrot.slane %v2690_v8, 1  ;;  %v2685_v27 = vld [vmem:[#allocation2 + $0x18] sm:$0xff]  ;;  %v3067_v5 = vrot.slane %v2689_v13, 2 }
 0x369   : > { %v3069_v62 = vrot.slane %v2690_v8, 2  ;;  %v2885_v56 = vrot.slane %v2685_v27, 1  ;;  %v3061_v4 = vrot.slane %v2685_v27, 2  ;;  %v11002_v13 = vld [vmem:[%s17852_s4 + $0x40] sm:$0xff]  }
 0x36a   : > { %9658 = vrot.lane.b32.xlu1 %v9657_v63, %s18006_s17  ;;  %9653 = vrot.lane.b32.xlu0 %v9657_v63, %s18024_s25  ;;  %v2892_v12 = vsel %vm998_vm2, %v2890_v23, %v2891_v0  ;;  %v2894_v46 = vsel %vm998_vm2, %v2891_v0, %v2893_v9  ;;  %v3068_v31 = vsel %vm1175_vm4, %v3066_v15, %v3067_v5 }
 0x36b   : > { %v2564_v16 = vpop.permute.xlu1 %2563  ;;  %v2574_v58 = vpop.permute.xlu0 %2573  ;;  %v2686_v2 = vld [vmem:[#allocation2 + $0x20] sm:$0xff]  ;;  %v2687_v6 = vld [vmem:[#allocation2 + $0x28] sm:$0x3]  ;;  %v9687_v35 = vpack.i.bf16 %v2894_v46, %v2892_v12  ;;  %v3070_v49 = vsel %vm1175_vm4, %v3067_v5, %v3069_v62  ;;  %4251 = vmatpush2.bf16.msra.mxu1 %v11002_v13 }
 0x36c   : > { %2655 = vst.msk [vmem:[#allocation2 + $0x51] sm:$0xff] %vm2649_vm1, %v2564_v16  ;;  %2660 = vst.msk [vmem:[#allocation2 + $0x91] sm:$0xff] %vm2649_vm1, %v2574_v58  ;;  %v9667_v59 = vpack.i.bf16 %v2686_v2, %v2685_v27  ;;  %v2886_v45 = vrot.slane %v2686_v2, 1  ;;  %v2888_v32 = vrot.slane %v2687_v6, 1  ;;  %v9692_v38 = vpack.i.bf16 %v3070_v49, %v3068_v31  ;;  %v2694_v26 = vld [vmem:[#allocation2 + $0x60] sm:$0xff]  ;;  %8888 = vmatprep.subr.bf16.mxu1 %v18010_v60 }
 0x36d   : > { %v3062_v61 = vrot.slane %v2686_v2, 2  ;;  %v3064_v14 = vrot.slane %v2687_v6, 2  ;;  %v2900_v16 = vrot.slane %v2694_v26, 1  ;;  %v3076_v46 = vrot.slane %v2694_v26, 2 }
 0x36e   : > { %9663 = vrot.lane.b32.xlu0 %v9657_v63, %s18002_s11  ;;  %9668 = vrot.lane.b32.xlu1 %v9667_v59, %s18024_s25  ;;  %v2887_v11 = vsel %vm998_vm2, %v2885_v56, %v2886_v45  ;;  %v2889_v36 = vsel %vm998_vm2, %v2886_v45, %v2888_v32  ;;  %s18066_s11 = smov 72  }
 0x36f   : > { %v2576_v20 = vpop.permute.xlu1 %2575  ;;  %v2570_v41 = vpop.permute.xlu0 %2569  ;;  %v9707_v19 = vpack.i.bf16 %v2889_v36, %v2887_v11  ;;  %v3063_v54 = vsel %vm1175_vm4, %v3061_v4, %v3062_v61  ;;  %v3065_v51 = vsel %vm1175_vm4, %v3062_v61, %v3064_v14  ;;  %v2695_v57 = vld [vmem:[#allocation2 + $0x68] sm:$0xff]  ;;  %v2696_v48 = vld [vmem:[#allocation2 + $0x70] sm:$0x3] }
 0x370   : > { %2661 = vst.msk [vmem:[#allocation2 + $0x99] sm:$0xff] %vm2649_vm1, %v2576_v20  ;;  %2658 = vst.msk [vmem:[#allocation2 + $0x79] sm:$0xff] %vm2649_vm1, %v2570_v41  ;;  %v9712_v47 = vpack.i.bf16 %v3065_v51, %v3063_v54  ;;  %v9732_v33 = vpack.i.bf16 %v2695_v57, %v2694_v26  ;;  %v2691_v18 = vld [vmem:[#allocation2 + $0x48] sm:$0xff]  ;;  %v2901_v63 = vrot.slane %v2695_v57, 1  ;;  %v2903_v43 = vrot.slane %v2696_v48, 1 }
 0x371   : > { %v3077_v2 = vrot.slane %v2695_v57, 2  ;;  %v3079_v23 = vrot.slane %v2696_v48, 2  ;;  %v2895_v55 = vrot.slane %v2691_v18, 1 }
 0x372   : > { %9673 = vrot.lane.b32.xlu0 %v9667_v59, %s18006_s17  ;;  %9688 = vrot.lane.b32.xlu1 %v9687_v35, %s18004_s23  ;;  %s18474_s23 = smov 40   ;;  %v2902_v58 = vsel %vm998_vm2, %v2900_v16, %v2901_v63  ;;  %v2904_v27 = vsel %vm998_vm2, %v2901_v63, %v2903_v43  ;;  %s18488_s17 = smov 16  }
 0x373   : > { %v2572_v40 = vpop.permute.xlu1 %2571  ;;  %v2582_v1 = vpop.permute.xlu0 %2581  ;;  %v13615_v29 = vld [vmem:[#allocation2 + $0x50] sm:$0xff]  ;;  %v2693_v59 = vld [vmem:[#allocation2 + $0x58] sm:$0x3]  ;;  %v9767_v5 = vpack.i.bf16 %v2904_v27, %v2902_v58  ;;  %v3078_v62 = vsel %vm1175_vm4, %v3076_v46, %v3077_v2  ;;  %v3080_v6 = vsel %vm1175_vm4, %v3077_v2, %v3079_v23 }
 0x374   : > { %2659 = vst.msk [vmem:[#allocation2 + $0x81] sm:$0xff] %vm2649_vm1, %v2572_v40  ;;  %2664 = vst.msk [vmem:[#allocation2 + $0xc1] sm:$0xff] %vm2649_vm1, %v2582_v1  ;;  %v9742_v8 = vpack.i.bf16 %v13615_v29, %v2691_v18  ;;  %v2896_v20 = vrot.slane %v13615_v29, 1  ;;  %v2898_v41 = vrot.slane %v2693_v59, 1  ;;  %v9772_v31 = vpack.i.bf16 %v3080_v6, %v3078_v62 }
 0x375   : > { %v3072_v32 = vrot.slane %v13615_v29, 2  ;;  %v3074_v40 = vrot.slane %v2693_v59, 2 }
 0x376   : > { %9678 = vrot.lane.b32.xlu0 %v9687_v35, %s18023_s26  ;;  %9693 = vrot.lane.b32.xlu1 %v9692_v38, %s18066_s11  ;;  %v2897_v49 = vsel %vm998_vm2, %v2895_v55, %v2896_v20  ;;  %v2899_v45 = vsel %vm998_vm2, %v2896_v20, %v2898_v41 }
 0x377   : > { %v2584_v44 = vpop.permute.xlu1 %2583  ;;  %v2578_v34 = vpop.permute.xlu0 %2577  ;;  %v9787_v50 = vpack.i.bf16 %v2899_v45, %v2897_v49  ;;  %v3075_v36 = vsel %vm1175_vm4, %v3072_v32, %v3074_v40  ;;  %v2701_v4 = vld [vmem:[#allocation2 + $0x98] sm:$0xff]  ;;  %v2702_v25 = vld [vmem:[#allocation2 + $0xa0] sm:$0x3] }
 0x378   : > { %2665 = vst.msk [vmem:[#allocation2 + $0xc9] sm:$0xff] %vm2649_vm1, %v2584_v44  ;;  %2662 = vst.msk [vmem:[#allocation2 + $0xa9] sm:$0xff] %vm2649_vm1, %v2578_v34  ;;  %v13676_v57 = vld [vmem:[#allocation2 + $0x78] sm:$0xff] }
 0x37a   : > { %9683 = vrot.lane.b32.xlu0 %v9692_v38, %s18026_s27  ;;  %9708 = vrot.lane.b32.xlu1 %v9707_v19, %s18023_s26 }
 0x37b   : > { %v2580_v10 = vpop.permute.xlu1 %2579  ;;  %v2590_v22 = vpop.permute.xlu0 %2589  ;;  %v13670_v51 = vld [vmem:[#allocation2 + $0x80] sm:$0xff] }
 0x37c   : > { %2663 = vst.msk [vmem:[#allocation2 + $0xb1] sm:$0xff] %vm2649_vm1, %v2580_v10  ;;  %2668 = vst.msk [vmem:[#allocation2 + $0xf1] sm:$0xff] %vm2649_vm1, %v2590_v22  ;;  %v2911_v10 = vrot.slane %v2701_v4, 1  ;;  %v2913_v22 = vrot.slane %v2702_v25, 1 }
 0x37e   : > { %9698 = vrot.lane.b32.xlu0 %v9687_v35, %s18008_s18  ;;  %9713 = vrot.lane.b32.xlu1 %v9712_v47, %s18026_s27  ;;  %s18476_s18 = smov 88   ;;  %v2914_v16 = vsel %vm998_vm2, %v2911_v10, %v2913_v22 }
 0x37f   : > { %v2592_v52 = vpop.permute.xlu1 %2591  ;;  %v2586_v28 = vpop.permute.xlu0 %2585  ;;  %v13668_v54 = vld [vmem:[#allocation2 + $0xc8] sm:$0xff]  ;;  %v13678_v26 = vld [vmem:[#allocation2 + $0xd0] sm:$0x3] }
 0x380   : > { %2669 = vst.msk [vmem:[#allocation2 + $0xf9] sm:$0xff] %vm2649_vm1, %v2592_v52  ;;  %2666 = vst.msk [vmem:[#allocation2 + $0xd9] sm:$0xff] %vm2649_vm1, %v2586_v28  ;;  %v3087_v52 = vrot.slane %v2701_v4, 2  ;;  %v3089_v28 = vrot.slane %v2702_v25, 2  ;;  %v13680_v53 = vld [vmem:[#allocation2 + $0xa8] sm:$0xff]  ;;  %v3097_v48 = vrot.slane %v13668_v54, 2 }
 0x381   : > { %v3099_v58 = vrot.slane %v13678_v26, 2 }
 0x382   : > { %9703 = vrot.lane.b32.xlu0 %v9692_v38, %s18024_s25  ;;  %9733 = vrot.lane.b32.xlu1 %v9732_v33, %s18474_s23  ;;  %v3071_v38 = vrot.slane %v2691_v18, 2 }
 0x383   : > { %v2588_v7 = vpop.permute.xlu1 %2587  ;;  %v2598_v37 = vpop.permute.xlu0 %2597  ;;  %v13682_v29 = vld [vmem:[#allocation2 + $0xb0] sm:$0xff] }
 0x384   : > { %2667 = vst.msk [vmem:[#allocation2 + $0xe1] sm:$0xff] %vm2649_vm1, %v2588_v7  ;;  %2672 = vst.msk [vmem:[#allocation2 + $0x121] sm:$0xff] %vm2649_vm1, %v2598_v37  ;;  %v3073_v11 = vsel %vm1175_vm4, %v3071_v38, %v3072_v32  ;;  %v13685_v7 = vld [vmem:[#allocation2 + $0xb8] sm:$0x3]  ;;  %v13692_v37 = vpack.i.bf16 %v13670_v51, %v13676_v57 }
 0x385   : > { %v13657_v44 = vpack.i.bf16 %v3075_v36, %v3073_v11  ;;  %v3094_v46 = vrot.slane %v13685_v7, 2  ;;  %v3100_v11 = vsel %vm1175_vm4, %v3097_v48, %v3099_v58 }
 0x386   : > { %9718 = vrot.lane.b32.xlu0 %v9707_v19, %s18475_s24  ;;  %9743 = vrot.lane.b32.xlu1 %v9742_v8, %s18024_s25  ;;  %v2700_v19 = vld [vmem:[#allocation2 + $0x90] sm:$0xff] }
 0x387   : > { %v2600_v0 = vpop.permute.xlu1 %2599  ;;  %v2594_v9 = vpop.permute.xlu0 %2593  ;;  %v13674_v42 = vpack.i.bf16 %v2701_v4, %v2700_v19  ;;  %v3086_v18 = vrot.slane %v2700_v19, 2  ;;  %v13697_v63 = vld [vmem:[#allocation2 + $0xf8] sm:$0xff] }
 0x388   : > { %2673 = vst.msk [vmem:[#allocation2 + $0x129] sm:$0xff] %vm2649_vm1, %v2600_v0  ;;  %2670 = vst.msk [vmem:[#allocation2 + $0x109] sm:$0xff] %vm2649_vm1, %v2594_v9  ;;  %v13701_v0 = vld [vmem:[#allocation2 + $0x100] sm:$0x3]  ;;  %v3107_v41 = vrot.slane %v13697_v63, 2 }
 0x389   : > { %v3088_v59 = vsel %vm1175_vm4, %v3086_v18, %v3087_v52 }
 0x38a   : > { %9723 = vrot.lane.b32.xlu0 %v9712_v47, %s18066_s11  ;;  %9753 = vrot.lane.b32.xlu1 %v9742_v8, %s18476_s18  ;;  %v13672_v47 = vld [vmem:[#allocation2 + $0xc0] sm:$0xff] }
 0x38b   : > { %v2596_v30 = vpop.permute.xlu1 %2595  ;;  %v2606_v12 = vpop.permute.xlu0 %2605  ;;  %v3096_v13 = vrot.slane %v13672_v47, 2  ;;  %v13699_v43 = vld [vmem:[#allocation2 + $0xe0] sm:$0xff]  ;;  %v13706_v27 = vld [vmem:[#allocation2 + $0xe8] sm:$0x3] }
 0x38c   : > { %2671 = vst.msk [vmem:[#allocation2 + $0x111] sm:$0xff] %vm2649_vm1, %v2596_v30  ;;  %2676 = vst.msk [vmem:[#allocation2 + $0x151] sm:$0xff] %vm2649_vm1, %v2606_v12  ;;  %v3090_v30 = vsel %vm1175_vm4, %v3087_v52, %v3089_v28  ;;  %v3092_v12 = vrot.slane %v13682_v29, 2  ;;  %v3104_v49 = vrot.slane %v13706_v27, 2  ;;  %v13733_v45 = vld [vmem:[#allocation2 + $0x120] sm:$0xff] }
 0x38d   : > { %v3098_v20 = vsel %vm1175_vm4, %v3096_v13, %v3097_v48  ;;  %v2906_v13 = vrot.slane %v13670_v51, 1  ;;  %v13759_v58 = vpack.i.bf16 %v3090_v30, %v3088_v59 }
 0x38e   : > { %9728 = vrot.lane.b32.xlu0 %v9732_v33, %s18024_s25  ;;  %9768 = vrot.lane.b32.xlu1 %v9767_v5, %s18475_s24 }
 0x38f   : > { %v2608_v15 = vpop.permute.xlu1 %2607  ;;  %v2602_v35 = vpop.permute.xlu0 %2601  ;;  %v13718_v62 = vld [vmem:[#allocation2 + $0x128] sm:$0xff]  ;;  %v13720_v6 = vld [vmem:[#allocation2 + $0x130] sm:$0x3] }
 0x390   : > { %2677 = vst.msk [vmem:[#allocation2 + $0x159] sm:$0xff] %vm2649_vm1, %v2608_v15  ;;  %2674 = vst.msk [vmem:[#allocation2 + $0x139] sm:$0xff] %vm2649_vm1, %v2602_v35  ;;  %v3109_v15 = vrot.slane %v13701_v0, 2  ;;  %v3102_v35 = vrot.slane %v13699_v43, 2  ;;  %v13726_v55 = vld [vmem:[#allocation2 + $0x108] sm:$0xff]  ;;  %v3117_v38 = vrot.slane %v13718_v62, 2 }
 0x392   : > { %9738 = vrot.lane.b32.xlu0 %v9732_v33, %s18476_s18  ;;  %9773 = vrot.lane.b32.xlu1 %v9772_v31, %s18066_s11  ;;  %v2910_v33 = vrot.slane %v2700_v19, 1  ;;  %v3110_v4 = vsel %vm1175_vm4, %v3107_v41, %v3109_v15  ;;  %v3116_v19 = vrot.slane %v13733_v45, 2  ;;  %v3105_v22 = vsel %vm1175_vm4, %v3102_v35, %v3104_v49 }
 0x393   : > { %v2604_v1 = vpop.permute.xlu1 %2603  ;;  %v2614_v56 = vpop.permute.xlu0 %2613  ;;  %v13708_v2 = vld [vmem:[#allocation2 + $0x110] sm:$0xff]  ;;  %v13710_v23 = vld [vmem:[#allocation2 + $0x118] sm:$0x3]  ;;  %v3081_v49 = vrot.slane %v13676_v57, 2 }
 0x394   : > { %2675 = vst.msk [vmem:[#allocation2 + $0x141] sm:$0xff] %vm2649_vm1, %v2604_v1  ;;  %2680 = vst.msk [vmem:[#allocation2 + $0x181] sm:$0xff] %vm2649_vm1, %v2614_v56  ;;  %v2912_v9 = vsel %vm998_vm2, %v2910_v33, %v2911_v10  ;;  %v3112_v32 = vrot.slane %v13708_v2, 2  ;;  %v3114_v40 = vrot.slane %v13710_v23, 2  ;;  %v2699_v10 = vld [vmem:[#allocation2 + $0x88] sm:$0x3]  ;;  %v3118_v48 = vsel %vm1175_vm4, %v3116_v19, %v3117_v38 }
 0x395   : > { %v9857_v33 = vpack.i.bf16 %v2914_v16, %v2912_v9  ;;  %v2905_v16 = vrot.slane %v13676_v57, 1  ;;  %v9917_v57 = vpack.i.bf16 %v13682_v29, %v13680_v53 }
 0x396   : > { %9748 = vrot.lane.b32.xlu0 %v9742_v8, %s18474_s23  ;;  %9788 = vrot.lane.b32.xlu1 %v9787_v50, %s18023_s26  ;;  %v13695_v8 = vld [vmem:[#allocation2 + $0xf0] sm:$0xff]  ;;  %v3115_v28 = vsel %vm1175_vm4, %v3112_v32, %v3114_v40 }
 0x397   : > { %v2616_v61 = vpop.permute.xlu1 %2615  ;;  %v2610_v14 = vpop.permute.xlu0 %2609  ;;  %v3106_v1 = vrot.slane %v13695_v8, 2  ;;  %v2907_v59 = vsel %vm998_vm2, %v2905_v16, %v2906_v13 }
 0x398   : > { %2681 = vst.msk [vmem:[#allocation2 + $0x189] sm:$0xff] %vm2649_vm1, %v2616_v61  ;;  %2678 = vst.msk [vmem:[#allocation2 + $0x169] sm:$0xff] %vm2649_vm1, %v2610_v14  ;;  %v3095_v61 = vsel %vm1175_vm4, %v3092_v12, %v3094_v46  ;;  %v3111_v14 = vrot.slane %v13726_v55, 2  ;;  %v2908_v46 = vrot.slane %v2699_v10, 1 }
 0x39a   : > { %9758 = vrot.lane.b32.xlu0 %v9767_v5, %s18023_s26  ;;  %9793 = vrot.lane.b32.xlu1 %v13657_v44, %s18026_s27  ;;  %v3113_v52 = vsel %vm1175_vm4, %v3111_v14, %v3112_v32  ;;  %v2909_v30 = vsel %vm998_vm2, %v2906_v13, %v2908_v46  ;;  %v2933_v13 = vrot.slane %v13701_v0, 1  ;;  %v2930_v46 = vrot.slane %v13695_v8, 1 }
 0x39b   : > { %v2612_v34 = vpop.permute.xlu1 %2611  ;;  %v9872_v32 = vpack.i.bf16 %v2909_v30, %v2907_v59  ;;  %v9630_v0 = vunpack.i.l.bf16 %v13531_v21 }
 0x39c   : > { %2679 = vst.msk [vmem:[#allocation2 + $0x171] sm:$0xff] %vm2649_vm1, %v2612_v34  ;;  %v3108_v34 = vsel %vm1175_vm4, %v3106_v1, %v3107_v41 }
 0x39d   : > { %v13767_v15 = vpack.i.bf16 %v3110_v4, %v3108_v34 }
 0x39e   : > { %9763 = vrot.lane.b32.xlu0 %v9772_v31, %s18026_s27  ;;  %9808 = vrot.lane.b32.xlu1 %v9787_v50, %s18477_s22 }
 0x3a2   : > { %9778 = vrot.lane.b32.xlu0 %v9767_v5, %s18477_s22  ;;  %9813 = vrot.lane.b32.xlu1 %v13657_v44, %s18024_s25  ;;  %v13716_v5 = vld [vmem:[#allocation2 + $0xd8] sm:$0xff] }
 0x3a3   : > { %v3101_v56 = vrot.slane %v13716_v5, 2 }
 0x3a5   : > { %v3103_v25 = vsel %vm1175_vm4, %v3101_v56, %v3102_v35  ;;  %v13769_v35 = vpack.i.bf16 %v3115_v28, %v3113_v52  ;;  %v2923_v56 = vrot.slane %v13678_v26, 1  ;;  %v2915_v26 = vrot.slane %v13680_v53, 1 }
 0x3a6   : > { %9783 = vrot.lane.b32.xlu0 %v9772_v31, %s18024_s25  ;;  %9823 = vrot.lane.b32.xlu1 %v13674_v42, %s18474_s23  ;;  %v3091_v31 = vrot.slane %v13680_v53, 2  ;;  %v13765_v41 = vpack.i.bf16 %v3105_v22, %v3103_v25  ;;  %v9987_v52 = vpack.i.bf16 %v13697_v63, %v13695_v8  ;;  %v9635_v8 = vunpack.i.l.bf16 %v13533_v39 }
 0x3a8   : > { %v3093_v36 = vsel %vm1175_vm4, %v3091_v31, %v3092_v12  ;;  %v13763_v12 = vpack.i.bf16 %v3100_v11, %v3098_v20  ;;  %v3082_v20 = vrot.slane %v13670_v51, 2  ;;  %v3084_v31 = vrot.slane %v2699_v10, 2 }
 0x3aa   : > { %9798 = vrot.lane.b32.xlu0 %v9787_v50, %s18475_s24  ;;  %9833 = vrot.lane.b32.xlu1 %v13692_v37, %s18024_s25  ;;  %v3119_v50 = vrot.slane %v13720_v6, 2  ;;  %v3083_v40 = vsel %vm1175_vm4, %v3081_v49, %v3082_v20  ;;  %v3085_v1 = vsel %vm1175_vm4, %v3082_v20, %v3084_v31  ;;  %v9636_v31 = vunpack.i.h.bf16 %v13533_v39 }
 0x3ab   : > { %v9877_v51 = vpack.i.bf16 %v3085_v1, %v3083_v40  ;;  %v2925_v39 = vrot.slane %v13716_v5, 1 }
 0x3ac   : > { %v3120_v18 = vsel %vm1175_vm4, %v3117_v38, %v3119_v50  ;;  %v2920_v38 = vrot.slane %v13672_v47, 1 }
 0x3ad   : > { %v13774_v9 = vpack.i.bf16 %v3120_v18, %v3118_v48  ;;  %v9997_v48 = vpack.i.bf16 %v13699_v43, %v13716_v5  ;;  %v2931_v18 = vrot.slane %v13697_v63, 1  ;;  %v9631_v63 = vunpack.i.h.bf16 %v13531_v21 }
 0x3ae   : > { %9803 = vrot.lane.b32.xlu0 %v13657_v44, %s18066_s11  ;;  %9843 = vrot.lane.b32.xlu1 %v13692_v37, %s18476_s18  ;;  %v13761_v44 = vpack.i.bf16 %v3095_v61, %v3093_v36  ;;  %v2916_v61 = vrot.slane %v13682_v29, 1  ;;  %v9641_v21 = vunpack.i.h.bf16 %v13537_v24 }
 0x3af   : > { %v2932_v30 = vsel %vm998_vm2, %v2930_v46, %v2931_v18  ;;  %v2934_v20 = vsel %vm998_vm2, %v2931_v18, %v2933_v13 }
 0x3b0   : > { %v10022_v40 = vpack.i.bf16 %v2934_v20, %v2932_v30 }
 0x3b2   : > { %9818 = vrot.lane.b32.xlu0 %v13674_v42, %s18024_s25  ;;  %9858 = vrot.lane.b32.xlu1 %v9857_v33, %s18475_s24 }
 0x3b6   : > { %9828 = vrot.lane.b32.xlu0 %v13674_v42, %s18476_s18  ;;  %9863 = vrot.lane.b32.xlu1 %v13759_v58, %s18066_s11  ;;  %v9907_v42 = vpack.i.bf16 %v13668_v54, %v13672_v47  ;;  %v2917_v47 = vsel %vm998_vm2, %v2915_v26, %v2916_v61 }
 0x3ba   : > { %9838 = vrot.lane.b32.xlu0 %v13692_v37, %s18474_s23  ;;  %9873 = vrot.lane.b32.xlu1 %v9872_v32, %s18023_s26  ;;  %v2921_v37 = vrot.slane %v13668_v54, 1  ;;  %v2918_v54 = vrot.slane %v13685_v7, 1 }
 0x3bc   : > { %v2922_v50 = vsel %vm998_vm2, %v2920_v38, %v2921_v37  ;;  %v2924_v11 = vsel %vm998_vm2, %v2921_v37, %v2923_v56  ;;  %v2919_v14 = vsel %vm998_vm2, %v2916_v61, %v2918_v54  ;;  %v9640_v37 = vunpack.i.l.bf16 %v13537_v24 }
 0x3bd   : > { %v9942_v36 = vpack.i.bf16 %v2924_v11, %v2922_v50  ;;  %v9957_v7 = vpack.i.bf16 %v2919_v14, %v2917_v47  ;;  %v3834_v38 = vsel %vm1923_vm8, %v9630_v0, %v9635_v8  ;;  %v3835_v50 = vsel %vm1923_vm8, %v9631_v63, %v9636_v31 }
 0x3be   : > { %9848 = vrot.lane.b32.xlu0 %v9857_v33, %s18023_s26  ;;  %9878 = vrot.lane.b32.xlu1 %v9877_v51, %s18026_s27  ;;  %v3866_v5 = vsel %vm1988_vm9, %v3834_v38, %v9640_v37  ;;  %v3867_v47 = vsel %vm1988_vm9, %v3835_v50, %v9641_v21 }
 0x3c2   : > { %9853 = vrot.lane.b32.xlu0 %v13759_v58, %s18026_s27  ;;  %9893 = vrot.lane.b32.xlu1 %v9872_v32, %s18477_s22 }
 0x3c6   : > { %9868 = vrot.lane.b32.xlu0 %v9857_v33, %s18477_s22  ;;  %9898 = vrot.lane.b32.xlu1 %v9877_v51, %s18024_s25 }
 0x3ca   : > { %9883 = vrot.lane.b32.xlu0 %v9872_v32, %s18475_s24  ;;  %9908 = vrot.lane.b32.xlu1 %v9907_v42, %s18474_s23 }
 0x3ce   : > { %9888 = vrot.lane.b32.xlu0 %v9877_v51, %s18066_s11  ;;  %9918 = vrot.lane.b32.xlu1 %v9917_v57, %s18024_s25 }
 0x3d2   : > { %9903 = vrot.lane.b32.xlu0 %v9907_v42, %s18024_s25  ;;  %9928 = vrot.lane.b32.xlu1 %v9917_v57, %s18476_s18 }
 0x3d6   : > { %9913 = vrot.lane.b32.xlu0 %v9907_v42, %s18476_s18  ;;  %9943 = vrot.lane.b32.xlu1 %v9942_v36, %s18475_s24  ;;  %v2926_v42 = vrot.slane %v13699_v43, 1 }
 0x3d8   : > { %v2927_v61 = vsel %vm998_vm2, %v2925_v39, %v2926_v42 }
 0x3da   : > { %9923 = vrot.lane.b32.xlu0 %v9917_v57, %s18474_s23  ;;  %9948 = vrot.lane.b32.xlu1 %v13763_v12, %s18066_s11  ;;  %v2928_v57 = vrot.slane %v13706_v27, 1 }
 0x3dc   : > { %v13822_v34 = vpop.permute.xlu1 %9658  ;;  %v13824_v29 = vpop.permute.xlu0 %9653  ;;  %v2929_v54 = vsel %vm998_vm2, %v2926_v42, %v2928_v57 }
 0x3de   : > { %9933 = vrot.lane.b32.xlu0 %v9942_v36, %s18023_s26  ;;  %9958 = vrot.lane.b32.xlu1 %v9957_v7, %s18023_s26 }
 0x3e0   : > { %v13828_v4 = vpop.permute.xlu1 %9668  ;;  %v13830_v53 = vpop.permute.xlu0 %9663 }
 0x3e1   : > { %v9665_v30 = vunpack.i.l.bf16 %v13830_v53 }
 0x3e2   : > { %9938 = vrot.lane.b32.xlu0 %v13763_v12, %s18026_s27  ;;  %9963 = vrot.lane.b32.xlu1 %v13761_v44, %s18026_s27 }
 0x3e4   : > { %v13836_v25 = vpop.permute.xlu1 %9688  ;;  %v9674_v19 = vpop.permute.xlu0 %9673 }
 0x3e5   : > { %v9675_v27 = vunpack.i.l.bf16 %v9674_v19 }
 0x3e6   : > { %9953 = vrot.lane.b32.xlu0 %v9942_v36, %s18477_s22  ;;  %9978 = vrot.lane.b32.xlu1 %v9957_v7, %s18477_s22  ;;  %v9676_v36 = vunpack.i.h.bf16 %v9674_v19  ;;  %v10037_v19 = vpack.i.bf16 %v2929_v54, %v2927_v61 }
 0x3e7   : > { %v3898_v18 = vsel %vm2054_vm11, %v3866_v5, %v9675_v27  ;;  %v9670_v27 = vunpack.i.l.bf16 %v13828_v4  ;;  %v9661_v5 = vunpack.i.h.bf16 %v13822_v34 }
 0x3e8   : > { %v13840_v10 = vpop.permute.xlu1 %9693  ;;  %v13842_v22 = vpop.permute.xlu0 %9678 }
 0x3ea   : > { %9968 = vrot.lane.b32.xlu0 %v9957_v7, %s18475_s24  ;;  %9988 = vrot.lane.b32.xlu1 %v9987_v52, %s18474_s23 }
 0x3ec   : > { %v13848_v28 = vpop.permute.xlu1 %9708  ;;  %v13850_v33 = vpop.permute.xlu0 %9683 }
 0x3ed   : > { %v9711_v39 = vunpack.i.h.bf16 %v13848_v28  ;;  %v9710_v38 = vunpack.i.l.bf16 %v13848_v28 }
 0x3ee   : > { %9973 = vrot.lane.b32.xlu0 %v13761_v44, %s18066_s11  ;;  %9998 = vrot.lane.b32.xlu1 %v9997_v48, %s18024_s25 }
 0x3f0   : > { %v13860_v16 = vpop.permute.xlu1 %9713  ;;  %v13862_v59 = vpop.permute.xlu0 %9698 }
 0x3f1   : > { %v9701_v8 = vunpack.i.h.bf16 %v13862_v59  ;;  %v9716_v50 = vunpack.i.h.bf16 %v13860_v16 }
 0x3f2   : > { %9983 = vrot.lane.b32.xlu0 %v9987_v52, %s18024_s25  ;;  %10008 = vrot.lane.b32.xlu1 %v9997_v48, %s18476_s18 }
 0x3f4   : > { %v13872_v49 = vpop.permute.xlu1 %9733  ;;  %v9704_v32 = vpop.permute.xlu0 %9703 }
 0x3f5   : > { %v9706_v1 = vunpack.i.h.bf16 %v9704_v32  ;;  %v9705_v51 = vunpack.i.l.bf16 %v9704_v32  ;;  %v9700_v32 = vunpack.i.l.bf16 %v13862_v59 }
 0x3f6   : > { %9993 = vrot.lane.b32.xlu0 %v9987_v52, %s18476_s18  ;;  %10023 = vrot.lane.b32.xlu1 %v10022_v40, %s18475_s24  ;;  %v3899_v52 = vsel %vm2054_vm11, %v3867_v47, %v9676_v36  ;;  %v9671_v36 = vunpack.i.h.bf16 %v13828_v4  ;;  %v10077_v4 = vpack.i.bf16 %v13708_v2, %v13726_v55  ;;  %v9660_v47 = vunpack.i.l.bf16 %v13822_v34 }
 0x3f7   : > { %v4062_v56 = vpack.c.bf16 %v9706_v1, %v9705_v51  ;;  %v9691_v34 = vunpack.i.h.bf16 %v13836_v25 }
 0x3f8   : > { %v13883_v11 = vpop.permute.xlu1 %9743  ;;  %v9719_v43 = vpop.permute.xlu0 %9718  ;;  %v3837_v28 = vsel %vm1923_vm8, %v9671_v36, %v9711_v39 }
 0x3f9   : > { %8745 = vmatprep.mubr.msk.bf16.mxu1 %vm1923_vm8, %v4062_v56  ;;  %v9721_v26 = vunpack.i.h.bf16 %v9719_v43  ;;  %v9720_v24 = vunpack.i.l.bf16 %v9719_v43  ;;  %v9715_v43 = vunpack.i.l.bf16 %v13860_v16 }
 0x3fa   : > { %10003 = vrot.lane.b32.xlu0 %v9997_v48, %s18474_s23  ;;  %10028 = vrot.lane.b32.xlu1 %v13767_v15, %s18066_s11  ;;  %v9666_v48 = vunpack.i.h.bf16 %v13830_v53 }
 0x3fb   : > { %v3930_v20 = vsel %vm545_vm6, %v3898_v18, %v9720_v24  ;;  %v3931_v63 = vsel %vm545_vm6, %v3899_v52, %v9721_v26  ;;  %v10067_v26 = vpack.i.bf16 %v13718_v62, %v13733_v45  ;;  %v3869_v24 = vsel %vm1988_vm9, %v3837_v28, %v9716_v50 }
 0x3fc   : > { %v13893_v14 = vpop.permute.xlu1 %9753  ;;  %v9724_v7 = vpop.permute.xlu0 %9723  ;;  %v2941_v18 = vrot.slane %v13718_v62, 1  ;;  %v2938_v50 = vrot.slane %v13710_v23, 1 }
 0x3fd   : > { %v9726_v13 = vunpack.i.h.bf16 %v9724_v7  ;;  %v9725_v46 = vunpack.i.l.bf16 %v9724_v7 }
 0x3fe   : > { %10013 = vrot.lane.b32.xlu0 %v10022_v40, %s18023_s26  ;;  %10038 = vrot.lane.b32.xlu1 %v10037_v19, %s18023_s26 }
 0x3ff   : > { %v3963_v0 = vsel %vm3962_vm3, %v3930_v20, %v9725_v46  ;;  %v3964_v31 = vsel %vm3962_vm3, %v3931_v63, %v9726_v13  ;;  %v3901_v46 = vsel %vm2054_vm11, %v3869_v24, %v9661_v5 }
 0x400   : > { %v13907_v1 = vpop.permute.xlu1 %9768  ;;  %v13909_v53 = vpop.permute.xlu0 %9728  ;;  %v3996_v51 = vsel %vm3995_vm12, %v3963_v0, %v9665_v30  ;;  %v3997_v42 = vsel %vm3995_vm12, %v3964_v31, %v9666_v48  ;;  %v2940_v48 = vrot.slane %v13733_v45, 1  ;;  %v9690_v30 = vunpack.i.l.bf16 %v13836_v25 }
 0x401   : > { %v4029_v57 = vsel %vm4028_vm14, %v3996_v51, %v9700_v32  ;;  %v4030_v21 = vsel %vm4028_vm14, %v3997_v42, %v9701_v8  ;;  %v9756_v0 = vunpack.i.h.bf16 %v13893_v14  ;;  %v9755_v31 = vunpack.i.l.bf16 %v13893_v14 }
 0x402   : > { %10018 = vrot.lane.b32.xlu0 %v13767_v15, %s18026_s27  ;;  %10043 = vrot.lane.b32.xlu1 %v13765_v41, %s18026_s27  ;;  %v4061_v37 = vpack.c.bf16 %v4030_v21, %v4029_v57  ;;  %v2942_v62 = vsel %vm998_vm2, %v2940_v48, %v2941_v18  ;;  %v3933_v32 = vsel %vm545_vm6, %v3901_v46, %v9691_v34  ;;  %v9696_v45 = vunpack.i.h.bf16 %v13840_v10 }
 0x403   : > { %v9695_v51 = vunpack.i.l.bf16 %v13840_v10  ;;  %v2936_v57 = vrot.slane %v13708_v2, 1  ;;  %v9686_v48 = vunpack.i.h.bf16 %v13850_v33  ;;  %v9685_v34 = vunpack.i.l.bf16 %v13850_v33 }
 0x404   : > { %v13919_v59 = vpop.permute.xlu1 %9773  ;;  %v13921_v56 = vpop.permute.xlu0 %9738  ;;  %4253 = vmatmul.mubr.bf16.vlgmr.msra.gmra.mxu1 %v4061_v37 }
 0x406   : > { %10033 = vrot.lane.b32.xlu0 %v10022_v40, %s18477_s22  ;;  %10058 = vrot.lane.b32.xlu1 %v10037_v19, %s18477_s22  ;;  %v3836_v40 = vsel %vm1923_vm8, %v9670_v27, %v9710_v38  ;;  %v3966_v38 = vsel %vm3962_vm3, %v3933_v32, %v9696_v45 }
 0x407   : > { %v3868_v16 = vsel %vm1988_vm9, %v3836_v40, %v9715_v43  ;;  %v3999_v27 = vsel %vm3995_vm12, %v3966_v38, %v9756_v0  ;;  %v2935_v40 = vrot.slane %v13726_v55, 1  ;;  %v9681_v55 = vunpack.i.h.bf16 %v13842_v22 }
 0x408   : > { %v13931_v61 = vpop.permute.xlu1 %9788  ;;  %v13933_v54 = vpop.permute.xlu0 %9748  ;;  %v3900_v13 = vsel %vm2054_vm11, %v3868_v16, %v9660_v47  ;;  %v9740_v38 = vunpack.i.l.bf16 %v13921_v56 }
 0x409   : > { %v3932_v8 = vsel %vm545_vm6, %v3900_v13, %v9690_v30  ;;  %v2937_v5 = vsel %vm998_vm2, %v2935_v40, %v2936_v57  ;;  %v9680_v13 = vunpack.i.l.bf16 %v13842_v22  ;;  %v9751_v0 = vunpack.i.h.bf16 %v13933_v54 }
 0x40a   : > { %10048 = vrot.lane.b32.xlu0 %v10037_v19, %s18475_s24  ;;  %10068 = vrot.lane.b32.xlu1 %v10067_v26, %s18474_s23  ;;  %v2943_v19 = vrot.slane %v13720_v6, 1  ;;  %v3965_v39 = vsel %vm3962_vm3, %v3932_v8, %v9695_v51 }
 0x40b   : > { %v3998_v36 = vsel %vm3995_vm12, %v3965_v39, %v9755_v31  ;;  %v9750_v31 = vunpack.i.l.bf16 %v13933_v54  ;;  %v9741_v39 = vunpack.i.h.bf16 %v13921_v56 }
 0x40c   : > { %v13947_v7 = vpop.permute.xlu1 %9793  ;;  %v13949_v52 = vpop.permute.xlu0 %9758  ;;  %v2944_v6 = vsel %vm998_vm2, %v2941_v18, %v2943_v19  ;;  %v2939_v19 = vsel %vm998_vm2, %v2936_v57, %v2938_v50 }
 0x40d   : > { %v13976_v14 = vpack.i.bf16 %v2944_v6, %v2942_v62  ;;  %v10117_v62 = vpack.i.bf16 %v2939_v19, %v2937_v5  ;;  %v9656_v6 = vunpack.i.h.bf16 %v13824_v29 }
 0x40e   : > { %10053 = vrot.lane.b32.xlu0 %v13765_v41, %s18066_s11  ;;  %10078 = vrot.lane.b32.xlu1 %v10077_v4, %s18024_s25 }
 0x40f   : > { %v3839_v32 = vsel %vm1923_vm8, %v9656_v6, %v9681_v55  ;;  %v14054_v6 = vld [vmem:[#allocation2 + $0x138] sm:$0xff] }
 0x410   : > { %v9809_v20 = vpop.permute.xlu1 %9808  ;;  %v13961_v63 = vpop.permute.xlu0 %9763 }
 0x411   : > { %v9811_v25 = vunpack.i.h.bf16 %v9809_v20  ;;  %v9810_v42 = vunpack.i.l.bf16 %v9809_v20 }
 0x412   : > { %10063 = vrot.lane.b32.xlu0 %v10067_v26, %s18024_s25  ;;  %10088 = vrot.lane.b32.xlu1 %v10077_v4, %s18476_s18 }
 0x413   : > { %v4031_v2 = vsel %vm4028_vm14, %v3998_v36, %v9810_v42  ;;  %v4032_v28 = vsel %vm4028_vm14, %v3999_v27, %v9811_v25 }
 0x414   : > { %v9814_v21 = vpop.permute.xlu1 %9813  ;;  %v13974_v37 = vpop.permute.xlu0 %9778 }
 0x415   : > { %v9816_v10 = vunpack.i.h.bf16 %v9814_v21  ;;  %v9815_v43 = vunpack.i.l.bf16 %v9814_v21  ;;  %v9781_v27 = vunpack.i.h.bf16 %v13974_v37 }
 0x416   : > { %10073 = vrot.lane.b32.xlu0 %v10067_v26, %s18476_s18  ;;  %10103 = vrot.lane.b32.xlu1 %v13976_v14, %s18475_s24  ;;  %v4063_v26 = vpack.c.bf16 %v4032_v28, %v4031_v2  ;;  %v9780_v2 = vunpack.i.l.bf16 %v13974_v37  ;;  %v2724_v37 = vld [vmem:[#allocation2 + $0x150] sm:$0xff] }
 0x417   : > { %v4064_v16 = vpack.c.bf16 %v9816_v10, %v9815_v43 }
 0x418   : > { %v13989_v24 = vpop.permute.xlu1 %9823  ;;  %v9784_v23 = vpop.permute.xlu0 %9783 }
 0x419   : > { %v9786_v47 = vunpack.i.h.bf16 %v9784_v23  ;;  %v9785_v18 = vunpack.i.l.bf16 %v9784_v23  ;;  %8746 = vmatprep.mubr.msk.bf16.mxu1 %vm1923_vm8, %v4064_v16  ;;  %v2725_v23 = vld [vmem:[#allocation2 + $0x158] sm:$0xff] }
 0x41a   : > { %10083 = vrot.lane.b32.xlu0 %v10077_v4, %s18474_s23  ;;  %10108 = vrot.lane.b32.xlu1 %v13774_v9, %s18066_s11  ;;  %v9655_v4 = vunpack.i.l.bf16 %v13824_v29  ;;  %v3871_v29 = vsel %vm1988_vm9, %v3839_v32, %v9686_v48  ;;  %v10147_v55 = vpack.i.bf16 %v2725_v23, %v2724_v37  ;;  %v9790_v48 = vunpack.i.l.bf16 %v13931_v61 }
 0x41b   : > { %v4066_v46 = vpack.c.bf16 %v9786_v47, %v9785_v18  ;;  %4261 = vmatmul.mubr.bf16.gmra.mxu1 %v4063_v26  ;;  %v3903_v42 = vsel %vm2054_vm11, %v3871_v29, %v9751_v0  ;;  %v9745_v0 = vunpack.i.l.bf16 %v13883_v11  ;;  %v9736_v29 = vunpack.i.h.bf16 %v13872_v49 }
 0x41c   : > { %v14001_v30 = vpop.permute.xlu1 %9833  ;;  %v9799_v20 = vpop.permute.xlu0 %9798  ;;  %v3838_v33 = vsel %vm1923_vm8, %v9655_v4, %v9680_v13  ;;  %v14046_v13 = vld [vmem:[#allocation2 + $0x140] sm:$0xff]  ;;  %v9746_v4 = vunpack.i.h.bf16 %v13883_v11 }
 0x41d   : > { %8747 = vmatprep.mubr.msk.bf16.mxu1 %vm1923_vm8, %v4066_v46  ;;  %v9801_v22 = vunpack.i.h.bf16 %v9799_v20  ;;  %v9800_v8 = vunpack.i.l.bf16 %v9799_v20  ;;  %v3870_v45 = vsel %vm1988_vm9, %v3838_v33, %v9685_v34  ;;  %v9791_v46 = vunpack.i.h.bf16 %v13931_v61 }
 0x41e   : > { %10118 = vrot.lane.b32.xlu1 %v10117_v62, %s18023_s26  ;;  %10093 = vrot.lane.b32.xlu0 %v13976_v14, %s18023_s26  ;;  %v3902_v25 = vsel %vm2054_vm11, %v3870_v45, %v9750_v31  ;;  %v9796_v34 = vunpack.i.h.bf16 %v13947_v7  ;;  %v9795_v20 = vunpack.i.l.bf16 %v13947_v7  ;;  %v10157_v61 = vpack.i.bf16 %v14046_v13, %v14054_v6 }
 0x41f   : > { %v3934_v50 = vsel %vm545_vm6, %v3902_v25, %v9800_v8  ;;  %v3935_v10 = vsel %vm545_vm6, %v3903_v42, %v9801_v22  ;;  %v2951_v8 = vrot.slane %v2725_v23, 1  ;;  %v3841_v33 = vsel %vm1923_vm8, %v9746_v4, %v9791_v46 }
 0x420   : > { %v14015_v51 = vpop.permute.xlu1 %9843  ;;  %v9804_v54 = vpop.permute.xlu0 %9803  ;;  %v3840_v32 = vsel %vm1923_vm8, %v9745_v0, %v9790_v48  ;;  %v2950_v7 = vrot.slane %v2724_v37, 1  ;;  %v3873_v45 = vsel %vm1988_vm9, %v3841_v33, %v9796_v34  ;;  %v2945_v46 = vrot.slane %v14054_v6, 1 }
 0x421   : > { %v9806_v57 = vunpack.i.h.bf16 %v9804_v54  ;;  %v9805_v21 = vunpack.i.l.bf16 %v9804_v54  ;;  %v3872_v11 = vsel %vm1988_vm9, %v3840_v32, %v9795_v20  ;;  %v9735_v54 = vunpack.i.l.bf16 %v13872_v49 }
 0x422   : > { %10123 = vrot.lane.b32.xlu1 %v13769_v35, %s18026_s27  ;;  %10098 = vrot.lane.b32.xlu0 %v13774_v9, %s18026_s27  ;;  %v3126_v49 = vrot.slane %v2724_v37, 2  ;;  %v9846_v48 = vunpack.i.h.bf16 %v14015_v51  ;;  %v9845_v37 = vunpack.i.l.bf16 %v14015_v51  ;;  %v9776_v34 = vunpack.i.h.bf16 %v13919_v59 }
 0x423   : > { %v3967_v43 = vsel %vm3962_vm3, %v3934_v50, %v9805_v21  ;;  %v3968_v36 = vsel %vm3962_vm3, %v3935_v10, %v9806_v57  ;;  %v3127_v57 = vrot.slane %v2725_v23, 2  ;;  %v3904_v10 = vsel %vm2054_vm11, %v3872_v11, %v9735_v54 }
 0x424   : > { %v14031_v28 = vpop.permute.xlu1 %9858  ;;  %v14033_v56 = vpop.permute.xlu0 %9818  ;;  %v4000_v40 = vsel %vm3995_vm12, %v3967_v43, %v9740_v38  ;;  %v4001_v16 = vsel %vm3995_vm12, %v3968_v36, %v9741_v39  ;;  %v2723_v39 = vld [vmem:[#allocation2 + $0x148] sm:$0x3]  ;;  %v2952_v38 = vsel %vm998_vm2, %v2950_v7, %v2951_v8  ;;  %v3905_v43 = vsel %vm2054_vm11, %v3873_v45, %v9736_v29 }
 0x425   : > { %v4033_v5 = vsel %vm4028_vm14, %v4000_v40, %v9780_v2  ;;  %v4034_v47 = vsel %vm4028_vm14, %v4001_v16, %v9781_v27  ;;  %v9771_v36 = vunpack.i.h.bf16 %v13907_v1  ;;  %v9770_v27 = vunpack.i.l.bf16 %v13907_v1 }
 0x426   : > { %10138 = vrot.lane.b32.xlu1 %v10117_v62, %s18477_s22  ;;  %10113 = vrot.lane.b32.xlu0 %v13976_v14, %s18477_s22  ;;  %v4065_v18 = vpack.c.bf16 %v4034_v47, %v4033_v5  ;;  %v2726_v14 = vld [vmem:[#allocation2 + $0x160] sm:$0x3]  ;;  %v2946_v2 = vrot.slane %v14046_v13, 1  ;;  %v2948_v40 = vrot.slane %v2723_v39, 1  ;;  %v3128_v47 = vsel %vm1175_vm4, %v3126_v49, %v3127_v57 }
 0x427   : > { %v3129_v21 = vrot.slane %v2726_v14, 2  ;;  %v3937_v1 = vsel %vm545_vm6, %v3905_v43, %v9771_v36  ;;  %v9775_v20 = vunpack.i.l.bf16 %v13919_v59  ;;  %v3122_v59 = vrot.slane %v14046_v13, 2  ;;  %v11018_v43 = vld [vmem:[#allocation2 + $0x198] sm:$0xff] }
 0x428   : > { %v14042_v26 = vpop.permute.xlu1 %9863  ;;  %v14044_v19 = vpop.permute.xlu0 %9828  ;;  %4269 = vmatmul.mubr.bf16.gmra.mxu1 %v4065_v18  ;;  %v2949_v51 = vsel %vm998_vm2, %v2946_v2, %v2948_v40  ;;  %v3970_v11 = vsel %vm3962_vm3, %v3937_v1, %v9776_v34  ;;  %v3124_v45 = vrot.slane %v2723_v39, 2  ;;  %v3733_v13 = vrot.slane %v11018_v43, 2  ;;  %v4560_v1 = vld [vmem:[#allocation2 + $0x198] sm:$0xff] }
 0x429   : > { %v3130_v18 = vsel %vm1175_vm4, %v3127_v57, %v3129_v21  ;;  %v4003_v57 = vsel %vm3995_vm12, %v3970_v11, %v9846_v48  ;;  %v3121_v49 = vrot.slane %v14054_v6, 2  ;;  %v11019_v6 = vld [vmem:[#allocation2 + $0x1a8] sm:$0x3]  ;;  %v2732_v11 = vld [vmem:[#allocation2 + $0x190] sm:$0x3] }
 0x42a   : > { %10148 = vrot.lane.b32.xlu1 %v10147_v55, %s18474_s23  ;;  %10128 = vrot.lane.b32.xlu0 %v10117_v62, %s18475_s24  ;;  %v2953_v62 = vrot.slane %v2726_v14, 1  ;;  %v3936_v14 = vsel %vm545_vm6, %v3904_v10, %v9770_v27 }
 0x42b   : > { %v3969_v7 = vsel %vm3962_vm3, %v3936_v14, %v9775_v20 }
 0x42c   : > { %v14058_v31 = vpop.permute.xlu1 %9873  ;;  %v14060_v22 = vpop.permute.xlu0 %9838  ;;  %v2954_v50 = vsel %vm998_vm2, %v2951_v8, %v2953_v62  ;;  %v14099_v8 = vpack.i.bf16 %v3130_v18, %v3128_v47  ;;  %v2947_v62 = vsel %vm998_vm2, %v2945_v46, %v2946_v2  ;;  %v3736_v18 = vrot.slane %v11019_v6, 2 }
 0x42d   : > { %v10182_v5 = vpack.i.bf16 %v2954_v50, %v2952_v38  ;;  %v11017_v50 = vld [vmem:[#allocation2 + $0x1a0] sm:$0xff]  ;;  %v10197_v2 = vpack.i.bf16 %v2949_v51, %v2947_v62 }
 0x42e   : > { %10158 = vrot.lane.b32.xlu1 %v10157_v61, %s18024_s25  ;;  %10133 = vrot.lane.b32.xlu0 %v13769_v35, %s18066_s11  ;;  %v3734_v10 = vrot.slane %v11017_v50, 2 }
 0x430   : > { %v14073_v25 = vpop.permute.xlu1 %9878  ;;  %v14075_v42 = vpop.permute.xlu0 %9848  ;;  %v14126_v47 = vsel %vm1175_vm4, %v3733_v13, %v3734_v10  ;;  %v14139_v14 = vsel %vm1175_vm4, %v3734_v10, %v3736_v18  ;;  %v3435_v13 = vrot.slane %v2732_v11, 2 }
 0x432   : > { %10168 = vrot.lane.b32.xlu1 %v10157_v61, %s18476_s18  ;;  %10143 = vrot.lane.b32.xlu0 %v10147_v55, %s18024_s25 }
 0x434   : > { %v9894_v16 = vpop.permute.xlu1 %9893  ;;  %v14086_v23 = vpop.permute.xlu0 %9853 }
 0x435   : > { %v9896_v4 = vunpack.i.h.bf16 %v9894_v16  ;;  %v9895_v0 = vunpack.i.l.bf16 %v9894_v16  ;;  %v3125_v16 = vsel %vm1175_vm4, %v3122_v59, %v3124_v45 }
 0x436   : > { %10183 = vrot.lane.b32.xlu1 %v10182_v5, %s18475_s24  ;;  %10153 = vrot.lane.b32.xlu0 %v10147_v55, %s18476_s18  ;;  %v4002_v55 = vsel %vm3995_vm12, %v3969_v7, %v9845_v37  ;;  %v14153_v7 = vld [vmem:[#allocation2 + $0x170] sm:$0xff] }
 0x437   : > { %v4035_v21 = vsel %vm4028_vm14, %v4002_v55, %v9895_v0  ;;  %v4036_v38 = vsel %vm4028_vm14, %v4003_v57, %v9896_v4  ;;  %v2731_v4 = vld [vmem:[#allocation2 + $0x188] sm:$0xff]  ;;  %v2730_v0 = vld [vmem:[#allocation2 + $0x180] sm:$0xff]  ;;  %v3334_v55 = vrot.slane %v2732_v11, 1 }
 0x438   : > { %v9899_v33 = vpop.permute.xlu1 %9898  ;;  %v14103_v32 = vpop.permute.xlu0 %9868  ;;  %v4067_v40 = vpack.c.bf16 %v4036_v38, %v4035_v21  ;;  %v3331_v57 = vrot.slane %v2730_v0, 1  ;;  %v3433_v43 = vrot.slane %v2731_v4, 2 }
 0x439   : > { %v9901_v29 = vunpack.i.h.bf16 %v9899_v33  ;;  %v9900_v54 = vunpack.i.l.bf16 %v9899_v33  ;;  %v10222_v33 = vpack.i.bf16 %v2731_v4, %v2730_v0 }
 0x43a   : > { %10188 = vrot.lane.b32.xlu1 %v14099_v8, %s18066_s11  ;;  %10163 = vrot.lane.b32.xlu0 %v10157_v61, %s18474_s23  ;;  %v3123_v61 = vsel %vm1175_vm4, %v3121_v49, %v3122_v59  ;;  %v14157_v59 = vld [vmem:[#allocation2 + $0x168] sm:$0xff]  ;;  %v2729_v49 = vld [vmem:[#allocation2 + $0x178] sm:$0x3]  ;;  %v3436_v18 = vsel %vm1175_vm4, %v3433_v43, %v3435_v13 }
 0x43b   : > { %v4068_v39 = vpack.c.bf16 %v9901_v29, %v9900_v54  ;;  %v14132_v37 = vpack.i.bf16 %v3125_v16, %v3123_v61  ;;  %v3332_v54 = vrot.slane %v2731_v4, 1  ;;  %v2956_v4 = vrot.slane %v14153_v7, 1 }
 0x43c   : > { %v14116_v36 = vpop.permute.xlu1 %9908  ;;  %v14118_v27 = vpop.permute.xlu0 %9883  ;;  %v2958_v11 = vrot.slane %v2729_v49, 1 }
 0x43d   : > { %8748 = vmatprep.mubr.msk.bf16.mxu1 %vm1923_vm8, %v4068_v39  ;;  %v3333_v50 = vsel %vm998_vm2, %v3331_v57, %v3332_v54  ;;  %v3335_v10 = vsel %vm998_vm2, %v3332_v54, %v3334_v55  ;;  %v18478_v39 = vmov 0.0  }
 0x43e   : > { %10198 = vrot.lane.b32.xlu1 %v10197_v2, %s18023_s26  ;;  %10173 = vrot.lane.b32.xlu0 %v10182_v5, %s18023_s26  ;;  %549 = vst.msk [vmem:[#allocation3 + $0x10] sm:$0x3] %vm548_vm15, %v18478_v39  ;;  %552 = vst.msk [vmem:[#allocation3 + $0x28] sm:$0x3] %vm548_vm15, %v18478_v39  ;;  %v10247_v16 = vpack.i.bf16 %v3335_v10, %v3333_v50  ;;  %v2959_v50 = vsel %vm998_vm2, %v2956_v4, %v2958_v11  ;;  %v3132_v10 = vrot.slane %v14153_v7, 2 }
 0x43f   : > { %4277 = vmatmul.mubr.bf16.gmra.mxu1 %v4067_v40  ;;  %555 = vst.msk [vmem:[#allocation3 + $0x40] sm:$0x3] %vm548_vm15, %v18478_v39  ;;  %558 = vst.msk [vmem:[#allocation3 + $0x58] sm:$0x3] %vm548_vm15, %v18478_v39 }
 0x440   : > { %v14128_v46 = vpop.permute.xlu1 %9918  ;;  %v14130_v48 = vpop.permute.xlu0 %9888  ;;  %561 = vst.msk [vmem:[#allocation3 + $0x70] sm:$0x3] %vm548_vm15, %v18478_v39  ;;  %564 = vst.msk [vmem:[#allocation3 + $0x88] sm:$0x3] %vm548_vm15, %v18478_v39 }
 0x441   : > { %567 = vst.msk [vmem:[#allocation3 + $0xa0] sm:$0x3] %vm548_vm15, %v18478_v39  ;;  %570 = vst.msk [vmem:[#allocation3 + $0xb8] sm:$0x3] %vm548_vm15, %v18478_v39 }
 0x442   : > { %10203 = vrot.lane.b32.xlu1 %v14132_v37, %s18026_s27  ;;  %10178 = vrot.lane.b32.xlu0 %v14099_v8, %s18026_s27  ;;  %573 = vst.msk [vmem:[#allocation3 + $0xd0] sm:$0x3] %vm548_vm15, %v18478_v39  ;;  %576 = vst.msk [vmem:[#allocation3 + $0xe8] sm:$0x3] %vm548_vm15, %v18478_v39 }
 0x443   : > { %579 = vst.msk [vmem:[#allocation3 + $0x100] sm:$0x3] %vm548_vm15, %v18478_v39  ;;  %582 = vst.msk [vmem:[#allocation3 + $0x118] sm:$0x3] %vm548_vm15, %v18478_v39 }
 0x444   : > { %v14143_v34 = vpop.permute.xlu1 %9928  ;;  %v14145_v20 = vpop.permute.xlu0 %9903  ;;  %585 = vst.msk [vmem:[#allocation3 + $0x130] sm:$0x3] %vm548_vm15, %v18478_v39  ;;  %588 = vst.msk [vmem:[#allocation3 + $0x148] sm:$0x3] %vm548_vm15, %v18478_v39 }
 0x445   : > { %591 = vst.msk [vmem:[#allocation3 + $0x160] sm:$0x3] %vm548_vm15, %v18478_v39  ;;  %594 = vst.msk [vmem:[#allocation3 + $0x178] sm:$0x3] %vm548_vm15, %v18478_v39 }
 0x446   : > { %10218 = vrot.lane.b32.xlu1 %v10197_v2, %s18477_s22  ;;  %10193 = vrot.lane.b32.xlu0 %v10182_v5, %s18477_s22  ;;  %v10232_v5 = vpack.i.bf16 %v14153_v7, %v14157_v59  ;;  %597 = vst.msk [vmem:[#allocation3 + $0x190] sm:$0x3] %vm548_vm15, %v18478_v39  ;;  %600 = vst.msk [vmem:[#allocation3 + $0x1a8] sm:$0x3] %vm548_vm15, %v18478_v39  ;;  %v4561_v39 = vld [vmem:[#allocation2 + $0x1a0] sm:$0xff] }
 0x448   : > { %v14149_v62 = vpop.permute.xlu1 %9943  ;;  %v14151_v51 = vpop.permute.xlu0 %9913 }
 0x44a   : > { %10223 = vrot.lane.b32.xlu1 %v10222_v33, %s18474_s23  ;;  %10208 = vrot.lane.b32.xlu0 %v10197_v2, %s18475_s24  ;;  %v3432_v2 = vrot.slane %v2730_v0, 2 }
 0x44c   : > { %v14159_v45 = vpop.permute.xlu1 %9948  ;;  %v14161_v29 = vpop.permute.xlu0 %9923  ;;  %v3434_v6 = vsel %vm1175_vm4, %v3432_v2, %v3433_v43  ;;  %v3134_v43 = vrot.slane %v2729_v49, 2 }
 0x44d   : > { %v10252_v55 = vpack.i.bf16 %v3436_v18, %v3434_v6 }
 0x44e   : > { %10233 = vrot.lane.b32.xlu1 %v10232_v5, %s18024_s25  ;;  %10213 = vrot.lane.b32.xlu0 %v14132_v37, %s18066_s11  ;;  %v3135_v18 = vsel %vm1175_vm4, %v3132_v10, %v3134_v43 }
 0x450   : > { %v14168_v21 = vpop.permute.xlu1 %9958  ;;  %v14170_v38 = vpop.permute.xlu0 %9933 }
 0x452   : > { %10243 = vrot.lane.b32.xlu1 %v10232_v5, %s18476_s18  ;;  %10228 = vrot.lane.b32.xlu0 %v10222_v33, %s18476_s18  ;;  %v2955_v33 = vrot.slane %v14157_v59, 1  ;;  %s8822_s18 = sshll.u32 %s11437_s28, 4 }
 0x454   : > { %v14212_v40 = vpop.permute.xlu1 %9963  ;;  %v14214_v61 = vpop.permute.xlu0 %9938  ;;  %v2957_v57 = vsel %vm998_vm2, %v2955_v33, %v2956_v4 }
 0x455   : > { %v10262_v60 = vpack.i.bf16 %v2959_v50, %v2957_v57 }
 0x456   : > { %10248 = vrot.lane.b32.xlu1 %v10247_v16, %s18475_s24  ;;  %10238 = vrot.lane.b32.xlu0 %v10232_v5, %s18474_s23  ;;  %v3131_v5 = vrot.slane %v14157_v59, 2 }
 0x458   : > { %v14222_v54 = vpop.permute.xlu1 %9978  ;;  %v14224_v0 = vpop.permute.xlu0 %9953  ;;  %v3133_v6 = vsel %vm1175_vm4, %v3131_v5, %v3132_v10  ;;  %v4511_v10 = vld [vmem:[#allocation2 + $0x10] sm:$0x3] }
 0x459   : > { %v4790_v17 = vrot.slane %v4511_v10, 2 }
 0x45a   : > { %10253 = vrot.lane.b32.xlu1 %v10252_v55, %s18066_s11  ;;  %10258 = vrot.lane.b32.xlu0 %v10247_v16, %s18477_s22  ;;  %v10267_v16 = vpack.i.bf16 %v3135_v18, %v3133_v6  ;;  %v4614_v6 = vrot.slane %v4511_v10, 1 }
 0x45c   : > { %v14232_v13 = vpop.permute.xlu1 %9988  ;;  %v14234_v2 = vpop.permute.xlu0 %9968 }
 0x45e   : > { %10263 = vrot.lane.b32.xlu1 %v10262_v60, %s18023_s26  ;;  %10273 = vrot.lane.b32.xlu0 %v10262_v60, %s18475_s24  ;;  %s18489_s24 = smov 48   ;;  %s18064_s26 = smov 96  }
 0x460   : > { %v14240_v7 = vpop.permute.xlu1 %9998  ;;  %v14242_v49 = vpop.permute.xlu0 %9973 }
 0x462   : > { %10268 = vrot.lane.b32.xlu1 %v10267_v16, %s18026_s27  ;;  %10278 = vrot.lane.b32.xlu0 %v10267_v16, %s18066_s11 }
 0x464   : > { %v14246_v59 = vpop.permute.xlu1 %10008  ;;  %v14248_v4 = vpop.permute.xlu0 %9983 }
 0x466   : > { %10288 = vrot.lane.b32.xlu1 %v10262_v60, %s18477_s22  ;;  %10283 = vrot.lane.b32.xlu0 %v13759_v58, %s18024_s25  ;;  %v4509_v60 = vld [vmem:[#allocation2] sm:$0xff]  ;;  %v4510_v58 = vld [vmem:[#allocation2 + $0x8] sm:$0xff]  ;;  %s18062_s22 = smov 64  }
 0x467   : > { %v4788_v3 = vrot.slane %v4510_v58, 2 }
 0x468   : > { %v14253_v11 = vpop.permute.xlu1 %10023  ;;  %v14255_v33 = vpop.permute.xlu0 %9993 }
 0x469   : > { %18479 = vst [vmem:[#allocation47_spill] sm:$0xff] %v14253_v11  ;;  %18480 = vst [vmem:[#allocation31_spill] sm:$0xff] %v14255_v33  ;;  %v4562_v11 = vld [vmem:[#allocation2 + $0x1a8] sm:$0x3] }
 0x46a   : > { %10293 = vrot.lane.b32.xlu1 %v13761_v44, %s18024_s25  ;;  %10298 = vrot.lane.b32.xlu0 %v13763_v12, %s18024_s25  ;;  %v4611_v44 = vrot.slane %v4509_v60, 1  ;;  %v4612_v12 = vrot.slane %v4510_v58, 1  ;;  %v5467_v58 = vrot.slane %v4562_v11, 2  ;;  %v5366_v10 = vrot.slane %v4562_v11, 1 }
 0x46c   : > { %v14261_v57 = vpop.permute.xlu1 %10028  ;;  %v14263_v50 = vpop.permute.xlu0 %10003 }
 0x46d   : > { %18481 = vst [vmem:[#allocation32_spill] sm:$0xff] %v14261_v57  ;;  %18482 = vst [vmem:[#allocation24_spill] sm:$0xff] %v14263_v50  ;;  %v5464_v50 = vrot.slane %v4560_v1, 2 }
 0x46e   : > { %10303 = vrot.lane.b32.xlu1 %v13765_v41, %s18024_s25  ;;  %10308 = vrot.lane.b32.xlu0 %v13767_v15, %s18024_s25  ;;  %v4613_v15 = vsel %vm998_vm2, %v4611_v44, %v4612_v12  ;;  %v5363_v44 = vrot.slane %v4560_v1, 1 }
 0x470   : > { %v14269_v43 = vpop.permute.xlu1 %10038  ;;  %v14271_v5 = vpop.permute.xlu0 %10013 }
 0x472   : > { %10313 = vrot.lane.b32.xlu1 %v13769_v35, %s18024_s25  ;;  %10318 = vrot.lane.b32.xlu0 %v13774_v9, %s18024_s25  ;;  %v4615_v35 = vsel %vm998_vm2, %v4612_v12, %v4614_v6  ;;  %v4787_v9 = vrot.slane %v4509_v60, 2  ;;  %v4791_v60 = vsel %vm1175_vm4, %v4788_v3, %v4790_v17 }
 0x474   : > { %v14277_v41 = vpop.permute.xlu1 %10043  ;;  %v14279_v18 = vpop.permute.xlu0 %10018  ;;  %v4789_v12 = vsel %vm1175_vm4, %v4787_v9, %v4788_v3 }
 0x475   : > { %18483 = vst [vmem:[#allocation29_spill] sm:$0xff] %v14279_v18  ;;  %v10347_v18 = vpack.i.bf16 %v4615_v35, %v4613_v15  ;;  %v10352_v15 = vpack.i.bf16 %v4791_v60, %v4789_v12  ;;  %v6363_v12 = vld [vmem:[#allocation3 + $0x1a0] sm:$0xff] }
 0x476   : > { %10323 = vrot.lane.b32.xlu1 %v14132_v37, %s18024_s25  ;;  %10328 = vrot.lane.b32.xlu0 %v14099_v8, %s18024_s25  ;;  %v5364_v8 = vrot.slane %v4561_v39, 1  ;;  %v5465_v37 = vrot.slane %v4561_v39, 2 }
 0x478   : > { %v14287_v57 = vpop.permute.xlu1 %10058  ;;  %v14289_v33 = vpop.permute.xlu0 %10033  ;;  %v5466_v35 = vsel %vm1175_vm4, %v5464_v50, %v5465_v37  ;;  %v5468_v9 = vsel %vm1175_vm4, %v5465_v37, %v5467_v58  ;;  %v5365_v17 = vsel %vm998_vm2, %v5363_v44, %v5364_v8  ;;  %v5367_v3 = vsel %vm998_vm2, %v5364_v8, %v5366_v10  ;;  %v6364_v58 = vld [vmem:[#allocation3 + $0x1a8] sm:$0x3]  ;;  %v6362_v10 = vld [vmem:[#allocation3 + $0x198] sm:$0xff] }
 0x479   : > { %18484 = vst [vmem:[#allocation15_spill] sm:$0xff] %v14287_v57  ;;  %18485 = vst [vmem:[#allocation36_spill] sm:$0xff] %v14289_v33  ;;  %v6312_v33 = vld [vmem:[#allocation3 + $0x8] sm:$0xff]  ;;  %v18028_v50 = vlaneseq }
 0x47a   : > { %10333 = vrot.lane.b32.xlu1 %v10267_v16, %s18024_s25  ;;  %10338 = vrot.lane.b32.xlu0 %v10252_v55, %s18024_s25  ;;  %v18487_v16 = vpack.i.bf16 %v14139_v14, %v14126_v47  ;;  %v10357_v55 = vpack.i.bf16 %v4561_v39, %v4560_v1  ;;  %v6313_v47 = vld [vmem:[#allocation3 + $0x10] sm:$0x3]  ;;  %v6311_v14 = vld [vmem:[#allocation3] sm:$0xff]  ;;  %v10367_v1 = vpack.i.bf16 %v5468_v9, %v5466_v35  ;;  %v6944_v35 = vrot.slane %v6364_v58, 1 }
 0x47b   : > { %v10362_v39 = vpack.i.bf16 %v5367_v3, %v5365_v17  ;;  %v6416_v37 = vrot.slane %v6313_v47, 1  ;;  %v6413_v44 = vrot.slane %v6311_v14, 1  ;;  %v6941_v9 = vrot.slane %v6362_v10, 1 }
 0x47c   : > { %v14295_v6 = vpop.permute.xlu1 %10068  ;;  %v14297_v57 = vpop.permute.xlu0 %10048 }
 0x47d   : > { %18486 = vst [vmem:[#allocation18_spill] sm:$0xff] %v14295_v6 }
 0x47e   : > { %10343 = vrot.lane.b32.xlu1 %v18487_v16, %s18024_s25  ;;  %10348 = vrot.lane.b32.xlu0 %v10347_v18, %s18026_s27  ;;  %v6414_v18 = vrot.slane %v6312_v33, 1  ;;  %v6942_v16 = vrot.slane %v6363_v12, 1  ;;  %s14333_s27 = scalar_lea.vmem %s18491_s1, %s8822_s18  ;;  %s18534_s25 = smov 24  }
 0x47f   : > { %s18558_s18 = smov 72  }
 0x480   : > { %v14308_v11 = vpop.permute.xlu1 %10078  ;;  %v14310_v6 = vpop.permute.xlu0 %10053  ;;  %v6417_v33 = vsel %vm998_vm2, %v6414_v18, %v6416_v37  ;;  %v6945_v14 = vsel %vm998_vm2, %v6942_v16, %v6944_v35 }
 0x482   : > { %10358 = vrot.lane.b32.xlu1 %v10357_v55, %s18488_s17  ;;  %10353 = vrot.lane.b32.xlu0 %v10352_v15, %s18489_s24  ;;  %v14322_v55 = vshrl.u32 %v18028_v50, 7  ;;  %v6415_v15 = vsel %vm998_vm2, %v6413_v44, %v6414_v18 }
 0x484   : > { %v14314_v8 = vpop.permute.xlu1 %10088  ;;  %v14316_v60 = vpop.permute.xlu0 %10063  ;;  %18490 = vst [vmem:[#allocation51_spill] sm:$0xff] %v14322_v55  ;;  %v14338_v47 = vsub.s32 0, %v14322_v55 }
 0x486   : > { %10368 = vrot.lane.b32.xlu1 %v10367_v1, %s18062_s22  ;;  %10363 = vrot.lane.b32.xlu0 %v10362_v39, %s18474_s23  ;;  %18492 = vst [vmem:[#allocation46_spill] sm:$0xff] %v14338_v47  ;;  %v6943_v1 = vsel %vm998_vm2, %v6941_v9, %v6942_v16  ;;  %v7512_v39 = vld [vmem:[%s14333_s27] sm:$0xff] }
 0x487   : > { %v14350_v44 = vrot.slane %v7512_v39, %v14338_v47 }
 0x488   : > { %v14326_v17 = vpop.permute.xlu1 %10103  ;;  %v14328_v3 = vpop.permute.xlu0 %10073 }
 0x489   : > { %18494 = vst [vmem:[#allocation53_spill] sm:$0xff] %v14350_v44 }
 0x48a   : > { %6495 = vrot.lane.b32.xlu1 %v6417_v33, %s18062_s22  ;;  %6493 = vrot.lane.b32.xlu0 %v6415_v15, %s18062_s22 }
 0x48c   : > { %v14343_v18 = vpop.permute.xlu1 %10108  ;;  %v14345_v37 = vpop.permute.xlu0 %10083 }
 0x48d   : > { %18493 = vst [vmem:[#allocation54_spill] sm:$0xff] %v14343_v18  ;;  %v9730_v18 = vunpack.i.l.bf16 %v13909_v53 }
 0x48e   : > { %6952 = vrot.lane.b32.xlu1 %v6945_v14, %s18062_s22  ;;  %6950 = vrot.lane.b32.xlu0 %v6943_v1, %s18062_s22  ;;  %s18542_s22 = smov 120  }
 0x490   : > { %v14352_v12 = vpop.permute.xlu1 %10118  ;;  %v14354_v58 = vpop.permute.xlu0 %10093 }
 0x491   : > { %18495 = vst [vmem:[#allocation38_spill] sm:$0xff] %v14354_v58  ;;  %v9841_v58 = vunpack.i.h.bf16 %v14060_v22 }
 0x492   : > { %7521 = vbcast.lane.b32.xlu1 %v14350_v44, 256  ;;  %v9760_v44 = vunpack.i.l.bf16 %v13949_v52 }
 0x494   : > { %v14357_v10 = vpop.permute.xlu1 %10123  ;;  %v14359_v16 = vpop.permute.xlu0 %10098 }
 0x495   : > { %18496 = vst [vmem:[#allocation52_spill] sm:$0xff] %v14359_v16 }
 0x498   : > { %v14361_v33 = vpop.permute.xlu1 %10138  ;;  %v14363_v15 = vpop.permute.xlu0 %10113 }
 0x499   : > { %18497 = vst [vmem:[#allocation45_spill] sm:$0xff] %v14361_v33  ;;  %18498 = vst [vmem:[#allocation57_spill] sm:$0xff] %v14363_v15  ;;  %v9761_v15 = vunpack.i.h.bf16 %v13949_v52  ;;  %v9880_v52 = vunpack.i.l.bf16 %v14073_v25 }
 0x49c   : > { %v14365_v35 = vpop.permute.xlu1 %10148  ;;  %v14367_v9 = vpop.permute.xlu0 %10128 }
 0x49d   : > { %18499 = vst [vmem:[#allocation58_spill] sm:$0xff] %v14365_v35  ;;  %18500 = vst [vmem:[#allocation59_spill] sm:$0xff] %v14367_v9  ;;  %v9765_v35 = vunpack.i.l.bf16 %v13961_v63 }
 0x4a0   : > { %v14369_v14 = vpop.permute.xlu1 %10158  ;;  %v14371_v1 = vpop.permute.xlu0 %10133 }
 0x4a1   : > { %18501 = vst [vmem:[#allocation61_spill] sm:$0xff] %v14369_v14  ;;  %18502 = vst [vmem:[#allocation21_spill] sm:$0xff] %v14371_v1  ;;  %v9766_v14 = vunpack.i.h.bf16 %v13961_v63  ;;  %v9835_v63 = vunpack.i.l.bf16 %v14001_v30 }
 0x4a4   : > { %v14373_v39 = vpop.permute.xlu1 %10168  ;;  %v14375_v50 = vpop.permute.xlu0 %10143 }
 0x4a5   : > { %18503 = vst [vmem:[#allocation22_spill] sm:$0xff] %v14373_v39  ;;  %18504 = vst [vmem:[#allocation62_spill] sm:$0xff] %v14375_v50  ;;  %v9731_v50 = vunpack.i.h.bf16 %v13909_v53  ;;  %v9876_v39 = vunpack.i.h.bf16 %v14058_v31  ;;  %v9836_v53 = vunpack.i.h.bf16 %v14001_v30 }
 0x4a7   : > { %v3843_v33 = vsel %vm1923_vm8, %v9731_v50, %v9761_v15  ;;  %v9826_v50 = vunpack.i.h.bf16 %v13989_v24  ;;  %v9886_v15 = vunpack.i.h.bf16 %v14118_v27 }
 0x4a8   : > { %v14377_v47 = vpop.permute.xlu1 %10183  ;;  %v14379_v55 = vpop.permute.xlu0 %10153 }
 0x4a9   : > { %18505 = vst [vmem:[#allocation63_spill] sm:$0xff] %v14377_v47  ;;  %18506 = vst [vmem:[#allocation64_spill] sm:$0xff] %v14379_v55  ;;  %v9875_v47 = vunpack.i.l.bf16 %v14058_v31  ;;  %v3842_v55 = vsel %vm1923_vm8, %v9730_v18, %v9760_v44  ;;  %v9840_v18 = vunpack.i.l.bf16 %v14060_v22  ;;  %v9890_v22 = vunpack.i.l.bf16 %v14130_v48 }
 0x4aa   : > { %v3874_v16 = vsel %vm1988_vm9, %v3842_v55, %v9765_v35  ;;  %v9891_v35 = vunpack.i.h.bf16 %v14130_v48 }
 0x4ab   : > { %v3844_v55 = vsel %vm1923_vm8, %v9835_v63, %v9875_v47  ;;  %v3906_v63 = vsel %vm2054_vm11, %v3874_v16, %v9840_v18  ;;  %v9820_v16 = vunpack.i.l.bf16 %v14033_v56  ;;  %v11003_v18 = vld [vmem:[%s17854_s6 + $0x38] sm:$0xff]  }
 0x4ac   : > { %v14386_v9 = vpop.permute.xlu1 %10188  ;;  %v14388_v1 = vpop.permute.xlu0 %10163  ;;  %v3876_v30 = vsel %vm1988_vm9, %v3844_v55, %v9880_v52  ;;  %v9850_v52 = vunpack.i.l.bf16 %v14075_v42  ;;  %6022 = vmatpush1.bf16.msra.mxu0 %v11003_v18  ;;  %8902 = vmatpush1.bf16.msra.mxu1 %v11003_v18  ;;  %v11005_v18 = vld [vmem:[%s17854_s6 + $0x28] sm:$0xff]  }
 0x4ad   : > { %18507 = vst [vmem:[#allocation65_spill] sm:$0xff] %v14386_v9  ;;  %18508 = vst [vmem:[#allocation66_spill] sm:$0xff] %v14388_v1  ;;  %v9881_v9 = vunpack.i.h.bf16 %v14073_v25  ;;  %v3875_v1 = vsel %vm1988_vm9, %v3843_v33, %v9766_v14  ;;  %v9885_v25 = vunpack.i.l.bf16 %v14118_v27  ;;  %v3845_v33 = vsel %vm1923_vm8, %v9836_v53, %v9876_v39 }
 0x4ae   : > { %v9825_v14 = vunpack.i.l.bf16 %v13989_v24  ;;  %v3907_v27 = vsel %vm2054_vm11, %v3875_v1, %v9841_v58  ;;  %v9851_v39 = vunpack.i.h.bf16 %v14075_v42  ;;  %v9821_v24 = vunpack.i.h.bf16 %v14033_v56 }
 0x4af   : > { %v3877_v47 = vsel %vm1988_vm9, %v3845_v33, %v9881_v9  ;;  %v3939_v9 = vsel %vm545_vm6, %v3907_v27, %v9886_v15  ;;  %v9831_v33 = vunpack.i.h.bf16 %v14044_v19  ;;  %v9855_v15 = vunpack.i.l.bf16 %v14086_v23 }
 0x4b0   : > { %v14403_v44 = vpop.permute.xlu1 %10198  ;;  %v14405_v31 = vpop.permute.xlu0 %10173  ;;  %v3908_v48 = vsel %vm2054_vm11, %v3876_v30, %v9825_v14  ;;  %v3909_v58 = vsel %vm2054_vm11, %v3877_v47, %v9826_v50  ;;  %v3972_v42 = vsel %vm3962_vm3, %v3939_v9, %v9891_v35  ;;  %v9830_v30 = vunpack.i.l.bf16 %v14044_v19  ;;  %v11004_v19 = vld [vmem:[%s17854_s6 + $0x30] sm:$0xff]  }
 0x4b1   : > { %18509 = vst [vmem:[#allocation43_spill] sm:$0xff] %v14403_v44  ;;  %18510 = vst [vmem:[#allocation67_spill] sm:$0xff] %v14405_v31  ;;  %v9861_v31 = vunpack.i.h.bf16 %v14031_v28  ;;  %v9860_v44 = vunpack.i.l.bf16 %v14031_v28  ;;  %v3938_v28 = vsel %vm545_vm6, %v3906_v63, %v9885_v25  ;;  %v9856_v25 = vunpack.i.h.bf16 %v14086_v23 }
 0x4b2   : > { %v3971_v1 = vsel %vm3962_vm3, %v3938_v28, %v9890_v22  ;;  %v9866_v56 = vunpack.i.h.bf16 %v14042_v26  ;;  %v3846_v50 = vsel %vm1923_vm8, %v9820_v16, %v9850_v52  ;;  %v3847_v22 = vsel %vm1923_vm8, %v9821_v24, %v9851_v39 }
 0x4b3   : > { %v3940_v47 = vsel %vm545_vm6, %v3908_v48, %v9860_v44  ;;  %v9865_v23 = vunpack.i.l.bf16 %v14042_v26  ;;  %v4004_v63 = vsel %vm3995_vm12, %v3971_v1, %v9830_v30  ;;  %v4005_v27 = vsel %vm3995_vm12, %v3972_v42, %v9831_v33 }
 0x4b4   : > { %v14423_v53 = vpop.permute.xlu1 %10203  ;;  %v14425_v55 = vpop.permute.xlu0 %10178  ;;  %v3941_v39 = vsel %vm545_vm6, %v3909_v58, %v9861_v31  ;;  %v18511_v52 = vmov 0   ;;  %v9871_v44 = vunpack.i.h.bf16 %v14103_v32  ;;  %v9870_v24 = vunpack.i.l.bf16 %v14103_v32 }
 0x4b5   : > { %6023 = vmatprep.subr.bf16.mxu0 %v18511_v52  ;;  %8889 = vmatprep.subr.bf16.mxu1 %v18511_v52  ;;  %v9931_v48 = vunpack.i.h.bf16 %v14143_v34  ;;  %v9930_v28 = vunpack.i.l.bf16 %v14143_v34  ;;  %v3878_v26 = vsel %vm1988_vm9, %v3846_v50, %v9855_v15  ;;  %v3879_v9 = vsel %vm1988_vm9, %v3847_v22, %v9856_v25 }
 0x4b6   : > { %v3973_v16 = vsel %vm3962_vm3, %v3940_v47, %v9865_v23  ;;  %v14472_v42 = vsel %vm4028_vm14, %v4004_v63, %v9870_v24  ;;  %v14475_v32 = vsel %vm4028_vm14, %v4005_v27, %v9871_v44  ;;  %v3974_v34 = vsel %vm3962_vm3, %v3941_v39, %v9866_v56  ;;  %6024 = vmatpush1.bf16.msra.mxu0 %v11004_v19 }
 0x4b7   : > { %8903 = vmatpush1.bf16.msra.mxu1 %v11004_v19  ;;  %v9910_v33 = vunpack.i.l.bf16 %v14116_v36  ;;  %v9921_v30 = vunpack.i.h.bf16 %v14128_v46  ;;  %v9920_v25 = vunpack.i.l.bf16 %v14128_v46  ;;  %v9906_v15 = vunpack.i.h.bf16 %v14145_v20  ;;  %6025 = vmatprep.subr.bf16.mxu0 %v18511_v52 }
 0x4b8   : > { %v14445_v14 = vpop.permute.xlu1 %10218  ;;  %v14447_v35 = vpop.permute.xlu0 %10193  ;;  %8890 = vmatprep.subr.bf16.mxu1 %v18511_v52  ;;  %v9905_v56 = vunpack.i.l.bf16 %v14145_v20  ;;  %v9925_v50 = vunpack.i.l.bf16 %v14161_v29  ;;  %v4006_v22 = vsel %vm3995_vm12, %v3973_v16, %v9930_v28  ;;  %v4007_v47 = vsel %vm3995_vm12, %v3974_v34, %v9931_v48 }
 0x4b9   : > { %v9961_v23 = vunpack.i.h.bf16 %v14168_v21  ;;  %v9960_v46 = vunpack.i.l.bf16 %v14168_v21  ;;  %v9916_v39 = vunpack.i.h.bf16 %v14151_v51  ;;  %v9966_v20 = vunpack.i.h.bf16 %v14212_v40  ;;  %v11006_v21 = vld [vmem:[%s17854_s6 + $0x20] sm:$0xff]  }
 0x4ba   : > { %v9965_v44 = vunpack.i.l.bf16 %v14212_v40  ;;  %6026 = vmatpush1.bf16.msra.mxu0 %v11005_v18  ;;  %v9915_v28 = vunpack.i.l.bf16 %v14151_v51  ;;  %v9926_v34 = vunpack.i.h.bf16 %v14161_v29  ;;  %v9935_v63 = vunpack.i.l.bf16 %v14170_v38 }
 0x4bb   : > { %8904 = vmatpush1.bf16.msra.mxu1 %v11005_v18  ;;  %6027 = vmatprep.subr.bf16.mxu0 %v18511_v52  ;;  %v3910_v40 = vsel %vm2054_vm11, %v3878_v26, %v9925_v50  ;;  %v9936_v19 = vunpack.i.h.bf16 %v14170_v38  ;;  %v9971_v27 = vunpack.i.h.bf16 %v14234_v2  ;;  %v9970_v18 = vunpack.i.l.bf16 %v14234_v2 }
 0x4bc   : > { %v14467_v58 = vpop.permute.xlu1 %10223  ;;  %v14469_v1 = vpop.permute.xlu0 %10208  ;;  %8891 = vmatprep.subr.bf16.mxu1 %v18511_v52  ;;  %v3849_v51 = vsel %vm1923_vm8, %v9921_v30, %v9961_v23  ;;  %v3848_v16 = vsel %vm1923_vm8, %v9920_v25, %v9960_v46  ;;  %v9976_v29 = vunpack.i.h.bf16 %v14242_v49  ;;  %v9975_v31 = vunpack.i.l.bf16 %v14242_v49 }
 0x4bd   : > { %18512 = vst [vmem:[#allocation68_spill] sm:$0xff] %v14467_v58  ;;  %v14524_v58 = vld [vmem:[%s17853_s5] ss:$0 sm:$0xff]  ;;  %v3880_v26 = vsel %vm1988_vm9, %v3848_v16, %v9965_v44  ;;  %v3881_v38 = vsel %vm1988_vm9, %v3849_v51, %v9966_v20  ;;  %v9981_v50 = vunpack.i.h.bf16 %v14222_v54  ;;  %v9980_v2 = vunpack.i.l.bf16 %v14222_v54 }
 0x4be   : > { %6028 = vmatpush1.bf16.msra.mxu0 %v11006_v21  ;;  %v3911_v49 = vsel %vm2054_vm11, %v3879_v9, %v9926_v34  ;;  %v3850_v23 = vsel %vm1923_vm8, %v9905_v56, %v9935_v63  ;;  %v9941_v46 = vunpack.i.h.bf16 %v14214_v61  ;;  %v9940_v44 = vunpack.i.l.bf16 %v14214_v61 }
 0x4bf   : > { %8905 = vmatpush1.bf16.msra.mxu1 %v11006_v21  ;;  %6029 = vmatprep.subr.bf16.mxu0 %v18511_v52  ;;  %v3851_v54 = vsel %vm1923_vm8, %v9906_v15, %v9936_v19  ;;  %v3942_v20 = vsel %vm545_vm6, %v3910_v40, %v9970_v18  ;;  %v3943_v51 = vsel %vm545_vm6, %v3911_v49, %v9971_v27  ;;  %v18515_v56 = vunpack.i.h.bf16 %v14116_v36 }
 0x4c0   : > { %v14500_v24 = vpop.permute.xlu1 %10233  ;;  %v14502_v48 = vpop.permute.xlu0 %10213  ;;  %8892 = vmatprep.subr.bf16.mxu1 %v18511_v52  ;;  %v3912_v9 = vsel %vm2054_vm11, %v3880_v26, %v9910_v33  ;;  %v3975_v61 = vsel %vm3962_vm3, %v3942_v20, %v9975_v31  ;;  %v3976_v34 = vsel %vm3962_vm3, %v3943_v51, %v9976_v29  ;;  %v14555_v27 = vsel %vm4028_vm14, %v4006_v22, %v9980_v2 }
 0x4c1   : > { %v3913_v63 = vsel %vm2054_vm11, %v3881_v38, %v18515_v56  ;;  %v14558_v33 = vsel %vm4028_vm14, %v4007_v47, %v9981_v50  ;;  %v9950_v36 = vunpack.i.l.bf16 %v14159_v45  ;;  %v14562_v40 = vsel %vm1988_vm9, %v3850_v23, %v9940_v44 }
 0x4c2   : > { %v14565_v31 = vsel %vm1988_vm9, %v3851_v54, %v9941_v46  ;;  %v9956_v18 = vunpack.i.h.bf16 %v14224_v0  ;;  %v4008_v22 = vsel %vm3995_vm12, %v3975_v61, %v9915_v28  ;;  %v4009_v2 = vsel %vm3995_vm12, %v3976_v34, %v9916_v39 }
 0x4c3   : > { %v9955_v47 = vunpack.i.l.bf16 %v14224_v0  ;;  %v18517_v49 = vunpack.i.l.bf16 %v14149_v62  ;;  %v9991_v28 = vunpack.i.h.bf16 %v14232_v13  ;;  %v9990_v39 = vunpack.i.l.bf16 %v14232_v13 }
 0x4c4   : > { %v14530_v30 = vpop.permute.xlu1 %10243  ;;  %v14532_v25 = vpop.permute.xlu0 %10228  ;;  %v10011_v54 = vunpack.i.h.bf16 %v14246_v59  ;;  %v10010_v20 = vunpack.i.l.bf16 %v14246_v59  ;;  %v18521_v56 = vunpack.i.h.bf16 %v14159_v45  ;;  %v10000_v61 = vunpack.i.l.bf16 %v14240_v7 }
 0x4c5   : > { %18513 = vst [vmem:[#allocation69_spill] sm:$0xff] %v14530_v30  ;;  %18514 = vst [vmem:[#allocation70_spill] sm:$0xff] %v14532_v25  ;;  %v4254_v16 = vpop.f32.mrf.mxu1  ;;  %v3944_v23 = vsel %vm545_vm6, %v3912_v9, %v18517_v49  ;;  %v14590_v51 = vsel %vm4028_vm14, %v4008_v22, %v9955_v47  ;;  %v9986_v34 = vunpack.i.h.bf16 %v14248_v4  ;;  %v10041_v59 = vunpack.i.h.bf16 %v14269_v43 }
 0x4c6   : > { %v4255_v21 = vadd.f32 %v14524_v58, %v4254_v16  ;;  %v3977_v13 = vsel %vm3962_vm3, %v3944_v23, %v9950_v36  ;;  %v9985_v36 = vunpack.i.l.bf16 %v14248_v4  ;;  %v10046_v45 = vunpack.i.h.bf16 %v14277_v41  ;;  %v18525_v23 = vld [vmem:[#allocation29_spill] sm:$0xff] }
 0x4c7   : > { %v4256_v25 = vpop.f32.mrf.mxu1  ;;  %v14620_v47 = vsel %vm3995_vm12, %v3977_v13, %v10010_v20  ;;  %v18527_v13 = vld [vmem:[#allocation31_spill] sm:$0xff] }
 0x4c8   : > { %vm4381_vm15 = vcmp.gt.f32.partialorder %v4255_v21, 0.0  ;;  %v4413_v30 = vmul.f32 0.1, %v4255_v21  ;;  %v14550_v15 = vpop.permute.xlu1 %10248  ;;  %v14552_v19 = vpop.permute.xlu0 %10238  ;;  %v18530_v25 = vld [vmem:[#allocation32_spill] sm:$0xff] }
 0x4c9   : > { %18516 = vst [vmem:[#allocation71_spill] sm:$0xff] %v14550_v15  ;;  %v4257_v29 = vpop.f32.mrf.mxu1 }
 0x4ca   : > { %v4445_v26 = vsel %vm4381_vm15, %v4255_v21, %v4413_v30  ;;  %v4258_v38 = vadd.f32 %v14524_v58, %v4257_v29  ;;  %v18518_v30 = vunpack.i.h.bf16 %v14149_v62  ;;  %v14593_v62 = vsel %vm4028_vm14, %v4009_v2, %v9956_v18  ;;  %v11007_v18 = vld [vmem:[%s17854_s6 + $0x18] sm:$0xff]  }
 0x4cb   : > { %4477 = vst.msk [vmem:[#allocation2 + $0x19] sm:$0xff] %vm1890_vm7, %v4445_v26  ;;  %v4259_v50 = vpop.f32.mrf.mxu1  ;;  %v10001_v21 = vunpack.i.h.bf16 %v14240_v7  ;;  %v10040_v29 = vunpack.i.l.bf16 %v14269_v43  ;;  %v10045_v26 = vunpack.i.l.bf16 %v14277_v41  ;;  %v10016_v43 = vunpack.i.h.bf16 %v14271_v5  ;;  %6030 = vmatpush1.bf16.msra.mxu0 %v11007_v18  ;;  %8906 = vmatpush1.bf16.msra.mxu1 %v11007_v18  ;;  %v18524_v41 = vld [vmem:[#allocation24_spill] sm:$0xff] }
 0x4cc   : > { %v3945_v46 = vsel %vm545_vm6, %v3913_v63, %v18518_v30  ;;  %vm4382_vm15 = vcmp.gt.f32.partialorder %v4258_v38, 0.0  ;;  %v4414_v0 = vmul.f32 0.1, %v4258_v38  ;;  %v14583_v44 = vpop.permute.xlu1 %10253  ;;  %v14585_v16 = vpop.permute.xlu0 %10258  ;;  %v10015_v2 = vunpack.i.l.bf16 %v14271_v5  ;;  %6031 = vmatprep.subr.bf16.mxu0 %v18511_v52  ;;  %8893 = vmatprep.subr.bf16.mxu1 %v18511_v52  ;;  %v18526_v5 = vld [vmem:[#allocation47_spill] sm:$0xff] }
 0x4cd   : > { %18519 = vst [vmem:[#allocation72_spill] sm:$0xff] %v14583_v44  ;;  %18520 = vst [vmem:[#allocation73_spill] sm:$0xff] %v14585_v16  ;;  %v3978_v63 = vsel %vm3962_vm3, %v3945_v46, %v18521_v56  ;;  %v10006_v50 = vunpack.i.h.bf16 %v18524_v41  ;;  %v10005_v49 = vunpack.i.l.bf16 %v18524_v41  ;;  %v10021_v30 = vunpack.i.h.bf16 %v18525_v23  ;;  %v11009_v44 = vld [vmem:[%s17854_s6 + $0x8] sm:$0xff]  }
 0x4ce   : > { %v4446_v9 = vsel %vm4382_vm15, %v4258_v38, %v4414_v0  ;;  %v14623_v4 = vsel %vm3995_vm12, %v3978_v63, %v10011_v54  ;;  %v10020_v46 = vunpack.i.l.bf16 %v18525_v23  ;;  %v3853_v54 = vsel %vm1923_vm8, %v10001_v21, %v10041_v59 }
 0x4cf   : > { %4478 = vst.msk [vmem:[#allocation2 + $0x21] sm:$0xff] %vm1890_vm7, %v4446_v9  ;;  %v3852_v9 = vsel %vm1923_vm8, %v10000_v61, %v10040_v29  ;;  %v3885_v41 = vsel %vm1988_vm9, %v3853_v54, %v10046_v45  ;;  %v3854_v21 = vsel %vm1923_vm8, %v9985_v36, %v10015_v2  ;;  %v3855_v61 = vsel %vm1923_vm8, %v9986_v34, %v10016_v43  ;;  %v11008_v29 = vld [vmem:[%s17854_s6 + $0x10] sm:$0xff]  }
 0x4d0   : > { %v14611_v38 = vpop.permute.xlu1 %10263  ;;  %v14613_v7 = vpop.permute.xlu0 %10273  ;;  %v3884_v18 = vsel %vm1988_vm9, %v3852_v9, %v10045_v26  ;;  %v3914_v45 = vsel %vm2054_vm11, %v14562_v40, %v10005_v49  ;;  %v3915_v26 = vsel %vm2054_vm11, %v14565_v31, %v10006_v50  ;;  %v14655_v54 = vsel %vm1988_vm9, %v3854_v21, %v10020_v46  ;;  %6032 = vmatpush1.bf16.msra.mxu0 %v11008_v29 }
 0x4d1   : > { %18522 = vst [vmem:[#allocation74_spill] sm:$0xff] %v14611_v38  ;;  %18523 = vst [vmem:[#allocation75_spill] sm:$0xff] %v14613_v7  ;;  %v14658_v9 = vsel %vm1988_vm9, %v3855_v61, %v10021_v30  ;;  %v3916_v34 = vsel %vm2054_vm11, %v3884_v18, %v9990_v39  ;;  %v3917_v43 = vsel %vm2054_vm11, %v3885_v41, %v9991_v28  ;;  %v10051_v2 = vunpack.i.h.bf16 %v14297_v57  ;;  %v18532_v39 = vld [vmem:[#allocation15_spill] sm:$0xff] }
 0x4d2   : > { %v4512_v59 = vld [vmem:[#allocation2 + $0x18] sm:$0xff]  ;;  %v10050_v0 = vunpack.i.l.bf16 %v14297_v57  ;;  %v10055_v40 = vunpack.i.l.bf16 %v14310_v6  ;;  %6033 = vmatprep.subr.bf16.mxu0 %v18511_v52  ;;  %8907 = vmatpush1.bf16.msra.mxu1 %v11008_v29  ;;  %v10061_v18 = vunpack.i.h.bf16 %v18532_v39  ;;  %v10060_v28 = vunpack.i.l.bf16 %v18532_v39 }
 0x4d3   : > { %v4616_v46 = vrot.slane %v4512_v59, 1  ;;  %8894 = vmatprep.subr.bf16.mxu1 %v18511_v52  ;;  %v10056_v16 = vunpack.i.h.bf16 %v14310_v6 }
 0x4d4   : > { %v14639_v23 = vpop.permute.xlu1 %10268  ;;  %v14641_v22 = vpop.permute.xlu0 %10278  ;;  %v3946_v29 = vsel %vm545_vm6, %v3914_v45, %v10050_v0  ;;  %6034 = vmatpush1.bf16.msra.mxu0 %v11009_v44  ;;  %v14688_v0 = vld [vmem:[%s17854_s6] sm:$0xff]   ;;  %v18533_v45 = vpack.c.bf16 %v14475_v32, %v14472_v42  ;;  %v14706_v32 = vsel %vm4028_vm14, %v14620_v47, %v10060_v28 }
 0x4d5   : > { %18528 = vst [vmem:[#allocation77_spill] sm:$0xff] %v14639_v23  ;;  %18529 = vst [vmem:[#allocation78_spill] sm:$0xff] %v14641_v22  ;;  %v3947_v22 = vsel %vm545_vm6, %v3915_v26, %v10051_v2  ;;  %6035 = vmatprep.subr.bf16.mxu0 %v18511_v52 }
 0x4d6   : > { %v4513_v36 = vld [vmem:[#allocation2 + $0x20] sm:$0xff]  ;;  %v4514_v20 = vld [vmem:[#allocation2 + $0x28] sm:$0x3]  ;;  %v3980_v26 = vsel %vm3962_vm3, %v3947_v22, %v10056_v16  ;;  %v14710_v16 = vsel %vm4028_vm14, %v14623_v4, %v10061_v18  ;;  %8908 = vmatpush1.bf16.msra.mxu1 %v11009_v44 }
 0x4d7   : > { %v10372_v49 = vpack.i.bf16 %v4513_v36, %v4512_v59  ;;  %v4617_v30 = vrot.slane %v4513_v36, 1  ;;  %v4619_v61 = vrot.slane %v4514_v20, 1  ;;  %v4793_v56 = vrot.slane %v4513_v36, 2  ;;  %8895 = vmatprep.subr.bf16.mxu1 %v18511_v52 }
 0x4d8   : > { %v14665_v31 = vpop.permute.xlu1 %10288  ;;  %v10284_v50 = vpop.permute.xlu0 %10283  ;;  %v4795_v63 = vrot.slane %v4514_v20, 2  ;;  %6036 = vmatpush1.bf16.msra.mxu0 %v14688_v0  ;;  %v4075_v44 = vpack.c.bf16 %v14710_v16, %v14706_v32  ;;  %v18552_v32 = vld [vmem:[#allocation54_spill] sm:$0xff] }
 0x4d9   : > { %18531 = vst [vmem:[#allocation79_spill] sm:$0xff] %v14665_v31  ;;  %v10286_v41 = vunpack.i.h.bf16 %v10284_v50  ;;  %v10285_v21 = vunpack.i.l.bf16 %v10284_v50  ;;  %10373 = vrot.lane.b32.xlu0 %v10372_v49, %s18066_s11  ;;  %v4618_v57 = vsel %vm998_vm2, %v4616_v46, %v4617_v30  ;;  %v4792_v50 = vrot.slane %v4512_v59, 2  ;;  %6041 = vmatprep.subr.bf16.mxu0 %v18511_v52 }
 0x4da   : > { %v3979_v49 = vsel %vm3962_vm3, %v3946_v29, %v10055_v40  ;;  %v4620_v36 = vsel %vm998_vm2, %v4617_v30, %v4619_v61  ;;  %v18535_v30 = vunpack.i.l.bf16 %v18526_v5  ;;  %v18540_v29 = vunpack.i.l.bf16 %v18530_v25  ;;  %8909 = vmatpush1.bf16.msra.mxu1 %v14688_v0 }
 0x4db   : > { %v4070_v39 = vpack.c.bf16 %v10286_v41, %v10285_v21  ;;  %v4262_v15 = vpop.f32.mrf.mxu1  ;;  %v10377_v23 = vpack.i.bf16 %v4620_v36, %v4618_v57  ;;  %v4794_v6 = vsel %vm1175_vm4, %v4792_v50, %v4793_v56  ;;  %v18536_v21 = vunpack.i.h.bf16 %v18526_v5  ;;  %8896 = vmatprep.subr.bf16.mxu1 %v18511_v52 }
 0x4dc   : > { %v4263_v46 = vadd.f32 %v14524_v58, %v4262_v15  ;;  %v10294_v20 = vpop.permute.xlu1 %10293  ;;  %v10299_v59 = vpop.permute.xlu0 %10298  ;;  %v3948_v41 = vsel %vm545_vm6, %v3916_v34, %v18535_v30  ;;  %v18538_v34 = vunpack.i.h.bf16 %v18527_v13  ;;  %v10066_v30 = vunpack.i.h.bf16 %v14316_v60 }
 0x4dd   : > { %v10296_v31 = vunpack.i.h.bf16 %v10294_v20  ;;  %v10295_v7 = vunpack.i.l.bf16 %v10294_v20  ;;  %v4264_v38 = vpop.f32.mrf.mxu1  ;;  %8749 = vmatprep.mubr.msk.bf16.mxu1 %vm1923_vm8, %v4070_v39  ;;  %10378 = vrot.lane.b32.xlu1 %v10377_v23, %s18534_s25  ;;  %v3949_v57 = vsel %vm545_vm6, %v3917_v43, %v18536_v21  ;;  %v10300_v22 = vunpack.i.l.bf16 %v10299_v59  ;;  %v11011_v43 = vld [vmem:[%s17854_s6 + $0x68] ss:$0 sps:$4 sm:$0xff]   ;;  %v18543_v20 = vld [vmem:[#allocation18_spill] sm:$0xff] }
 0x4de   : > { %vm4383_vm15 = vcmp.gt.f32.partialorder %v4263_v46, 0.0  ;;  %v4415_v15 = vmul.f32 0.1, %v4263_v46  ;;  %4285 = vmatmul.mubr.bf16.gmra.mxu1 %v18533_v45  ;;  %v4796_v38 = vsel %vm1175_vm4, %v4793_v56, %v4795_v63  ;;  %10388 = vrot.lane.b32.xlu0 %v10377_v23, %s18064_s26  ;;  %v18537_v63 = vunpack.i.l.bf16 %v18527_v13  ;;  %s18549_s26 = smov 96  }
 0x4df   : > { %v4072_v2 = vpack.c.bf16 %v10296_v31, %v10295_v7  ;;  %v4265_v40 = vpop.f32.mrf.mxu1  ;;  %v10301_v7 = vunpack.i.h.bf16 %v10299_v59  ;;  %v10382_v5 = vpack.i.bf16 %v4796_v38, %v4794_v6  ;;  %v4013_v4 = vsel %vm3995_vm12, %v3980_v26, %v18538_v34  ;;  %v18539_v31 = vld [vmem:[#allocation36_spill] sm:$0xff] }
 0x4e0   : > { %v4447_v61 = vsel %vm4383_vm15, %v4263_v46, %v4415_v15  ;;  %v4266_v42 = vadd.f32 %v14524_v58, %v4265_v40  ;;  %v4012_v23 = vsel %vm3995_vm12, %v3979_v49, %v18537_v63  ;;  %v10036_v18 = vunpack.i.h.bf16 %v18539_v31  ;;  %v10304_v26 = vpop.permute.xlu1 %10303 }
 0x4e1   : > { %4479 = vst.msk [vmem:[#allocation2 + $0x31] sm:$0xff] %vm1890_vm7, %v4447_v61  ;;  %v4267_v56 = vpop.f32.mrf.mxu1  ;;  %8750 = vmatprep.mubr.msk.bf16.mxu1 %vm1923_vm8, %v4072_v2  ;;  %v10035_v28 = vunpack.i.l.bf16 %v18539_v31  ;;  %10383 = vrot.lane.b32.xlu1 %v10382_v5, %s18489_s24  ;;  %v3981_v39 = vsel %vm3962_vm3, %v3948_v41, %v18540_v29  ;;  %v18541_v13 = vunpack.i.h.bf16 %v18530_v25  ;;  %v10091_v49 = vunpack.i.h.bf16 %v14314_v8 }
 0x4e2   : > { %vm4384_vm15 = vcmp.gt.f32.partialorder %v4266_v42, 0.0  ;;  %v4416_v47 = vmul.f32 0.1, %v4266_v42  ;;  %v10090_v46 = vunpack.i.l.bf16 %v14314_v8  ;;  %10393 = vrot.lane.b32.xlu0 %v10382_v5, %s18542_s22  ;;  %v10071_v6 = vunpack.i.h.bf16 %v18543_v20 }
 0x4e3   : > { %v3982_v50 = vsel %vm3962_vm3, %v3949_v57, %v18541_v13  ;;  %v4074_v15 = vpack.c.bf16 %v10301_v7, %v10300_v22  ;;  %v14743_v25 = vsel %vm4028_vm14, %v4012_v23, %v10035_v28  ;;  %v14746_v59 = vsel %vm4028_vm14, %v4013_v4, %v10036_v18  ;;  %v10309_v13 = vpop.permute.xlu0 %10308 }
 0x4e4   : > { %v4448_v36 = vsel %vm4384_vm15, %v4266_v42, %v4416_v47  ;;  %v10070_v8 = vunpack.i.l.bf16 %v18543_v20  ;;  %v10081_v45 = vunpack.i.h.bf16 %v14308_v11  ;;  %v10080_v38 = vunpack.i.l.bf16 %v14308_v11  ;;  %v11012_v42 = vld [vmem:[%s17854_s6 + $0x60] sm:$0xff]  }
 0x4e5   : > { %4480 = vst.msk [vmem:[#allocation2 + $0x39] sm:$0xff] %vm1890_vm7, %v4448_v36  ;;  %v18544_v2 = vpack.c.bf16 %v14558_v33, %v14555_v27  ;;  %v6019_v40 = vsel %vm2260_vm5, %v11011_v43, 0  ;;  %v10065_v41 = vunpack.i.l.bf16 %v14316_v60  ;;  %v10086_v21 = vunpack.i.h.bf16 %v14345_v37  ;;  %v18545_v43 = vld [vmem:[#allocation38_spill] sm:$0xff] }
 0x4e6   : > { %v10085_v57 = vunpack.i.l.bf16 %v14345_v37  ;;  %v10120_v61 = vunpack.i.l.bf16 %v14352_v12  ;;  %v4077_v11 = vpack.c.bf16 %v14746_v59, %v14743_v25  ;;  %v14764_v27 = vsel %vm3995_vm12, %v3981_v39, %v10090_v46  ;;  %6042 = vmatpush2.bf16.msra.mxu0 %v6019_v40  ;;  %8910 = vmatpush2.bf16.msra.mxu1 %v6019_v40 }
 0x4e7   : > { %4293 = vmatmul.mubr.bf16.gmra.mxu1 %v18544_v2  ;;  %v14767_v33 = vsel %vm3995_vm12, %v3982_v50, %v10091_v49  ;;  %v10121_v37 = vunpack.i.h.bf16 %v14352_v12  ;;  %v10125_v7 = vunpack.i.l.bf16 %v14357_v10  ;;  %v10306_v22 = vunpack.i.h.bf16 %v10304_v26  ;;  %6043 = vmatprep.subr.bf16.mxu0 %v18511_v52 }
 0x4e8   : > { %8751 = vmatprep.mubr.msk.bf16.mxu1 %vm1923_vm8, %v4074_v15  ;;  %v10305_v5 = vunpack.i.l.bf16 %v10304_v26  ;;  %v4270_v56 = vpop.f32.mrf.mxu1  ;;  %v10106_v63 = vunpack.i.h.bf16 %v14326_v17  ;;  %v10105_v23 = vunpack.i.l.bf16 %v14326_v17  ;;  %v10076_v47 = vunpack.i.h.bf16 %v14328_v3  ;;  %v14791_v28 = vld [vmem:[#allocation2 + $0x30] sm:$0xff]  ;;  %8897 = vmatprep.subr.bf16.mxu1 %v18511_v52 }
 0x4e9   : > { %v4271_v34 = vadd.f32 %v14524_v58, %v4270_v56  ;;  %v10075_v0 = vunpack.i.l.bf16 %v14328_v3  ;;  %v14784_v12 = vsel %vm2054_vm11, %v14655_v54, %v10085_v57  ;;  %v14788_v4 = vsel %vm2054_vm11, %v14658_v9, %v10086_v21 }
 0x4ea   : > { %v10096_v31 = vunpack.i.h.bf16 %v18545_v43  ;;  %v4272_v18 = vpop.f32.mrf.mxu1  ;;  %v3856_v29 = vsel %vm1923_vm8, %v10080_v38, %v10120_v61  ;;  %v10095_v39 = vunpack.i.l.bf16 %v18545_v43  ;;  %6044 = vmatpush2.bf16.msra.mxu0 %v11012_v42  ;;  %v3857_v9 = vsel %vm1923_vm8, %v10081_v45, %v10121_v37  ;;  %v11013_v38 = vld [vmem:[%s17854_s6 + $0x58] sm:$0xff]   ;;  %8911 = vmatpush2.bf16.msra.mxu1 %v11012_v42 }
 0x4eb   : > { %vm4385_vm5 = vcmp.gt.f32.partialorder %v4271_v34, 0.0  ;;  %v4417_v50 = vmul.f32 0.1, %v4271_v34  ;;  %v10126_v46 = vunpack.i.h.bf16 %v14357_v10  ;;  %v3888_v36 = vsel %vm1988_vm9, %v3856_v29, %v10125_v7  ;;  %6045 = vmatprep.subr.bf16.mxu0 %v18511_v52  ;;  %v11014_v29 = vld [vmem:[%s17854_s6 + $0x50] sm:$0xff]   ;;  %8898 = vmatprep.subr.bf16.mxu1 %v18511_v52 }
 0x4ec   : > { %v14795_v49 = vld [vmem:[#allocation2 + $0x38] sm:$0xff]  ;;  %v4517_v54 = vld [vmem:[#allocation2 + $0x40] sm:$0x3]  ;;  %v4076_v15 = vpack.c.bf16 %v10306_v22, %v10305_v5  ;;  %v4273_v26 = vpop.f32.mrf.mxu1  ;;  %v18546_v10 = vpack.c.bf16 %v14593_v62, %v14590_v51  ;;  %v10311_v40 = vunpack.i.h.bf16 %v10309_v13  ;;  %v4621_v61 = vrot.slane %v14791_v28, 1 }
 0x4ed   : > { %v4449_v2 = vsel %vm4385_vm5, %v4271_v34, %v4417_v50  ;;  %v4274_v21 = vadd.f32 %v14524_v58, %v4273_v26  ;;  %v10402_v45 = vpack.i.bf16 %v14795_v49, %v14791_v28  ;;  %v4622_v37 = vrot.slane %v14795_v49, 1 }
 0x4ee   : > { %4481 = vst.msk [vmem:[#allocation2 + $0x49] sm:$0xff] %vm1890_vm7, %v4449_v2  ;;  %v4275_v57 = vpop.f32.mrf.mxu1  ;;  %v4624_v7 = vrot.slane %v4517_v54, 1  ;;  %v4798_v51 = vrot.slane %v14795_v49, 2  ;;  %v4800_v62 = vrot.slane %v4517_v54, 2  ;;  %v10310_v5 = vunpack.i.l.bf16 %v10309_v13  ;;  %6046 = vmatpush2.bf16.msra.mxu0 %v11013_v38  ;;  %v18547_v54 = vld [vmem:[#allocation52_spill] sm:$0xff]  ;;  %8912 = vmatpush2.bf16.msra.mxu1 %v11013_v38 }
 0x4ef   : > { %4301 = vmatmul.mubr.bf16.gmra.mxu1 %v18546_v10  ;;  %vm4386_vm15 = vcmp.gt.f32.partialorder %v4274_v21, 0.0  ;;  %v4418_v22 = vmul.f32 0.1, %v4274_v21  ;;  %10403 = vrot.lane.b32.xlu0 %v10402_v45, %s18488_s17  ;;  %v4623_v56 = vsel %vm998_vm2, %v4621_v61, %v4622_v37  ;;  %v4797_v18 = vrot.slane %v14791_v28, 2 }
 0x4f0   : > { %8752 = vmatprep.mubr.msk.bf16.mxu1 %vm1923_vm8, %v4076_v15  ;;  %10398 = vrot.lane.b32.xlu1 %v10402_v45, %s18066_s11  ;;  %v4625_v34 = vsel %vm998_vm2, %v4622_v37, %v4624_v7  ;;  %v3889_v50 = vsel %vm1988_vm9, %v3857_v9, %v10126_v46  ;;  %v10101_v13 = vunpack.i.h.bf16 %v18547_v54  ;;  %v10100_v2 = vunpack.i.l.bf16 %v18547_v54  ;;  %v18548_v46 = vld [vmem:[#allocation45_spill] sm:$0xff]  ;;  %v18550_v37 = vld [vmem:[#allocation59_spill] sm:$0xff]  ;;  %s18554_s11 = smov 64  }
 0x4f1   : > { %v4450_v15 = vsel %vm4386_vm15, %v4274_v21, %v4418_v22  ;;  %v10407_v26 = vpack.i.bf16 %v4625_v34, %v4623_v56  ;;  %6047 = vmatprep.subr.bf16.mxu0 %v18511_v52  ;;  %v4799_v45 = vsel %vm1175_vm4, %v4797_v18, %v4798_v51  ;;  %v4801_v10 = vsel %vm1175_vm4, %v4798_v51, %v4800_v62  ;;  %v10314_v22 = vpop.permute.xlu1 %10313 }
 0x4f2   : > { %4482 = vst.msk [vmem:[#allocation2 + $0x51] sm:$0xff] %vm1890_vm7, %v4450_v15  ;;  %v3858_v42 = vsel %vm1923_vm8, %v10065_v41, %v10095_v39  ;;  %v3920_v9 = vsel %vm2054_vm11, %v3888_v36, %v10070_v8  ;;  %v10141_v21 = vunpack.i.h.bf16 %v18548_v46  ;;  %v10140_v57 = vunpack.i.l.bf16 %v18548_v46  ;;  %6048 = vmatpush2.bf16.msra.mxu0 %v11014_v29  ;;  %v14850_v8 = vld [vmem:[%s17854_s6 + $0x48] sm:$0xff]   ;;  %v18551_v36 = vld [vmem:[#allocation21_spill] sm:$0xff]  ;;  %8899 = vmatprep.subr.bf16.mxu1 %v18511_v52 }
 0x4f3   : > { %10408 = vrot.lane.b32.xlu0 %v10407_v26, %s18534_s25  ;;  %v3921_v61 = vsel %vm2054_vm11, %v3889_v50, %v10071_v6  ;;  %v10131_v7 = vunpack.i.h.bf16 %v18550_v37  ;;  %v10130_v41 = vunpack.i.l.bf16 %v18550_v37  ;;  %v4078_v39 = vpack.c.bf16 %v10311_v40, %v10310_v5  ;;  %6049 = vmatprep.subr.bf16.mxu0 %v18511_v52 }
 0x4f4   : > { %10418 = vrot.lane.b32.xlu1 %v10407_v26, %s18549_s26  ;;  %v3859_v20 = vsel %vm1923_vm8, %v10066_v30, %v10096_v31  ;;  %v10135_v6 = vunpack.i.l.bf16 %v18551_v36  ;;  %v10412_v51 = vpack.i.bf16 %v4801_v10, %v4799_v45  ;;  %v14863_v40 = vsel %vm1988_vm9, %v3858_v42, %v10100_v2  ;;  %8913 = vmatpush2.bf16.msra.mxu1 %v11014_v29  ;;  %v18555_v10 = vld [vmem:[#allocation58_spill] sm:$0xff] }
 0x4f5   : > { %v14866_v38 = vsel %vm1988_vm9, %v3859_v20, %v10101_v13  ;;  %v10136_v60 = vunpack.i.h.bf16 %v18551_v36  ;;  %v3952_v30 = vsel %vm545_vm6, %v3920_v9, %v10105_v23  ;;  %v10111_v16 = vunpack.i.h.bf16 %v18552_v32  ;;  %8900 = vmatprep.subr.bf16.mxu1 %v18511_v52  ;;  %v18556_v36 = vld [vmem:[#allocation61_spill] sm:$0xff] }
 0x4f6   : > { %v14883_v43 = vsel %vm4028_vm14, %v14767_v33, %v10141_v21  ;;  %v3953_v23 = vsel %vm545_vm6, %v3921_v61, %v10106_v63  ;;  %v3950_v31 = vsel %vm545_vm6, %v14784_v12, %v10130_v41  ;;  %v3951_v62 = vsel %vm545_vm6, %v14788_v4, %v10131_v7  ;;  %6050 = vmatpush2.bf16.msra.mxu0 %v14850_v8  ;;  %v4518_v63 = vld [vmem:[#allocation2 + $0x48] sm:$0xff]  ;;  %v18553_v4 = vld [vmem:[#allocation57_spill] sm:$0xff] }
 0x4f7   : > { %4309 = vmatmul.mubr.bf16.gmra.mxu1 %v4075_v44  ;;  %10413 = vrot.lane.b32.xlu0 %v10412_v51, %s18489_s24  ;;  %v14879_v44 = vsel %vm4028_vm14, %v14764_v27, %v10140_v57  ;;  %v10316_v5 = vunpack.i.h.bf16 %v10314_v22  ;;  %v10315_v56 = vunpack.i.l.bf16 %v10314_v22  ;;  %v14896_v27 = vld [vmem:[%s17854_s6 + $0x40] sm:$0xff]   ;;  %v10110_v17 = vunpack.i.l.bf16 %v18552_v32 }
 0x4f8   : > { %8753 = vmatprep.mubr.msk.bf16.mxu1 %vm1923_vm8, %v4078_v39  ;;  %10423 = vrot.lane.b32.xlu1 %v10412_v51, %s18542_s22  ;;  %v3983_v33 = vsel %vm3962_vm3, %v3950_v31, %v10135_v6  ;;  %v10116_v18 = vunpack.i.h.bf16 %v18553_v4  ;;  %v3984_v50 = vsel %vm3962_vm3, %v3951_v62, %v10136_v60  ;;  %v10115_v13 = vunpack.i.l.bf16 %v18553_v4  ;;  %v18557_v22 = vld [vmem:[#allocation22_spill] sm:$0xff] }
 0x4f9   : > { %v4519_v34 = vld [vmem:[#allocation2 + $0x50] sm:$0xff]  ;;  %v4520_v12 = vld [vmem:[#allocation2 + $0x58] sm:$0x3]  ;;  %6051 = vmatprep.subr.bf16.mxu0 %v18511_v52  ;;  %v4079_v29 = vpack.c.bf16 %v14883_v43, %v14879_v44  ;;  %v3985_v2 = vsel %vm3962_vm3, %v3952_v30, %v10110_v17  ;;  %v3986_v45 = vsel %vm3962_vm3, %v3953_v23, %v10111_v16  ;;  %v10151_v42 = vunpack.i.h.bf16 %v18555_v10  ;;  %8914 = vmatpush2.bf16.msra.mxu1 %v14850_v8 }
 0x4fa   : > { %v4627_v15 = vrot.slane %v4519_v34, 1  ;;  %v4629_v54 = vrot.slane %v4520_v12, 1  ;;  %v4080_v9 = vpack.c.bf16 %v10316_v5, %v10315_v56  ;;  %v4626_v46 = vrot.slane %v4518_v63, 1  ;;  %6052 = vmatpush2.bf16.msra.mxu0 %v14896_v27  ;;  %8901 = vmatprep.subr.bf16.mxu1 %v18511_v52  ;;  %v18559_v5 = vld [vmem:[#allocation62_spill] sm:$0xff] }
 0x4fb   : > { %10433 = vrot.lane.b32.xlu0 %v10412_v51, %s18554_s11  ;;  %v4016_v21 = vsel %vm3995_vm12, %v3983_v33, %v10075_v0  ;;  %v10150_v57 = vunpack.i.l.bf16 %v18555_v10  ;;  %v10442_v61 = vpack.i.bf16 %v4519_v34, %v4518_v63  ;;  %v4017_v37 = vsel %vm3995_vm12, %v3984_v50, %v10076_v47  ;;  %v18560_v52 = vld [vmem:[#allocation66_spill] sm:$0xff]  ;;  %v10324_v50 = vpop.permute.xlu1 %10323 }
 0x4fc   : > { %10428 = vrot.lane.b32.xlu1 %v10407_v26, %s18474_s23  ;;  %v10319_v26 = vpop.permute.xlu0 %10318  ;;  %v4628_v41 = vsel %vm998_vm2, %v4626_v46, %v4627_v15  ;;  %v4630_v0 = vsel %vm998_vm2, %v4627_v15, %v4629_v54  ;;  %v4803_v39 = vrot.slane %v4519_v34, 2  ;;  %v4805_v20 = vrot.slane %v4520_v12, 2  ;;  %v18561_v54 = vld [vmem:[#allocation63_spill] sm:$0xff] }
 0x4fd   : > { %v10161_v6 = vunpack.i.h.bf16 %v18556_v36  ;;  %v10170_v51 = vunpack.i.l.bf16 %v18557_v22  ;;  %v14932_v3 = vsel %vm4028_vm14, %v4016_v21, %v10115_v13  ;;  %v10321_v59 = vunpack.i.h.bf16 %v10319_v26  ;;  %8915 = vmatpush2.bf16.msra.mxu1 %v14896_v27  ;;  %v18562_v46 = vld [vmem:[#allocation43_spill] sm:$0xff] }
 0x4fe   : > { %v4802_v60 = vrot.slane %v4518_v63, 2  ;;  %v14935_v30 = vsel %vm4028_vm14, %v4017_v37, %v10116_v18  ;;  %v10457_v16 = vpack.i.bf16 %v4630_v0, %v4628_v41  ;;  %v10160_v44 = vunpack.i.l.bf16 %v18556_v36 }
 0x4ff   : > { %4317 = vmatmul.mubr.bf16.gmra.mxu1 %v4077_v11  ;;  %v4278_v7 = vpop.f32.mrf.mxu1  ;;  %10438 = vrot.lane.b32.xlu0 %v10442_v61, %s18558_s18  ;;  %v10320_v11 = vunpack.i.l.bf16 %v10319_v26  ;;  %v10171_v43 = vunpack.i.h.bf16 %v18557_v22  ;;  %v4806_v62 = vsel %vm1175_vm4, %v4803_v39, %v4805_v20  ;;  %v10146_v56 = vunpack.i.h.bf16 %v18559_v5 }
 0x500   : > { %8754 = vmatprep.mubr.msk.bf16.mxu1 %vm1923_vm8, %v4080_v9  ;;  %v4279_v25 = vadd.f32 %v14524_v58, %v4278_v7  ;;  %10443 = vrot.lane.b32.xlu1 %v10442_v61, %s18488_s17  ;;  %v4804_v31 = vsel %vm1175_vm4, %v4802_v60, %v4803_v39  ;;  %v10145_v17 = vunpack.i.l.bf16 %v18559_v5  ;;  %v10165_v63 = vunpack.i.l.bf16 %v18560_v52  ;;  %v18563_v61 = vld [vmem:[#allocation64_spill] sm:$0xff] }
 0x501   : > { %v4280_v47 = vpop.f32.mrf.mxu1  ;;  %v4082_v34 = vpack.c.bf16 %v10321_v59, %v10320_v11  ;;  %v4081_v4 = vpack.c.bf16 %v14935_v30, %v14932_v3  ;;  %v4018_v18 = vsel %vm3995_vm12, %v3985_v2, %v10170_v51  ;;  %v10462_v15 = vpack.i.bf16 %v4806_v62, %v4804_v31 }
 0x502   : > { %vm4387_vm5 = vcmp.gt.f32.partialorder %v4279_v25, 0.0  ;;  %v4419_v32 = vmul.f32 0.1, %v4279_v25  ;;  %v10186_v13 = vunpack.i.h.bf16 %v18561_v54  ;;  %v10185_v9 = vunpack.i.l.bf16 %v18561_v54 }
 0x503   : > { %v4281_v23 = vpop.f32.mrf.mxu1  ;;  %10458 = vrot.lane.b32.xlu0 %v10457_v16, %s18549_s26  ;;  %v10200_v21 = vunpack.i.l.bf16 %v18562_v46  ;;  %v4019_v26 = vsel %vm3995_vm12, %v3986_v45, %v10171_v43  ;;  %v10156_v37 = vunpack.i.h.bf16 %v18563_v61  ;;  %v10155_v2 = vunpack.i.l.bf16 %v18563_v61 }
 0x504   : > { %v4451_v33 = vsel %vm4387_vm5, %v4279_v25, %v4419_v32  ;;  %v4282_v8 = vadd.f32 %v14524_v58, %v4281_v23  ;;  %10448 = vrot.lane.b32.xlu1 %v10457_v16, %s18534_s25  ;;  %v10205_v27 = vunpack.i.l.bf16 %v14423_v53  ;;  %v10201_v41 = vunpack.i.h.bf16 %v18562_v46 }
 0x505   : > { %4483 = vst.msk [vmem:[#allocation2 + $0x61] sm:$0xff] %vm1890_vm7, %v4451_v33  ;;  %v4283_v12 = vpop.f32.mrf.mxu1  ;;  %v10326_v0 = vunpack.i.h.bf16 %v10324_v50  ;;  %v10325_v39 = vunpack.i.l.bf16 %v10324_v50  ;;  %v3922_v45 = vsel %vm2054_vm11, %v14863_v40, %v10165_v63  ;;  %v10206_v20 = vunpack.i.h.bf16 %v14423_v53 }
 0x506   : > { %vm4388_vm15 = vcmp.gt.f32.partialorder %v4282_v8, 0.0  ;;  %v4420_v58 = vmul.f32 0.1, %v4282_v8  ;;  %v3860_v22 = vsel %vm1923_vm8, %v10160_v44, %v10200_v21  ;;  %v10220_v51 = vunpack.i.l.bf16 %v14445_v14 }
 0x507   : > { %4325 = vmatmul.mubr.bf16.gmra.mxu1 %v4079_v29  ;;  %10463 = vrot.lane.b32.xlu0 %v10462_v15, %s18542_s22  ;;  %v10166_v29 = vunpack.i.h.bf16 %v18560_v52  ;;  %v10211_v25 = vunpack.i.h.bf16 %v14469_v1  ;;  %v10210_v3 = vunpack.i.l.bf16 %v14469_v1  ;;  %v3892_v59 = vsel %vm1988_vm9, %v3860_v22, %v10205_v27  ;;  %v18564_v1 = vld [vmem:[#allocation67_spill] sm:$0xff]  ;;  %v18565_v22 = vld [vmem:[#allocation65_spill] sm:$0xff] }
 0x508   : > { %8755 = vmatprep.mubr.msk.bf16.mxu1 %vm1923_vm8, %v4082_v34  ;;  %v4452_v7 = vsel %vm4388_vm15, %v4282_v8, %v4420_v58  ;;  %10453 = vrot.lane.b32.xlu1 %v10462_v15, %s18489_s24  ;;  %v10221_v11 = vunpack.i.h.bf16 %v14445_v14  ;;  %v10216_v47 = vunpack.i.h.bf16 %v14502_v48  ;;  %v10215_v60 = vunpack.i.l.bf16 %v14502_v48 }
 0x509   : > { %4484 = vst.msk [vmem:[#allocation2 + $0x69] sm:$0xff] %vm1890_vm7, %v4452_v7  ;;  %v3923_v53 = vsel %vm2054_vm11, %v14866_v38, %v10166_v29  ;;  %v3861_v40 = vsel %vm1923_vm8, %v10161_v6, %v10201_v41  ;;  %v10176_v30 = vunpack.i.h.bf16 %v18564_v1  ;;  %v4084_v32 = vpack.c.bf16 %v10326_v0, %v10325_v39 }
 0x50a   : > { %v10175_v14 = vunpack.i.l.bf16 %v18564_v1  ;;  %v3893_v43 = vsel %vm1988_vm9, %v3861_v40, %v10206_v20  ;;  %v10181_v48 = vunpack.i.h.bf16 %v14425_v55  ;;  %v10180_v23 = vunpack.i.l.bf16 %v14425_v55 }
 0x50b   : > { %10473 = vrot.lane.b32.xlu0 %v10462_v15, %s18554_s11  ;;  %v3924_v38 = vsel %vm2054_vm11, %v3892_v59, %v10150_v57  ;;  %v3954_v36 = vsel %vm545_vm6, %v3922_v45, %v10210_v3  ;;  %v3955_v6 = vsel %vm545_vm6, %v3923_v53, %v10211_v25  ;;  %v4051_v31 = vsel %vm4028_vm14, %v4018_v18, %v10220_v51  ;;  %v10334_v51 = vpop.permute.xlu1 %10333  ;;  %v18566_v53 = vld [vmem:[#allocation69_spill] sm:$0xff] }
 0x50c   : > { %10468 = vrot.lane.b32.xlu1 %v10457_v16, %s18474_s23  ;;  %v4521_v44 = vld [vmem:[#allocation2 + $0x60] sm:$0xff]  ;;  %v10329_v16 = vpop.permute.xlu0 %10328  ;;  %v3987_v62 = vsel %vm3962_vm3, %v3954_v36, %v10215_v60  ;;  %v3988_v33 = vsel %vm3962_vm3, %v3955_v6, %v10216_v47  ;;  %v4052_v55 = vsel %vm4028_vm14, %v4019_v26, %v10221_v11  ;;  %v3925_v18 = vsel %vm2054_vm11, %v3893_v43, %v10151_v42 }
 0x50d   : > { %v4631_v63 = vrot.slane %v4521_v44, 1  ;;  %v10330_v50 = vunpack.i.l.bf16 %v10329_v16  ;;  %v10196_v46 = vunpack.i.h.bf16 %v14447_v35  ;;  %v4083_v27 = vpack.c.bf16 %v4052_v55, %v4051_v31  ;;  %v18570_v31 = vld [vmem:[#allocation77_spill] sm:$0xff] }
 0x50e   : > { %v4807_v29 = vrot.slane %v4521_v44, 2  ;;  %v10195_v41 = vunpack.i.l.bf16 %v14447_v35  ;;  %v4020_v0 = vsel %vm3995_vm12, %v3987_v62, %v10155_v2  ;;  %v4021_v10 = vsel %vm3995_vm12, %v3988_v33, %v10156_v37 }
 0x50f   : > { %4333 = vmatmul.mubr.bf16.gmra.mxu1 %v4081_v4  ;;  %v10331_v4 = vunpack.i.h.bf16 %v10329_v16  ;;  %v3956_v42 = vsel %vm545_vm6, %v3924_v38, %v10185_v9  ;;  %v3957_v35 = vsel %vm545_vm6, %v3925_v18, %v10186_v13  ;;  %v10191_v2 = vunpack.i.h.bf16 %v18565_v22  ;;  %v18569_v38 = vld [vmem:[#allocation79_spill] sm:$0xff] }
 0x510   : > { %8756 = vmatprep.mubr.msk.bf16.mxu1 %vm1923_vm8, %v4084_v32  ;;  %v4522_v8 = vld [vmem:[#allocation2 + $0x68] sm:$0xff]  ;;  %v4523_v52 = vld [vmem:[#allocation2 + $0x70] sm:$0x3]  ;;  %v10190_v61 = vunpack.i.l.bf16 %v18565_v22  ;;  %v3862_v37 = vsel %vm1923_vm8, %v10145_v17, %v10175_v14  ;;  %v3863_v9 = vsel %vm1923_vm8, %v10146_v56, %v10176_v30  ;;  %v4053_v25 = vsel %vm4028_vm14, %v4020_v0, %v10195_v41  ;;  %v18567_v14 = vld [vmem:[#allocation74_spill] sm:$0xff]  ;;  %v10339_v55 = vpop.permute.xlu0 %10338 }
 0x511   : > { %v10482_v34 = vpack.i.bf16 %v4522_v8, %v4521_v44  ;;  %v4632_v57 = vrot.slane %v4522_v8, 1  ;;  %v4634_v12 = vrot.slane %v4523_v52, 1  ;;  %v4808_v58 = vrot.slane %v4522_v8, 2  ;;  %v18572_v41 = vld [vmem:[#allocation68_spill] sm:$0xff] }
 0x512   : > { %v4810_v15 = vrot.slane %v4523_v52, 2  ;;  %v4086_v39 = vpack.c.bf16 %v10331_v4, %v10330_v50  ;;  %v3894_v54 = vsel %vm1988_vm9, %v3862_v37, %v10180_v23  ;;  %v3895_v13 = vsel %vm1988_vm9, %v3863_v9, %v10181_v48 }
 0x513   : > { %10483 = vrot.lane.b32.xlu0 %v10482_v34, %s18488_s17  ;;  %10478 = vrot.lane.b32.xlu1 %v10482_v34, %s18558_s18  ;;  %v4633_v21 = vsel %vm998_vm2, %v4631_v63, %v4632_v57  ;;  %v4635_v26 = vsel %vm998_vm2, %v4632_v57, %v4634_v12  ;;  %v4809_v45 = vsel %vm1175_vm4, %v4807_v29, %v4808_v58  ;;  %v10236_v59 = vunpack.i.h.bf16 %v14500_v24 }
 0x514   : > { %v10487_v7 = vpack.i.bf16 %v4635_v26, %v4633_v21  ;;  %v4811_v20 = vsel %vm1175_vm4, %v4808_v58, %v4810_v15  ;;  %v4054_v3 = vsel %vm4028_vm14, %v4021_v10, %v10196_v46  ;;  %v3989_v5 = vsel %vm3962_vm3, %v3956_v42, %v10190_v61 }
 0x515   : > { %v10492_v17 = vpack.i.bf16 %v4811_v20, %v4809_v45  ;;  %v3990_v56 = vsel %vm3962_vm3, %v3957_v35, %v10191_v2  ;;  %v10235_v11 = vunpack.i.l.bf16 %v14500_v24  ;;  %v10336_v47 = vunpack.i.h.bf16 %v10334_v51  ;;  %v18568_v24 = vld [vmem:[#allocation75_spill] sm:$0xff]  ;;  %v18573_v45 = vld [vmem:[#allocation70_spill] sm:$0xff]  ;;  %v10344_v2 = vpop.permute.xlu1 %10343 }
 0x516   : > { %v10335_v60 = vunpack.i.l.bf16 %v10334_v51  ;;  %v10246_v40 = vunpack.i.h.bf16 %v18566_v53  ;;  %v10245_v1 = vunpack.i.l.bf16 %v18566_v53  ;;  %v10241_v30 = vunpack.i.h.bf16 %v14552_v19  ;;  %v18574_v51 = vld [vmem:[#allocation71_spill] sm:$0xff]  ;;  %v18576_v53 = vld [vmem:[#allocation72_spill] sm:$0xff] }
 0x517   : > { %4341 = vmatmul.mubr.bf16.gmra.mxu1 %v4083_v27  ;;  %10488 = vrot.lane.b32.xlu0 %v10487_v7, %s18534_s25  ;;  %v4085_v32 = vpack.c.bf16 %v4054_v3, %v4053_v25  ;;  %v10240_v44 = vunpack.i.l.bf16 %v14552_v19  ;;  %v10266_v43 = vunpack.i.h.bf16 %v18567_v14  ;;  %v10265_v48 = vunpack.i.l.bf16 %v18567_v14  ;;  %v18571_v19 = vld [vmem:[#allocation78_spill] sm:$0xff] }
 0x518   : > { %10498 = vrot.lane.b32.xlu1 %v10487_v7, %s18549_s26  ;;  %8757 = vmatprep.mubr.msk.bf16.mxu1 %vm1923_vm8, %v4086_v39  ;;  %v10276_v23 = vunpack.i.h.bf16 %v18568_v24  ;;  %v10291_v36 = vunpack.i.h.bf16 %v18569_v38  ;;  %v10290_v6 = vunpack.i.l.bf16 %v18569_v38  ;;  %v10275_v16 = vunpack.i.l.bf16 %v18568_v24 }
 0x519   : > { %v10271_v62 = vunpack.i.h.bf16 %v18570_v31  ;;  %v10270_v33 = vunpack.i.l.bf16 %v18570_v31  ;;  %v4088_v8 = vpack.c.bf16 %v10336_v47, %v10335_v60  ;;  %v10281_v52 = vunpack.i.h.bf16 %v18571_v19 }
 0x51a   : > { %v10280_v63 = vunpack.i.l.bf16 %v18571_v19  ;;  %v4022_v34 = vsel %vm3995_vm12, %v3989_v5, %v10245_v1  ;;  %v4023_v57 = vsel %vm3995_vm12, %v3990_v56, %v10246_v40  ;;  %v3926_v12 = vsel %vm2054_vm11, %v3894_v54, %v10240_v44 }
 0x51b   : > { %10493 = vrot.lane.b32.xlu0 %v10492_v17, %s18489_s24  ;;  %v3927_v4 = vsel %vm2054_vm11, %v3895_v13, %v10241_v30  ;;  %v3865_v50 = vsel %vm1923_vm8, %v10236_v59, %v10266_v43  ;;  %v3864_v58 = vsel %vm1923_vm8, %v10235_v11, %v10265_v48  ;;  %v10341_v15 = vunpack.i.h.bf16 %v10339_v55  ;;  %v18577_v48 = vld [vmem:[#allocation28_spill] sm:$0xff] }
 0x51c   : > { %10503 = vrot.lane.b32.xlu1 %v10492_v17, %s18542_s22  ;;  %v10340_v18 = vunpack.i.l.bf16 %v10339_v55  ;;  %v4055_v46 = vsel %vm4028_vm14, %v4022_v34, %v10290_v6  ;;  %v4056_v21 = vsel %vm4028_vm14, %v4023_v57, %v10291_v36  ;;  %v3958_v26 = vsel %vm545_vm6, %v3926_v12, %v10275_v16  ;;  %v18578_v16 = vld [vmem:[#allocation26_spill] sm:$0xff]  ;;  %v10349_v55 = vpop.permute.xlu0 %10348 }
 0x51d   : > { %v3959_v27 = vsel %vm545_vm6, %v3927_v4, %v10276_v23  ;;  %v3897_v29 = vsel %vm1988_vm9, %v3865_v50, %v10271_v62  ;;  %v10226_v0 = vunpack.i.h.bf16 %v18572_v41  ;;  %v10225_v10 = vunpack.i.l.bf16 %v18572_v41 }
 0x51e   : > { %v3991_v42 = vsel %vm3962_vm3, %v3958_v26, %v10280_v63  ;;  %v3992_v39 = vsel %vm3962_vm3, %v3959_v27, %v10281_v52  ;;  %v10231_v20 = vunpack.i.h.bf16 %v18573_v45  ;;  %v10230_v35 = vunpack.i.l.bf16 %v18573_v45  ;;  %v15103_v52 = vpop.permute.xlu1 %10358 }
 0x51f   : > { %4349 = vmatmul.mubr.bf16.gmra.mxu1 %v4085_v32  ;;  %10513 = vrot.lane.b32.xlu0 %v10492_v17, %s18554_s11  ;;  %v4087_v22 = vpack.c.bf16 %v4056_v21, %v4055_v46  ;;  %v3929_v37 = vsel %vm2054_vm11, %v3897_v29, %v10226_v0  ;;  %v4090_v9 = vpack.c.bf16 %v10341_v15, %v10340_v18  ;;  %v10251_v54 = vunpack.i.h.bf16 %v18574_v51  ;;  %v18575_v17 = vld [vmem:[#allocation73_spill] sm:$0xff] }
 0x520   : > { %10508 = vrot.lane.b32.xlu1 %v10487_v7, %s18474_s23  ;;  %8758 = vmatprep.mubr.msk.bf16.mxu1 %vm1923_vm8, %v4088_v8  ;;  %v3896_v7 = vsel %vm1988_vm9, %v3864_v58, %v10270_v33  ;;  %v10250_v13 = vunpack.i.l.bf16 %v18574_v51  ;;  %v4024_v25 = vsel %vm3995_vm12, %v3991_v42, %v10230_v35  ;;  %v4025_v3 = vsel %vm3995_vm12, %v3992_v39, %v10231_v20  ;;  %v10354_v63 = vpop.permute.xlu0 %10353  ;;  %v11020_v20 = vld [vmem:[#allocation2 + $0x8] sm:$0xff] }
 0x521   : > { %v3928_v61 = vsel %vm2054_vm11, %v3896_v7, %v10225_v10  ;;  %v10261_v5 = vunpack.i.h.bf16 %v18575_v17  ;;  %v10260_v56 = vunpack.i.l.bf16 %v18575_v17  ;;  %v10346_v59 = vunpack.i.h.bf16 %v10344_v2 }
 0x522   : > { %v10345_v11 = vunpack.i.l.bf16 %v10344_v2  ;;  %v3960_v47 = vsel %vm545_vm6, %v3928_v61, %v10250_v13  ;;  %v3961_v60 = vsel %vm545_vm6, %v3929_v37, %v10251_v54  ;;  %v10256_v40 = vunpack.i.h.bf16 %v18576_v53  ;;  %v15105_v34 = vpop.permute.xlu1 %10368 }
 0x523   : > { %v10255_v1 = vunpack.i.l.bf16 %v18576_v53  ;;  %v4057_v30 = vsel %vm4028_vm14, %v4024_v25, %v10260_v56  ;;  %v4058_v32 = vsel %vm4028_vm14, %v4025_v3, %v10261_v5  ;;  %v9646_v24 = vunpack.i.h.bf16 %v18577_v48 }
 0x524   : > { %v4092_v44 = vpack.c.bf16 %v10346_v59, %v10345_v11  ;;  %v3994_v43 = vsel %vm3962_vm3, %v3961_v60, %v10256_v40  ;;  %v9645_v23 = vunpack.i.l.bf16 %v18577_v48  ;;  %v4089_v38 = vpack.c.bf16 %v4058_v32, %v4057_v30  ;;  %v15107_v57 = vpop.permute.xlu0 %10363 }
 0x525   : > { %v3993_v14 = vsel %vm3962_vm3, %v3960_v47, %v10255_v1  ;;  %v4027_v6 = vsel %vm3995_vm12, %v3994_v43, %v9646_v24  ;;  %v9651_v31 = vunpack.i.h.bf16 %v18578_v16  ;;  %v9650_v62 = vunpack.i.l.bf16 %v18578_v16 }
 0x526   : > { %v4026_v36 = vsel %vm3995_vm12, %v3993_v14, %v9645_v23  ;;  %v15109_v12 = vpop.permute.xlu1 %6495  ;;  %v10351_v41 = vunpack.i.h.bf16 %v10349_v55  ;;  %v10350_v0 = vunpack.i.l.bf16 %v10349_v55  ;;  %v10356_v39 = vunpack.i.h.bf16 %v10354_v63 }
 0x527   : > { %4357 = vmatmul.mubr.bf16.gmra.mxu1 %v4087_v22  ;;  %v4059_v33 = vsel %vm4028_vm14, %v4026_v36, %v9650_v62  ;;  %v4060_v8 = vsel %vm4028_vm14, %v4027_v6, %v9651_v31  ;;  %v10355_v45 = vunpack.i.l.bf16 %v10354_v63  ;;  %v11021_v22 = vld [vmem:[#allocation2] sm:$0xff]  ;;  %vm5693_vm9 = vcmask 982016  }
 0x528   : > { %8759 = vmatprep.mubr.msk.bf16.mxu1 %vm1923_vm8, %v4090_v9  ;;  %v4091_v19 = vpack.c.bf16 %v4060_v8, %v4059_v33  ;;  %v15111_v4 = vpop.permute.xlu0 %6493  ;;  %v5566_v35 = vsel %vm489_vm0, %v11020_v20, %v10351_v41  ;;  %v5565_v2 = vsel %vm489_vm0, %v11021_v22, %v10350_v0  ;;  %vm5969_vm3 = vcmask 719872  }
 0x529   : > { %v5597_v25 = vsel %vm2054_vm11, %v5565_v2, %v10355_v45  ;;  %v5598_v3 = vsel %vm2054_vm11, %v5566_v35, %v10356_v39  ;;  %v11022_v45 = vld [vmem:[#allocation2 + $0x20] sm:$0xff]  ;;  %v11023_v35 = vld [vmem:[#allocation2 + $0x18] sm:$0xff] }
 0x52a   : > { %v15113_v50 = vpop.permute.xlu1 %6952 }
 0x52b   : > { %18579 = vst [vmem:[#allocation17_spill] sm:$0xff] %v15113_v50 }
 0x52c   : > { %v15115_v58 = vpop.permute.xlu0 %6950 }
 0x52d   : > { %18580 = vst [vmem:[#allocation80_spill] sm:$0xff] %v15115_v58 }
 0x52e   : > { %v15117_v15 = vpop.permute.xlu1 %7521 }
 0x52f   : > { %4365 = vmatmul.mubr.bf16.gmra.mxu1 %v4089_v38  ;;  %18581 = vst [vmem:[#allocation81_spill] sm:$0xff] %v15117_v15 }
 0x530   : > { %8760 = vmatprep.mubr.msk.bf16.mxu1 %vm1923_vm8, %v4092_v44 }
 0x537   : > { %4373 = vmatmul.mubr.bf16.gmra.mxu1 %v4091_v19 }
 0x54b   : > { %v10374_v18 = vpop.permute.xlu0 %10373 }
 0x54c   : > { %v10376_v9 = vunpack.i.h.bf16 %v10374_v18  ;;  %v10375_v51 = vunpack.i.l.bf16 %v10374_v18 }
 0x54e   : > { %v5630_v30 = vsel %vm2211_vm13, %v5598_v3, %v10376_v9  ;;  %v5629_v32 = vsel %vm2211_vm13, %v5597_v25, %v10375_v51 }
 0x54f   : > { %v15119_v46 = vpop.permute.xlu1 %10378 }
 0x550   : > { %v10389_v21 = vpop.permute.xlu0 %10388  ;;  %v10381_v63 = vunpack.i.h.bf16 %v15119_v46  ;;  %v10380_v18 = vunpack.i.l.bf16 %v15119_v46 }
 0x551   : > { %v10391_v17 = vunpack.i.h.bf16 %v10389_v21  ;;  %v10390_v5 = vunpack.i.l.bf16 %v10389_v21 }
 0x552   : > { %v5568_v20 = vsel %vm489_vm0, %v11022_v45, %v10381_v63  ;;  %v5567_v22 = vsel %vm489_vm0, %v11023_v35, %v10380_v18 }
 0x553   : > { %v15121_v26 = vpop.permute.xlu1 %10383  ;;  %v5662_v43 = vsel %vm3995_vm12, %v5630_v30, %v10391_v17  ;;  %v5661_v48 = vsel %vm3995_vm12, %v5629_v32, %v10390_v5 }
 0x554   : > { %v10394_v27 = vpop.permute.xlu0 %10393  ;;  %v10386_v21 = vunpack.i.h.bf16 %v15121_v26 }
 0x555   : > { %v10396_v56 = vunpack.i.h.bf16 %v10394_v27  ;;  %v10395_v59 = vunpack.i.l.bf16 %v10394_v27  ;;  %v10385_v27 = vunpack.i.l.bf16 %v15121_v26 }
 0x557   : > { %v5694_v38 = vsel %vm5693_vm9, %v5661_v48, %v10395_v59  ;;  %v5695_v36 = vsel %vm5693_vm9, %v5662_v43, %v10396_v56  ;;  %v5599_v51 = vsel %vm2054_vm11, %v5567_v22, %v10385_v27 }
 0x558   : > { %v5822_v8 = vpack.c.bf16 %v5695_v36, %v5694_v38 }
 0x561   : > { %v10404_v7 = vpop.permute.xlu0 %10403 }
 0x562   : > { %v15123_v29 = vpop.permute.xlu1 %10398  ;;  %v10406_v54 = vunpack.i.h.bf16 %v10404_v7  ;;  %v10405_v13 = vunpack.i.l.bf16 %v10404_v7 }
 0x563   : > { %v10401_v7 = vunpack.i.h.bf16 %v15123_v29  ;;  %v10400_v41 = vunpack.i.l.bf16 %v15123_v29  ;;  %v5600_v29 = vsel %vm2054_vm11, %v5568_v20, %v10386_v21 }
 0x564   : > { %v5726_v44 = vsel %vm1923_vm8, %v10395_v59, %v10405_v13  ;;  %v5727_v14 = vsel %vm1923_vm8, %v10396_v56, %v10406_v54 }
 0x565   : > { %v15125_v10 = vpop.permute.xlu0 %10408  ;;  %v5631_v25 = vsel %vm2211_vm13, %v5599_v51, %v10400_v41  ;;  %v5632_v3 = vsel %vm2211_vm13, %v5600_v29, %v10401_v7 }
 0x566   : > { %v15127_v42 = vpop.permute.xlu1 %10418 }
 0x567   : > { %v10421_v46 = vunpack.i.h.bf16 %v15127_v42  ;;  %v10420_v2 = vunpack.i.l.bf16 %v15127_v42 }
 0x569   : > { %v15131_v61 = vpop.permute.xlu0 %10413 }
 0x56a   : > { %v15133_v37 = vpop.permute.xlu1 %10423 }
 0x56b   : > { %v10426_v54 = vunpack.i.h.bf16 %v15133_v37  ;;  %v10425_v13 = vunpack.i.l.bf16 %v15133_v37 }
 0x56d   : > { %v10434_v11 = vpop.permute.xlu0 %10433 }
 0x56e   : > { %v10429_v47 = vpop.permute.xlu1 %10428  ;;  %v10436_v60 = vunpack.i.h.bf16 %v10434_v11  ;;  %v10435_v53 = vunpack.i.l.bf16 %v10434_v11 }
 0x56f   : > { %v10431_v40 = vunpack.i.h.bf16 %v10429_v47  ;;  %v10430_v1 = vunpack.i.l.bf16 %v10429_v47 }
 0x571   : > { %v5759_v24 = vsel %vm2021_vm10, %v5727_v14, %v10431_v40  ;;  %v5758_v23 = vsel %vm2021_vm10, %v5726_v44, %v10430_v1  ;;  %v15147_v16 = vpop.permute.xlu0 %10438  ;;  %v5664_v40 = vsel %vm3995_vm12, %v5632_v3, %v10421_v46 }
 0x572   : > { %v10444_v6 = vpop.permute.xlu1 %10443  ;;  %v5790_v31 = vsel %vm545_vm6, %v5758_v23, %v10435_v53  ;;  %v5791_v62 = vsel %vm545_vm6, %v5759_v24, %v10436_v60  ;;  %v5663_v53 = vsel %vm3995_vm12, %v5631_v25, %v10420_v2  ;;  %v5697_v32 = vsel %vm5693_vm9, %v5664_v40, %v10426_v54 }
 0x573   : > { %v5823_v33 = vpack.c.bf16 %v5791_v62, %v5790_v31  ;;  %v10446_v9 = vunpack.i.h.bf16 %v10444_v6  ;;  %v10445_v26 = vunpack.i.l.bf16 %v10444_v6  ;;  %v5696_v30 = vsel %vm5693_vm9, %v5663_v53, %v10425_v13 }
 0x574   : > { %v5824_v48 = vpack.c.bf16 %v5697_v32, %v5696_v30  ;;  %v10411_v6 = vunpack.i.h.bf16 %v15125_v10  ;;  %v10410_v31 = vunpack.i.l.bf16 %v15125_v10  ;;  %v10416_v62 = vunpack.i.h.bf16 %v15131_v61 }
 0x575   : > { %8776 = vmatprep.mubr.msk.bf16.mxu0 %vm5969_vm3, %v5823_v33  ;;  %v15152_v55 = vpop.permute.xlu0 %10458  ;;  %v5729_v47 = vsel %vm1923_vm8, %v10426_v54, %v10446_v9  ;;  %v5728_v60 = vsel %vm1923_vm8, %v10425_v13, %v10445_v26  ;;  %v10415_v33 = vunpack.i.l.bf16 %v15131_v61  ;;  %v10440_v63 = vunpack.i.l.bf16 %v15147_v16 }
 0x576   : > { %v15154_v19 = vpop.permute.xlu1 %10448  ;;  %6054 = vmatmul.mubr.bf16.vlgmr.msra.gmra.mxu0 %v5822_v8  ;;  %v10441_v8 = vunpack.i.h.bf16 %v15147_v16  ;;  %v5570_v27 = vsel %vm489_vm0, %v14795_v49, %v10411_v6  ;;  %v5569_v7 = vsel %vm489_vm0, %v14791_v28, %v10410_v31  ;;  %v10461_v10 = vunpack.i.h.bf16 %v15152_v55 }
 0x577   : > { %v10460_v41 = vunpack.i.l.bf16 %v15152_v55  ;;  %v5601_v20 = vsel %vm2054_vm11, %v5569_v7, %v10415_v33  ;;  %v5602_v16 = vsel %vm2054_vm11, %v5570_v27, %v10416_v62 }
 0x578   : > { %v5634_v46 = vsel %vm2211_vm13, %v5602_v16, %v10441_v8  ;;  %v5633_v49 = vsel %vm2211_vm13, %v5601_v20, %v10440_v63 }
 0x579   : > { %v15162_v0 = vpop.permute.xlu0 %10463  ;;  %v5665_v13 = vsel %vm3995_vm12, %v5633_v49, %v10460_v41  ;;  %v5666_v25 = vsel %vm3995_vm12, %v5634_v46, %v10461_v10 }
 0x57a   : > { %v15164_v39 = vpop.permute.xlu1 %10453  ;;  %v10466_v35 = vunpack.i.h.bf16 %v15162_v0  ;;  %v10465_v22 = vunpack.i.l.bf16 %v15162_v0 }
 0x57d   : > { %v10474_v17 = vpop.permute.xlu0 %10473 }
 0x57e   : > { %v10469_v5 = vpop.permute.xlu1 %10468  ;;  %v10476_v56 = vunpack.i.h.bf16 %v10474_v17  ;;  %v10475_v59 = vunpack.i.l.bf16 %v10474_v17  ;;  %v5698_v17 = vsel %vm5693_vm9, %v5665_v13, %v10465_v22 }
 0x57f   : > { %v10471_v11 = vunpack.i.h.bf16 %v10469_v5  ;;  %v10470_v42 = vunpack.i.l.bf16 %v10469_v5  ;;  %v5699_v5 = vsel %vm5693_vm9, %v5666_v25, %v10466_v35 }
 0x581   : > { %v5761_v37 = vsel %vm2021_vm10, %v5729_v47, %v10471_v11  ;;  %v5760_v1 = vsel %vm2021_vm10, %v5728_v60, %v10470_v42  ;;  %v5826_v42 = vpack.c.bf16 %v5699_v5, %v5698_v17  ;;  %v15229_v60 = vld [vmem:[%s17853_s5] ss:$0 sm:$0xff] }
 0x582   : > { %v5792_v44 = vsel %vm545_vm6, %v5760_v1, %v10475_v59  ;;  %v5793_v14 = vsel %vm545_vm6, %v5761_v37, %v10476_v56 }
 0x583   : > { %v5825_v43 = vpack.c.bf16 %v5793_v14, %v5792_v44 }
 0x585   : > { %8777 = vmatprep.mubr.msk.bf16.mxu0 %vm5969_vm3, %v5825_v43  ;;  %v10484_v24 = vpop.permute.xlu0 %10483  ;;  %v15187_v23 = vpop.permute.xlu1 %10478 }
 0x586   : > { %6062 = vmatmul.mubr.bf16.gmra.mxu0 %v5824_v48  ;;  %v10486_v45 = vunpack.i.h.bf16 %v10484_v24  ;;  %v10485_v61 = vunpack.i.l.bf16 %v10484_v24 }
 0x588   : > { %v5730_v29 = vsel %vm1923_vm8, %v10465_v22, %v10485_v61  ;;  %v5731_v54 = vsel %vm1923_vm8, %v10466_v35, %v10486_v45 }
 0x589   : > { %v15189_v38 = vpop.permute.xlu0 %10488 }
 0x58a   : > { %v15191_v36 = vpop.permute.xlu1 %10498 }
 0x58d   : > { %v15199_v18 = vpop.permute.xlu0 %10493 }
 0x58e   : > { %v15201_v21 = vpop.permute.xlu1 %10503 }
 0x591   : > { %v10514_v2 = vpop.permute.xlu0 %10513 }
 0x592   : > { %v10509_v28 = vpop.permute.xlu1 %10508  ;;  %v10516_v9 = vunpack.i.h.bf16 %v10514_v2  ;;  %v10515_v26 = vunpack.i.l.bf16 %v10514_v2 }
 0x593   : > { %v10511_v51 = vunpack.i.h.bf16 %v10509_v28  ;;  %v10510_v55 = vunpack.i.l.bf16 %v10509_v28 }
 0x595   : > { %v5763_v0 = vsel %vm2021_vm10, %v5731_v54, %v10511_v51  ;;  %v5762_v3 = vsel %vm2021_vm10, %v5730_v29, %v10510_v55 }
 0x596   : > { %v5794_v56 = vsel %vm545_vm6, %v5762_v3, %v10515_v26  ;;  %v5795_v59 = vsel %vm545_vm6, %v5763_v0, %v10516_v9 }
 0x597   : > { %v5827_v11 = vpack.c.bf16 %v5795_v59, %v5794_v56 }
 0x599   : > { %8778 = vmatprep.mubr.msk.bf16.mxu0 %vm5969_vm3, %v5827_v11 }
 0x59a   : > { %6070 = vmatmul.mubr.bf16.gmra.mxu0 %v5826_v42 }
 0x59e   : > { %v4286_v47 = vpop.f32.mrf.mxu1 }
 0x59f   : > { %v4287_v53 = vadd.f32 %v15229_v60, %v4286_v47 }
 0x5a0   : > { %v4288_v40 = vpop.f32.mrf.mxu1 }
 0x5a1   : > { %vm4389_vm14 = vcmp.gt.f32.partialorder %v4287_v53, 0.0  ;;  %v4421_v37 = vmul.f32 0.1, %v4287_v53 }
 0x5a2   : > { %v4289_v1 = vpop.f32.mrf.mxu1 }
 0x5a3   : > { %v4453_v30 = vsel %vm4389_vm14, %v4287_v53, %v4421_v37  ;;  %v4290_v32 = vadd.f32 %v15229_v60, %v4289_v1 }
 0x5a4   : > { %4485 = vst.msk [vmem:[#allocation2 + $0x79] sm:$0xff] %vm1890_vm7, %v4453_v30  ;;  %v4291_v44 = vpop.f32.mrf.mxu1 }
 0x5a5   : > { %vm4390_vm5 = vcmp.gt.f32.partialorder %v4290_v32, 0.0  ;;  %v4422_v14 = vmul.f32 0.1, %v4290_v32 }
 0x5a7   : > { %v4294_v43 = vpop.f32.mrf.mxu1  ;;  %v4454_v48 = vsel %vm4390_vm5, %v4290_v32, %v4422_v14 }
 0x5a8   : > { %v4295_v24 = vadd.f32 %v15229_v60, %v4294_v43  ;;  %4486 = vst.msk [vmem:[#allocation2 + $0x81] sm:$0xff] %vm1890_vm7, %v4454_v48 }
 0x5a9   : > { %v4296_v6 = vpop.f32.mrf.mxu1 }
 0x5aa   : > { %vm4391_vm15 = vcmp.gt.f32.partialorder %v4295_v24, 0.0  ;;  %v4423_v31 = vmul.f32 0.1, %v4295_v24 }
 0x5ab   : > { %v4297_v62 = vpop.f32.mrf.mxu1  ;;  %v4524_v27 = vld [vmem:[#allocation2 + $0x78] sm:$0xff] }
 0x5ac   : > { %v4455_v33 = vsel %vm4391_vm15, %v4295_v24, %v4423_v31  ;;  %v4298_v8 = vadd.f32 %v15229_v60, %v4297_v62  ;;  %v4636_v16 = vrot.slane %v4524_v27, 1  ;;  %v4812_v29 = vrot.slane %v4524_v27, 2 }
 0x5ad   : > { %4487 = vst.msk [vmem:[#allocation2 + $0x91] sm:$0xff] %vm1890_vm7, %v4455_v33  ;;  %v4299_v63 = vpop.f32.mrf.mxu1 }
 0x5ae   : > { %vm4392_vm14 = vcmp.gt.f32.partialorder %v4298_v8, 0.0  ;;  %v4424_v7 = vmul.f32 0.1, %v4298_v8 }
 0x5af   : > { %v4302_v10 = vpop.f32.mrf.mxu1  ;;  %v4525_v61 = vld [vmem:[#allocation2 + $0x80] sm:$0xff]  ;;  %v4526_v20 = vld [vmem:[#allocation2 + $0x88] sm:$0x3] }
 0x5b0   : > { %v4456_v41 = vsel %vm4392_vm14, %v4298_v8, %v4424_v7  ;;  %v4303_v45 = vadd.f32 %v15229_v60, %v4302_v10  ;;  %v10517_v22 = vpack.i.bf16 %v4525_v61, %v4524_v27  ;;  %v4637_v46 = vrot.slane %v4525_v61, 1 }
 0x5b1   : > { %4488 = vst.msk [vmem:[#allocation2 + $0x99] sm:$0xff] %vm1890_vm7, %v4456_v41  ;;  %v4304_v35 = vpop.f32.mrf.mxu1  ;;  %v4639_v49 = vrot.slane %v4526_v20, 1  ;;  %v4813_v28 = vrot.slane %v4525_v61, 2  ;;  %v4815_v9 = vrot.slane %v4526_v20, 2 }
 0x5b2   : > { %vm4393_vm5 = vcmp.gt.f32.partialorder %v4303_v45, 0.0  ;;  %v4425_v2 = vmul.f32 0.1, %v4303_v45  ;;  %10518 = vrot.lane.b32.xlu0 %v10517_v22, %s18558_s18  ;;  %10523 = vrot.lane.b32.xlu1 %v10517_v22, %s18488_s17  ;;  %v4638_v51 = vsel %vm998_vm2, %v4636_v16, %v4637_v46 }
 0x5b3   : > { %v4305_v26 = vpop.f32.mrf.mxu1  ;;  %v4640_v55 = vsel %vm998_vm2, %v4637_v46, %v4639_v49  ;;  %v4814_v17 = vsel %vm1175_vm4, %v4812_v29, %v4813_v28  ;;  %v4816_v5 = vsel %vm1175_vm4, %v4813_v28, %v4815_v9 }
 0x5b4   : > { %v4457_v54 = vsel %vm4393_vm5, %v4303_v45, %v4425_v2  ;;  %v4306_v13 = vadd.f32 %v15229_v60, %v4305_v26  ;;  %v10537_v25 = vpack.i.bf16 %v4640_v55, %v4638_v51  ;;  %v10542_v47 = vpack.i.bf16 %v4816_v5, %v4814_v17  ;;  %v4527_v14 = vld [vmem:[#allocation2 + $0x90] sm:$0xff] }
 0x5b5   : > { %4489 = vst.msk [vmem:[#allocation2 + $0xa9] sm:$0xff] %vm1890_vm7, %v4457_v54  ;;  %v4307_v0 = vpop.f32.mrf.mxu1  ;;  %v4641_v33 = vrot.slane %v4527_v14, 1  ;;  %v4817_v35 = vrot.slane %v4527_v14, 2 }
 0x5b6   : > { %vm4394_vm15 = vcmp.gt.f32.partialorder %v4306_v13, 0.0  ;;  %v4426_v3 = vmul.f32 0.1, %v4306_v13  ;;  %10538 = vrot.lane.b32.xlu0 %v10537_v25, %s18549_s26  ;;  %10528 = vrot.lane.b32.xlu1 %v10537_v25, %s18534_s25 }
 0x5b7   : > { %v4310_v56 = vpop.f32.mrf.mxu1 }
 0x5b8   : > { %v4458_v59 = vsel %vm4394_vm15, %v4306_v13, %v4426_v3  ;;  %v4311_v11 = vadd.f32 %v15229_v60, %v4310_v56  ;;  %v4528_v37 = vld [vmem:[#allocation2 + $0x98] sm:$0xff]  ;;  %v4529_v1 = vld [vmem:[#allocation2 + $0xa0] sm:$0x3] }
 0x5b9   : > { %4490 = vst.msk [vmem:[#allocation2 + $0xb1] sm:$0xff] %vm1890_vm7, %v4458_v59  ;;  %v4312_v42 = vpop.f32.mrf.mxu1  ;;  %v4642_v48 = vrot.slane %v4528_v37, 1  ;;  %v4644_v24 = vrot.slane %v4529_v1, 1  ;;  %v10562_v63 = vpack.i.bf16 %v4528_v37, %v4527_v14  ;;  %v4818_v27 = vrot.slane %v4528_v37, 2 }
 0x5ba   : > { %vm4395_vm14 = vcmp.gt.f32.partialorder %v4311_v11, 0.0  ;;  %v4427_v53 = vmul.f32 0.1, %v4311_v11  ;;  %10543 = vrot.lane.b32.xlu0 %v10542_v47, %s18542_s22  ;;  %10533 = vrot.lane.b32.xlu1 %v10542_v47, %s18489_s24  ;;  %v4820_v7 = vrot.slane %v4529_v1, 2 }
 0x5bb   : > { %v4313_v40 = vpop.f32.mrf.mxu1  ;;  %v4643_v41 = vsel %vm998_vm2, %v4641_v33, %v4642_v48  ;;  %v4645_v45 = vsel %vm998_vm2, %v4642_v48, %v4644_v24  ;;  %v4819_v2 = vsel %vm1175_vm4, %v4817_v35, %v4818_v27 }
 0x5bc   : > { %v4459_v30 = vsel %vm4395_vm14, %v4311_v11, %v4427_v53  ;;  %v4314_v32 = vadd.f32 %v15229_v60, %v4313_v40  ;;  %v10567_v46 = vpack.i.bf16 %v4645_v45, %v4643_v41  ;;  %v4821_v28 = vsel %vm1175_vm4, %v4818_v27, %v4820_v7  ;;  %v4530_v56 = vld [vmem:[#allocation2 + $0xa8] sm:$0xff] }
 0x5bd   : > { %4491 = vst.msk [vmem:[#allocation2 + $0xc1] sm:$0xff] %vm1890_vm7, %v4459_v30  ;;  %v4315_v44 = vpop.f32.mrf.mxu1  ;;  %v10572_v29 = vpack.i.bf16 %v4821_v28, %v4819_v2  ;;  %v4646_v37 = vrot.slane %v4530_v56, 1 }
 0x5be   : > { %vm4396_vm5 = vcmp.gt.f32.partialorder %v4314_v32, 0.0  ;;  %v4428_v43 = vmul.f32 0.1, %v4314_v32  ;;  %10553 = vrot.lane.b32.xlu0 %v10542_v47, %s18554_s11  ;;  %10548 = vrot.lane.b32.xlu1 %v10537_v25, %s18474_s23 }
 0x5bf   : > { %v4318_v6 = vpop.f32.mrf.mxu1 }
 0x5c0   : > { %v4460_v31 = vsel %vm4396_vm5, %v4314_v32, %v4428_v43  ;;  %v4319_v62 = vadd.f32 %v15229_v60, %v4318_v6  ;;  %v4531_v25 = vld [vmem:[#allocation2 + $0xb0] sm:$0xff]  ;;  %v4532_v0 = vld [vmem:[#allocation2 + $0xb8] sm:$0x3] }
 0x5c1   : > { %4492 = vst.msk [vmem:[#allocation2 + $0xc9] sm:$0xff] %vm1890_vm7, %v4460_v31  ;;  %v4320_v8 = vpop.f32.mrf.mxu1  ;;  %v4647_v11 = vrot.slane %v4531_v25, 1  ;;  %v4649_v42 = vrot.slane %v4532_v0, 1  ;;  %v10597_v30 = vpack.i.bf16 %v4531_v25, %v4530_v56  ;;  %v4823_v32 = vrot.slane %v4531_v25, 2 }
 0x5c2   : > { %vm4397_vm15 = vcmp.gt.f32.partialorder %v4319_v62, 0.0  ;;  %v4429_v10 = vmul.f32 0.1, %v4319_v62  ;;  %10563 = vrot.lane.b32.xlu0 %v10562_v63, %s18488_s17  ;;  %10558 = vrot.lane.b32.xlu1 %v10562_v63, %s18558_s18  ;;  %v4825_v44 = vrot.slane %v4532_v0, 2 }
 0x5c3   : > { %v4321_v61 = vpop.f32.mrf.mxu1  ;;  %v4648_v43 = vsel %vm998_vm2, %v4646_v37, %v4647_v11  ;;  %v4650_v48 = vsel %vm998_vm2, %v4647_v11, %v4649_v42 }
 0x5c4   : > { %v4461_v20 = vsel %vm4397_vm15, %v4319_v62, %v4429_v10  ;;  %v4322_v16 = vadd.f32 %v15229_v60, %v4321_v61  ;;  %v4822_v62 = vrot.slane %v4530_v56, 2  ;;  %v10617_v8 = vpack.i.bf16 %v4650_v48, %v4648_v43 }
 0x5c5   : > { %4493 = vst.msk [vmem:[#allocation2 + $0xd9] sm:$0xff] %vm1890_vm7, %v4461_v20  ;;  %v4323_v22 = vpop.f32.mrf.mxu1  ;;  %v4826_v7 = vsel %vm1175_vm4, %v4823_v32, %v4825_v44 }
 0x5c6   : > { %vm4398_vm14 = vcmp.gt.f32.partialorder %v4322_v16, 0.0  ;;  %v4430_v49 = vmul.f32 0.1, %v4322_v16  ;;  %10568 = vrot.lane.b32.xlu0 %v10567_v46, %s18534_s25  ;;  %10578 = vrot.lane.b32.xlu1 %v10567_v46, %s18549_s26  ;;  %v4824_v27 = vsel %vm1175_vm4, %v4822_v62, %v4823_v32 }
 0x5c7   : > { %v4326_v9 = vpop.f32.mrf.mxu1  ;;  %v10622_v20 = vpack.i.bf16 %v4826_v7, %v4824_v27 }
 0x5c8   : > { %v4462_v26 = vsel %vm4398_vm14, %v4322_v16, %v4430_v49  ;;  %v4327_v51 = vadd.f32 %v15229_v60, %v4326_v9  ;;  %v4534_v22 = vld [vmem:[#allocation2 + $0xc8] sm:$0xff]  ;;  %v4533_v9 = vld [vmem:[#allocation2 + $0xc0] sm:$0xff] }
 0x5c9   : > { %4494 = vst.msk [vmem:[#allocation2 + $0xe1] sm:$0xff] %vm1890_vm7, %v4462_v26  ;;  %v4328_v55 = vpop.f32.mrf.mxu1  ;;  %v4651_v25 = vrot.slane %v4533_v9, 1 }
 0x5ca   : > { %vm4399_vm5 = vcmp.gt.f32.partialorder %v4327_v51, 0.0  ;;  %v4431_v54 = vmul.f32 0.1, %v4327_v51  ;;  %10573 = vrot.lane.b32.xlu0 %v10572_v29, %s18489_s24  ;;  %10583 = vrot.lane.b32.xlu1 %v10572_v29, %s18542_s22 }
 0x5cb   : > { %v4329_v13 = vpop.f32.mrf.mxu1 }
 0x5cc   : > { %v4463_v3 = vsel %vm4399_vm5, %v4327_v51, %v4431_v54  ;;  %v4330_v17 = vadd.f32 %v15229_v60, %v4329_v13  ;;  %v4652_v51 = vrot.slane %v4534_v22, 1 }
 0x5cd   : > { %4495 = vst.msk [vmem:[#allocation2 + $0xf1] sm:$0xff] %vm1890_vm7, %v4463_v3  ;;  %v4331_v5 = vpop.f32.mrf.mxu1  ;;  %v10642_v3 = vpack.i.bf16 %v4534_v22, %v4533_v9 }
 0x5ce   : > { %vm4400_vm15 = vcmp.gt.f32.partialorder %v4330_v17, 0.0  ;;  %v4432_v59 = vmul.f32 0.1, %v4330_v17  ;;  %10593 = vrot.lane.b32.xlu0 %v10572_v29, %s18554_s11  ;;  %10588 = vrot.lane.b32.xlu1 %v10567_v46, %s18474_s23  ;;  %v4535_v46 = vld [vmem:[#allocation2 + $0xd0] sm:$0x3] }
 0x5cf   : > { %v4334_v47 = vpop.f32.mrf.mxu1  ;;  %v4654_v55 = vrot.slane %v4535_v46, 1  ;;  %v4830_v5 = vrot.slane %v4535_v46, 2 }
 0x5d0   : > { %v4464_v53 = vsel %vm4400_vm15, %v4330_v17, %v4432_v59  ;;  %v4335_v40 = vadd.f32 %v15229_v60, %v4334_v47  ;;  %v4828_v17 = vrot.slane %v4534_v22, 2  ;;  %v4653_v59 = vsel %vm998_vm2, %v4651_v25, %v4652_v51 }
 0x5d1   : > { %4496 = vst.msk [vmem:[#allocation2 + $0xf9] sm:$0xff] %vm1890_vm7, %v4464_v53  ;;  %v4336_v1 = vpop.f32.mrf.mxu1  ;;  %v4655_v11 = vsel %vm998_vm2, %v4652_v51, %v4654_v55 }
 0x5d2   : > { %vm4401_vm14 = vcmp.gt.f32.partialorder %v4335_v40, 0.0  ;;  %v4433_v14 = vmul.f32 0.1, %v4335_v40  ;;  %10598 = vrot.lane.b32.xlu0 %v10597_v30, %s18558_s18  ;;  %10603 = vrot.lane.b32.xlu1 %v10597_v30, %s18488_s17  ;;  %v10647_v1 = vpack.i.bf16 %v4655_v11, %v4653_v59  ;;  %v4831_v44 = vsel %vm1175_vm4, %v4828_v17, %v4830_v5 }
 0x5d3   : > { %v4337_v24 = vpop.f32.mrf.mxu1 }
 0x5d4   : > { %v4465_v6 = vsel %vm4401_vm14, %v4335_v40, %v4433_v14  ;;  %v4338_v31 = vadd.f32 %v15229_v60, %v4337_v24  ;;  %v4827_v40 = vrot.slane %v4533_v9, 2 }
 0x5d5   : > { %4497 = vst.msk [vmem:[#allocation2 + $0x109] sm:$0xff] %vm1890_vm7, %v4465_v6  ;;  %v4339_v33 = vpop.f32.mrf.mxu1 }
 0x5d6   : > { %vm4402_vm5 = vcmp.gt.f32.partialorder %v4338_v31, 0.0  ;;  %v4434_v63 = vmul.f32 0.1, %v4338_v31  ;;  %10618 = vrot.lane.b32.xlu0 %v10617_v8, %s18549_s26  ;;  %10608 = vrot.lane.b32.xlu1 %v10617_v8, %s18534_s25  ;;  %v4829_v32 = vsel %vm1175_vm4, %v4827_v40, %v4828_v17  ;;  %v4537_v33 = vld [vmem:[#allocation2 + $0xe0] sm:$0xff] }
 0x5d7   : > { %v4342_v10 = vpop.f32.mrf.mxu1  ;;  %v10652_v6 = vpack.i.bf16 %v4831_v44, %v4829_v32 }
 0x5d8   : > { %v4466_v41 = vsel %vm4402_vm5, %v4338_v31, %v4434_v63  ;;  %v4343_v45 = vadd.f32 %v15229_v60, %v4342_v10  ;;  %v4536_v10 = vld [vmem:[#allocation2 + $0xd8] sm:$0xff] }
 0x5d9   : > { %4498 = vst.msk [vmem:[#allocation2 + $0x111] sm:$0xff] %vm1890_vm7, %v4466_v41  ;;  %v4344_v61 = vpop.f32.mrf.mxu1  ;;  %v4656_v22 = vrot.slane %v4536_v10, 1 }
 0x5da   : > { %vm4403_vm15 = vcmp.gt.f32.partialorder %v4343_v45, 0.0  ;;  %v4435_v16 = vmul.f32 0.1, %v4343_v45  ;;  %10623 = vrot.lane.b32.xlu0 %v10622_v20, %s18542_s22  ;;  %10613 = vrot.lane.b32.xlu1 %v10622_v20, %s18489_s24 }
 0x5db   : > { %v4345_v35 = vpop.f32.mrf.mxu1 }
 0x5dc   : > { %v4467_v49 = vsel %vm4403_vm15, %v4343_v45, %v4435_v16  ;;  %v4346_v2 = vadd.f32 %v15229_v60, %v4345_v35  ;;  %v4657_v45 = vrot.slane %v4537_v33, 1 }
 0x5dd   : > { %4499 = vst.msk [vmem:[#allocation2 + $0x121] sm:$0xff] %vm1890_vm7, %v4467_v49  ;;  %v4347_v28 = vpop.f32.mrf.mxu1  ;;  %v10677_v49 = vpack.i.bf16 %v4537_v33, %v4536_v10 }
 0x5de   : > { %vm4404_vm14 = vcmp.gt.f32.partialorder %v4346_v2, 0.0  ;;  %v4436_v26 = vmul.f32 0.1, %v4346_v2  ;;  %10633 = vrot.lane.b32.xlu0 %v10622_v20, %s18554_s11  ;;  %10628 = vrot.lane.b32.xlu1 %v10617_v8, %s18474_s23  ;;  %v4538_v8 = vld [vmem:[#allocation2 + $0xe8] sm:$0x3] }
 0x5df   : > { %v4350_v29 = vpop.f32.mrf.mxu1  ;;  %v4659_v61 = vrot.slane %v4538_v8, 1  ;;  %v4835_v28 = vrot.slane %v4538_v8, 2 }
 0x5e0   : > { %v4468_v54 = vsel %vm4404_vm14, %v4346_v2, %v4436_v26  ;;  %v4351_v13 = vadd.f32 %v15229_v60, %v4350_v29  ;;  %v4833_v2 = vrot.slane %v4537_v33, 2  ;;  %v4658_v26 = vsel %vm998_vm2, %v4656_v22, %v4657_v45 }
 0x5e1   : > { %4500 = vst.msk [vmem:[#allocation2 + $0x129] sm:$0xff] %vm1890_vm7, %v4468_v54  ;;  %v4352_v0 = vpop.f32.mrf.mxu1  ;;  %v4660_v51 = vsel %vm998_vm2, %v4657_v45, %v4659_v61  ;;  %v4543_v61 = vld [vmem:[#allocation2 + $0x110] sm:$0xff] }
 0x5e2   : > { %vm4405_vm5 = vcmp.gt.f32.partialorder %v4351_v13, 0.0  ;;  %v4437_v56 = vmul.f32 0.1, %v4351_v13  ;;  %10643 = vrot.lane.b32.xlu0 %v10642_v3, %s18488_s17  ;;  %10638 = vrot.lane.b32.xlu1 %v10642_v3, %s18558_s18  ;;  %v10697_v0 = vpack.i.bf16 %v4660_v51, %v4658_v26  ;;  %v4836_v5 = vsel %vm1175_vm4, %v4833_v2, %v4835_v28 }
 0x5e3   : > { %v4353_v42 = vpop.f32.mrf.mxu1 }
 0x5e4   : > { %v4469_v47 = vsel %vm4405_vm5, %v4351_v13, %v4437_v56  ;;  %v4354_v53 = vadd.f32 %v15229_v60, %v4353_v42  ;;  %v4832_v13 = vrot.slane %v4536_v10, 2 }
 0x5e5   : > { %4501 = vst.msk [vmem:[#allocation2 + $0x139] sm:$0xff] %vm1890_vm7, %v4469_v47  ;;  %v4355_v37 = vpop.f32.mrf.mxu1 }
 0x5e6   : > { %vm4406_vm15 = vcmp.gt.f32.partialorder %v4354_v53, 0.0  ;;  %v4438_v30 = vmul.f32 0.1, %v4354_v53  ;;  %10648 = vrot.lane.b32.xlu0 %v10647_v1, %s18534_s25  ;;  %10658 = vrot.lane.b32.xlu1 %v10647_v1, %s18549_s26  ;;  %v4834_v17 = vsel %vm1175_vm4, %v4832_v13, %v4833_v2  ;;  %v4540_v37 = vld [vmem:[#allocation2 + $0xf8] sm:$0xff] }
 0x5e7   : > { %v4358_v14 = vpop.f32.mrf.mxu1  ;;  %v10702_v47 = vpack.i.bf16 %v4836_v5, %v4834_v17  ;;  %v4838_v8 = vrot.slane %v4540_v37, 2 }
 0x5e8   : > { %v4470_v43 = vsel %vm4406_vm15, %v4354_v53, %v4438_v30  ;;  %v4359_v48 = vadd.f32 %v15229_v60, %v4358_v14  ;;  %v4539_v14 = vld [vmem:[#allocation2 + $0xf0] sm:$0xff] }
 0x5e9   : > { %4502 = vst.msk [vmem:[#allocation2 + $0x141] sm:$0xff] %vm1890_vm7, %v4470_v43  ;;  %v4360_v24 = vpop.f32.mrf.mxu1 }
 0x5ea   : > { %vm4407_vm14 = vcmp.gt.f32.partialorder %v4359_v48, 0.0  ;;  %v4439_v31 = vmul.f32 0.1, %v4359_v48  ;;  %10653 = vrot.lane.b32.xlu0 %v10652_v6, %s18489_s24  ;;  %10663 = vrot.lane.b32.xlu1 %v10652_v6, %s18542_s22 }
 0x5eb   : > { %v4361_v62 = vpop.f32.mrf.mxu1 }
 0x5ec   : > { %v4471_v63 = vsel %vm4407_vm14, %v4359_v48, %v4439_v31  ;;  %v4362_v27 = vadd.f32 %v15229_v60, %v4361_v62  ;;  %v4662_v48 = vrot.slane %v4540_v37, 1  ;;  %v4661_v31 = vrot.slane %v4539_v14, 1 }
 0x5ed   : > { %4503 = vst.msk [vmem:[#allocation2 + $0x151] sm:$0xff] %vm1890_vm7, %v4471_v63  ;;  %v4363_v7 = vpop.f32.mrf.mxu1  ;;  %v10722_v62 = vpack.i.bf16 %v4540_v37, %v4539_v14 }
 0x5ee   : > { %vm4408_vm5 = vcmp.gt.f32.partialorder %v4362_v27, 0.0  ;;  %v4440_v41 = vmul.f32 0.1, %v4362_v27  ;;  %10673 = vrot.lane.b32.xlu0 %v10652_v6, %s18554_s11  ;;  %10668 = vrot.lane.b32.xlu1 %v10647_v1, %s18474_s23  ;;  %v4541_v1 = vld [vmem:[#allocation2 + $0x100] sm:$0x3]  ;;  %v4663_v33 = vsel %vm998_vm2, %v4661_v31, %v4662_v48 }
 0x5ef   : > { %v4366_v20 = vpop.f32.mrf.mxu1  ;;  %v4664_v24 = vrot.slane %v4541_v1, 1  ;;  %v4840_v63 = vrot.slane %v4541_v1, 2 }
 0x5f0   : > { %v4472_v16 = vsel %vm4408_vm5, %v4362_v27, %v4440_v41  ;;  %v4367_v35 = vadd.f32 %v15229_v60, %v4366_v20  ;;  %v4837_v27 = vrot.slane %v4539_v14, 2  ;;  %v4544_v20 = vld [vmem:[#allocation2 + $0x118] sm:$0x3]  ;;  %v10451_v14 = vunpack.i.h.bf16 %v15154_v19 }
 0x5f1   : > { %4504 = vst.msk [vmem:[#allocation2 + $0x159] sm:$0xff] %vm1890_vm7, %v4472_v16  ;;  %v4368_v46 = vpop.f32.mrf.mxu1  ;;  %v4841_v41 = vsel %vm1175_vm4, %v4838_v8, %v4840_v63  ;;  %v4542_v16 = vld [vmem:[#allocation2 + $0x108] sm:$0xff]  ;;  %v4669_v22 = vrot.slane %v4544_v20, 1  ;;  %v4845_v26 = vrot.slane %v4544_v20, 2  ;;  %v10480_v63 = vunpack.i.l.bf16 %v15187_v23 }
 0x5f2   : > { %vm4409_vm15 = vcmp.gt.f32.partialorder %v4367_v35, 0.0  ;;  %v4441_v9 = vmul.f32 0.1, %v4367_v35  ;;  %10678 = vrot.lane.b32.xlu0 %v10677_v49, %s18558_s18  ;;  %10683 = vrot.lane.b32.xlu1 %v10677_v49, %s18488_s17  ;;  %v4839_v10 = vsel %vm1175_vm4, %v4837_v27, %v4838_v8  ;;  %v4666_v46 = vrot.slane %v4542_v16, 1 }
 0x5f3   : > { %v4369_v55 = vpop.f32.mrf.mxu1  ;;  %v10732_v45 = vpack.i.bf16 %v4841_v41, %v4839_v10  ;;  %v10757_v49 = vpack.i.bf16 %v4543_v61, %v4542_v16  ;;  %v4842_v51 = vrot.slane %v4542_v16, 2  ;;  %v10456_v8 = vunpack.i.h.bf16 %v15164_v39  ;;  %v11026_v41 = vld [vmem:[#allocation2 + $0x48] sm:$0xff] }
 0x5f4   : > { %v4473_v29 = vsel %vm4409_vm15, %v4367_v35, %v4441_v9  ;;  %v4370_v54 = vadd.f32 %v15229_v60, %v4369_v55  ;;  %v4667_v35 = vrot.slane %v4543_v61, 1  ;;  %v4843_v9 = vrot.slane %v4543_v61, 2 }
 0x5f5   : > { %4505 = vst.msk [vmem:[#allocation2 + $0x169] sm:$0xff] %vm1890_vm7, %v4473_v29  ;;  %v4371_v25 = vpop.f32.mrf.mxu1  ;;  %v10481_v20 = vunpack.i.h.bf16 %v15187_v23 }
 0x5f6   : > { %vm4410_vm14 = vcmp.gt.f32.partialorder %v4370_v54, 0.0  ;;  %v4442_v3 = vmul.f32 0.1, %v4370_v54  ;;  %10698 = vrot.lane.b32.xlu0 %v10697_v0, %s18549_s26  ;;  %10688 = vrot.lane.b32.xlu1 %v10697_v0, %s18534_s25  ;;  %v4668_v2 = vsel %vm998_vm2, %v4666_v46, %v4667_v35  ;;  %v4670_v28 = vsel %vm998_vm2, %v4667_v35, %v4669_v22  ;;  %v4546_v25 = vld [vmem:[#allocation2 + $0x128] sm:$0xff] }
 0x5f7   : > { %v4374_v56 = vpop.f32.mrf.mxu1  ;;  %v10777_v55 = vpack.i.bf16 %v4670_v28, %v4668_v2  ;;  %v4844_v29 = vsel %vm1175_vm4, %v4842_v51, %v4843_v9  ;;  %v4672_v17 = vrot.slane %v4546_v25, 1  ;;  %v10501_v51 = vunpack.i.h.bf16 %v15191_v36 }
 0x5f8   : > { %v4474_v59 = vsel %vm4410_vm14, %v4370_v54, %v4442_v3  ;;  %v4375_v11 = vadd.f32 %v15229_v60, %v4374_v56  ;;  %v4846_v54 = vsel %vm1175_vm4, %v4843_v9, %v4845_v26  ;;  %v4545_v3 = vld [vmem:[#allocation2 + $0x120] sm:$0xff] }
 0x5f9   : > { %4506 = vst.msk [vmem:[#allocation2 + $0x171] sm:$0xff] %vm1890_vm7, %v4474_v59  ;;  %v4376_v42 = vpop.f32.mrf.mxu1  ;;  %v10782_v13 = vpack.i.bf16 %v4846_v54, %v4844_v29  ;;  %v4671_v56 = vrot.slane %v4545_v3, 1  ;;  %v10802_v59 = vpack.i.bf16 %v4546_v25, %v4545_v3 }
 0x5fa   : > { %vm4411_vm5 = vcmp.gt.f32.partialorder %v4375_v11, 0.0  ;;  %v4443_v53 = vmul.f32 0.1, %v4375_v11  ;;  %10703 = vrot.lane.b32.xlu0 %v10702_v47, %s18542_s22  ;;  %10693 = vrot.lane.b32.xlu1 %v10702_v47, %s18489_s24 }
 0x5fb   : > { %v4377_v40 = vpop.f32.mrf.mxu1 }
 0x5fc   : > { %v4475_v30 = vsel %vm4411_vm5, %v4375_v11, %v4443_v53  ;;  %v4378_v32 = vadd.f32 %v15229_v60, %v4377_v40  ;;  %v4665_v60 = vsel %vm998_vm2, %v4662_v48, %v4664_v24  ;;  %v4673_v11 = vsel %vm998_vm2, %v4671_v56, %v4672_v17  ;;  %v4549_v48 = vld [vmem:[#allocation2 + $0x140] sm:$0xff]  ;;  %v4550_v24 = vld [vmem:[#allocation2 + $0x148] sm:$0x3] }
 0x5fd   : > { %4507 = vst.msk [vmem:[#allocation2 + $0x181] sm:$0xff] %vm1890_vm7, %v4475_v30  ;;  %v4379_v44 = vpop.f32.mrf.mxu1  ;;  %v10727_v7 = vpack.i.bf16 %v4665_v60, %v4663_v33  ;;  %v4847_v40 = vrot.slane %v4545_v3, 2  ;;  %v4548_v60 = vld [vmem:[#allocation2 + $0x138] sm:$0xff]  ;;  %v4677_v27 = vrot.slane %v4549_v48, 1  ;;  %v4853_v46 = vrot.slane %v4549_v48, 2 }
 0x5fe   : > { %vm4412_vm15 = vcmp.gt.f32.partialorder %v4378_v32, 0.0  ;;  %v4444_v43 = vmul.f32 0.1, %v4378_v32  ;;  %10708 = vrot.lane.b32.xlu0 %v10697_v0, %s18474_s23  ;;  %10713 = vrot.lane.b32.xlu1 %v10702_v47, %s18554_s11  ;;  %v4547_v0 = vld [vmem:[#allocation2 + $0x130] sm:$0x3]  ;;  %v4848_v47 = vrot.slane %v4546_v25, 2  ;;  %v10505_v25 = vunpack.i.l.bf16 %v15201_v21 }
 0x5ff   : > { %v4674_v5 = vrot.slane %v4547_v0, 1  ;;  %v4850_v53 = vrot.slane %v4547_v0, 2  ;;  %v4676_v16 = vrot.slane %v4548_v60, 1  ;;  %v4852_v29 = vrot.slane %v4548_v60, 2 }
 0x600   : > { %v4476_v6 = vsel %vm4412_vm15, %v4378_v32, %v4444_v43  ;;  %v4849_v32 = vsel %vm1175_vm4, %v4847_v40, %v4848_v47  ;;  %v10450_v43 = vunpack.i.l.bf16 %v15154_v19  ;;  %v4679_v19 = vrot.slane %v4550_v24, 1 }
 0x601   : > { %4508 = vst.msk [vmem:[#allocation2 + $0x189] sm:$0xff] %vm1890_vm7, %v4476_v6  ;;  %v4675_v42 = vsel %vm998_vm2, %v4672_v17, %v4674_v5  ;;  %v4851_v44 = vsel %vm1175_vm4, %v4848_v47, %v4850_v53  ;;  %v10455_v6 = vunpack.i.l.bf16 %v15164_v39  ;;  %v10500_v39 = vunpack.i.l.bf16 %v15191_v36 }
 0x602   : > { %10723 = vrot.lane.b32.xlu0 %v10722_v62, %s18488_s17  ;;  %10718 = vrot.lane.b32.xlu1 %v10722_v62, %s18558_s18  ;;  %v10807_v30 = vpack.i.bf16 %v4675_v42, %v4673_v11  ;;  %v10812_v33 = vpack.i.bf16 %v4851_v44, %v4849_v32  ;;  %v4678_v9 = vsel %vm998_vm2, %v4676_v16, %v4677_v27  ;;  %v10491_v40 = vunpack.i.h.bf16 %v15189_v38 }
 0x603   : > { %v4680_v26 = vsel %vm998_vm2, %v4677_v27, %v4679_v19  ;;  %v10837_v5 = vpack.i.bf16 %v4549_v48, %v4548_v60  ;;  %v4854_v36 = vsel %vm1175_vm4, %v4852_v29, %v4853_v46  ;;  %v10490_v27 = vunpack.i.l.bf16 %v15189_v38  ;;  %v15428_v19 = vld [vmem:[%s17855_s7] ss:$0 sm:$0xff] }
 0x604   : > { %v10847_v56 = vpack.i.bf16 %v4680_v26, %v4678_v9  ;;  %v11028_v26 = vld [vmem:[#allocation2 + $0x60] sm:$0xff] }
 0x606   : > { %10728 = vrot.lane.b32.xlu0 %v10727_v7, %s18534_s25  ;;  %10738 = vrot.lane.b32.xlu1 %v10727_v7, %s18549_s26 }
 0x60a   : > { %10733 = vrot.lane.b32.xlu0 %v10732_v45, %s18489_s24  ;;  %10743 = vrot.lane.b32.xlu1 %v10732_v45, %s18542_s22 }
 0x60e   : > { %10753 = vrot.lane.b32.xlu0 %v10732_v45, %s18554_s11  ;;  %10748 = vrot.lane.b32.xlu1 %v10727_v7, %s18474_s23  ;;  %v11025_v7 = vld [vmem:[#allocation2 + $0x50] sm:$0xff]  ;;  %v5571_v45 = vsel %vm489_vm0, %v11026_v41, %v10450_v43  ;;  %v10495_v41 = vunpack.i.l.bf16 %v15199_v18 }
 0x60f   : > { %v5572_v10 = vsel %vm489_vm0, %v11025_v7, %v10451_v14  ;;  %v5603_v61 = vsel %vm2054_vm11, %v5571_v45, %v10455_v6  ;;  %v11027_v7 = vld [vmem:[#allocation2 + $0x68] sm:$0xff] }
 0x610   : > { %v5604_v2 = vsel %vm2054_vm11, %v5572_v10, %v10456_v8  ;;  %v5635_v28 = vsel %vm2211_vm13, %v5603_v61, %v10480_v63  ;;  %v4552_v8 = vld [vmem:[#allocation2 + $0x158] sm:$0xff]  ;;  %v4553_v63 = vld [vmem:[#allocation2 + $0x160] sm:$0x3]  ;;  %v5574_v10 = vsel %vm489_vm0, %v11027_v7, %v10491_v40  ;;  %v4551_v61 = vld [vmem:[#allocation2 + $0x150] sm:$0xff] }
 0x611   : > { %v5636_v54 = vsel %vm2211_vm13, %v5604_v2, %v10481_v20  ;;  %v5667_v0 = vsel %vm3995_vm12, %v5635_v28, %v10500_v39  ;;  %v4682_v38 = vrot.slane %v4552_v8, 1  ;;  %v4684_v16 = vrot.slane %v4553_v63, 1 }
 0x612   : > { %10758 = vrot.lane.b32.xlu0 %v10757_v49, %s18558_s18  ;;  %10763 = vrot.lane.b32.xlu1 %v10757_v49, %s18488_s17  ;;  %v4855_v49 = vrot.slane %v4550_v24, 2  ;;  %v5700_v14 = vsel %vm5693_vm9, %v5667_v0, %v10505_v25  ;;  %v4860_v9 = vrot.slane %v4553_v63, 2  ;;  %v4681_v29 = vrot.slane %v4551_v61, 1 }
 0x616   : > { %10778 = vrot.lane.b32.xlu0 %v10777_v55, %s18549_s26  ;;  %10768 = vrot.lane.b32.xlu1 %v10777_v55, %s18534_s25 }
 0x61a   : > { %10783 = vrot.lane.b32.xlu0 %v10782_v13, %s18542_s22  ;;  %10773 = vrot.lane.b32.xlu1 %v10782_v13, %s18489_s24 }
 0x61e   : > { %10788 = vrot.lane.b32.xlu0 %v10777_v55, %s18474_s23  ;;  %10793 = vrot.lane.b32.xlu1 %v10782_v13, %s18554_s11  ;;  %v10506_v13 = vunpack.i.h.bf16 %v15201_v21 }
 0x622   : > { %10803 = vrot.lane.b32.xlu0 %v10802_v59, %s18488_s17  ;;  %10798 = vrot.lane.b32.xlu1 %v10802_v59, %s18558_s18  ;;  %v4856_v59 = vsel %vm1175_vm4, %v4853_v46, %v4855_v49  ;;  %v4858_v46 = vrot.slane %v4552_v8, 2 }
 0x623   : > { %v15420_v6 = vpack.i.bf16 %v4856_v59, %v4854_v36 }
 0x624   : > { %v15367_v37 = vpop.permute.xlu0 %10518  ;;  %v10524_v1 = vpop.permute.xlu1 %10523 }
 0x625   : > { %v10526_v23 = vunpack.i.h.bf16 %v10524_v1  ;;  %v10525_v55 = vunpack.i.l.bf16 %v10524_v1  ;;  %v10520_v36 = vunpack.i.l.bf16 %v15367_v37  ;;  %v10521_v40 = vunpack.i.h.bf16 %v15367_v37 }
 0x626   : > { %10808 = vrot.lane.b32.xlu0 %v10807_v30, %s18534_s25  ;;  %10818 = vrot.lane.b32.xlu1 %v10807_v30, %s18549_s26 }
 0x627   : > { %v5732_v1 = vsel %vm1923_vm8, %v10505_v25, %v10525_v55  ;;  %v5733_v21 = vsel %vm1923_vm8, %v10506_v13, %v10526_v23  ;;  %v10496_v23 = vunpack.i.h.bf16 %v15199_v18 }
 0x628   : > { %v15376_v31 = vpop.permute.xlu0 %10538  ;;  %v15378_v62 = vpop.permute.xlu1 %10528 }
 0x62a   : > { %10813 = vrot.lane.b32.xlu0 %v10812_v33, %s18489_s24  ;;  %10823 = vrot.lane.b32.xlu1 %v10812_v33, %s18542_s22 }
 0x62c   : > { %v15389_v35 = vpop.permute.xlu0 %10543  ;;  %v15391_v22 = vpop.permute.xlu1 %10533 }
 0x62e   : > { %10833 = vrot.lane.b32.xlu0 %v10812_v33, %s18554_s11  ;;  %10828 = vrot.lane.b32.xlu1 %v10807_v30, %s18474_s23  ;;  %v5668_v30 = vsel %vm3995_vm12, %v5636_v54, %v10501_v51  ;;  %v5573_v51 = vsel %vm489_vm0, %v11028_v26, %v10490_v27  ;;  %v4857_v54 = vrot.slane %v4551_v61, 2 }
 0x62f   : > { %v5701_v43 = vsel %vm5693_vm9, %v5668_v30, %v10506_v13  ;;  %v5605_v13 = vsel %vm2054_vm11, %v5573_v51, %v10495_v41 }
 0x630   : > { %v10554_v3 = vpop.permute.xlu0 %10553  ;;  %v10549_v17 = vpop.permute.xlu1 %10548  ;;  %v5828_v39 = vpack.c.bf16 %v5701_v43, %v5700_v14  ;;  %v4859_v18 = vsel %vm1175_vm4, %v4857_v54, %v4858_v46  ;;  %v10540_v14 = vunpack.i.l.bf16 %v15376_v31 }
 0x631   : > { %v10556_v11 = vunpack.i.h.bf16 %v10554_v3  ;;  %v10555_v42 = vunpack.i.l.bf16 %v10554_v3  ;;  %v10551_v47 = vunpack.i.h.bf16 %v10549_v17  ;;  %v10550_v53 = vunpack.i.l.bf16 %v10549_v17 }
 0x632   : > { %10838 = vrot.lane.b32.xlu0 %v10837_v5, %s18558_s18  ;;  %10848 = vrot.lane.b32.xlu1 %v10847_v56, %s18534_s25  ;;  %v10877_v3 = vpack.i.bf16 %v4552_v8, %v4551_v61  ;;  %v4683_v17 = vsel %vm998_vm2, %v4681_v29, %v4682_v38  ;;  %v4554_v29 = vld [vmem:[#allocation2 + $0x168] sm:$0xff] }
 0x633   : > { %v5764_v32 = vsel %vm2021_vm10, %v5732_v1, %v10550_v53  ;;  %v5765_v44 = vsel %vm2021_vm10, %v5733_v21, %v10551_v47  ;;  %v4861_v53 = vsel %vm1175_vm4, %v4858_v46, %v4860_v9 }
 0x634   : > { %v15416_v48 = vpop.permute.xlu0 %10563  ;;  %v15418_v24 = vpop.permute.xlu1 %10558  ;;  %v5796_v33 = vsel %vm545_vm6, %v5764_v32, %v10555_v42  ;;  %v5797_v60 = vsel %vm545_vm6, %v5765_v44, %v10556_v11  ;;  %v10541_v44 = vunpack.i.h.bf16 %v15376_v31  ;;  %v15466_v37 = vpack.i.bf16 %v4861_v53, %v4859_v18 }
 0x635   : > { %v5829_v45 = vpack.c.bf16 %v5797_v60, %v5796_v33  ;;  %v10566_v21 = vunpack.i.h.bf16 %v15416_v48  ;;  %v10565_v30 = vunpack.i.l.bf16 %v15416_v48  ;;  %v5637_v33 = vsel %vm2211_vm13, %v5605_v13, %v10520_v36 }
 0x636   : > { %10843 = vrot.lane.b32.xlu0 %v10837_v5, %s18488_s17  ;;  %10853 = vrot.lane.b32.xlu1 %v15420_v6, %s18489_s24  ;;  %v6055_v20 = vpop.f32.mrf.mxu0  ;;  %v4685_v5 = vsel %vm998_vm2, %v4682_v38, %v4684_v16  ;;  %v10546_v60 = vunpack.i.h.bf16 %v15389_v35  ;;  %v10545_v48 = vunpack.i.l.bf16 %v15389_v35  ;;  %v4555_v35 = vld [vmem:[#allocation2 + $0x170] sm:$0xff]  ;;  %v5669_v46 = vsel %vm3995_vm12, %v5637_v33, %v10540_v14 }
 0x637   : > { %v6056_v49 = vadd.f32 %v15428_v19, %v6055_v20  ;;  %8779 = vmatprep.mubr.msk.bf16.mxu0 %vm5969_vm3, %v5829_v45  ;;  %v10897_v43 = vpack.i.bf16 %v4685_v5, %v4683_v17  ;;  %v4687_v54 = vrot.slane %v4555_v35, 1  ;;  %v4686_v5 = vrot.slane %v4554_v29, 1 }
 0x638   : > { %v15437_v2 = vpop.permute.xlu0 %10568  ;;  %v15439_v28 = vpop.permute.xlu1 %10578  ;;  %6078 = vmatmul.mubr.bf16.gmra.mxu0 %v5828_v39  ;;  %v5734_v61 = vsel %vm1923_vm8, %v10545_v48, %v10565_v30  ;;  %v5735_v20 = vsel %vm1923_vm8, %v10546_v60, %v10566_v21  ;;  %v4556_v39 = vld [vmem:[#allocation2 + $0x178] sm:$0x3]  ;;  %v4863_v18 = vrot.slane %v4555_v35, 2 }
 0x639   : > { %v6057_v55 = vpop.f32.mrf.mxu0  ;;  %vm6182_vm7 = vcmp.gt.f32.partialorder %v6056_v49, 0.0  ;;  %v6214_v25 = vmul.f32 0.1, %v6056_v49  ;;  %v4689_v13 = vrot.slane %v4556_v39, 1  ;;  %v4865_v36 = vrot.slane %v4556_v39, 2 }
 0x63a   : > { %10858 = vrot.lane.b32.xlu0 %v10847_v56, %s18549_s26  ;;  %10868 = vrot.lane.b32.xlu1 %v10847_v56, %s18474_s23  ;;  %v5606_v56 = vsel %vm2054_vm11, %v5574_v10, %v10496_v23  ;;  %v5702_v23 = vsel %vm5693_vm9, %v5669_v46, %v10545_v48  ;;  %v10530_v48 = vunpack.i.l.bf16 %v15378_v62 }
 0x63b   : > { %v6058_v0 = vpop.f32.mrf.mxu0  ;;  %v6246_v59 = vsel %vm6182_vm7, %v6056_v49, %v6214_v25  ;;  %v5638_v31 = vsel %vm2211_vm13, %v5606_v56, %v10521_v40  ;;  %v4690_v40 = vsel %vm998_vm2, %v4687_v54, %v4689_v13  ;;  %v4866_v33 = vsel %vm1175_vm4, %v4863_v18, %v4865_v36 }
 0x63c   : > { %v6059_v11 = vadd.f32 %v15428_v19, %v6058_v0  ;;  %v15451_v42 = vpop.permute.xlu0 %10573  ;;  %v15453_v47 = vpop.permute.xlu1 %10583  ;;  %6279 = vst.msk [vmem:[#allocation3 + $0x19] sm:$0xff] %vm545_vm6, %v6246_v59  ;;  %v5670_v49 = vsel %vm3995_vm12, %v5638_v31, %v10541_v44  ;;  %v10561_v31 = vunpack.i.h.bf16 %v15418_v24 }
 0x63d   : > { %v6060_v1 = vpop.f32.mrf.mxu0  ;;  %v5703_v55 = vsel %vm5693_vm9, %v5670_v49, %v10546_v60  ;;  %v10531_v60 = vunpack.i.h.bf16 %v15378_v62  ;;  %v10560_v62 = vunpack.i.l.bf16 %v15418_v24  ;;  %v11030_v24 = vld [vmem:[#allocation2 + $0x78] sm:$0xff] }
 0x63e   : > { %vm6183_vm14 = vcmp.gt.f32.partialorder %v6059_v11, 0.0  ;;  %v6215_v32 = vmul.f32 0.1, %v6059_v11  ;;  %10863 = vrot.lane.b32.xlu0 %v15420_v6, %s18542_s22  ;;  %10878 = vrot.lane.b32.xlu1 %v10877_v3, %s18558_s18  ;;  %v5830_v17 = vpack.c.bf16 %v5703_v55, %v5702_v23  ;;  %v4862_v1 = vrot.slane %v4554_v29, 2 }
 0x63f   : > { %v5575_v49 = vsel %vm489_vm0, %v11030_v24, %v10530_v48 }
 0x640   : > { %v6247_v8 = vsel %vm6183_vm14, %v6059_v11, %v6215_v32  ;;  %v10594_v63 = vpop.permute.xlu0 %10593  ;;  %v10589_v27 = vpop.permute.xlu1 %10588  ;;  %v10922_v32 = vpack.i.bf16 %v4555_v35, %v4554_v29  ;;  %v4864_v14 = vsel %vm1175_vm4, %v4862_v1, %v4863_v18 }
 0x641   : > { %6280 = vst.msk [vmem:[#allocation3 + $0x21] sm:$0xff] %vm545_vm6, %v6247_v8  ;;  %v10596_v7 = vunpack.i.h.bf16 %v10594_v63  ;;  %v10595_v10 = vunpack.i.l.bf16 %v10594_v63  ;;  %v10591_v41 = vunpack.i.h.bf16 %v10589_v27  ;;  %v10590_v45 = vunpack.i.l.bf16 %v10589_v27 }
 0x642   : > { %10873 = vrot.lane.b32.xlu0 %v15420_v6, %s18554_s11  ;;  %10898 = vrot.lane.b32.xlu1 %v10897_v43, %s18549_s26 }
 0x643   : > { %v5767_v38 = vsel %vm2021_vm10, %v5735_v20, %v10591_v41  ;;  %v5766_v16 = vsel %vm2021_vm10, %v5734_v61, %v10590_v45  ;;  %v10581_v61 = vunpack.i.h.bf16 %v15439_v28  ;;  %v15523_v20 = vpack.i.bf16 %v4866_v33, %v4864_v14 }
 0x644   : > { %v15482_v9 = vpop.permute.xlu0 %10598  ;;  %v15484_v26 = vpop.permute.xlu1 %10603  ;;  %v5798_v51 = vsel %vm545_vm6, %v5766_v16, %v10595_v10  ;;  %v5799_v6 = vsel %vm545_vm6, %v5767_v38, %v10596_v7  ;;  %v10536_v10 = vunpack.i.h.bf16 %v15391_v22  ;;  %v11029_v16 = vld [vmem:[#allocation2 + $0x80] sm:$0xff] }
 0x645   : > { %v5831_v0 = vpack.c.bf16 %v5799_v6, %v5798_v51  ;;  %v10606_v35 = vunpack.i.h.bf16 %v15484_v26  ;;  %v10605_v39 = vunpack.i.l.bf16 %v15484_v26  ;;  %v5576_v46 = vsel %vm489_vm0, %v11029_v16, %v10531_v60 }
 0x646   : > { %v6063_v25 = vpop.f32.mrf.mxu0  ;;  %10883 = vrot.lane.b32.xlu0 %v10877_v3, %s18488_s17  ;;  %10903 = vrot.lane.b32.xlu1 %v15466_v37, %s18542_s22  ;;  %v4688_v3 = vsel %vm998_vm2, %v4686_v5, %v4687_v54  ;;  %v10586_v51 = vunpack.i.h.bf16 %v15453_v47  ;;  %v10585_v6 = vunpack.i.l.bf16 %v15453_v47  ;;  %v5608_v55 = vsel %vm2054_vm11, %v5576_v46, %v10536_v10  ;;  %v15541_v47 = vld [vmem:[#allocation2 + $0x188] sm:$0xff]  ;;  %v15543_v5 = vld [vmem:[#allocation2 + $0x190] sm:$0x3] }
 0x647   : > { %v6064_v59 = vadd.f32 %v15428_v19, %v6063_v25  ;;  %8780 = vmatprep.mubr.msk.bf16.mxu0 %vm5969_vm3, %v5831_v0  ;;  %v15510_v7 = vpack.i.bf16 %v4690_v40, %v4688_v3  ;;  %v5640_v25 = vsel %vm2211_vm13, %v5608_v55, %v10561_v31  ;;  %v5063_v60 = vrot.slane %v15541_v47, 1  ;;  %v11032_v55 = vld [vmem:[#allocation2 + $0x90] sm:$0xff] }
 0x648   : > { %v6065_v11 = vpop.f32.mrf.mxu0  ;;  %v15495_v53 = vpop.permute.xlu0 %10618  ;;  %6086 = vmatmul.mubr.bf16.gmra.mxu0 %v5830_v17  ;;  %v5736_v18 = vsel %vm1923_vm8, %v10585_v6, %v10605_v39  ;;  %v5737_v36 = vsel %vm1923_vm8, %v10586_v51, %v10606_v35  ;;  %v5065_v48 = vrot.slane %v15543_v5, 1  ;;  %v10570_v31 = vunpack.i.l.bf16 %v15437_v2 }
 0x649   : > { %v15497_v56 = vpop.permute.xlu1 %10608  ;;  %vm6184_vm5 = vcmp.gt.f32.partialorder %v6064_v59, 0.0  ;;  %v6216_v21 = vmul.f32 0.1, %v6064_v59  ;;  %v5672_v11 = vsel %vm3995_vm12, %v5640_v25, %v10581_v61  ;;  %v10575_v35 = vunpack.i.l.bf16 %v15451_v42 }
 0x64a   : > { %v6066_v30 = vpop.f32.mrf.mxu0  ;;  %10888 = vrot.lane.b32.xlu0 %v10897_v43, %s18534_s25  ;;  %10908 = vrot.lane.b32.xlu1 %v10897_v43, %s18474_s23  ;;  %v10535_v43 = vunpack.i.l.bf16 %v15391_v22  ;;  %v10580_v22 = vunpack.i.l.bf16 %v15439_v28  ;;  %v5164_v46 = vrot.slane %v15541_v47, 2 }
 0x64b   : > { %v6067_v44 = vadd.f32 %v15428_v19, %v6066_v30  ;;  %v6248_v8 = vsel %vm6184_vm5, %v6064_v59, %v6216_v21  ;;  %v5705_v21 = vsel %vm5693_vm9, %v5672_v11, %v10586_v51  ;;  %v15555_v30 = vld [vmem:[#allocation2 + $0x180] sm:$0xff] }
 0x64c   : > { %v6068_v63 = vpop.f32.mrf.mxu0  ;;  %v15508_v27 = vpop.permute.xlu0 %10623  ;;  %6281 = vst.msk [vmem:[#allocation3 + $0x31] sm:$0xff] %vm545_vm6, %v6248_v8  ;;  %v5607_v28 = vsel %vm2054_vm11, %v5575_v49, %v10535_v43  ;;  %v5062_v10 = vrot.slane %v15555_v30, 1  ;;  %v5163_v16 = vrot.slane %v15555_v30, 2 }
 0x64d   : > { %vm6185_vm15 = vcmp.gt.f32.partialorder %v6067_v44, 0.0  ;;  %v6217_v41 = vmul.f32 0.1, %v6067_v44  ;;  %v15515_v45 = vpop.permute.xlu1 %10613  ;;  %v5639_v13 = vsel %vm2211_vm13, %v5607_v28, %v10560_v62 }
 0x64e   : > { %10893 = vrot.lane.b32.xlu0 %v15466_v37, %s18489_s24  ;;  %10923 = vrot.lane.b32.xlu1 %v10922_v32, %s18488_s17  ;;  %v5671_v59 = vsel %vm3995_vm12, %v5639_v13, %v10580_v22  ;;  %v5066_v22 = vsel %vm998_vm2, %v5063_v60, %v5065_v48 }
 0x64f   : > { %v6249_v38 = vsel %vm6185_vm15, %v6067_v44, %v6217_v41  ;;  %v5704_v1 = vsel %vm5693_vm9, %v5671_v59, %v10585_v6  ;;  %v10571_v41 = vunpack.i.h.bf16 %v15437_v2  ;;  %v10957_v2 = vpack.i.bf16 %v15541_v47, %v15555_v30 }
 0x650   : > { %6282 = vst.msk [vmem:[#allocation3 + $0x39] sm:$0xff] %vm545_vm6, %v6249_v38  ;;  %v10634_v23 = vpop.permute.xlu0 %10633  ;;  %v5832_v63 = vpack.c.bf16 %v5705_v21, %v5704_v1  ;;  %v5166_v6 = vrot.slane %v15543_v5, 2 }
 0x651   : > { %v10636_v29 = vunpack.i.h.bf16 %v10634_v23  ;;  %v10635_v26 = vunpack.i.l.bf16 %v10634_v23  ;;  %v10629_v54 = vpop.permute.xlu1 %10628  ;;  %v11031_v23 = vld [vmem:[#allocation2 + $0x98] sm:$0xff] }
 0x652   : > { %v10631_v0 = vunpack.i.h.bf16 %v10629_v54  ;;  %v10630_v17 = vunpack.i.l.bf16 %v10629_v54  ;;  %10913 = vrot.lane.b32.xlu0 %v15466_v37, %s18554_s11  ;;  %10928 = vrot.lane.b32.xlu1 %v15510_v7, %s18534_s25  ;;  %v5578_v28 = vsel %vm489_vm0, %v11031_v23, %v10571_v41  ;;  %v10600_v54 = vunpack.i.l.bf16 %v15482_v9  ;;  %s7478_s25 = sld [smem:[#allocation5]] }
 0x654   : > { %v5768_v3 = vsel %vm2021_vm10, %v5736_v18, %v10630_v17  ;;  %v5769_v40 = vsel %vm2021_vm10, %v5737_v36, %v10631_v0  ;;  %v15551_v37 = vpop.permute.xlu0 %10643  ;;  %v10601_v17 = vunpack.i.h.bf16 %v15482_v9  ;;  %v10621_v18 = vunpack.i.h.bf16 %v15495_v53 }
 0x655   : > { %v15557_v44 = vpop.permute.xlu1 %10638  ;;  %v5800_v14 = vsel %vm545_vm6, %v5768_v3, %v10635_v26  ;;  %v5801_v33 = vsel %vm545_vm6, %v5769_v40, %v10636_v29  ;;  %v5577_v29 = vsel %vm489_vm0, %v11032_v55, %v10570_v31  ;;  %v10576_v26 = vunpack.i.h.bf16 %v15451_v42 }
 0x656   : > { %10918 = vrot.lane.b32.xlu0 %v10922_v32, %s18558_s18  ;;  %10933 = vrot.lane.b32.xlu1 %v15523_v20, %s18489_s24  ;;  %v5833_v8 = vpack.c.bf16 %v5801_v33, %v5800_v14  ;;  %v5064_v32 = vsel %vm998_vm2, %v5062_v10, %v5063_v60  ;;  %v5609_v0 = vsel %vm2054_vm11, %v5577_v29, %v10575_v35  ;;  %v10620_v42 = vunpack.i.l.bf16 %v15495_v53  ;;  %s8806_s24 = sld [smem:[#allocation7 + $0x102]] }
 0x657   : > { %v15588_v51 = vpack.i.bf16 %v5066_v22, %v5064_v32  ;;  %v10646_v36 = vunpack.i.h.bf16 %v15551_v37  ;;  %v10645_v59 = vunpack.i.l.bf16 %v15551_v37  ;;  %v10626_v9 = vunpack.i.h.bf16 %v15508_v27 }
 0x658   : > { %8781 = vmatprep.mubr.msk.bf16.mxu0 %vm5969_vm3, %v5833_v8  ;;  %v15568_v43 = vpop.permute.xlu0 %10648  ;;  %v5610_v40 = vsel %vm2054_vm11, %v5578_v28, %v10576_v26  ;;  %v5641_v1 = vsel %vm2211_vm13, %v5609_v0, %v10600_v54  ;;  %v15635_v28 = vld [vmem:[%s14333_s27 + $0x8] sm:$0xff] }
 0x659   : > { %v15572_v62 = vpop.permute.xlu1 %10658  ;;  %6094 = vmatmul.mubr.bf16.gmra.mxu0 %v5832_v63  ;;  %v5642_v14 = vsel %vm2211_vm13, %v5610_v40, %v10601_v17  ;;  %v5739_v48 = vsel %vm1923_vm8, %v10626_v9, %v10646_v36  ;;  %v5673_v8 = vsel %vm3995_vm12, %v5641_v1, %v10620_v42  ;;  %v10616_v17 = vunpack.i.h.bf16 %v15515_v45 }
 0x65a   : > { %v6071_v61 = vpop.f32.mrf.mxu0  ;;  %10938 = vrot.lane.b32.xlu0 %v15510_v7, %s18549_s26  ;;  %10953 = vrot.lane.b32.xlu1 %v15523_v20, %s18554_s11  ;;  %v5674_v63 = vsel %vm3995_vm12, %v5642_v14, %v10621_v18  ;;  %v10640_v18 = vunpack.i.l.bf16 %v15557_v44  ;;  %v10660_v36 = vunpack.i.l.bf16 %v15572_v62 }
 0x65b   : > { %v6072_v39 = vadd.f32 %v15428_v19, %v6071_v61  ;;  %v5707_v61 = vsel %vm5693_vm9, %v5674_v63, %v10626_v9  ;;  %v15668_v9 = vld [vmem:[%s14333_s27] sm:$0xff]  ;;  %s8801_s27 = sld [smem:[#allocation7 + $0x3]] }
 0x65c   : > { %v6073_v38 = vpop.f32.mrf.mxu0  ;;  %v15586_v49 = vpop.permute.xlu0 %10653 }
 0x65d   : > { %vm6186_vm7 = vcmp.gt.f32.partialorder %v6072_v39, 0.0  ;;  %v6218_v24 = vmul.f32 0.1, %v6072_v39  ;;  %v15595_v13 = vpop.permute.xlu1 %10663  ;;  %v5167_v38 = vsel %vm1175_vm4, %v5164_v46, %v5166_v6  ;;  %v10610_v6 = vunpack.i.l.bf16 %v15497_v56 }
 0x65e   : > { %v6074_v25 = vpop.f32.mrf.mxu0  ;;  %10943 = vrot.lane.b32.xlu0 %v15523_v20, %s18542_s22  ;;  %10958 = vrot.lane.b32.xlu1 %v10957_v2, %s18558_s18  ;;  %s8793_s18 = sld [smem:[#allocation7 + $0x83]] }
 0x65f   : > { %v6250_v47 = vsel %vm6186_vm7, %v6072_v39, %v6218_v24  ;;  %v6075_v5 = vadd.f32 %v15428_v19, %v6074_v25  ;;  %v10625_v19 = vunpack.i.l.bf16 %v15508_v27  ;;  %v5165_v39 = vsel %vm1175_vm4, %v5163_v16, %v5164_v46  ;;  %v18583_v16 = vld [vmem:[#allocation51_spill] sm:$0xff]  ;;  %v18584_v25 = vld [vmem:[#allocation46_spill] sm:$0xff] }
 0x660   : > { %6283 = vst.msk [vmem:[#allocation3 + $0x49] sm:$0xff] %vm545_vm6, %v6250_v47  ;;  %v6076_v11 = vpop.f32.mrf.mxu0  ;;  %v10674_v20 = vpop.permute.xlu0 %10673  ;;  %v10972_v29 = vpack.i.bf16 %v5167_v38, %v5165_v39  ;;  %v15643_v54 = vsub.s32 1, %v18583_v16  ;;  %v10611_v46 = vunpack.i.h.bf16 %v15497_v56  ;;  %v7607_v0 = vrot.slane %v15635_v28, %v18584_v25 }
 0x661   : > { %vm6187_vm14 = vcmp.gt.f32.partialorder %v6075_v5, 0.0  ;;  %v6219_v3 = vmul.f32 0.1, %v6075_v5  ;;  %v10676_v21 = vunpack.i.h.bf16 %v10674_v20  ;;  %v10675_v53 = vunpack.i.l.bf16 %v10674_v20  ;;  %v10669_v30 = vpop.permute.xlu1 %10668 }
 0x662   : > { %v10671_v33 = vunpack.i.h.bf16 %v10669_v30  ;;  %v10670_v60 = vunpack.i.l.bf16 %v10669_v30  ;;  %10948 = vrot.lane.b32.xlu0 %v15510_v7, %s18474_s23  ;;  %10963 = vrot.lane.b32.xlu1 %v10957_v2, %s18488_s17  ;;  %v5738_v27 = vsel %vm1923_vm8, %v10625_v19, %v10645_v59  ;;  %v5706_v7 = vsel %vm5693_vm9, %v5673_v8, %v10625_v19  ;;  %v18582_v2 = vld [vmem:[#allocation53_spill] sm:$0xff]  ;;  %s17469_s17 = sld [smem:[#allocation7 + $0x183]] }
 0x663   : > { %v6251_v37 = vsel %vm6187_vm14, %v6075_v5, %v6219_v3  ;;  %v5834_v23 = vpack.c.bf16 %v5707_v61, %v5706_v7  ;;  %v10615_v47 = vunpack.i.l.bf16 %v15515_v45  ;;  %v10641_v5 = vunpack.i.h.bf16 %v15557_v44  ;;  %v11034_v44 = vld [vmem:[#allocation2 + $0xb0] sm:$0xff]  ;;  %v11035_v3 = vld [vmem:[#allocation2 + $0xa8] sm:$0xff] }
 0x664   : > { %6284 = vst.msk [vmem:[#allocation3 + $0x51] sm:$0xff] %vm545_vm6, %v6251_v37  ;;  %v5771_v10 = vsel %vm2021_vm10, %v5739_v48, %v10671_v33  ;;  %v5770_v41 = vsel %vm2021_vm10, %v5738_v27, %v10670_v60  ;;  %v15623_v31 = vpop.permute.xlu0 %10678  ;;  %v15659_v56 = vsub.s32 2, %v18583_v16  ;;  %v7618_v11 = vrot.slane %v15635_v28, %v15643_v54 }
 0x665   : > { %v10684_v32 = vpop.permute.xlu1 %10683  ;;  %v5802_v22 = vsel %vm545_vm6, %v5770_v41, %v10675_v53  ;;  %v5803_v35 = vsel %vm545_vm6, %v5771_v10, %v10676_v21  ;;  %v7530_v45 = vrot.slane %v15668_v9, %v15643_v54  ;;  %v5580_v19 = vsel %vm489_vm0, %v11034_v44, %v10611_v46 }
 0x666   : > { %7525 = vbcast.lane.b32.xlu0 %v18582_v2, 264  ;;  %10968 = vrot.lane.b32.xlu1 %v15588_v51, %s18549_s26  ;;  %v5835_v24 = vpack.c.bf16 %v5803_v35, %v5802_v22  ;;  %v5579_v20 = vsel %vm489_vm0, %v11035_v3, %v10610_v6  ;;  %v10686_v40 = vunpack.i.h.bf16 %v10684_v32  ;;  %v10685_v1 = vunpack.i.l.bf16 %v10684_v32 }
 0x667   : > { %v5612_v21 = vsel %vm2054_vm11, %v5580_v19, %v10616_v17  ;;  %v10666_v53 = vunpack.i.h.bf16 %v15595_v13  ;;  %v10665_v30 = vunpack.i.l.bf16 %v15595_v13  ;;  %v15683_v60 = vrot.slane %v15668_v9, %v15659_v56 }
 0x668   : > { %8782 = vmatprep.mubr.msk.bf16.mxu0 %vm5969_vm3, %v5835_v24  ;;  %v15638_v55 = vpop.permute.xlu0 %10698  ;;  %v5644_v37 = vsel %vm2211_vm13, %v5612_v21, %v10641_v5  ;;  %v7629_v6 = vrot.slane %v15635_v28, %v15659_v56  ;;  %v15702_v17 = vsub.s32 3, %v18583_v16  ;;  %v15715_v44 = vsub.s32 4, %v18583_v16 }
 0x669   : > { %v15640_v26 = vpop.permute.xlu1 %10688  ;;  %6102 = vmatmul.mubr.bf16.gmra.mxu0 %v5834_v23  ;;  %v5740_v41 = vsel %vm1923_vm8, %v10665_v30, %v10685_v1  ;;  %v5741_v13 = vsel %vm1923_vm8, %v10666_v53, %v10686_v40  ;;  %v10656_v19 = vunpack.i.h.bf16 %v15586_v49  ;;  %v10655_v3 = vunpack.i.l.bf16 %v15586_v49 }
 0x66a   : > { %10978 = vrot.lane.b32.xlu0 %v15588_v51, %s18474_s23  ;;  %10973 = vrot.lane.b32.xlu1 %v10972_v29, %s18542_s22  ;;  %v10661_v51 = vunpack.i.h.bf16 %v15572_v62  ;;  %v5611_v62 = vsel %vm2054_vm11, %v5579_v20, %v10615_v47  ;;  %v10680_v40 = vunpack.i.l.bf16 %v15623_v31  ;;  %v15729_v1 = vrot.slane %v15668_v9, %v15715_v44  ;;  %s463_s22 = sand.u32 1, %s11151_s30   ;;  %s17467_s23 = sld [smem:[#allocation7 + $0x182]] }
 0x66b   : > { %v5643_v14 = vsel %vm2211_vm13, %v5611_v62, %v10640_v18  ;;  %v7552_v18 = vrot.slane %v15668_v9, %v15702_v17  ;;  %v10701_v62 = vunpack.i.h.bf16 %v15638_v55  ;;  %v10700_v49 = vunpack.i.l.bf16 %v15638_v55  ;;  %s8706_s26 = sshll.u32 %s463_s22, 4 }
 0x66c   : > { %v15656_v42 = vpop.permute.xlu0 %10703  ;;  %v5675_v63 = vsel %vm3995_vm12, %v5643_v14, %v10660_v36  ;;  %v5676_v10 = vsel %vm3995_vm12, %v5644_v37, %v10661_v51  ;;  %v10651_v51 = vunpack.i.h.bf16 %v15568_v43  ;;  %v10650_v36 = vunpack.i.l.bf16 %v15568_v43  ;;  %s17462_s1 = scalar_lea.vmem [#allocation10], %s8706_s26  ;;  %s11178_s26 = smov 1  }
 0x66d   : > { %v15663_v59 = vpop.permute.xlu1 %10693  ;;  %v5708_v35 = vsel %vm5693_vm9, %v5675_v63, %v10665_v30  ;;  %v5709_v39 = vsel %vm5693_vm9, %v5676_v10, %v10666_v53  ;;  %v15725_v43 = vrot.slane %v15635_v28, %v15702_v17  ;;  %v11036_v30 = vld [vmem:[#allocation2 + $0xc8] sm:$0xff]  ;;  %v10706_v37 = vunpack.i.h.bf16 %v15656_v42 }
 0x66e   : > { %7609 = vbcast.lane.b32.xlu0 %v7607_v0, 256  ;;  %10983 = vrot.lane.b32.xlu1 %v10972_v29, %s18554_s11  ;;  %v5836_v46 = vpack.c.bf16 %v5709_v39, %v5708_v35  ;;  %v5582_v14 = vsel %vm489_vm0, %v11036_v30, %v10651_v51  ;;  %v10695_v30 = vunpack.i.l.bf16 %v15663_v59 }
 0x670   : > { %v10709_v33 = vpop.permute.xlu0 %10708 }
 0x671   : > { %v10711_v27 = vunpack.i.h.bf16 %v10709_v33  ;;  %v10710_v48 = vunpack.i.l.bf16 %v10709_v33  ;;  %v10714_v8 = vpop.permute.xlu1 %10713  ;;  %v10705_v33 = vunpack.i.l.bf16 %v15656_v42 }
 0x672   : > { %v10716_v7 = vunpack.i.h.bf16 %v10714_v8  ;;  %v10715_v61 = vunpack.i.l.bf16 %v10714_v8  ;;  %7620 = vbcast.lane.b32.xlu0 %v7618_v11, 256  ;;  %7532 = vbcast.lane.b32.xlu1 %v7530_v45, 256  ;;  %v5614_v8 = vsel %vm2054_vm11, %v5582_v14, %v10656_v19  ;;  %v7651_v19 = vrot.slane %v15635_v28, %v15715_v44 }
 0x673   : > { %v5772_v32 = vsel %vm2021_vm10, %v5740_v41, %v10710_v48  ;;  %v5773_v22 = vsel %vm2021_vm10, %v5741_v13, %v10711_v27 }
 0x674   : > { %v5804_v38 = vsel %vm545_vm6, %v5772_v32, %v10715_v61  ;;  %v5805_v2 = vsel %vm545_vm6, %v5773_v22, %v10716_v7  ;;  %v10724_v24 = vpop.permute.xlu0 %10723 }
 0x675   : > { %v15695_v23 = vpop.permute.xlu1 %10718  ;;  %v5837_v29 = vpack.c.bf16 %v5805_v2, %v5804_v38  ;;  %v10726_v21 = vunpack.i.h.bf16 %v10724_v24  ;;  %v10725_v53 = vunpack.i.l.bf16 %v10724_v24 }
 0x676   : > { %7543 = vbcast.lane.b32.xlu0 %v15683_v60, 256  ;;  %7536 = vbcast.lane.b32.xlu1 %v7530_v45, 264  ;;  %v10721_v14 = vunpack.i.h.bf16 %v15695_v23 }
 0x677   : > { %8783 = vmatprep.mubr.msk.bf16.mxu0 %vm5969_vm3, %v5837_v29  ;;  %v5742_v42 = vsel %vm1923_vm8, %v10705_v33, %v10725_v53  ;;  %v5743_v32 = vsel %vm1923_vm8, %v10706_v37, %v10726_v21  ;;  %v10690_v21 = vunpack.i.l.bf16 %v15640_v26  ;;  %v10696_v53 = vunpack.i.h.bf16 %v15663_v59  ;;  %v11039_v59 = vld [vmem:[#allocation2 + $0xd8] sm:$0xff] }
 0x678   : > { %v15704_v47 = vpop.permute.xlu0 %10728  ;;  %6110 = vmatmul.mubr.bf16.gmra.mxu0 %v5836_v46 }
 0x679   : > { %v15706_v5 = vpop.permute.xlu1 %10738 }
 0x67a   : > { %7631 = vbcast.lane.b32.xlu0 %v7629_v6, 256  ;;  %7613 = vbcast.lane.b32.xlu1 %v7607_v0, 264  ;;  %v10681_v0 = vunpack.i.h.bf16 %v15623_v31  ;;  %v11037_v31 = vld [vmem:[#allocation2 + $0xc0] sm:$0xff] }
 0x67c   : > { %v15712_v45 = vpop.permute.xlu0 %10733  ;;  %v5646_v13 = vsel %vm2211_vm13, %v5614_v8, %v10681_v0 }
 0x67d   : > { %v15719_v20 = vpop.permute.xlu1 %10743  ;;  %v5678_v35 = vsel %vm3995_vm12, %v5646_v13, %v10701_v62 }
 0x67e   : > { %7554 = vbcast.lane.b32.xlu0 %v7552_v18, 256  ;;  %7624 = vbcast.lane.b32.xlu1 %v7618_v11, 264  ;;  %v5581_v11 = vsel %vm489_vm0, %v11037_v31, %v10650_v36  ;;  %v5711_v29 = vsel %vm5693_vm9, %v5678_v35, %v10706_v37  ;;  %v10720_v31 = vunpack.i.l.bf16 %v15695_v23  ;;  %v7584_v37 = vsub.s32 6, %v18583_v16 }
 0x67f   : > { %v5613_v48 = vsel %vm2054_vm11, %v5581_v11, %v10655_v3  ;;  %v7573_v3 = vsub.s32 5, %v18583_v16  ;;  %v10745_v13 = vunpack.i.l.bf16 %v15719_v20 }
 0x680   : > { %v10754_v27 = vpop.permute.xlu0 %10753  ;;  %v5645_v41 = vsel %vm2211_vm13, %v5613_v48, %v10680_v40  ;;  %v11038_v48 = vld [vmem:[#allocation2 + $0xe0] sm:$0xff] }
 0x681   : > { %v10756_v63 = vunpack.i.h.bf16 %v10754_v27  ;;  %v10755_v10 = vunpack.i.l.bf16 %v10754_v27  ;;  %v10749_v55 = vpop.permute.xlu1 %10748  ;;  %v5677_v22 = vsel %vm3995_vm12, %v5645_v41, %v10700_v49  ;;  %v10691_v49 = vunpack.i.h.bf16 %v15640_v26 }
 0x682   : > { %v10751_v7 = vunpack.i.h.bf16 %v10749_v55  ;;  %v10750_v61 = vunpack.i.l.bf16 %v10749_v55  ;;  %7642 = vbcast.lane.b32.xlu0 %v15725_v43, 256  ;;  %7547 = vbcast.lane.b32.xlu1 %v15683_v60, 264  ;;  %v5710_v24 = vsel %vm5693_vm9, %v5677_v22, %v10705_v33  ;;  %v10741_v33 = vunpack.i.h.bf16 %v15706_v5 }
 0x683   : > { %v5838_v0 = vpack.c.bf16 %v5711_v29, %v5710_v24  ;;  %v10740_v26 = vunpack.i.l.bf16 %v15706_v5  ;;  %v5584_v8 = vsel %vm489_vm0, %v11038_v48, %v10691_v49  ;;  %v10746_v5 = vunpack.i.h.bf16 %v15719_v20 }
 0x684   : > { %v5775_v39 = vsel %vm2021_vm10, %v5743_v32, %v10751_v7  ;;  %v5774_v38 = vsel %vm2021_vm10, %v5742_v42, %v10750_v61  ;;  %v15749_v2 = vpop.permute.xlu0 %10758  ;;  %v5616_v41 = vsel %vm2054_vm11, %v5584_v8, %v10696_v53  ;;  %v15789_v32 = vrot.slane %v15668_v9, %v7584_v37 }
 0x685   : > { %v10764_v46 = vpop.permute.xlu1 %10763  ;;  %v5806_v60 = vsel %vm545_vm6, %v5774_v38, %v10755_v10  ;;  %v5807_v51 = vsel %vm545_vm6, %v5775_v39, %v10756_v63  ;;  %v5583_v63 = vsel %vm489_vm0, %v11039_v59, %v10690_v21  ;;  %v5648_v61 = vsel %vm2211_vm13, %v5616_v41, %v10721_v14 }
 0x686   : > { %7565 = vbcast.lane.b32.xlu0 %v15729_v1, 256  ;;  %7635 = vbcast.lane.b32.xlu1 %v7629_v6, 264  ;;  %v5839_v36 = vpack.c.bf16 %v5807_v51, %v5806_v60  ;;  %v7574_v6 = vrot.slane %v15668_v9, %v7573_v3  ;;  %v10766_v10 = vunpack.i.h.bf16 %v10764_v46  ;;  %v10765_v23 = vunpack.i.l.bf16 %v10764_v46 }
 0x687   : > { %v5615_v55 = vsel %vm2054_vm11, %v5583_v63, %v10695_v30  ;;  %v5680_v38 = vsel %vm3995_vm12, %v5648_v61, %v10741_v33  ;;  %v7673_v14 = vrot.slane %v15635_v28, %v7584_v37  ;;  %v10731_v8 = vunpack.i.h.bf16 %v15704_v47 }
 0x688   : > { %8784 = vmatprep.mubr.msk.bf16.mxu0 %vm5969_vm3, %v5839_v36  ;;  %v15760_v40 = vpop.permute.xlu0 %10778  ;;  %v5647_v7 = vsel %vm2211_vm13, %v5615_v55, %v10720_v31  ;;  %v5744_v24 = vsel %vm1923_vm8, %v10745_v13, %v10765_v23  ;;  %v5745_v29 = vsel %vm1923_vm8, %v10746_v5, %v10766_v10  ;;  %v7595_v31 = vsub.s32 7, %v18583_v16 }
 0x689   : > { %v15762_v62 = vpop.permute.xlu1 %10768  ;;  %6118 = vmatmul.mubr.bf16.gmra.mxu0 %v5838_v0  ;;  %v10736_v37 = vunpack.i.h.bf16 %v15712_v45  ;;  %v10735_v63 = vunpack.i.l.bf16 %v15712_v45  ;;  %v10761_v23 = vunpack.i.h.bf16 %v15749_v2  ;;  %v10760_v55 = vunpack.i.l.bf16 %v15749_v2  ;;  %v11041_v45 = vld [vmem:[#allocation2 + $0xf0] sm:$0xff] }
 0x68a   : > { %7653 = vbcast.lane.b32.xlu0 %v7651_v19, 256  ;;  %7558 = vbcast.lane.b32.xlu1 %v7552_v18, 264  ;;  %v7662_v18 = vrot.slane %v15635_v28, %v7573_v3  ;;  %v5713_v3 = vsel %vm5693_vm9, %v5680_v38, %v10746_v5  ;;  %v7596_v48 = vrot.slane %v15668_v9, %v7595_v31 }
 0x68b   : > { %v7684_v9 = vrot.slane %v15635_v28, %v7595_v31 }
 0x68c   : > { %v15771_v11 = vpop.permute.xlu0 %10783 }
 0x68d   : > { %v15776_v27 = vpop.permute.xlu1 %10773  ;;  %v10785_v2 = vunpack.i.l.bf16 %v15771_v11 }
 0x68e   : > { %7576 = vbcast.lane.b32.xlu0 %v7574_v6, 256  ;;  %7646 = vbcast.lane.b32.xlu1 %v15725_v43, 264  ;;  %v5679_v43 = vsel %vm3995_vm12, %v5647_v7, %v10740_v26 }
 0x68f   : > { %v5712_v36 = vsel %vm5693_vm9, %v5679_v43, %v10745_v13  ;;  %v11040_v13 = vld [vmem:[#allocation2 + $0xf8] sm:$0xff] }
 0x690   : > { %v10789_v42 = vpop.permute.xlu0 %10788  ;;  %v5586_v7 = vsel %vm489_vm0, %v11040_v13, %v10731_v8 }
 0x691   : > { %v10791_v22 = vunpack.i.h.bf16 %v10789_v42  ;;  %v10790_v35 = vunpack.i.l.bf16 %v10789_v42  ;;  %v10794_v39 = vpop.permute.xlu1 %10793  ;;  %v10786_v42 = vunpack.i.h.bf16 %v15771_v11  ;;  %v5618_v28 = vsel %vm2054_vm11, %v5586_v7, %v10736_v37 }
 0x692   : > { %v10796_v20 = vunpack.i.h.bf16 %v10794_v39  ;;  %v10795_v46 = vunpack.i.l.bf16 %v10794_v39  ;;  %7664 = vbcast.lane.b32.xlu0 %v7662_v18, 256  ;;  %7569 = vbcast.lane.b32.xlu1 %v15729_v1, 264  ;;  %v5840_v1 = vpack.c.bf16 %v5713_v3, %v5712_v36  ;;  %v5650_v38 = vsel %vm2211_vm13, %v5618_v28, %v10761_v23 }
 0x693   : > { %v5776_v60 = vsel %vm2021_vm10, %v5744_v24, %v10790_v35  ;;  %v5777_v51 = vsel %vm2021_vm10, %v5745_v29, %v10791_v22  ;;  %v10771_v7 = vunpack.i.h.bf16 %v15762_v62 }
 0x694   : > { %v5808_v0 = vsel %vm545_vm6, %v5776_v60, %v10795_v46  ;;  %v5809_v49 = vsel %vm545_vm6, %v5777_v51, %v10796_v20  ;;  %v10804_v21 = vpop.permute.xlu0 %10803  ;;  %v15835_v20 = vld [vmem:[#allocation3 + $0x20] sm:$0xff] }
 0x695   : > { %v15802_v53 = vpop.permute.xlu1 %10798  ;;  %v5841_v30 = vpack.c.bf16 %v5809_v49, %v5808_v0  ;;  %v10806_v41 = vunpack.i.h.bf16 %v10804_v21  ;;  %v10805_v5 = vunpack.i.l.bf16 %v10804_v21  ;;  %v6314_v49 = vld [vmem:[#allocation3 + $0x18] sm:$0xff]  ;;  %v6419_v8 = vrot.slane %v15835_v20, 1 }
 0x696   : > { %7587 = vbcast.lane.b32.xlu0 %v15789_v32, 256  ;;  %7657 = vbcast.lane.b32.xlu1 %v7651_v19, 264  ;;  %v10730_v19 = vunpack.i.l.bf16 %v15704_v47  ;;  %v10780_v47 = vunpack.i.l.bf16 %v15760_v40  ;;  %v6418_v37 = vrot.slane %v6314_v49, 1  ;;  %v10800_v28 = vunpack.i.l.bf16 %v15802_v53 }
 0x697   : > { %8785 = vmatprep.mubr.msk.bf16.mxu0 %vm5969_vm3, %v5841_v30  ;;  %v5746_v11 = vsel %vm1923_vm8, %v10785_v2, %v10805_v5  ;;  %v5747_v46 = vsel %vm1923_vm8, %v10786_v42, %v10806_v41  ;;  %v6595_v41 = vrot.slane %v15835_v20, 2 }
 0x698   : > { %v15808_v33 = vpop.permute.xlu0 %10808  ;;  %6126 = vmatmul.mubr.bf16.gmra.mxu0 %v5840_v1  ;;  %v5585_v61 = vsel %vm489_vm0, %v11041_v45, %v10730_v19  ;;  %v10770_v45 = vunpack.i.l.bf16 %v15762_v62 }
 0x699   : > { %v15810_v26 = vpop.permute.xlu1 %10818 }
 0x69a   : > { %7675 = vbcast.lane.b32.xlu0 %v7673_v14, 256  ;;  %7580 = vbcast.lane.b32.xlu1 %v7574_v6, 264  ;;  %v10781_v6 = vunpack.i.h.bf16 %v15760_v40 }
 0x69c   : > { %v15815_v59 = vpop.permute.xlu0 %10813  ;;  %v5682_v51 = vsel %vm3995_vm12, %v5650_v38, %v10781_v6 }
 0x69d   : > { %v15819_v10 = vpop.permute.xlu1 %10823 }
 0x69e   : > { %7598 = vbcast.lane.b32.xlu0 %v7596_v48, 256  ;;  %7668 = vbcast.lane.b32.xlu1 %v7662_v18, 264  ;;  %v5617_v18 = vsel %vm2054_vm11, %v5585_v61, %v10735_v63 }
 0x69f   : > { %v5649_v43 = vsel %vm2211_vm13, %v5617_v18, %v10760_v55  ;;  %v15854_v55 = vld [vmem:[#allocation3 + $0x28] sm:$0x3]  ;;  %v10776_v18 = vunpack.i.h.bf16 %v15776_v27 }
 0x6a0   : > { %v10834_v22 = vpop.permute.xlu0 %10833  ;;  %v5681_v60 = vsel %vm3995_vm12, %v5649_v43, %v10780_v47  ;;  %v15859_v47 = vsel %vm998_vm2, %v6418_v37, %v6419_v8  ;;  %v6421_v5 = vrot.slane %v15854_v55, 1 }
 0x6a1   : > { %v10836_v35 = vunpack.i.h.bf16 %v10834_v22  ;;  %v10835_v39 = vunpack.i.l.bf16 %v10834_v22  ;;  %v10829_v40 = vpop.permute.xlu1 %10828  ;;  %v5714_v21 = vsel %vm5693_vm9, %v5681_v60, %v10785_v2  ;;  %v6317_v2 = vld [vmem:[#allocation3 + $0x30] sm:$0xff]  ;;  %v15874_v22 = vld [vmem:[#allocation3 + $0x38] sm:$0xff] }
 0x6a2   : > { %v10831_v24 = vunpack.i.h.bf16 %v10829_v40  ;;  %v10830_v29 = vunpack.i.l.bf16 %v10829_v40  ;;  %7686 = vbcast.lane.b32.xlu0 %v7684_v9, 256  ;;  %7591 = vbcast.lane.b32.xlu1 %v15789_v32, 264  ;;  %v5715_v32 = vsel %vm5693_vm9, %v5682_v51, %v10786_v42  ;;  %v15882_v62 = vsel %vm998_vm2, %v6419_v8, %v6421_v5 }
 0x6a3   : > { %v5842_v63 = vpack.c.bf16 %v5715_v32, %v5714_v21  ;;  %v10820_v40 = vunpack.i.l.bf16 %v15810_v26  ;;  %v6423_v38 = vrot.slane %v6317_v2, 1  ;;  %v6600_v37 = vrot.slane %v15874_v22, 2 }
 0x6a4   : > { %v5779_v36 = vsel %vm2021_vm10, %v5747_v46, %v10831_v24  ;;  %v5778_v3 = vsel %vm2021_vm10, %v5746_v11, %v10830_v29  ;;  %v15843_v0 = vpop.permute.xlu0 %10838  ;;  %v6424_v24 = vrot.slane %v15874_v22, 1  ;;  %v11042_v29 = vld [vmem:[#allocation2 + $0x110] sm:$0xff] }
 0x6a5   : > { %v15847_v30 = vpop.permute.xlu1 %10848  ;;  %v5810_v1 = vsel %vm545_vm6, %v5778_v3, %v10835_v39  ;;  %v5811_v31 = vsel %vm545_vm6, %v5779_v36, %v10836_v35  ;;  %v6597_v35 = vrot.slane %v15854_v55, 2  ;;  %v10801_v39 = vunpack.i.h.bf16 %v15802_v53 }
 0x6a6   : > { %6703 = vrot.lane.b32.xlu0 %v6314_v49, %s18554_s11  ;;  %7679 = vbcast.lane.b32.xlu1 %v7673_v14, 264  ;;  %v5843_v19 = vpack.c.bf16 %v5811_v31, %v5810_v1  ;;  %v6594_v14 = vrot.slane %v6314_v49, 2  ;;  %v10821_v53 = vunpack.i.h.bf16 %v15810_v26  ;;  %v10826_v1 = vunpack.i.h.bf16 %v15819_v10 }
 0x6a7   : > { %v10825_v31 = vunpack.i.l.bf16 %v15819_v10  ;;  %v15907_v26 = vsel %vm998_vm2, %v6423_v38, %v6424_v24  ;;  %v6319_v38 = vld [vmem:[#allocation3 + $0x40] sm:$0x3] }
 0x6a8   : > { %8786 = vmatprep.mubr.msk.bf16.mxu0 %vm5969_vm3, %v5843_v19  ;;  %v10844_v23 = vpop.permute.xlu0 %10843  ;;  %v15872_v42 = vsel %vm1175_vm4, %v6594_v14, %v6595_v41 }
 0x6a9   : > { %v15856_v6 = vpop.permute.xlu1 %10853  ;;  %6134 = vmatmul.mubr.bf16.gmra.mxu0 %v5842_v63  ;;  %v10846_v46 = vunpack.i.h.bf16 %v10844_v23  ;;  %v10845_v60 = vunpack.i.l.bf16 %v10844_v23 }
 0x6aa   : > { %6497 = vrot.lane.b32.xlu0 %v15859_v47, %s18554_s11  ;;  %7602 = vbcast.lane.b32.xlu1 %v7596_v48, 264  ;;  %v10775_v48 = vunpack.i.l.bf16 %v15776_v27  ;;  %v11043_v27 = vld [vmem:[#allocation2 + $0x108] sm:$0xff] }
 0x6ab   : > { %v5587_v11 = vsel %vm489_vm0, %v11043_v27, %v10770_v45  ;;  %v5748_v23 = vsel %vm1923_vm8, %v10825_v31, %v10845_v60  ;;  %v5749_v55 = vsel %vm1923_vm8, %v10826_v1, %v10846_v46 }
 0x6ac   : > { %v15865_v13 = vpop.permute.xlu0 %10858  ;;  %v5619_v36 = vsel %vm2054_vm11, %v5587_v11, %v10775_v48  ;;  %v15933_v11 = vsel %vm1175_vm4, %v6595_v41, %v6597_v35  ;;  %v10811_v41 = vunpack.i.h.bf16 %v15808_v33  ;;  %v10810_v35 = vunpack.i.l.bf16 %v15808_v33 }
 0x6ad   : > { %v10869_v61 = vpop.permute.xlu1 %10868  ;;  %v5651_v32 = vsel %vm2211_vm13, %v5619_v36, %v10800_v28  ;;  %v6320_v36 = vld [vmem:[#allocation3 + $0x48] sm:$0xff] }
 0x6ae   : > { %6842 = vrot.lane.b32.xlu0 %v15872_v42, %s18554_s11  ;;  %7690 = vbcast.lane.b32.xlu1 %v7684_v9, 264  ;;  %v5588_v9 = vsel %vm489_vm0, %v11042_v29, %v10771_v7  ;;  %v10871_v3 = vunpack.i.h.bf16 %v10869_v61  ;;  %v10870_v49 = vunpack.i.l.bf16 %v10869_v61  ;;  %v5683_v63 = vsel %vm3995_vm12, %v5651_v32, %v10820_v40 }
 0x6af   : > { %v5620_v21 = vsel %vm2054_vm11, %v5588_v9, %v10776_v18  ;;  %v6599_v61 = vrot.slane %v6317_v2, 2 }
 0x6b0   : > { %v15887_v43 = vpop.permute.xlu0 %10863  ;;  %v5652_v8 = vsel %vm2211_vm13, %v5620_v21, %v10801_v39  ;;  %v5780_v10 = vsel %vm2021_vm10, %v5748_v23, %v10870_v49  ;;  %v5781_v45 = vsel %vm2021_vm10, %v5749_v55, %v10871_v3  ;;  %v5716_v39 = vsel %vm5693_vm9, %v5683_v63, %v10825_v31 }
 0x6b1   : > { %v15892_v51 = vpop.permute.xlu1 %10878  ;;  %v5684_v48 = vsel %vm3995_vm12, %v5652_v8, %v10821_v53  ;;  %v15938_v46 = vsel %vm1175_vm4, %v6599_v61, %v6600_v37  ;;  %v6426_v53 = vrot.slane %v6319_v38, 1  ;;  %v10816_v49 = vunpack.i.h.bf16 %v15815_v59 }
 0x6b2   : > { %6705 = vrot.lane.b32.xlu1 %v15835_v20, %s18554_s11  ;;  %6707 = vrot.lane.b32.xlu0 %v6317_v2, %s18554_s11  ;;  %v5717_v40 = vsel %vm5693_vm9, %v5684_v48, %v10826_v1  ;;  %v15926_v2 = vld [vmem:[#allocation3 + $0x50] sm:$0xff]  ;;  %v10815_v21 = vunpack.i.l.bf16 %v15815_v59  ;;  %v6428_v1 = vrot.slane %v6320_v36, 1  ;;  %v10840_v31 = vunpack.i.l.bf16 %v15843_v0 }
 0x6b3   : > { %v5844_v60 = vpack.c.bf16 %v5717_v40, %v5716_v39  ;;  %v6429_v20 = vrot.slane %v15926_v2, 1  ;;  %v6604_v8 = vrot.slane %v6320_v36, 2  ;;  %v15959_v33 = vsel %vm998_vm2, %v6424_v24, %v6426_v53 }
 0x6b4   : > { %v10874_v19 = vpop.permute.xlu0 %10873  ;;  %v10841_v63 = vunpack.i.h.bf16 %v15843_v0  ;;  %v10860_v59 = vunpack.i.l.bf16 %v15865_v13  ;;  %v6605_v55 = vrot.slane %v15926_v2, 2  ;;  %v10861_v24 = vunpack.i.h.bf16 %v15865_v13 }
 0x6b5   : > { %v10876_v14 = vunpack.i.h.bf16 %v10874_v19  ;;  %v10875_v5 = vunpack.i.l.bf16 %v10874_v19  ;;  %v15913_v7 = vpop.permute.xlu1 %10898  ;;  %v6602_v19 = vrot.slane %v6319_v38, 2  ;;  %v15966_v23 = vsel %vm998_vm2, %v6428_v1, %v6429_v20 }
 0x6b6   : > { %6499 = vrot.lane.b32.xlu1 %v15882_v62, %s18554_s11  ;;  %6501 = vrot.lane.b32.xlu0 %v15907_v26, %s18554_s11  ;;  %v10865_v61 = vunpack.i.l.bf16 %v15887_v43 }
 0x6b7   : > { %v5812_v18 = vsel %vm545_vm6, %v5780_v10, %v10875_v5  ;;  %v5813_v28 = vsel %vm545_vm6, %v5781_v45, %v10876_v14  ;;  %v11044_v14 = vld [vmem:[#allocation2 + $0x128] sm:$0xff]  ;;  %v11045_v10 = vld [vmem:[#allocation2 + $0x120] sm:$0xff] }
 0x6b8   : > { %v10884_v29 = vpop.permute.xlu0 %10883  ;;  %v5845_v9 = vpack.c.bf16 %v5813_v28, %v5812_v18  ;;  %v5590_v5 = vsel %vm489_vm0, %v11044_v14, %v10811_v41  ;;  %v5589_v45 = vsel %vm489_vm0, %v11045_v10, %v10810_v35 }
 0x6b9   : > { %v15928_v27 = vpop.permute.xlu1 %10903  ;;  %v5621_v48 = vsel %vm2054_vm11, %v5589_v45, %v10815_v21  ;;  %v5622_v18 = vsel %vm2054_vm11, %v5590_v5, %v10816_v49  ;;  %v10886_v28 = vunpack.i.h.bf16 %v10884_v29  ;;  %v10885_v39 = vunpack.i.l.bf16 %v10884_v29 }
 0x6ba   : > { %6844 = vrot.lane.b32.xlu1 %v15933_v11, %s18554_s11  ;;  %6846 = vrot.lane.b32.xlu0 %v15938_v46, %s18554_s11  ;;  %v5653_v38 = vsel %vm2211_vm13, %v5621_v48, %v10840_v31  ;;  %v5654_v13 = vsel %vm2211_vm13, %v5622_v18, %v10841_v63  ;;  %v15990_v29 = vsel %vm1175_vm4, %v6600_v37, %v6602_v19  ;;  %v6322_v19 = vld [vmem:[#allocation3 + $0x58] sm:$0x3]  ;;  %v10851_v48 = vunpack.i.h.bf16 %v15847_v30 }
 0x6bb   : > { %8787 = vmatprep.mubr.msk.bf16.mxu0 %vm5969_vm3, %v5845_v9  ;;  %v10866_v9 = vunpack.i.h.bf16 %v15887_v43  ;;  %v5685_v53 = vsel %vm3995_vm12, %v5653_v38, %v10860_v59  ;;  %v15995_v43 = vsel %vm1175_vm4, %v6604_v8, %v6605_v55  ;;  %v5686_v35 = vsel %vm3995_vm12, %v5654_v13, %v10861_v24 }
 0x6bc   : > { %6142 = vmatmul.mubr.bf16.gmra.mxu0 %v5844_v60  ;;  %v15948_v3 = vpop.permute.xlu0 %10888  ;;  %18585 = vst [vmem:[#allocation49_spill] sm:$0xff] %v15995_v43  ;;  %v5718_v49 = vsel %vm5693_vm9, %v5685_v53, %v10865_v61  ;;  %v5750_v21 = vsel %vm1923_vm8, %v10865_v61, %v10885_v39  ;;  %v6431_v61 = vrot.slane %v6322_v19, 1  ;;  %v10850_v18 = vunpack.i.l.bf16 %v15847_v30 }
 0x6bd   : > { %v10909_v32 = vpop.permute.xlu1 %10908  ;;  %v5719_v8 = vsel %vm5693_vm9, %v5686_v35, %v10866_v9  ;;  %v10856_v39 = vunpack.i.h.bf16 %v15856_v6  ;;  %v10855_v38 = vunpack.i.l.bf16 %v15856_v6  ;;  %v10881_v13 = vunpack.i.h.bf16 %v15892_v51  ;;  %v11046_v35 = vld [vmem:[#allocation2 + $0x140] sm:$0xff] }
 0x6be   : > { %6709 = vrot.lane.b32.xlu1 %v15874_v22, %s18554_s11  ;;  %6711 = vrot.lane.b32.xlu0 %v6320_v36, %s18554_s11  ;;  %v10911_v60 = vunpack.i.h.bf16 %v10909_v32  ;;  %v10910_v36 = vunpack.i.l.bf16 %v10909_v32  ;;  %v5751_v32 = vsel %vm1923_vm8, %v10866_v9, %v10886_v28  ;;  %v5846_v24 = vpack.c.bf16 %v5719_v8, %v5718_v49  ;;  %v11047_v49 = vld [vmem:[#allocation2 + $0x138] sm:$0xff] }
 0x6bf   : > { %v10880_v53 = vunpack.i.l.bf16 %v15892_v51  ;;  %v10901_v30 = vunpack.i.h.bf16 %v15913_v7  ;;  %v5592_v6 = vsel %vm489_vm0, %v11046_v35, %v10851_v48 }
 0x6c0   : > { %v15973_v0 = vpop.permute.xlu0 %10893  ;;  %v5783_v22 = vsel %vm2021_vm10, %v5751_v32, %v10911_v60  ;;  %v5782_v37 = vsel %vm2021_vm10, %v5750_v21, %v10910_v36  ;;  %v16028_v60 = vsel %vm998_vm2, %v6429_v20, %v6431_v61  ;;  %v6607_v36 = vrot.slane %v6322_v19, 2 }
 0x6c1   : > { %v15977_v40 = vpop.permute.xlu1 %10923  ;;  %v5591_v21 = vsel %vm489_vm0, %v11047_v49, %v10850_v18  ;;  %v10906_v20 = vunpack.i.h.bf16 %v15928_v27  ;;  %v10905_v32 = vunpack.i.l.bf16 %v15928_v27  ;;  %v10890_v61 = vunpack.i.l.bf16 %v15948_v3 }
 0x6c2   : > { %6503 = vrot.lane.b32.xlu1 %v15959_v33, %s18554_s11  ;;  %6505 = vrot.lane.b32.xlu0 %v15966_v23, %s18554_s11  ;;  %v5623_v51 = vsel %vm2054_vm11, %v5591_v21, %v10855_v38  ;;  %v10926_v19 = vunpack.i.h.bf16 %v15977_v40  ;;  %v10925_v27 = vunpack.i.l.bf16 %v15977_v40  ;;  %v10361_v21 = vunpack.i.h.bf16 %v15103_v52 }
 0x6c4   : > { %v10914_v41 = vpop.permute.xlu0 %10913  ;;  %v5752_v40 = vsel %vm1923_vm8, %v10905_v32, %v10925_v27  ;;  %v5753_v38 = vsel %vm1923_vm8, %v10906_v20, %v10926_v19  ;;  %v11049_v19 = vld [vmem:[#allocation2 + $0x150] sm:$0xff] }
 0x6c5   : > { %v10916_v1 = vunpack.i.h.bf16 %v10914_v41  ;;  %v10915_v31 = vunpack.i.l.bf16 %v10914_v41  ;;  %v16001_v63 = vpop.permute.xlu1 %10928  ;;  %v10900_v41 = vunpack.i.l.bf16 %v15913_v7  ;;  %v16049_v7 = vsel %vm1175_vm4, %v6605_v55, %v6607_v36 }
 0x6c6   : > { %6848 = vrot.lane.b32.xlu1 %v15990_v29, %s18554_s11  ;;  %6850 = vrot.lane.b32.xlu0 %v15995_v43, %s18554_s11  ;;  %18586 = vst [vmem:[#allocation48_spill] sm:$0xff] %v16049_v7  ;;  %v5593_v27 = vsel %vm489_vm0, %v11049_v19, %v10890_v61 }
 0x6c7   : > { %v5814_v59 = vsel %vm545_vm6, %v5782_v37, %v10915_v31  ;;  %v5815_v14 = vsel %vm545_vm6, %v5783_v22, %v10916_v1  ;;  %v5624_v31 = vsel %vm2054_vm11, %v5592_v6, %v10856_v39  ;;  %v5655_v37 = vsel %vm2211_vm13, %v5623_v51, %v10880_v53 }
 0x6c8   : > { %v16012_v5 = vpop.permute.xlu0 %10918  ;;  %v5847_v10 = vpack.c.bf16 %v5815_v14, %v5814_v59  ;;  %v5656_v8 = vsel %vm2211_vm13, %v5624_v31, %v10881_v13  ;;  %v5687_v59 = vsel %vm3995_vm12, %v5655_v37, %v10900_v41  ;;  %v10896_v53 = vunpack.i.h.bf16 %v15973_v0  ;;  %v11048_v37 = vld [vmem:[#allocation2 + $0x158] sm:$0xff] }
 0x6c9   : > { %v16014_v45 = vpop.permute.xlu1 %10933  ;;  %v5688_v14 = vsel %vm3995_vm12, %v5656_v8, %v10901_v30  ;;  %v10895_v30 = vunpack.i.l.bf16 %v15973_v0  ;;  %v10370_v0 = vunpack.i.l.bf16 %v15105_v34 }
 0x6ca   : > { %6713 = vrot.lane.b32.xlu1 %v15926_v2, %s18554_s11  ;;  %8788 = vmatprep.mubr.msk.bf16.mxu0 %vm5969_vm3, %v5847_v10  ;;  %v5720_v2 = vsel %vm5693_vm9, %v5687_v59, %v10905_v32  ;;  %v5721_v55 = vsel %vm5693_vm9, %v5688_v14, %v10906_v20  ;;  %v10360_v20 = vunpack.i.l.bf16 %v15103_v52  ;;  %v10366_v59 = vunpack.i.h.bf16 %v15107_v57 }
 0x6cb   : > { %6150 = vmatmul.mubr.bf16.gmra.mxu0 %v5846_v24  ;;  %v10891_v24 = vunpack.i.h.bf16 %v15948_v3  ;;  %v5848_v31 = vpack.c.bf16 %v5721_v55, %v5720_v2  ;;  %v10365_v14 = vunpack.i.l.bf16 %v15107_v57  ;;  %v5625_v52 = vsel %vm2054_vm11, %v5593_v27, %v10895_v30 }
 0x6cc   : > { %v16021_v28 = vpop.permute.xlu0 %10938  ;;  %v10921_v2 = vunpack.i.h.bf16 %v16012_v5  ;;  %v10920_v55 = vunpack.i.l.bf16 %v16012_v5  ;;  %v10936_v61 = vunpack.i.h.bf16 %v16014_v45  ;;  %v10935_v57 = vunpack.i.l.bf16 %v16014_v45 }
 0x6cd   : > { %v10954_v9 = vpop.permute.xlu1 %10953  ;;  %v5594_v8 = vsel %vm489_vm0, %v11048_v37, %v10891_v24 }
 0x6ce   : > { %6507 = vrot.lane.b32.xlu1 %v16028_v60, %s18554_s11  ;;  %v10956_v36 = vunpack.i.h.bf16 %v10954_v9  ;;  %v10955_v13 = vunpack.i.l.bf16 %v10954_v9  ;;  %v10371_v9 = vunpack.i.h.bf16 %v15105_v34  ;;  %v10930_v34 = vunpack.i.l.bf16 %v16001_v63 }
 0x6d0   : > { %v16040_v1 = vpop.permute.xlu0 %10943 }
 0x6d1   : > { %v16044_v22 = vpop.permute.xlu1 %10958 }
 0x6d2   : > { %6852 = vrot.lane.b32.xlu1 %v16049_v7, %s18554_s11 }
 0x6d4   : > { %v10949_v10 = vpop.permute.xlu0 %10948 }
 0x6d5   : > { %v10951_v48 = vunpack.i.h.bf16 %v10949_v10  ;;  %v10950_v18 = vunpack.i.l.bf16 %v10949_v10  ;;  %v10964_v39 = vpop.permute.xlu1 %10963  ;;  %v5626_v10 = vsel %vm2054_vm11, %v5594_v8, %v10896_v53 }
 0x6d7   : > { %v5784_v41 = vsel %vm2021_vm10, %v5752_v40, %v10950_v18  ;;  %v5785_v35 = vsel %vm2021_vm10, %v5753_v38, %v10951_v48  ;;  %v10931_v48 = vunpack.i.h.bf16 %v16001_v63  ;;  %v10941_v18 = vunpack.i.h.bf16 %v16021_v28 }
 0x6d8   : > { %v16069_v6 = vpop.permute.xlu0 %7525  ;;  %v5816_v3 = vsel %vm545_vm6, %v5784_v41, %v10955_v13  ;;  %v5817_v49 = vsel %vm545_vm6, %v5785_v35, %v10956_v36  ;;  %v10940_v40 = vunpack.i.l.bf16 %v16021_v28  ;;  %v10966_v36 = vunpack.i.h.bf16 %v10964_v39 }
 0x6d9   : > { %18587 = vst [vmem:[#allocation82_spill] sm:$0xff] %v16069_v6  ;;  %v16076_v32 = vpop.permute.xlu1 %10968  ;;  %v5849_v51 = vpack.c.bf16 %v5817_v49, %v5816_v3  ;;  %v10965_v13 = vunpack.i.l.bf16 %v10964_v39  ;;  %v10946_v63 = vunpack.i.h.bf16 %v16040_v1  ;;  %v10945_v41 = vunpack.i.l.bf16 %v16040_v1 }
 0x6da   : > { %v5657_v3 = vsel %vm2211_vm13, %v5625_v52, %v10920_v55  ;;  %v5658_v49 = vsel %vm2211_vm13, %v5626_v10, %v10921_v2 }
 0x6db   : > { %8789 = vmatprep.mubr.msk.bf16.mxu1 %vm5969_vm3, %v5849_v51  ;;  %v5689_v37 = vsel %vm3995_vm12, %v5657_v3, %v10940_v40  ;;  %v5690_v8 = vsel %vm3995_vm12, %v5658_v49, %v10941_v18  ;;  %v5755_v1 = vsel %vm1923_vm8, %v10946_v63, %v10966_v36  ;;  %v5754_v19 = vsel %vm1923_vm8, %v10945_v41, %v10965_v13 }
 0x6dc   : > { %v10979_v24 = vpop.permute.xlu0 %10978  ;;  %6158 = vmatmul.mubr.bf16.vlgmr.msra.gmra.mxu1 %v5848_v31  ;;  %v10961_v18 = vunpack.i.h.bf16 %v16044_v22  ;;  %v10960_v40 = vunpack.i.l.bf16 %v16044_v22  ;;  %v10971_v36 = vunpack.i.h.bf16 %v16076_v32  ;;  %v10970_v13 = vunpack.i.l.bf16 %v16076_v32 }
 0x6dd   : > { %v10974_v38 = vpop.permute.xlu1 %10973  ;;  %v10981_v5 = vunpack.i.h.bf16 %v10979_v24  ;;  %v10980_v35 = vunpack.i.l.bf16 %v10979_v24 }
 0x6de   : > { %v10976_v53 = vunpack.i.h.bf16 %v10974_v38  ;;  %v10975_v30 = vunpack.i.l.bf16 %v10974_v38 }
 0x6df   : > { %v5786_v10 = vsel %vm2021_vm10, %v5754_v19, %v10980_v35  ;;  %v11051_v35 = vld [vmem:[#allocation2 + $0x168] sm:$0xff] }
 0x6e0   : > { %v5757_v45 = vsel %vm1923_vm8, %v10976_v53, %v10361_v21  ;;  %v5756_v51 = vsel %vm1923_vm8, %v10975_v30, %v10360_v20  ;;  %v5787_v21 = vsel %vm2021_vm10, %v5755_v1, %v10981_v5  ;;  %v5722_v20 = vsel %vm5693_vm9, %v5689_v37, %v10945_v41  ;;  %v11050_v5 = vld [vmem:[#allocation2 + $0x170] sm:$0xff] }
 0x6e1   : > { %v5789_v28 = vsel %vm2021_vm10, %v5757_v45, %v10366_v59  ;;  %v5788_v39 = vsel %vm2021_vm10, %v5756_v51, %v10365_v14  ;;  %v10984_v31 = vpop.permute.xlu1 %10983  ;;  %v5723_v59 = vsel %vm5693_vm9, %v5690_v8, %v10946_v63  ;;  %v5596_v63 = vsel %vm489_vm0, %v11050_v5, %v10931_v48  ;;  %v16141_v8 = vld [vmem:[%s17855_s7] ss:$0 sm:$0xff] }
 0x6e2   : > { %v10986_v27 = vunpack.i.h.bf16 %v10984_v31  ;;  %v10985_v52 = vunpack.i.l.bf16 %v10984_v31  ;;  %v5820_v55 = vsel %vm545_vm6, %v5788_v39, %v10370_v0  ;;  %v5821_v24 = vsel %vm545_vm6, %v5789_v28, %v10371_v9  ;;  %v16136_v31 = vpop.permute.xlu0 %7609 }
 0x6e3   : > { %v5850_v41 = vpack.c.bf16 %v5723_v59, %v5722_v20  ;;  %v5595_v3 = vsel %vm489_vm0, %v11051_v35, %v10930_v34  ;;  %v5853_v0 = vpack.c.bf16 %v5821_v24, %v5820_v55  ;;  %v5628_v49 = vsel %vm2054_vm11, %v5596_v63, %v10936_v61  ;;  %18591 = vst [vmem:[#allocation85_spill] sm:$0xff] %v16136_v31 }
 0x6e4   : > { %v5818_v14 = vsel %vm545_vm6, %v5786_v10, %v10985_v52  ;;  %v5819_v2 = vsel %vm545_vm6, %v5787_v21, %v10986_v27  ;;  %v5627_v9 = vsel %vm2054_vm11, %v5595_v3, %v10935_v57  ;;  %v5660_v45 = vsel %vm2211_vm13, %v5628_v49, %v10961_v18 }
 0x6e5   : > { %v5851_v38 = vpack.c.bf16 %v5819_v2, %v5818_v14  ;;  %v5659_v22 = vsel %vm2211_vm13, %v5627_v9, %v10960_v40  ;;  %v5692_v48 = vsel %vm3995_vm12, %v5660_v45, %v10971_v36  ;;  %v16130_v28 = vpop.permute.xlu1 %7532 }
 0x6e6   : > { %v5691_v32 = vsel %vm3995_vm12, %v5659_v22, %v10970_v13  ;;  %v5725_v51 = vsel %vm5693_vm9, %v5692_v48, %v10976_v53  ;;  %18588 = vst [vmem:[#allocation35_spill] sm:$0xff] %v16130_v28  ;;  %v16147_v21 = vpop.permute.xlu0 %7620 }
 0x6e7   : > { %8790 = vmatprep.mubr.msk.bf16.mxu1 %vm5969_vm3, %v5851_v38  ;;  %v5724_v34 = vsel %vm5693_vm9, %v5691_v32, %v10975_v30  ;;  %18593 = vst [vmem:[#allocation86_spill] sm:$0xff] %v16147_v21 }
 0x6e8   : > { %6166 = vmatmul.mubr.bf16.gmra.mxu1 %v5850_v41  ;;  %v5852_v57 = vpack.c.bf16 %v5725_v51, %v5724_v34 }
 0x6e9   : > { %8791 = vmatprep.mubr.msk.bf16.mxu1 %vm5969_vm3, %v5853_v0  ;;  %v16132_v61 = vpop.permute.xlu1 %7536 }
 0x6ea   : > { %18589 = vst [vmem:[#allocation83_spill] sm:$0xff] %v16132_v61  ;;  %v16153_v55 = vpop.permute.xlu0 %7543 }
 0x6eb   : > { %18595 = vst [vmem:[#allocation50_spill] sm:$0xff] %v16153_v55 }
 0x6ed   : > { %v16134_v39 = vpop.permute.xlu1 %7613 }
 0x6ee   : > { %18590 = vst [vmem:[#allocation84_spill] sm:$0xff] %v16134_v39  ;;  %v16159_v41 = vpop.permute.xlu0 %7631 }
 0x6ef   : > { %18597 = vst [vmem:[#allocation14_spill] sm:$0xff] %v16159_v41 }
 0x6f0   : > { %6174 = vmatmul.mubr.bf16.gmra.mxu1 %v5852_v57 }
 0x6f1   : > { %v16144_v27 = vpop.permute.xlu1 %7624 }
 0x6f2   : > { %18592 = vst [vmem:[#allocation40_spill] sm:$0xff] %v16144_v27 }
 0x6f5   : > { %v16151_v2 = vpop.permute.xlu1 %7547 }
 0x6f6   : > { %18594 = vst [vmem:[#allocation87_spill] sm:$0xff] %v16151_v2 }
 0x6f8   : > { %v6079_v37 = vpop.f32.mrf.mxu0 }
 0x6f9   : > { %v6080_v30 = vadd.f32 %v16141_v8, %v6079_v37  ;;  %v16156_v40 = vpop.permute.xlu1 %7635 }
 0x6fa   : > { %v6081_v1 = vpop.f32.mrf.mxu0  ;;  %18596 = vst [vmem:[#allocation42_spill] sm:$0xff] %v16156_v40 }
 0x6fb   : > { %vm6188_vm0 = vcmp.gt.f32.partialorder %v6080_v30, 0.0  ;;  %v6220_v53 = vmul.f32 0.1, %v6080_v30  ;;  %v16176_v1 = vpop.permute.xlu0 %7554 }
 0x6fc   : > { %v6082_v19 = vpop.f32.mrf.mxu0  ;;  %18601 = vst [vmem:[#allocation34_spill] sm:$0xff] %v16176_v1 }
 0x6fd   : > { %v6252_v52 = vsel %vm6188_vm0, %v6080_v30, %v6220_v53  ;;  %v6083_v10 = vadd.f32 %v16141_v8, %v6082_v19  ;;  %v16174_v37 = vpop.permute.xlu1 %7558 }
 0x6fe   : > { %6285 = vst.msk [vmem:[#allocation3 + $0x61] sm:$0xff] %vm545_vm6, %v6252_v52  ;;  %v6084_v20 = vpop.f32.mrf.mxu0  ;;  %18600 = vst [vmem:[#allocation37_spill] sm:$0xff] %v16174_v37 }
 0x6ff   : > { %vm6189_vm10 = vcmp.gt.f32.partialorder %v6083_v10, 0.0  ;;  %v6221_v59 = vmul.f32 0.1, %v6083_v10 }
 0x701   : > { %v6253_v14 = vsel %vm6189_vm10, %v6083_v10, %v6221_v59  ;;  %v16189_v10 = vpop.permute.xlu1 %7646  ;;  %v16191_v59 = vpop.permute.xlu0 %7642 }
 0x702   : > { %6286 = vst.msk [vmem:[#allocation3 + $0x69] sm:$0xff] %vm545_vm6, %v6253_v14  ;;  %18602 = vst [vmem:[#allocation16_spill] sm:$0xff] %v16189_v10 }
 0x703   : > { %18603 = vst [vmem:[#allocation13_spill] sm:$0xff] %v16191_v59 }
 0x705   : > { %v6323_v24 = vld [vmem:[#allocation3 + $0x60] sm:$0xff] }
 0x706   : > { %6715 = vrot.lane.b32.xlu0 %v6323_v24, %s18554_s11  ;;  %v6433_v5 = vrot.slane %v6323_v24, 1  ;;  %v6609_v51 = vrot.slane %v6323_v24, 2 }
 0x708   : > { %v6087_v18 = vpop.f32.mrf.mxu0 }
 0x709   : > { %v6088_v38 = vadd.f32 %v16141_v8, %v6087_v18  ;;  %v6324_v36 = vld [vmem:[#allocation3 + $0x68] sm:$0xff]  ;;  %v6325_v13 = vld [vmem:[#allocation3 + $0x70] sm:$0x3] }
 0x70a   : > { %v6089_v63 = vpop.f32.mrf.mxu0  ;;  %6717 = vrot.lane.b32.xlu1 %v6324_v36, %s18554_s11  ;;  %v6434_v35 = vrot.slane %v6324_v36, 1  ;;  %v6436_v3 = vrot.slane %v6325_v13, 1  ;;  %v6610_v9 = vrot.slane %v6324_v36, 2  ;;  %v6612_v34 = vrot.slane %v6325_v13, 2 }
 0x70b   : > { %vm6190_vm11 = vcmp.gt.f32.partialorder %v6088_v38, 0.0  ;;  %v6222_v0 = vmul.f32 0.1, %v6088_v38 }
 0x70c   : > { %v6090_v49 = vpop.f32.mrf.mxu0  ;;  %v16163_v22 = vsel %vm998_vm2, %v6433_v5, %v6434_v35  ;;  %v16166_v45 = vsel %vm998_vm2, %v6434_v35, %v6436_v3  ;;  %v16179_v53 = vsel %vm1175_vm4, %v6609_v51, %v6610_v9  ;;  %v16184_v52 = vsel %vm1175_vm4, %v6610_v9, %v6612_v34  ;;  %v16196_v35 = vpop.permute.xlu1 %7569 }
 0x70d   : > { %18598 = vst [vmem:[#allocation33_spill] sm:$0xff] %v16163_v22  ;;  %18599 = vst [vmem:[#allocation39_spill] sm:$0xff] %v16166_v45  ;;  %v6254_v32 = vsel %vm6190_vm11, %v6088_v38, %v6222_v0  ;;  %v6091_v48 = vadd.f32 %v16141_v8, %v6090_v49  ;;  %6509 = vrot.lane.b32.xlu0 %v16163_v22, %s18554_s11  ;;  %v16198_v0 = vpop.permute.xlu0 %7565 }
 0x70e   : > { %6287 = vst.msk [vmem:[#allocation3 + $0x79] sm:$0xff] %vm545_vm6, %v6254_v32  ;;  %v6092_v57 = vpop.f32.mrf.mxu0  ;;  %6511 = vrot.lane.b32.xlu1 %v16166_v45, %s18554_s11  ;;  %18604 = vst [vmem:[#allocation56_spill] sm:$0xff] %v16196_v35 }
 0x70f   : > { %vm6191_vm13 = vcmp.gt.f32.partialorder %v6091_v48, 0.0  ;;  %v6223_v30 = vmul.f32 0.1, %v6091_v48  ;;  %18605 = vst [vmem:[#allocation44_spill] sm:$0xff] %v16198_v0 }
 0x711   : > { %v6255_v19 = vsel %vm6191_vm13, %v6091_v48, %v6223_v30  ;;  %6854 = vrot.lane.b32.xlu0 %v16179_v53, %s18554_s11 }
 0x712   : > { %6288 = vst.msk [vmem:[#allocation3 + $0x81] sm:$0xff] %vm545_vm6, %v6255_v19  ;;  %6856 = vrot.lane.b32.xlu1 %v16184_v52, %s18554_s11 }
 0x715   : > { %v6326_v20 = vld [vmem:[#allocation3 + $0x78] sm:$0xff] }
 0x716   : > { %6719 = vrot.lane.b32.xlu0 %v6326_v20, %s18554_s11  ;;  %v6438_v36 = vrot.slane %v6326_v20, 1  ;;  %v6614_v30 = vrot.slane %v6326_v20, 2  ;;  %v16222_v20 = vpop.permute.xlu0 %7653 }
 0x717   : > { %18609 = vst [vmem:[#allocation25_spill] sm:$0xff] %v16222_v20 }
 0x719   : > { %v6095_v14 = vpop.f32.mrf.mxu0  ;;  %v6327_v18 = vld [vmem:[#allocation3 + $0x80] sm:$0xff]  ;;  %v6328_v38 = vld [vmem:[#allocation3 + $0x88] sm:$0x3] }
 0x71a   : > { %v6096_v24 = vadd.f32 %v16141_v8, %v6095_v14  ;;  %v6439_v5 = vrot.slane %v6327_v18, 1  ;;  %6721 = vrot.lane.b32.xlu1 %v6327_v18, %s18554_s11  ;;  %v6441_v63 = vrot.slane %v6328_v38, 1  ;;  %v6615_v9 = vrot.slane %v6327_v18, 2 }
 0x71b   : > { %v6097_v13 = vpop.f32.mrf.mxu0  ;;  %v6617_v57 = vrot.slane %v6328_v38, 2 }
 0x71c   : > { %vm6192_vm12 = vcmp.gt.f32.partialorder %v6096_v24, 0.0  ;;  %v6224_v3 = vmul.f32 0.1, %v6096_v24  ;;  %v16201_v32 = vsel %vm998_vm2, %v6438_v36, %v6439_v5  ;;  %v16204_v48 = vsel %vm998_vm2, %v6439_v5, %v6441_v63  ;;  %v16215_v36 = vpop.permute.xlu1 %7657  ;;  %v16230_v63 = vpop.permute.xlu0 %7576 }
 0x71d   : > { %v6098_v49 = vpop.f32.mrf.mxu0  ;;  %18606 = vst [vmem:[#allocation19_spill] sm:$0xff] %v16201_v32  ;;  %18607 = vst [vmem:[#allocation23_spill] sm:$0xff] %v16204_v48  ;;  %6513 = vrot.lane.b32.xlu0 %v16201_v32, %s18554_s11  ;;  %v16213_v18 = vsel %vm1175_vm4, %v6614_v30, %v6615_v9  ;;  %v16220_v38 = vsel %vm1175_vm4, %v6615_v9, %v6617_v57 }
 0x71e   : > { %v6256_v34 = vsel %vm6192_vm12, %v6096_v24, %v6224_v3  ;;  %v6099_v51 = vadd.f32 %v16141_v8, %v6098_v49  ;;  %6515 = vrot.lane.b32.xlu1 %v16204_v48, %s18554_s11  ;;  %18608 = vst [vmem:[#allocation30_spill] sm:$0xff] %v16215_v36  ;;  %18611 = vst [vmem:[#allocation20_spill] sm:$0xff] %v16230_v63 }
 0x71f   : > { %6289 = vst.msk [vmem:[#allocation3 + $0x91] sm:$0xff] %vm545_vm6, %v6256_v34  ;;  %v6100_v19 = vpop.f32.mrf.mxu0 }
 0x720   : > { %vm6193_vm9 = vcmp.gt.f32.partialorder %v6099_v51, 0.0  ;;  %v6225_v14 = vmul.f32 0.1, %v6099_v51  ;;  %v16228_v5 = vpop.permute.xlu1 %7580  ;;  %v16245_v41 = vpop.permute.xlu0 %7664 }
 0x721   : > { %6858 = vrot.lane.b32.xlu0 %v16213_v18, %s18554_s11  ;;  %18610 = vst [vmem:[#allocation60_spill] sm:$0xff] %v16228_v5  ;;  %18615 = vst [vmem:[#allocation27_spill] sm:$0xff] %v16245_v41 }
 0x722   : > { %v6257_v24 = vsel %vm6193_vm9, %v6099_v51, %v6225_v14  ;;  %6860 = vrot.lane.b32.xlu1 %v16220_v38, %s18554_s11 }
 0x723   : > { %6290 = vst.msk [vmem:[#allocation3 + $0x99] sm:$0xff] %vm545_vm6, %v6257_v24 }
 0x724   : > { %v16240_v59 = vpop.permute.xlu1 %7668 }
 0x725   : > { %18614 = vst [vmem:[#allocation76_spill] sm:$0xff] %v16240_v59 }
 0x726   : > { %v6329_v13 = vld [vmem:[#allocation3 + $0x90] sm:$0xff] }
 0x727   : > { %6723 = vrot.lane.b32.xlu0 %v6329_v13, %s18554_s11  ;;  %v6443_v51 = vrot.slane %v6329_v13, 1  ;;  %v6619_v40 = vrot.slane %v6329_v13, 2 }
 0x728   : > { %v16261_v13 = vpop.permute.xlu1 %7591 }
 0x729   : > { %v6103_v3 = vpop.f32.mrf.mxu0  ;;  %18616 = vst [vmem:[#allocation24_spill] sm:$0xff] %v16261_v13 }
 0x72a   : > { %v6104_v49 = vadd.f32 %v16141_v8, %v6103_v3  ;;  %v6330_v34 = vld [vmem:[#allocation3 + $0x98] sm:$0xff]  ;;  %v6331_v9 = vld [vmem:[#allocation3 + $0xa0] sm:$0x3] }
 0x72b   : > { %v6105_v57 = vpop.f32.mrf.mxu0  ;;  %v6444_v30 = vrot.slane %v6330_v34, 1  ;;  %6725 = vrot.lane.b32.xlu1 %v6330_v34, %s18554_s11  ;;  %v6446_v19 = vrot.slane %v6331_v9, 1  ;;  %v6620_v24 = vrot.slane %v6330_v34, 2 }
 0x72c   : > { %vm6194_vm3 = vcmp.gt.f32.partialorder %v6104_v49, 0.0  ;;  %v6226_v14 = vmul.f32 0.1, %v6104_v49  ;;  %v6622_v57 = vrot.slane %v6331_v9, 2  ;;  %v16263_v9 = vpop.permute.xlu0 %7587 }
 0x72d   : > { %v6106_v16 = vpop.f32.mrf.mxu0  ;;  %v16235_v36 = vsel %vm998_vm2, %v6443_v51, %v6444_v30  ;;  %v16238_v20 = vsel %vm998_vm2, %v6444_v30, %v6446_v19  ;;  %v16251_v30 = vsel %vm1175_vm4, %v6619_v40, %v6620_v24  ;;  %18617 = vst [vmem:[#allocation29_spill] sm:$0xff] %v16263_v9 }
 0x72e   : > { %18612 = vst [vmem:[#allocation55_spill] sm:$0xff] %v16235_v36  ;;  %18613 = vst [vmem:[#allocation41_spill] sm:$0xff] %v16238_v20  ;;  %v6258_v3 = vsel %vm6194_vm3, %v6104_v49, %v6226_v14  ;;  %v6107_v10 = vadd.f32 %v16141_v8, %v6106_v16  ;;  %6517 = vrot.lane.b32.xlu0 %v16235_v36, %s18554_s11  ;;  %v16256_v16 = vsel %vm1175_vm4, %v6620_v24, %v6622_v57  ;;  %v16267_v14 = vpop.permute.xlu1 %7679 }
 0x72f   : > { %6291 = vst.msk [vmem:[#allocation3 + $0xa9] sm:$0xff] %vm545_vm6, %v6258_v3  ;;  %v6108_v34 = vpop.f32.mrf.mxu0  ;;  %6519 = vrot.lane.b32.xlu1 %v16238_v20, %s18554_s11  ;;  %18618 = vst [vmem:[#allocation47_spill] sm:$0xff] %v16267_v14 }
 0x730   : > { %vm6195_vm5 = vcmp.gt.f32.partialorder %v6107_v10, 0.0  ;;  %v6227_v51 = vmul.f32 0.1, %v6107_v10  ;;  %v16269_v34 = vpop.permute.xlu0 %7675 }
 0x731   : > { %18619 = vst [vmem:[#allocation31_spill] sm:$0xff] %v16269_v34 }
 0x732   : > { %v6259_v49 = vsel %vm6195_vm5, %v6107_v10, %v6227_v51  ;;  %6862 = vrot.lane.b32.xlu0 %v16251_v30, %s18554_s11 }
 0x733   : > { %6292 = vst.msk [vmem:[#allocation3 + $0xb1] sm:$0xff] %vm545_vm6, %v6259_v49  ;;  %6864 = vrot.lane.b32.xlu1 %v16256_v16, %s18554_s11 }
 0x736   : > { %v6332_v19 = vld [vmem:[#allocation3 + $0xa8] sm:$0xff] }
 0x737   : > { %6727 = vrot.lane.b32.xlu0 %v6332_v19, %s18554_s11  ;;  %v6448_v51 = vrot.slane %v6332_v19, 1  ;;  %v6624_v9 = vrot.slane %v6332_v19, 2 }
 0x738   : > { %v6111_v40 = vpop.f32.mrf.mxu0 }
 0x739   : > { %v6112_v10 = vadd.f32 %v16141_v8, %v6111_v40 }
 0x73a   : > { %v6113_v3 = vpop.f32.mrf.mxu0  ;;  %v6333_v24 = vld [vmem:[#allocation3 + $0xb0] sm:$0xff]  ;;  %v6334_v57 = vld [vmem:[#allocation3 + $0xb8] sm:$0x3] }
 0x73b   : > { %vm6196_vm15 = vcmp.gt.f32.partialorder %v6112_v10, 0.0  ;;  %v6228_v49 = vmul.f32 0.1, %v6112_v10  ;;  %v6449_v59 = vrot.slane %v6333_v24, 1  ;;  %6729 = vrot.lane.b32.xlu1 %v6333_v24, %s18554_s11  ;;  %v6451_v21 = vrot.slane %v6334_v57, 1 }
 0x73c   : > { %v6114_v41 = vpop.f32.mrf.mxu0  ;;  %v6625_v31 = vrot.slane %v6333_v24, 2  ;;  %v6627_v34 = vrot.slane %v6334_v57, 2 }
 0x73d   : > { %v6260_v27 = vsel %vm6196_vm15, %v6112_v10, %v6228_v49  ;;  %v6115_v39 = vadd.f32 %v16141_v8, %v6114_v41  ;;  %v16274_v40 = vsel %vm998_vm2, %v6448_v51, %v6449_v59  ;;  %v16280_v14 = vsel %vm998_vm2, %v6449_v59, %v6451_v21  ;;  %v16284_v41 = vpop.permute.xlu1 %7602  ;;  %v16286_v10 = vpop.permute.xlu0 %7598 }
 0x73e   : > { %18620 = vst [vmem:[#allocation32_spill] sm:$0xff] %v16274_v40  ;;  %6293 = vst.msk [vmem:[#allocation3 + $0xc1] sm:$0xff] %vm545_vm6, %v6260_v27  ;;  %6521 = vrot.lane.b32.xlu0 %v16274_v40, %s18554_s11  ;;  %v6116_v3 = vpop.f32.mrf.mxu0  ;;  %v16289_v27 = vsel %vm1175_vm4, %v6624_v9, %v6625_v31  ;;  %v16295_v21 = vsel %vm1175_vm4, %v6625_v31, %v6627_v34 }
 0x73f   : > { %18621 = vst [vmem:[#allocation15_spill] sm:$0xff] %v16280_v14  ;;  %vm6197_vm7 = vcmp.gt.f32.partialorder %v6115_v39, 0.0  ;;  %v6229_v13 = vmul.f32 0.1, %v6115_v39  ;;  %6523 = vrot.lane.b32.xlu1 %v16280_v14, %s18554_s11  ;;  %18622 = vst [vmem:[#allocation36_spill] sm:$0xff] %v16284_v41 }
 0x740   : > { %18623 = vst [vmem:[#allocation18_spill] sm:$0xff] %v16286_v10  ;;  %18624 = vst [vmem:[#allocation38_spill] sm:$0xff] %v16295_v21 }
 0x741   : > { %v6261_v24 = vsel %vm6197_vm7, %v6115_v39, %v6229_v13  ;;  %v16299_v19 = vpop.permute.xlu1 %7690  ;;  %v16302_v39 = vpop.permute.xlu0 %7686 }
 0x742   : > { %6294 = vst.msk [vmem:[#allocation3 + $0xc9] sm:$0xff] %vm545_vm6, %v6261_v24  ;;  %6866 = vrot.lane.b32.xlu0 %v16289_v27, %s18554_s11  ;;  %18625 = vst [vmem:[#allocation52_spill] sm:$0xff] %v16299_v19 }
 0x743   : > { %6868 = vrot.lane.b32.xlu1 %v16295_v21, %s18554_s11  ;;  %18626 = vst [vmem:[#allocation45_spill] sm:$0xff] %v16302_v39 }
 0x745   : > { %v6335_v59 = vld [vmem:[#allocation3 + $0xc0] sm:$0xff]  ;;  %v16306_v10 = vpop.permute.xlu1 %6705  ;;  %v16314_v63 = vpop.permute.xlu0 %6703 }
 0x746   : > { %6731 = vrot.lane.b32.xlu0 %v6335_v59, %s18554_s11  ;;  %v6453_v51 = vrot.slane %v6335_v59, 1  ;;  %v6629_v0 = vrot.slane %v6335_v59, 2 }
 0x749   : > { %v6119_v13 = vpop.f32.mrf.mxu0  ;;  %v6336_v9 = vld [vmem:[#allocation3 + $0xc8] sm:$0xff]  ;;  %v6337_v57 = vld [vmem:[#allocation3 + $0xd0] sm:$0x3]  ;;  %v16330_v59 = vpop.permute.xlu1 %6499 }
 0x74a   : > { %v6120_v49 = vadd.f32 %v16141_v8, %v6119_v13  ;;  %v6454_v3 = vrot.slane %v6336_v9, 1  ;;  %6733 = vrot.lane.b32.xlu1 %v6336_v9, %s18554_s11  ;;  %v6456_v31 = vrot.slane %v6337_v57, 1  ;;  %v6630_v24 = vrot.slane %v6336_v9, 2 }
 0x74b   : > { %v6121_v34 = vpop.f32.mrf.mxu0  ;;  %v6632_v13 = vrot.slane %v6337_v57, 2 }
 0x74c   : > { %vm6198_vm14 = vcmp.gt.f32.partialorder %v6120_v49, 0.0  ;;  %v6230_v19 = vmul.f32 0.1, %v6120_v49  ;;  %v16309_v41 = vsel %vm998_vm2, %v6453_v51, %v6454_v3  ;;  %v16312_v39 = vsel %vm998_vm2, %v6454_v3, %v6456_v31 }
 0x74d   : > { %18627 = vst [vmem:[#allocation59_spill] sm:$0xff] %v16309_v41  ;;  %18628 = vst [vmem:[#allocation21_spill] sm:$0xff] %v16312_v39  ;;  %v6122_v5 = vpop.f32.mrf.mxu0  ;;  %6525 = vrot.lane.b32.xlu0 %v16309_v41, %s18554_s11  ;;  %v16323_v31 = vsel %vm1175_vm4, %v6629_v0, %v6630_v24  ;;  %v16328_v57 = vsel %vm1175_vm4, %v6630_v24, %v6632_v13  ;;  %v16338_v0 = vpop.permute.xlu1 %6844 }
 0x74e   : > { %v6262_v34 = vsel %vm6198_vm14, %v6120_v49, %v6230_v19  ;;  %v6123_v9 = vadd.f32 %v16141_v8, %v6122_v5  ;;  %6527 = vrot.lane.b32.xlu1 %v16312_v39, %s18554_s11  ;;  %18629 = vst [vmem:[#allocation54_spill] sm:$0xff] %v16323_v31  ;;  %18630 = vst [vmem:[#allocation57_spill] sm:$0xff] %v16328_v57  ;;  %v16334_v19 = vpop.permute.xlu0 %6497 }
 0x74f   : > { %6295 = vst.msk [vmem:[#allocation3 + $0xd9] sm:$0xff] %vm545_vm6, %v6262_v34  ;;  %v6124_v51 = vpop.f32.mrf.mxu0 }
 0x750   : > { %vm6199_vm0 = vcmp.gt.f32.partialorder %v6123_v9, 0.0  ;;  %v6231_v3 = vmul.f32 0.1, %v6123_v9 }
 0x751   : > { %6870 = vrot.lane.b32.xlu0 %v16323_v31, %s18554_s11  ;;  %v16348_v15 = vpop.permute.xlu1 %6709 }
 0x752   : > { %v6263_v5 = vsel %vm6199_vm0, %v6123_v9, %v6231_v3  ;;  %6872 = vrot.lane.b32.xlu1 %v16328_v57, %s18554_s11  ;;  %v16340_v51 = vpop.permute.xlu0 %6842 }
 0x753   : > { %6296 = vst.msk [vmem:[#allocation3 + $0xe1] sm:$0xff] %vm545_vm6, %v6263_v5 }
 0x756   : > { %v6338_v49 = vld [vmem:[#allocation3 + $0xd8] sm:$0xff]  ;;  %v16356_v50 = vpop.permute.xlu0 %6707 }
 0x757   : > { %6735 = vrot.lane.b32.xlu0 %v6338_v49, %s18554_s11  ;;  %v6458_v3 = vrot.slane %v6338_v49, 1 }
 0x758   : > { %v6127_v34 = vpop.f32.mrf.mxu0 }
 0x759   : > { %v6128_v24 = vadd.f32 %v16141_v8, %v6127_v34 }
 0x75a   : > { %v6129_v13 = vpop.f32.mrf.mxu0  ;;  %v6339_v35 = vld [vmem:[#allocation3 + $0xe0] sm:$0xff]  ;;  %v6340_v9 = vld [vmem:[#allocation3 + $0xe8] sm:$0x3] }
 0x75b   : > { %vm6200_vm10 = vcmp.gt.f32.partialorder %v6128_v24, 0.0  ;;  %v6232_v1 = vmul.f32 0.1, %v6128_v24  ;;  %v6459_v37 = vrot.slane %v6339_v35, 1  ;;  %6737 = vrot.lane.b32.xlu1 %v6339_v35, %s18554_s11  ;;  %v6461_v55 = vrot.slane %v6340_v9, 1 }
 0x75c   : > { %v6130_v5 = vpop.f32.mrf.mxu0  ;;  %v6635_v28 = vrot.slane %v6339_v35, 2  ;;  %v6637_v58 = vrot.slane %v6340_v9, 2 }
 0x75d   : > { %v6264_v2 = vsel %vm6200_vm10, %v6128_v24, %v6232_v1  ;;  %v6131_v61 = vadd.f32 %v16141_v8, %v6130_v5  ;;  %v16346_v6 = vsel %vm998_vm2, %v6458_v3, %v6459_v37  ;;  %v16354_v13 = vsel %vm998_vm2, %v6459_v37, %v6461_v55  ;;  %v16371_v55 = vpop.permute.xlu1 %6503  ;;  %v16373_v37 = vpop.permute.xlu0 %6501 }
 0x75e   : > { %18631 = vst [vmem:[#allocation58_spill] sm:$0xff] %v16346_v6  ;;  %6297 = vst.msk [vmem:[#allocation3 + $0xf1] sm:$0xff] %vm545_vm6, %v6264_v2  ;;  %6529 = vrot.lane.b32.xlu0 %v16346_v6, %s18554_s11  ;;  %v6132_v34 = vpop.f32.mrf.mxu0  ;;  %v6634_v1 = vrot.slane %v6338_v49, 2  ;;  %v16367_v2 = vsel %vm1175_vm4, %v6635_v28, %v6637_v58 }
 0x75f   : > { %18632 = vst [vmem:[#allocation61_spill] sm:$0xff] %v16354_v13  ;;  %vm6201_vm11 = vcmp.gt.f32.partialorder %v6131_v61, 0.0  ;;  %v6233_v35 = vmul.f32 0.1, %v6131_v61  ;;  %6531 = vrot.lane.b32.xlu1 %v16354_v13, %s18554_s11  ;;  %18634 = vst [vmem:[#allocation62_spill] sm:$0xff] %v16367_v2 }
 0x760   : > { %v16361_v3 = vsel %vm1175_vm4, %v6634_v1, %v6635_v28 }
 0x761   : > { %v6265_v24 = vsel %vm6201_vm11, %v6131_v61, %v6233_v35  ;;  %18633 = vst [vmem:[#allocation22_spill] sm:$0xff] %v16361_v3  ;;  %v16376_v34 = vpop.permute.xlu1 %6848 }
 0x762   : > { %6298 = vst.msk [vmem:[#allocation3 + $0xf9] sm:$0xff] %vm545_vm6, %v6265_v24  ;;  %6874 = vrot.lane.b32.xlu0 %v16361_v3, %s18554_s11  ;;  %v16380_v24 = vpop.permute.xlu0 %6846 }
 0x763   : > { %6876 = vrot.lane.b32.xlu1 %v16367_v2, %s18554_s11 }
 0x765   : > { %v6341_v49 = vld [vmem:[#allocation3 + $0xf0] sm:$0xff] }
 0x766   : > { %6739 = vrot.lane.b32.xlu0 %v6341_v49, %s18554_s11  ;;  %v6463_v1 = vrot.slane %v6341_v49, 1  ;;  %v6639_v20 = vrot.slane %v6341_v49, 2 }
 0x769   : > { %v6135_v61 = vpop.f32.mrf.mxu0  ;;  %v6342_v9 = vld [vmem:[#allocation3 + $0xf8] sm:$0xff]  ;;  %v6343_v5 = vld [vmem:[#allocation3 + $0x100] sm:$0x3] }
 0x76a   : > { %v6136_v35 = vadd.f32 %v16141_v8, %v6135_v61  ;;  %v6464_v58 = vrot.slane %v6342_v9, 1  ;;  %6741 = vrot.lane.b32.xlu1 %v6342_v9, %s18554_s11  ;;  %v6466_v28 = vrot.slane %v6343_v5, 1  ;;  %v6640_v6 = vrot.slane %v6342_v9, 2  ;;  %v16394_v9 = vpop.permute.xlu1 %6713 }
 0x76b   : > { %v6137_v13 = vpop.f32.mrf.mxu0  ;;  %v6642_v61 = vrot.slane %v6343_v5, 2 }
 0x76c   : > { %vm6202_vm13 = vcmp.gt.f32.partialorder %v6136_v35, 0.0  ;;  %v6234_v39 = vmul.f32 0.1, %v6136_v35  ;;  %v16383_v41 = vsel %vm998_vm2, %v6463_v1, %v6464_v58  ;;  %v16386_v14 = vsel %vm998_vm2, %v6464_v58, %v6466_v28  ;;  %v16399_v28 = vpop.permute.xlu0 %6711 }
 0x76d   : > { %18635 = vst [vmem:[#allocation66_spill] sm:$0xff] %v16383_v41  ;;  %18636 = vst [vmem:[#allocation63_spill] sm:$0xff] %v16386_v14  ;;  %v6138_v40 = vpop.f32.mrf.mxu0  ;;  %6533 = vrot.lane.b32.xlu0 %v16383_v41, %s18554_s11  ;;  %v16397_v58 = vsel %vm1175_vm4, %v6639_v20, %v6640_v6 }
 0x76e   : > { %v6266_v36 = vsel %vm6202_vm13, %v6136_v35, %v6234_v39  ;;  %v6139_v48 = vadd.f32 %v16141_v8, %v6138_v40  ;;  %6535 = vrot.lane.b32.xlu1 %v16386_v14, %s18554_s11  ;;  %18637 = vst [vmem:[#allocation43_spill] sm:$0xff] %v16397_v58  ;;  %v16404_v40 = vsel %vm1175_vm4, %v6640_v6, %v6642_v61 }
 0x76f   : > { %6299 = vst.msk [vmem:[#allocation3 + $0x109] sm:$0xff] %vm545_vm6, %v6266_v36  ;;  %v6140_v13 = vpop.f32.mrf.mxu0  ;;  %18638 = vst [vmem:[#allocation64_spill] sm:$0xff] %v16404_v40  ;;  %v16409_v36 = vpop.permute.xlu1 %6507 }
 0x770   : > { %vm6203_vm12 = vcmp.gt.f32.partialorder %v6139_v48, 0.0  ;;  %v6235_v1 = vmul.f32 0.1, %v6139_v48  ;;  %v16413_v20 = vpop.permute.xlu0 %6505 }
 0x771   : > { %6878 = vrot.lane.b32.xlu0 %v16397_v58, %s18554_s11 }
 0x772   : > { %v6267_v39 = vsel %vm6203_vm12, %v6139_v48, %v6235_v1  ;;  %6880 = vrot.lane.b32.xlu1 %v16404_v40, %s18554_s11  ;;  %vm8031_vm12 = vcmask 1041409  }
 0x773   : > { %6300 = vst.msk [vmem:[#allocation3 + $0x111] sm:$0xff] %vm545_vm6, %v6267_v39  ;;  %v16423_v13 = vpop.permute.xlu1 %6852 }
 0x774   : > { %v16425_v39 = vpop.permute.xlu0 %6850 }
 0x776   : > { %v16411_v49 = vld [vmem:[#allocation3 + $0x108] sm:$0xff] }
 0x777   : > { %18639 = vst [vmem:[#allocation67_spill] sm:$0xff] %v16411_v49  ;;  %6743 = vrot.lane.b32.xlu0 %v16411_v49, %s18554_s11  ;;  %v6468_v6 = vrot.slane %v16411_v49, 1  ;;  %v6644_v58 = vrot.slane %v16411_v49, 2 }
 0x77a   : > { %v16417_v5 = vld [vmem:[#allocation3 + $0x110] sm:$0xff]  ;;  %v6346_v35 = vld [vmem:[#allocation3 + $0x118] sm:$0x3] }
 0x77b   : > { %18640 = vst [vmem:[#allocation65_spill] sm:$0xff] %v16417_v5  ;;  %v6469_v48 = vrot.slane %v16417_v5, 1  ;;  %6745 = vrot.lane.b32.xlu1 %v16417_v5, %s18554_s11  ;;  %v6471_v61 = vrot.slane %v6346_v35, 1  ;;  %v6645_v14 = vrot.slane %v16417_v5, 2  ;;  %v6647_v40 = vrot.slane %v6346_v35, 2 }
 0x77c   : > { %v6143_v1 = vpop.f32.mrf.mxu0  ;;  %v16440_v5 = vpop.permute.xlu1 %6717 }
 0x77d   : > { %v6144_v41 = vadd.f32 %v16141_v8, %v6143_v1  ;;  %v16430_v32 = vsel %vm998_vm2, %v6468_v6, %v6469_v48  ;;  %v16433_v45 = vsel %vm998_vm2, %v6469_v48, %v6471_v61  ;;  %18643 = vst [vmem:[#allocation75_spill] sm:$0xff] %v16440_v5  ;;  %v16442_v6 = vpop.permute.xlu0 %6715  ;;  %v16452_v61 = vsel %vm1175_vm4, %v6645_v14, %v6647_v40 }
 0x77e   : > { %18641 = vst [vmem:[#allocation69_spill] sm:$0xff] %v16430_v32  ;;  %18642 = vst [vmem:[#allocation74_spill] sm:$0xff] %v16433_v45  ;;  %v6145_v22 = vpop.f32.mrf.mxu0  ;;  %6537 = vrot.lane.b32.xlu0 %v16430_v32, %s18554_s11 }
 0x77f   : > { %vm6204_vm9 = vcmp.gt.f32.partialorder %v6144_v41, 0.0  ;;  %v6236_v2 = vmul.f32 0.1, %v6144_v41  ;;  %6539 = vrot.lane.b32.xlu1 %v16433_v45, %s18554_s11  ;;  %18644 = vst [vmem:[#allocation79_spill] sm:$0xff] %v16442_v6  ;;  %v16446_v22 = vsel %vm1175_vm4, %v6644_v58, %v6645_v14  ;;  %18646 = vst [vmem:[#allocation78_spill] sm:$0xff] %v16452_v61 }
 0x780   : > { %v6146_v1 = vpop.f32.mrf.mxu0  ;;  %18645 = vst [vmem:[#allocation77_spill] sm:$0xff] %v16446_v22  ;;  %v16459_v58 = vpop.permute.xlu1 %6511 }
 0x781   : > { %v6268_v3 = vsel %vm6204_vm9, %v6144_v41, %v6236_v2  ;;  %v6147_v48 = vadd.f32 %v16141_v8, %v6146_v1  ;;  %v16456_v2 = vpop.permute.xlu0 %6509  ;;  %18648 = vst [vmem:[#allocation70_spill] sm:$0xff] %v16459_v58  ;;  %vm8033_vm9 = vcmask 1042434  }
 0x782   : > { %6301 = vst.msk [vmem:[#allocation3 + $0x121] sm:$0xff] %vm545_vm6, %v6268_v3  ;;  %v6148_v35 = vpop.f32.mrf.mxu0  ;;  %6882 = vrot.lane.b32.xlu0 %v16446_v22, %s18554_s11  ;;  %18647 = vst [vmem:[#allocation68_spill] sm:$0xff] %v16456_v2 }
 0x783   : > { %vm6205_vm3 = vcmp.gt.f32.partialorder %v6147_v48, 0.0  ;;  %v6237_v45 = vmul.f32 0.1, %v6147_v48  ;;  %6884 = vrot.lane.b32.xlu1 %v16452_v61, %s18554_s11 }
 0x784   : > { %v16467_v40 = vpop.permute.xlu1 %6856 }
 0x785   : > { %v6269_v41 = vsel %vm6205_vm3, %v6147_v48, %v6237_v45  ;;  %v16465_v1 = vpop.permute.xlu0 %6854  ;;  %18651 = vst [vmem:[#allocation72_spill] sm:$0xff] %v16467_v40  ;;  %vm8035_vm3 = vcmask 1043459  }
 0x786   : > { %6302 = vst.msk [vmem:[#allocation3 + $0x129] sm:$0xff] %vm545_vm6, %v6269_v41  ;;  %18650 = vst [vmem:[#allocation73_spill] sm:$0xff] %v16465_v1 }
 0x789   : > { %v16461_v3 = vld [vmem:[#allocation3 + $0x120] sm:$0xff]  ;;  %v16483_v2 = vpop.permute.xlu0 %6719 }
 0x78a   : > { %18649 = vst [vmem:[#allocation71_spill] sm:$0xff] %v16461_v3  ;;  %6747 = vrot.lane.b32.xlu0 %v16461_v3, %s18554_s11  ;;  %v6473_v41 = vrot.slane %v16461_v3, 1  ;;  %18655 = vst [vmem:[#allocation46_spill] sm:$0xff] %v16483_v2 }
 0x78b   : > { %v6151_v14 = vpop.f32.mrf.mxu0 }
 0x78c   : > { %v6152_v35 = vadd.f32 %v16141_v8, %v6151_v14  ;;  %v16476_v5 = vpop.permute.xlu1 %6721 }
 0x78d   : > { %v6153_v32 = vpop.f32.mrf.mxu0  ;;  %v16470_v45 = vld [vmem:[#allocation3 + $0x128] sm:$0xff]  ;;  %v6349_v48 = vld [vmem:[#allocation3 + $0x130] sm:$0x3]  ;;  %18653 = vst [vmem:[#allocation26_spill] sm:$0xff] %v16476_v5 }
 0x78e   : > { %18652 = vst [vmem:[#allocation28_spill] sm:$0xff] %v16470_v45  ;;  %vm6206_vm5 = vcmp.gt.f32.partialorder %v6152_v35, 0.0  ;;  %v6238_v49 = vmul.f32 0.1, %v6152_v35  ;;  %v6474_v61 = vrot.slane %v16470_v45, 1  ;;  %6749 = vrot.lane.b32.xlu1 %v16470_v45, %s18554_s11  ;;  %v6476_v1 = vrot.slane %v6349_v48, 1 }
 0x78f   : > { %v6154_v22 = vpop.f32.mrf.mxu0  ;;  %v6650_v14 = vrot.slane %v16470_v45, 2 }
 0x790   : > { %v6270_v58 = vsel %vm6206_vm5, %v6152_v35, %v6238_v49  ;;  %v6155_v32 = vadd.f32 %v16141_v8, %v6154_v22  ;;  %v16481_v40 = vsel %vm998_vm2, %v6473_v41, %v6474_v61  ;;  %v16489_v57 = vsel %vm998_vm2, %v6474_v61, %v6476_v1  ;;  %v16505_v61 = vpop.permute.xlu1 %6515 }
 0x791   : > { %18654 = vst [vmem:[#allocation53_spill] sm:$0xff] %v16481_v40  ;;  %6303 = vst.msk [vmem:[#allocation3 + $0x139] sm:$0xff] %vm545_vm6, %v6270_v58  ;;  %6541 = vrot.lane.b32.xlu0 %v16481_v40, %s18554_s11  ;;  %v6156_v6 = vpop.f32.mrf.mxu0  ;;  %v6652_v49 = vrot.slane %v6349_v48, 2  ;;  %v6649_v35 = vrot.slane %v16461_v3, 2  ;;  %v16498_v58 = vpop.permute.xlu0 %6513  ;;  %vm8037_vm5 = vcmask 1044484  }
 0x792   : > { %18656 = vst [vmem:[#allocation88_spill] sm:$0xff] %v16489_v57  ;;  %vm6207_vm15 = vcmp.gt.f32.partialorder %v6155_v32, 0.0  ;;  %v6239_v45 = vmul.f32 0.1, %v6155_v32  ;;  %6543 = vrot.lane.b32.xlu1 %v16489_v57, %s18554_s11  ;;  %18658 = vst [vmem:[#allocation90_spill] sm:$0xff] %v16498_v58 }
 0x793   : > { %v16495_v41 = vsel %vm1175_vm4, %v6649_v35, %v6650_v14  ;;  %v16503_v6 = vsel %vm1175_vm4, %v6650_v14, %v6652_v49  ;;  %18660 = vst [vmem:[#allocation92_spill] sm:$0xff] %v16505_v61 }
 0x794   : > { %v6271_v22 = vsel %vm6207_vm15, %v6155_v32, %v6239_v45  ;;  %18657 = vst [vmem:[#allocation89_spill] sm:$0xff] %v16495_v41  ;;  %18659 = vst [vmem:[#allocation91_spill] sm:$0xff] %v16503_v6  ;;  %v16515_v48 = vpop.permute.xlu1 %6860  ;;  %vm8039_vm15 = vcmask 1045509  }
 0x795   : > { %6304 = vst.msk [vmem:[#allocation3 + $0x141] sm:$0xff] %vm545_vm6, %v6271_v22  ;;  %6886 = vrot.lane.b32.xlu0 %v16495_v41, %s18554_s11  ;;  %v16513_v45 = vpop.permute.xlu0 %6858  ;;  %18663 = vst [vmem:[#allocation95_spill] sm:$0xff] %v16515_v48 }
 0x796   : > { %6888 = vrot.lane.b32.xlu1 %v16503_v6, %s18554_s11  ;;  %18662 = vst [vmem:[#allocation94_spill] sm:$0xff] %v16513_v45 }
 0x798   : > { %v16509_v1 = vld [vmem:[#allocation3 + $0x138] sm:$0xff] }
 0x799   : > { %18661 = vst [vmem:[#allocation93_spill] sm:$0xff] %v16509_v1  ;;  %6751 = vrot.lane.b32.xlu0 %v16509_v1, %s18554_s11  ;;  %v6478_v14 = vrot.slane %v16509_v1, 1  ;;  %v16535_v5 = vpop.permute.xlu0 %6723 }
 0x79a   : > { %18668 = vst [vmem:[#allocation100_spill] sm:$0xff] %v16535_v5 }
 0x79c   : > { %v6159_v32 = vpop.f32.mrf.mxu1  ;;  %v16517_v35 = vld [vmem:[#allocation3 + $0x140] sm:$0xff]  ;;  %v6352_v22 = vld [vmem:[#allocation3 + $0x148] sm:$0x3] }
 0x79d   : > { %18664 = vst [vmem:[#allocation96_spill] sm:$0xff] %v16517_v35  ;;  %v6160_v49 = vadd.f32 %v16141_v8, %v6159_v32  ;;  %v6479_v57 = vrot.slane %v16517_v35, 1  ;;  %6753 = vrot.lane.b32.xlu1 %v16517_v35, %s18554_s11  ;;  %v6481_v40 = vrot.slane %v6352_v22, 1  ;;  %v6655_v41 = vrot.slane %v16517_v35, 2  ;;  %v16528_v45 = vpop.permute.xlu1 %6725 }
 0x79e   : > { %v6161_v6 = vpop.f32.mrf.mxu1  ;;  %18666 = vst [vmem:[#allocation98_spill] sm:$0xff] %v16528_v45  ;;  %v6657_v58 = vrot.slane %v6352_v22, 2 }
 0x79f   : > { %vm6208_vm7 = vcmp.gt.f32.partialorder %v6160_v49, 0.0  ;;  %v6240_v3 = vmul.f32 0.1, %v6160_v49  ;;  %v16526_v48 = vsel %vm998_vm2, %v6478_v14, %v6479_v57  ;;  %v16533_v32 = vsel %vm998_vm2, %v6479_v57, %v6481_v40 }
 0x7a0   : > { %18665 = vst [vmem:[#allocation97_spill] sm:$0xff] %v16526_v48  ;;  %v6162_v61 = vpop.f32.mrf.mxu1  ;;  %6545 = vrot.lane.b32.xlu0 %v16526_v48, %s18554_s11  ;;  %18667 = vst [vmem:[#allocation99_spill] sm:$0xff] %v16533_v32  ;;  %v6654_v6 = vrot.slane %v16509_v1, 2  ;;  %v16548_v57 = vsel %vm1175_vm4, %v6655_v41, %v6657_v58 }
 0x7a1   : > { %v6272_v2 = vsel %vm6208_vm7, %v6160_v49, %v6240_v3  ;;  %v6163_v35 = vadd.f32 %v16141_v8, %v6162_v61  ;;  %6547 = vrot.lane.b32.xlu1 %v16533_v32, %s18554_s11  ;;  %18670 = vst [vmem:[#allocation102_spill] sm:$0xff] %v16548_v57  ;;  %v16550_v3 = vpop.permute.xlu0 %6517  ;;  %vm8041_vm7 = vcmask 1046534  }
 0x7a2   : > { %6305 = vst.msk [vmem:[#allocation3 + $0x151] sm:$0xff] %vm545_vm6, %v6272_v2  ;;  %v6164_v14 = vpop.f32.mrf.mxu1  ;;  %v16543_v48 = vsel %vm1175_vm4, %v6654_v6, %v6655_v41  ;;  %18671 = vst [vmem:[#allocation103_spill] sm:$0xff] %v16550_v3  ;;  %v16555_v2 = vpop.permute.xlu1 %6519 }
 0x7a3   : > { %vm6209_vm14 = vcmp.gt.f32.partialorder %v6163_v35, 0.0  ;;  %v6241_v45 = vmul.f32 0.1, %v6163_v35  ;;  %18669 = vst [vmem:[#allocation101_spill] sm:$0xff] %v16543_v48  ;;  %18672 = vst [vmem:[#allocation104_spill] sm:$0xff] %v16555_v2 }
 0x7a4   : > { %6890 = vrot.lane.b32.xlu0 %v16543_v48, %s18554_s11 }
 0x7a5   : > { %v6273_v40 = vsel %vm6209_vm14, %v6163_v35, %v6241_v45  ;;  %6892 = vrot.lane.b32.xlu1 %v16548_v57, %s18554_s11  ;;  %v16562_v41 = vpop.permute.xlu0 %6862  ;;  %vm8043_vm14 = vcmask 1047559  }
 0x7a6   : > { %6306 = vst.msk [vmem:[#allocation3 + $0x159] sm:$0xff] %vm545_vm6, %v6273_v40  ;;  %18674 = vst [vmem:[#allocation106_spill] sm:$0xff] %v16562_v41  ;;  %v16564_v45 = vpop.permute.xlu1 %6864 }
 0x7a7   : > { %18675 = vst [vmem:[#allocation107_spill] sm:$0xff] %v16564_v45 }
 0x7a8   : > { %v6167_v61 = vpop.f32.mrf.mxu1 }
 0x7a9   : > { %v6168_v22 = vadd.f32 %v16141_v8, %v6167_v61  ;;  %v16558_v49 = vld [vmem:[#allocation3 + $0x150] sm:$0xff] }
 0x7aa   : > { %18673 = vst [vmem:[#allocation105_spill] sm:$0xff] %v16558_v49  ;;  %v6169_v6 = vpop.f32.mrf.mxu1  ;;  %6755 = vrot.lane.b32.xlu0 %v16558_v49, %s18554_s11  ;;  %v6483_v61 = vrot.slane %v16558_v49, 1 }
 0x7ab   : > { %vm6210_vm0 = vcmp.gt.f32.partialorder %v6168_v22, 0.0  ;;  %v6242_v58 = vmul.f32 0.1, %v6168_v22 }
 0x7ac   : > { %v6170_v35 = vpop.f32.mrf.mxu1 }
 0x7ad   : > { %v6274_v14 = vsel %vm6210_vm0, %v6168_v22, %v6242_v58  ;;  %v6171_v40 = vadd.f32 %v16141_v8, %v6170_v35  ;;  %v16567_v32 = vld [vmem:[#allocation3 + $0x158] sm:$0xff]  ;;  %v6355_v1 = vld [vmem:[#allocation3 + $0x160] sm:$0x3]  ;;  %v16574_v41 = vpop.permute.xlu1 %6729  ;;  %vm8219_vm0 = vcmask 138248  }
 0x7ae   : > { %18676 = vst [vmem:[#allocation108_spill] sm:$0xff] %v16567_v32  ;;  %6307 = vst.msk [vmem:[#allocation3 + $0x169] sm:$0xff] %vm545_vm6, %v6274_v14  ;;  %v6172_v6 = vpop.f32.mrf.mxu1  ;;  %v6484_v57 = vrot.slane %v16567_v32, 1  ;;  %6757 = vrot.lane.b32.xlu1 %v16567_v32, %s18554_s11  ;;  %v6486_v48 = vrot.slane %v6355_v1, 1  ;;  %v6660_v22 = vrot.slane %v16567_v32, 2  ;;  %v6662_v3 = vrot.slane %v6355_v1, 2 }
 0x7af   : > { %vm6211_vm10 = vcmp.gt.f32.partialorder %v6171_v40, 0.0  ;;  %v6243_v45 = vmul.f32 0.1, %v6171_v40  ;;  %18677 = vst [vmem:[#allocation109_spill] sm:$0xff] %v16574_v41  ;;  %v16583_v6 = vpop.permute.xlu0 %6727  ;;  %v6659_v41 = vrot.slane %v16558_v49, 2 }
 0x7b0   : > { %v6175_v58 = vpop.f32.mrf.mxu1  ;;  %v16578_v35 = vsel %vm998_vm2, %v6483_v61, %v6484_v57  ;;  %v16581_v14 = vsel %vm998_vm2, %v6484_v57, %v6486_v48  ;;  %18680 = vst [vmem:[#allocation112_spill] sm:$0xff] %v16583_v6  ;;  %v7067_v49 = vld [vmem:[%s17856_s8] sm:$0x1f] }
 0x7b1   : > { %18678 = vst [vmem:[#allocation110_spill] sm:$0xff] %v16578_v35  ;;  %18679 = vst [vmem:[#allocation111_spill] sm:$0xff] %v16581_v14  ;;  %v6275_v5 = vsel %vm6211_vm10, %v6171_v40, %v6243_v45  ;;  %v6176_v2 = vadd.f32 %v16141_v8, %v6175_v58  ;;  %6549 = vrot.lane.b32.xlu0 %v16578_v35, %s18554_s11  ;;  %v16593_v61 = vsel %vm1175_vm4, %v6659_v41, %v6660_v22  ;;  %v16604_v1 = vpop.permute.xlu1 %6523 }
 0x7b2   : > { %6308 = vst.msk [vmem:[#allocation3 + $0x171] sm:$0xff] %vm545_vm6, %v6275_v5  ;;  %v6177_v32 = vpop.f32.mrf.mxu1  ;;  %6551 = vrot.lane.b32.xlu1 %v16581_v14, %s18554_s11  ;;  %18681 = vst [vmem:[#allocation113_spill] sm:$0xff] %v16593_v61  ;;  %v16601_v5 = vsel %vm1175_vm4, %v6660_v22, %v6662_v3 }
 0x7b3   : > { %vm6212_vm11 = vcmp.gt.f32.partialorder %v6176_v2, 0.0  ;;  %v6244_v48 = vmul.f32 0.1, %v6176_v2  ;;  %v16595_v40 = vpop.permute.xlu0 %6521  ;;  %18683 = vst [vmem:[#allocation115_spill] sm:$0xff] %v16601_v5  ;;  %18684 = vst [vmem:[#allocation116_spill] sm:$0xff] %v16604_v1 }
 0x7b4   : > { %v6178_v57 = vpop.f32.mrf.mxu1  ;;  %18682 = vst [vmem:[#allocation114_spill] sm:$0xff] %v16595_v40 }
 0x7b5   : > { %v6276_v45 = vsel %vm6212_vm11, %v6176_v2, %v6244_v48  ;;  %v6179_v58 = vadd.f32 %v16141_v8, %v6178_v57  ;;  %6894 = vrot.lane.b32.xlu0 %v16593_v61, %s18554_s11  ;;  %v16608_v41 = vld [vmem:[#allocation3 + $0x168] sm:$0xff]  ;;  %v16621_v14 = vpop.permute.xlu1 %6868  ;;  %v11053_v61 = vld [vmem:[#allocation3] sm:$0xff] }
 0x7b6   : > { %6309 = vst.msk [vmem:[#allocation3 + $0x181] sm:$0xff] %vm545_vm6, %v6276_v45  ;;  %v6180_v32 = vpop.f32.mrf.mxu1  ;;  %6896 = vrot.lane.b32.xlu1 %v16601_v5, %s18554_s11  ;;  %18685 = vst [vmem:[#allocation117_spill] sm:$0xff] %v16608_v41  ;;  %v6488_v22 = vrot.slane %v16608_v41, 1  ;;  %v6664_v5 = vrot.slane %v16608_v41, 2 }
 0x7b7   : > { %vm6213_vm13 = vcmp.gt.f32.partialorder %v6179_v58, 0.0  ;;  %v6245_v2 = vmul.f32 0.1, %v6179_v58  ;;  %v16619_v32 = vpop.permute.xlu0 %6866  ;;  %18688 = vst [vmem:[#allocation120_spill] sm:$0xff] %v16621_v14  ;;  %v11054_v14 = vld [vmem:[#allocation3 + $0x8] sm:$0xff] }
 0x7b8   : > { %18687 = vst [vmem:[#allocation119_spill] sm:$0xff] %v16619_v32 }
 0x7b9   : > { %v6277_v48 = vsel %vm6213_vm13, %v6179_v58, %v6245_v2  ;;  %6759 = vrot.lane.b32.xlu0 %v16608_v41, %s18554_s11  ;;  %v16612_v8 = vld [vmem:[#allocation3 + $0x170] sm:$0xff]  ;;  %v6358_v3 = vld [vmem:[#allocation3 + $0x178] sm:$0x3]  ;;  %v16651_v41 = vrot.slane %v7067_v49, %v18584_v25  ;;  %v16665_v25 = vrot.slane %v7067_v49, %v15702_v17 }
 0x7ba   : > { %18686 = vst [vmem:[#allocation118_spill] sm:$0xff] %v16612_v8  ;;  %6310 = vst.msk [vmem:[#allocation3 + $0x189] sm:$0xff] %vm545_vm6, %v6277_v48  ;;  %v6489_v57 = vrot.slane %v16612_v8, 1  ;;  %6761 = vrot.lane.b32.xlu1 %v16612_v8, %s18554_s11  ;;  %v6491_v45 = vrot.slane %v6358_v3, 1  ;;  %v6665_v58 = vrot.slane %v16612_v8, 2  ;;  %v6667_v35 = vrot.slane %v6358_v3, 2 }
 0x7bc   : > { %v16625_v2 = vsel %vm998_vm2, %v6488_v22, %v6489_v57  ;;  %v16630_v48 = vsel %vm998_vm2, %v6489_v57, %v6491_v45  ;;  %v16638_v8 = vpop.permute.xlu1 %6733  ;;  %v16641_v22 = vsel %vm1175_vm4, %v6664_v5, %v6665_v58  ;;  %v6590_v57 = vrot.slane %v11054_v14, 2  ;;  %v16643_v45 = vpop.permute.xlu0 %6731 }
 0x7bd   : > { %18689 = vst [vmem:[#allocation121_spill] sm:$0xff] %v16625_v2  ;;  %6553 = vrot.lane.b32.xlu0 %v16625_v2, %s18554_s11  ;;  %18690 = vst [vmem:[#allocation122_spill] sm:$0xff] %v16630_v48  ;;  %v6589_v2 = vrot.slane %v11053_v61, 2  ;;  %v16648_v3 = vsel %vm1175_vm4, %v6665_v58, %v6667_v35  ;;  %v16662_v32 = vld [vmem:[#allocation3 + $0x180] sm:$0xff]  ;;  %v11055_v35 = vld [vmem:[#allocation3 + $0x10] sm:$0x3] }
 0x7be   : > { %6555 = vrot.lane.b32.xlu1 %v16630_v48, %s18554_s11  ;;  %18691 = vst [vmem:[#allocation123_spill] sm:$0xff] %v16638_v8  ;;  %18692 = vst [vmem:[#allocation124_spill] sm:$0xff] %v16641_v22  ;;  %v16654_v8 = vrot.slane %v7067_v49, %v15715_v44  ;;  %v6592_v58 = vrot.slane %v11055_v35, 2  ;;  %v6837_v17 = vrot.slane %v16662_v32, 2 }
 0x7bf   : > { %18693 = vst [vmem:[#allocation125_spill] sm:$0xff] %v16643_v45  ;;  %18694 = vst [vmem:[#allocation126_spill] sm:$0xff] %v16648_v3  ;;  %v6968_v45 = vsel %vm545_vm6, %v11054_v14, %v15109_v12  ;;  %v6591_v44 = vsel %vm1175_vm4, %v6589_v2, %v6590_v57  ;;  %v16683_v2 = vrot.slane %v7067_v49, %v15643_v54 }
 0x7c0   : > { %18695 = vst [vmem:[#allocation127_spill] sm:$0xff] %v16662_v32  ;;  %v16668_v40 = vpop.permute.xlu0 %6525  ;;  %v16673_v12 = vmul.f32 %v16651_v41, %v6968_v45  ;;  %v7098_v14 = vmul.f32 %v16654_v8, %v15938_v46  ;;  %v7103_v35 = vmul.f32 %v16654_v8, %v15990_v29  ;;  %v7108_v45 = vmul.f32 %v16654_v8, %v15995_v43 }
 0x7c1   : > { %6898 = vrot.lane.b32.xlu0 %v16641_v22, %s18554_s11  ;;  %v6360_v48 = vld [vmem:[#allocation3 + $0x188] sm:$0xff]  ;;  %v6361_v5 = vld [vmem:[#allocation3 + $0x190] sm:$0x3]  ;;  %v6967_v22 = vsel %vm545_vm6, %v11053_v61, %v15111_v4  ;;  %18696 = vst [vmem:[#allocation128_spill] sm:$0xff] %v16668_v40  ;;  %v16678_v61 = vpop.permute.xlu1 %6527  ;;  %v6999_v40 = vsel %vm545_vm6, %v6591_v44, %v16314_v63  ;;  %v16698_v54 = vrot.slane %v7067_v49, %v15659_v56  ;;  %v6800_v56 = vrot.slane %v16662_v32, 1 }
 0x7c2   : > { %6900 = vrot.lane.b32.xlu1 %v16648_v3, %s18554_s11  ;;  %v6838_v1 = vrot.slane %v6360_v48, 2  ;;  %v6840_v3 = vrot.slane %v6361_v5, 2  ;;  %v7094_v4 = vmul.f32 %v16651_v41, %v6967_v22  ;;  %18697 = vst [vmem:[#allocation129_spill] sm:$0xff] %v16678_v61  ;;  %v7113_v22 = vmul.f32 %v16654_v8, %v16049_v7 }
 0x7c3   : > { %v6593_v61 = vsel %vm1175_vm4, %v6590_v57, %v6592_v58  ;;  %v6801_v6 = vrot.slane %v6360_v48, 1  ;;  %v7118_v21 = vmul.f32 %v16654_v8, %v16179_v53  ;;  %v6803_v43 = vrot.slane %v6361_v5, 1 }
 0x7c4   : > { %v16695_v31 = vsel %vm1175_vm4, %v6837_v17, %v6838_v1  ;;  %v16705_v7 = vsel %vm1175_vm4, %v6838_v1, %v6840_v3  ;;  %v7123_v63 = vmul.f32 %v16654_v8, %v16184_v52  ;;  %v16716_v49 = vsel %vm545_vm6, %v7098_v14, 0.0  ;;  %v16724_v5 = vpop.permute.xlu0 %6870 }
 0x7c5   : > { %6763 = vrot.lane.b32.xlu0 %v16662_v32, %s18554_s11  ;;  %18698 = vst [vmem:[#allocation130_spill] sm:$0xff] %v16695_v31  ;;  %18699 = vst [vmem:[#allocation131_spill] sm:$0xff] %v16705_v7  ;;  %v7095_v57 = vmul.f32 %v16683_v2, %v6999_v40  ;;  %v7000_v1 = vsel %vm545_vm6, %v6593_v61, %v16306_v10  ;;  %v7001_v3 = vsel %vm545_vm6, %v15872_v42, %v16356_v50  ;;  %v16731_v44 = vpop.permute.xlu1 %6872  ;;  %v11057_v42 = vld [vmem:[#allocation3 + $0x30] sm:$0xff] }
 0x7c6   : > { %6765 = vrot.lane.b32.xlu1 %v6360_v48, %s18554_s11  ;;  %v7031_v48 = vsel %vm545_vm6, %v15859_v47, %v16340_v51  ;;  %v16727_v47 = vsel %vm545_vm6, %v7103_v35, 0.0  ;;  %v11056_v51 = vld [vmem:[#allocation3 + $0x18] sm:$0xff]  ;;  %v16734_v40 = vsel %vm998_vm2, %v6800_v56, %v6801_v6  ;;  %v16737_v10 = vsel %vm545_vm6, %v7108_v45, 0.0  ;;  %v11058_v56 = vld [vmem:[#allocation3 + $0x20] sm:$0xff] }
 0x7c7   : > { %v6969_v58 = vsel %vm545_vm6, %v11056_v51, %v16334_v19  ;;  %18700 = vst [vmem:[#allocation132_spill] sm:$0xff] %v16734_v40  ;;  %v16740_v14 = vsel %vm545_vm6, %v7113_v22, 0.0  ;;  %v7096_v50 = vmul.f32 %v16698_v54, %v7031_v48  ;;  %v6971_v61 = vsel %vm545_vm6, %v11057_v42, %v16373_v37  ;;  %v11060_v51 = vld [vmem:[#allocation3 + $0x38] sm:$0xff] }
 0x7c8   : > { %v16748_v19 = vsel %vm998_vm2, %v6801_v6, %v6803_v43  ;;  %v16751_v17 = vsel %vm545_vm6, %v7118_v21, 0.0  ;;  %v7100_v35 = vmul.f32 %v16683_v2, %v7000_v1  ;;  %v7105_v45 = vmul.f32 %v16683_v2, %v7001_v3 }
 0x7c9   : > { %6902 = vrot.lane.b32.xlu0 %v16695_v31, %s18554_s11  ;;  %18701 = vst [vmem:[#allocation133_spill] sm:$0xff] %v16748_v19  ;;  %v7033_v22 = vsel %vm545_vm6, %v15907_v26, %v16380_v24  ;;  %v16761_v37 = vsel %vm545_vm6, %v7123_v63, 0.0  ;;  %v7254_v48 = vadd.f32 %v7095_v57, %v7094_v4  ;;  %v7104_v43 = vmul.f32 %v16651_v41, %v6969_v58  ;;  %v11059_v4 = vld [vmem:[#allocation3 + $0x48] sm:$0xff]  ;;  %v16784_v58 = vpop.permute.xlu0 %6735 }
 0x7ca   : > { %6904 = vrot.lane.b32.xlu1 %v16705_v7, %s18554_s11  ;;  %v7128_v21 = vmul.f32 %v16654_v8, %v16213_v18  ;;  %v7032_v6 = vsel %vm545_vm6, %v15882_v62, %v16338_v0  ;;  %v6970_v26 = vsel %vm545_vm6, %v11058_v56, %v16330_v59  ;;  %v7097_v24 = vmul.f32 %v16665_v25, %v6971_v61 }
 0x7cb   : > { %v7002_v63 = vsel %vm545_vm6, %v15933_v11, %v16348_v15  ;;  %v6973_v57 = vsel %vm545_vm6, %v11059_v4, %v16413_v20  ;;  %v7255_v3 = vadd.f32 %v7254_v48, %v7096_v50  ;;  %v7133_v62 = vmul.f32 %v16654_v8, %v16220_v38 }
 0x7cc   : > { %v7106_v0 = vmul.f32 %v16698_v54, %v7033_v22  ;;  %v6972_v59 = vsel %vm545_vm6, %v11060_v51, %v16371_v55  ;;  %v7261_v15 = vadd.f32 %v7100_v35, %v16673_v12  ;;  %v7268_v11 = vadd.f32 %v7105_v45, %v7104_v43  ;;  %v11061_v45 = vld [vmem:[#allocation3 + $0x50] sm:$0xff] }
 0x7cd   : > { %6946 = vrot.lane.b32.xlu0 %v16734_v40, %s18554_s11  ;;  %v16777_v1 = vpop.permute.xlu1 %6737  ;;  %v7101_v42 = vmul.f32 %v16698_v54, %v7032_v6  ;;  %v7034_v20 = vsel %vm545_vm6, %v15959_v33, %v16376_v34  ;;  %v7109_v50 = vmul.f32 %v16651_v41, %v6970_v26  ;;  %v7110_v48 = vmul.f32 %v16683_v2, %v7002_v63  ;;  %v18713_v40 = vld [vmem:[#allocation48_spill] sm:$0xff] }
 0x7ce   : > { %6948 = vrot.lane.b32.xlu1 %v16748_v19, %s18554_s11  ;;  %v7003_v22 = vsel %vm545_vm6, %v15938_v46, %v16399_v28  ;;  %v7107_v55 = vmul.f32 %v16665_v25, %v6973_v57  ;;  %v7256_v56 = vadd.f32 %v7255_v3, %v7097_v24  ;;  %v7138_v12 = vmul.f32 %v16654_v8, %v16251_v30  ;;  %v18712_v19 = vld [vmem:[#allocation75_spill] sm:$0xff]  ;;  %s8797_s11 = sld [smem:[#allocation7 + $0x82]] }
 0x7cf   : > { %v7102_v35 = vmul.f32 %v16665_v25, %v6972_v59  ;;  %v6974_v33 = vsel %vm545_vm6, %v11061_v45, %v16409_v36  ;;  %v7269_v34 = vadd.f32 %v7268_v11, %v7106_v0  ;;  %v7111_v43 = vmul.f32 %v16698_v54, %v7034_v20 }
 0x7d0   : > { %v7035_v6 = vsel %vm545_vm6, %v15966_v23, %v16425_v39  ;;  %v7004_v46 = vsel %vm545_vm6, %v15990_v29, %v16394_v9  ;;  %v16809_v28 = vpop.permute.xlu0 %6529  ;;  %v7262_v26 = vadd.f32 %v7261_v15, %v7101_v42  ;;  %v7115_v24 = vmul.f32 %v16683_v2, %v7003_v22 }
 0x7d1   : > { %v7143_v63 = vmul.f32 %v16654_v8, %v16256_v16  ;;  %v16814_v36 = vpop.permute.xlu1 %6531  ;;  %v16817_v4 = vsel %vm545_vm6, %v7128_v21, 0.0  ;;  %v7275_v3 = vadd.f32 %v7110_v48, %v7109_v50  ;;  %v7270_v0 = vadd.f32 %v7269_v34, %v7107_v55  ;;  %v18703_v34 = vld [vmem:[#allocation54_spill] sm:$0xff] }
 0x7d2   : > { %v7112_v23 = vmul.f32 %v16665_v25, %v6974_v33  ;;  %v16821_v39 = vsel %vm545_vm6, %v7133_v62, 0.0  ;;  %v7114_v29 = vmul.f32 %v16651_v41, %v6971_v61  ;;  %v7263_v9 = vadd.f32 %v7262_v26, %v7102_v35  ;;  %v18702_v35 = vld [vmem:[#allocation38_spill] sm:$0xff] }
 0x7d3   : > { %v7116_v51 = vmul.f32 %v16698_v54, %v7035_v6  ;;  %v7120_v15 = vmul.f32 %v16683_v2, %v7004_v46  ;;  %v7276_v11 = vadd.f32 %v7275_v3, %v7111_v43  ;;  %v7036_v21 = vsel %vm545_vm6, %v16028_v60, %v16423_v13  ;;  %v18704_v6 = vld [vmem:[#allocation57_spill] sm:$0xff]  ;;  %v18705_v26 = vld [vmem:[#allocation22_spill] sm:$0xff] }
 0x7d4   : > { %v16830_v42 = vadd.f32 %v16716_v49, %v7256_v56  ;;  %v16833_v20 = vsel %vm545_vm6, %v7138_v12, 0.0  ;;  %v7282_v62 = vadd.f32 %v7115_v24, %v7114_v29  ;;  %v7119_v50 = vmul.f32 %v16651_v41, %v6972_v59  ;;  %v16844_v13 = vpop.permute.xlu0 %6874  ;;  %v18709_v29 = vld [vmem:[#allocation43_spill] sm:$0xff] }
 0x7d5   : > { %v7124_v61 = vmul.f32 %v16651_v41, %v6973_v57  ;;  %v16838_v48 = vsel %vm545_vm6, %v7143_v63, 0.0  ;;  %v7277_v22 = vadd.f32 %v7276_v11, %v7112_v23  ;;  %v7148_v55 = vmul.f32 %v16654_v8, %v16289_v27  ;;  %v16850_v57 = vpop.permute.xlu1 %6876  ;;  %v18707_v63 = vld [vmem:[#allocation49_spill] sm:$0xff]  ;;  %v18711_v11 = vld [vmem:[#allocation68_spill] sm:$0xff] }
 0x7d6   : > { %v7153_v60 = vmul.f32 %v16654_v8, %v18702_v35  ;;  %v16847_v49 = vadd.f32 %v16737_v10, %v7270_v0  ;;  %v7283_v56 = vadd.f32 %v7282_v62, %v7116_v51  ;;  %v7289_v12 = vadd.f32 %v7120_v15, %v7119_v50  ;;  %v18706_v10 = vld [vmem:[#allocation79_spill] sm:$0xff]  ;;  %v18708_v0 = vld [vmem:[#allocation62_spill] sm:$0xff]  ;;  %v11062_v15 = vld [vmem:[#allocation3 + $0x60] sm:$0xff] }
 0x7d7   : > { %v7121_v59 = vmul.f32 %v16698_v54, %v7036_v21  ;;  %v16853_v45 = vadd.f32 %v16727_v47, %v7263_v9  ;;  %v7158_v43 = vmul.f32 %v16654_v8, %v18703_v34  ;;  %v7163_v46 = vmul.f32 %v16654_v8, %v18704_v6  ;;  %v18710_v9 = vld [vmem:[#allocation64_spill] sm:$0xff] }
 0x7d8   : > { %v7168_v24 = vmul.f32 %v16654_v8, %v18705_v26  ;;  %v7005_v3 = vsel %vm545_vm6, %v18707_v63, %v18706_v10  ;;  %v7173_v23 = vmul.f32 %v16654_v8, %v18708_v0  ;;  %v7178_v47 = vmul.f32 %v16654_v8, %v18709_v29  ;;  %v18725_v29 = vld [vmem:[#allocation72_spill] sm:$0xff]  ;;  %v18733_v0 = vld [vmem:[#allocation90_spill] sm:$0xff]  ;;  %v18741_v26 = vld [vmem:[#allocation103_spill] sm:$0xff] }
 0x7d9   : > { %v7183_v51 = vmul.f32 %v16654_v8, %v18710_v9  ;;  %v6975_v21 = vsel %vm545_vm6, %v11062_v15, %v18711_v11  ;;  %v7129_v62 = vmul.f32 %v16651_v41, %v6974_v33  ;;  %v16874_v50 = vadd.f32 %v16740_v14, %v7277_v22  ;;  %v11063_v9 = vld [vmem:[#allocation3 + $0x68] sm:$0xff]  ;;  %v18714_v15 = vld [vmem:[#allocation70_spill] sm:$0xff]  ;;  %v16891_v22 = vpop.permute.xlu0 %6739 }
 0x7da   : > { %v16877_v10 = vsel %vm545_vm6, %v7148_v55, 0.0  ;;  %v16880_v63 = vsel %vm545_vm6, %v7153_v60, 0.0  ;;  %v7290_v32 = vadd.f32 %v7289_v12, %v7121_v59  ;;  %v7125_v7 = vmul.f32 %v16683_v2, %v7005_v3  ;;  %18716 = vst [vmem:[#allocation54_spill] sm:$0xff] %v16891_v22  ;;  %v18742_v22 = vld [vmem:[#allocation104_spill] sm:$0xff] }
 0x7db   : > { %v7006_v31 = vsel %vm545_vm6, %v18713_v40, %v18712_v19  ;;  %v6976_v33 = vsel %vm545_vm6, %v11063_v9, %v18714_v15  ;;  %v7117_v14 = vmul.f32 %v16665_v25, %v6975_v21  ;;  %v16894_v55 = vsel %vm545_vm6, %v7158_v43, 0.0  ;;  %v18720_v40 = vld [vmem:[#allocation73_spill] sm:$0xff] }
 0x7dc   : > { %v16888_v11 = vpop.permute.xlu1 %6741  ;;  %18717 = vst [vmem:[#allocation57_spill] sm:$0xff] %v16894_v55  ;;  %v16897_v60 = vsel %vm545_vm6, %v7163_v46, 0.0  ;;  %v16900_v12 = vsel %vm545_vm6, %v7168_v24, 0.0  ;;  %v18721_v19 = vld [vmem:[#allocation33_spill] sm:$0xff]  ;;  %v16906_v3 = vsel %vm545_vm6, %v7173_v23, 0.0  ;;  %v16909_v9 = vsel %vm545_vm6, %v7178_v47, 0.0 }
 0x7dd   : > { %18715 = vst [vmem:[#allocation38_spill] sm:$0xff] %v16888_v11  ;;  %18718 = vst [vmem:[#allocation79_spill] sm:$0xff] %v16897_v60  ;;  %v7037_v59 = vsel %vm545_vm6, %v18721_v19, %v18720_v40  ;;  %v16912_v15 = vsel %vm545_vm6, %v7183_v51, 0.0  ;;  %v7130_v43 = vmul.f32 %v16683_v2, %v7006_v31  ;;  %v7122_v46 = vmul.f32 %v16665_v25, %v6976_v33  ;;  %v18726_v24 = vld [vmem:[#allocation39_spill] sm:$0xff]  ;;  %v18727_v60 = vld [vmem:[#allocation46_spill] sm:$0xff] }
 0x7de   : > { %18719 = vst [vmem:[#allocation49_spill] sm:$0xff] %v16900_v12  ;;  %18722 = vst [vmem:[#allocation68_spill] sm:$0xff] %v16906_v3  ;;  %v7038_v12 = vsel %vm545_vm6, %v18726_v24, %v18725_v29  ;;  %v7007_v40 = vsel %vm545_vm6, %v16179_v53, %v18727_v60  ;;  %v7296_v23 = vadd.f32 %v7125_v7, %v7124_v61  ;;  %v18728_v19 = vld [vmem:[#allocation77_spill] sm:$0xff]  ;;  %v18732_v31 = vld [vmem:[#allocation26_spill] sm:$0xff]  ;;  %vm601_vm2 = vcmask 146432  }
 0x7df   : > { %18723 = vst [vmem:[#allocation75_spill] sm:$0xff] %v16909_v9  ;;  %18724 = vst [vmem:[#allocation48_spill] sm:$0xff] %v16912_v15  ;;  %v16924_v47 = vmul.f32 %v16654_v8, %v18728_v19  ;;  %v18730_v9 = vld [vmem:[#allocation78_spill] sm:$0xff]  ;;  %v7008_v15 = vsel %vm545_vm6, %v16184_v52, %v18732_v31  ;;  %v7284_v3 = vadd.f32 %v7283_v56, %v7117_v14  ;;  %v11064_v24 = vld [vmem:[#allocation3 + $0x78] sm:$0xff] }
 0x7e0   : > { %v16928_v51 = vmul.f32 %v16654_v8, %v18730_v9  ;;  %v7126_v29 = vmul.f32 %v16698_v54, %v7037_v59  ;;  %v6977_v53 = vsel %vm545_vm6, %v11064_v24, %v18733_v0  ;;  %v11065_v7 = vld [vmem:[#allocation3 + $0x80] sm:$0xff]  ;;  %v7131_v9 = vmul.f32 %v16698_v54, %v7038_v12  ;;  %v18736_v19 = vld [vmem:[#allocation94_spill] sm:$0xff]  ;;  %v18737_v11 = vld [vmem:[#allocation19_spill] sm:$0xff]  ;;  %v16948_v31 = vpop.permute.xlu1 %6535 }
 0x7e1   : > { %18729 = vst [vmem:[#allocation70_spill] sm:$0xff] %v16924_v47  ;;  %v18734_v61 = vld [vmem:[#allocation92_spill] sm:$0xff]  ;;  %v16938_v47 = vpop.permute.xlu0 %6533  ;;  %v7039_v52 = vsel %vm545_vm6, %v18737_v11, %v18736_v19  ;;  %v18738_v56 = vld [vmem:[#allocation95_spill] sm:$0xff]  ;;  %18740 = vst [vmem:[#allocation72_spill] sm:$0xff] %v16948_v31  ;;  %v7303_v0 = vadd.f32 %v7130_v43, %v7129_v62  ;;  %v7134_v24 = vmul.f32 %v16651_v41, %v6975_v21 }
 0x7e2   : > { %18731 = vst [vmem:[#allocation73_spill] sm:$0xff] %v16928_v51  ;;  %v6978_v60 = vsel %vm545_vm6, %v11065_v7, %v18734_v61  ;;  %18735 = vst [vmem:[#allocation33_spill] sm:$0xff] %v16938_v47  ;;  %v7135_v51 = vmul.f32 %v16683_v2, %v7007_v40  ;;  %v18739_v14 = vld [vmem:[#allocation23_spill] sm:$0xff]  ;;  %v7291_v7 = vadd.f32 %v7290_v32, %v7122_v46  ;;  %v11066_v55 = vld [vmem:[#allocation3 + $0x90] sm:$0xff] }
 0x7e3   : > { %v7040_v59 = vsel %vm545_vm6, %v18739_v14, %v18738_v56  ;;  %v7140_v61 = vmul.f32 %v16683_v2, %v7008_v15  ;;  %v7127_v12 = vmul.f32 %v16665_v25, %v6977_v53  ;;  %v7132_v40 = vmul.f32 %v16665_v25, %v6978_v60  ;;  %v11067_v19 = vld [vmem:[#allocation3 + $0x98] sm:$0xff]  ;;  %v18743_v31 = vld [vmem:[#allocation100_spill] sm:$0xff]  ;;  %v18744_v47 = vld [vmem:[#allocation98_spill] sm:$0xff] }
 0x7e4   : > { %v6979_v11 = vsel %vm545_vm6, %v11066_v55, %v18741_v26  ;;  %v6980_v56 = vsel %vm545_vm6, %v11067_v19, %v18742_v22  ;;  %v7139_v14 = vmul.f32 %v16651_v41, %v6976_v33  ;;  %v7136_v62 = vmul.f32 %v16698_v54, %v7039_v52  ;;  %v18750_v19 = vld [vmem:[#allocation112_spill] sm:$0xff] }
 0x7e5   : > { %v7141_v32 = vmul.f32 %v16698_v54, %v7040_v59  ;;  %v16962_v21 = vadd.f32 %v16751_v17, %v7284_v3  ;;  %v7297_v15 = vadd.f32 %v7296_v23, %v7126_v29  ;;  %v7304_v43 = vadd.f32 %v7303_v0, %v7131_v9  ;;  %v16972_v59 = vpop.permute.xlu0 %6878  ;;  %v16975_v23 = vpop.permute.xlu1 %6880 }
 0x7e6   : > { %v7310_v46 = vadd.f32 %v7135_v51, %v7134_v24  ;;  %v7009_v26 = vsel %vm545_vm6, %v16213_v18, %v18743_v31  ;;  %v7317_v55 = vadd.f32 %v7140_v61, %v7139_v14  ;;  %v7010_v22 = vsel %vm545_vm6, %v16220_v38, %v18744_v47  ;;  %v18745_v47 = vld [vmem:[#allocation106_spill] sm:$0xff]  ;;  %v18746_v31 = vld [vmem:[#allocation55_spill] sm:$0xff]  ;;  %v18747_v24 = vld [vmem:[#allocation89_spill] sm:$0xff] }
 0x7e7   : > { %v7137_v33 = vmul.f32 %v16665_v25, %v6979_v11  ;;  %v7142_v52 = vmul.f32 %v16665_v25, %v6980_v56  ;;  %v7144_v17 = vmul.f32 %v16651_v41, %v6977_v53  ;;  %v7298_v3 = vadd.f32 %v7297_v15, %v7127_v12  ;;  %v18748_v12 = vld [vmem:[#allocation107_spill] sm:$0xff]  ;;  %v11068_v15 = vld [vmem:[#allocation3 + $0xa8] sm:$0xff] }
 0x7e8   : > { %v7305_v9 = vadd.f32 %v7304_v43, %v7132_v40  ;;  %v7293_v18 = vadd.f32 %v16761_v37, %v7291_v7  ;;  %v7311_v51 = vadd.f32 %v7310_v46, %v7136_v62  ;;  %v7318_v29 = vadd.f32 %v7317_v55, %v7141_v32  ;;  %v18749_v40 = vld [vmem:[#allocation41_spill] sm:$0xff]  ;;  %v18752_v43 = vld [vmem:[#allocation114_spill] sm:$0xff] }
 0x7e9   : > { %v7145_v38 = vmul.f32 %v16683_v2, %v7009_v26  ;;  %v7041_v0 = vsel %vm545_vm6, %v18746_v31, %v18745_v47  ;;  %v16985_v61 = vmul.f32 %v16654_v8, %v18747_v24  ;;  %v7150_v53 = vmul.f32 %v16683_v2, %v7010_v22  ;;  %v18751_v62 = vld [vmem:[#allocation109_spill] sm:$0xff]  ;;  %v18753_v47 = vld [vmem:[#allocation116_spill] sm:$0xff]  ;;  %v17012_v31 = vpop.permute.xlu0 %6743 }
 0x7ea   : > { %v7011_v37 = vsel %vm545_vm6, %v16251_v30, %v18750_v19  ;;  %v7312_v7 = vadd.f32 %v7311_v51, %v7137_v33  ;;  %v7319_v14 = vadd.f32 %v7318_v29, %v7142_v52  ;;  %v7012_v32 = vsel %vm545_vm6, %v16256_v16, %v18751_v62  ;;  %v11069_v29 = vld [vmem:[#allocation3 + $0xb0] sm:$0xff]  ;;  %v18756_v19 = vld [vmem:[#allocation120_spill] sm:$0xff] }
 0x7eb   : > { %v6981_v46 = vsel %vm545_vm6, %v11068_v15, %v18752_v43  ;;  %v7149_v26 = vmul.f32 %v16651_v41, %v6978_v60  ;;  %v7146_v55 = vmul.f32 %v16698_v54, %v7041_v0  ;;  %v7300_v30 = vadd.f32 %v16817_v4, %v7298_v3  ;;  %v18754_v4 = vld [vmem:[#allocation119_spill] sm:$0xff]  ;;  %v18755_v3 = vld [vmem:[#allocation32_spill] sm:$0xff] }
 0x7ec   : > { %7259 = vadd.xlane.f32.xlu0 %v16830_v42  ;;  %v7042_v42 = vsel %vm545_vm6, %v18749_v40, %v18748_v12  ;;  %v17006_v33 = vadd.f32 %v16821_v39, %v7305_v9  ;;  %v7324_v52 = vadd.f32 %v7145_v38, %v7144_v17  ;;  %v7155_v51 = vmul.f32 %v16683_v2, %v7011_v37  ;;  %v18757_v37 = vld [vmem:[#allocation15_spill] sm:$0xff] }
 0x7ed   : > { %v17001_v22 = vpop.permute.xlu1 %6745  ;;  %v7151_v16 = vmul.f32 %v16698_v54, %v7042_v42  ;;  %v6982_v60 = vsel %vm545_vm6, %v11069_v29, %v18753_v47  ;;  %v7331_v0 = vadd.f32 %v7150_v53, %v7149_v26  ;;  %v7160_v12 = vmul.f32 %v16683_v2, %v7012_v32  ;;  %v18758_v32 = vld [vmem:[#allocation125_spill] sm:$0xff] }
 0x7ee   : > { %v7043_v39 = vsel %vm545_vm6, %v18755_v3, %v18754_v4  ;;  %v7154_v17 = vmul.f32 %v16651_v41, %v6979_v11  ;;  %v7159_v9 = vmul.f32 %v16651_v41, %v6980_v56  ;;  %v7314_v38 = vadd.f32 %v16833_v20, %v7312_v7  ;;  %v11070_v7 = vld [vmem:[#allocation3 + $0xc0] sm:$0xff]  ;;  %v18761_v47 = vld [vmem:[#allocation129_spill] sm:$0xff] }
 0x7ef   : > { %v17024_v40 = vadd.f32 %v16838_v48, %v7319_v14  ;;  %v7325_v53 = vadd.f32 %v7324_v52, %v7146_v55  ;;  %v7152_v42 = vmul.f32 %v16665_v25, %v6982_v60  ;;  %v7044_v62 = vsel %vm545_vm6, %v18757_v37, %v18756_v19  ;;  %v18759_v48 = vld [vmem:[#allocation128_spill] sm:$0xff]  ;;  %v18760_v52 = vld [vmem:[#allocation123_spill] sm:$0xff]  ;;  %v18763_v3 = vld [vmem:[#allocation21_spill] sm:$0xff] }
 0x7f0   : > { %7273 = vadd.xlane.f32.xlu0 %v16847_v49  ;;  %v7147_v49 = vmul.f32 %v16665_v25, %v6981_v46  ;;  %v7332_v11 = vadd.f32 %v7331_v0, %v7151_v16  ;;  %v7338_v56 = vadd.f32 %v7155_v51, %v7154_v17  ;;  %v7156_v20 = vmul.f32 %v16698_v54, %v7043_v39  ;;  %v17037_v15 = vpop.permute.xlu0 %6537  ;;  %v11071_v51 = vld [vmem:[#allocation3 + $0xc8] sm:$0xff]  ;;  %v11073_v19 = vld [vmem:[#allocation3 + $0xe0] sm:$0xff] }
 0x7f1   : > { %v6983_v14 = vsel %vm545_vm6, %v11070_v7, %v18759_v48  ;;  %v7345_v43 = vadd.f32 %v7160_v12, %v7159_v9  ;;  %v7164_v26 = vmul.f32 %v16651_v41, %v6981_v46  ;;  %v17043_v29 = vpop.permute.xlu1 %6539  ;;  %v6984_v0 = vsel %vm545_vm6, %v11071_v51, %v18761_v47  ;;  %v18762_v12 = vld [vmem:[#allocation59_spill] sm:$0xff]  ;;  %v18767_v47 = vld [vmem:[#allocation54_spill] sm:$0xff] }
 0x7f2   : > { %7266 = vadd.xlane.f32.xlu1 %v16853_v45  ;;  %v7013_v45 = vsel %vm545_vm6, %v16289_v27, %v18758_v32  ;;  %v7326_v55 = vadd.f32 %v7325_v53, %v7147_v49  ;;  %v7014_v27 = vsel %vm545_vm6, %v18702_v35, %v18760_v52  ;;  %v7045_v46 = vsel %vm545_vm6, %v18762_v12, %v16724_v5  ;;  %v11072_v53 = vld [vmem:[#allocation3 + $0xd8] sm:$0xff]  ;;  %v18768_v12 = vld [vmem:[#allocation22_spill] sm:$0xff] }
 0x7f3   : > { %v7165_v16 = vmul.f32 %v16683_v2, %v7013_v45  ;;  %v7169_v49 = vmul.f32 %v16651_v41, %v6982_v60  ;;  %v7333_v4 = vadd.f32 %v7332_v11, %v7152_v42  ;;  %v7157_v35 = vmul.f32 %v16665_v25, %v6983_v14 }
 0x7f4   : > { %7280 = vadd.xlane.f32.xlu0 %v16874_v50  ;;  %v7161_v50 = vmul.f32 %v16698_v54, %v7044_v62  ;;  %v7339_v39 = vadd.f32 %v7338_v56, %v7156_v20  ;;  %v7170_v17 = vmul.f32 %v16683_v2, %v7014_v27  ;;  %v7015_v9 = vsel %vm545_vm6, %v18703_v34, %v16784_v58  ;;  %v18764_v56 = vld [vmem:[#allocation58_spill] sm:$0xff] }
 0x7f5   : > { %v6985_v5 = vsel %vm545_vm6, %v11072_v53, %v16809_v28  ;;  %v7162_v60 = vmul.f32 %v16665_v25, %v6984_v0  ;;  %v7166_v42 = vmul.f32 %v16698_v54, %v7045_v46  ;;  %v7352_v62 = vadd.f32 %v7165_v16, %v7164_v26  ;;  %v6883_v28 = vpop.permute.xlu0 %6882  ;;  %v18765_v26 = vld [vmem:[#allocation61_spill] sm:$0xff]  ;;  %v11074_v27 = vld [vmem:[#allocation3 + $0xf0] sm:$0xff] }
 0x7f6   : > { %7287 = vadd.xlane.f32.xlu1 %v16962_v21  ;;  %v7046_v21 = vsel %vm545_vm6, %v18763_v3, %v16731_v44  ;;  %v6986_v44 = vsel %vm545_vm6, %v11073_v19, %v16814_v36  ;;  %v7346_v37 = vadd.f32 %v7345_v43, %v7161_v50  ;;  %v7016_v58 = vsel %vm545_vm6, %v18704_v6, %v16777_v1  ;;  %v18771_v3 = vld [vmem:[#allocation62_spill] sm:$0xff] }
 0x7f7   : > { %v7171_v32 = vmul.f32 %v16698_v54, %v7046_v21  ;;  %v7340_v34 = vadd.f32 %v7339_v39, %v7157_v35  ;;  %v7175_v45 = vmul.f32 %v16683_v2, %v7015_v9  ;;  %v7167_v11 = vmul.f32 %v16665_v25, %v6985_v5  ;;  %v18770_v35 = vld [vmem:[#allocation38_spill] sm:$0xff]  ;;  %v11075_v39 = vld [vmem:[#allocation3 + $0xf8] sm:$0xff] }
 0x7f8   : > { %7294 = vadd.xlane.f32.xlu0 %v7293_v18  ;;  %v7328_v18 = vadd.f32 %v16877_v10, %v7326_v55  ;;  %v7047_v36 = vsel %vm545_vm6, %v18764_v56, %v16844_v13  ;;  %v7359_v10 = vadd.f32 %v7170_v17, %v7169_v49  ;;  %v7174_v20 = vmul.f32 %v16651_v41, %v6983_v14  ;;  %v18766_v14 = vld [vmem:[#allocation33_spill] sm:$0xff]  ;;  %v18772_v17 = vld [vmem:[#allocation72_spill] sm:$0xff] }
 0x7f9   : > { %v7172_v7 = vmul.f32 %v16665_v25, %v6986_v44  ;;  %v7335_v1 = vadd.f32 %v16880_v63, %v7333_v4  ;;  %v7347_v6 = vadd.f32 %v7346_v37, %v7162_v60  ;;  %v7353_v48 = vadd.f32 %v7352_v62, %v7166_v42 }
 0x7fa   : > { %7301 = vadd.xlane.f32.xlu1 %v7300_v30  ;;  %v17078_v30 = vpop.permute.xlu1 %6884  ;;  %v7180_v43 = vmul.f32 %v16683_v2, %v7016_v58  ;;  %v7048_v55 = vsel %vm545_vm6, %v18765_v26, %v16850_v57  ;;  %v7179_v13 = vmul.f32 %v16651_v41, %v6984_v0  ;;  %v7360_v52 = vadd.f32 %v7359_v10, %v7171_v32  ;;  %v18769_v57 = vld [vmem:[#allocation57_spill] sm:$0xff]  ;;  %v18774_v58 = vld [vmem:[#allocation66_spill] sm:$0xff] }
 0x7fb   : > { %v6987_v50 = vsel %vm545_vm6, %v11074_v27, %v18766_v14  ;;  %v7366_v63 = vadd.f32 %v7175_v45, %v7174_v20  ;;  %v7354_v51 = vadd.f32 %v7353_v48, %v7167_v11  ;;  %v7017_v46 = vsel %vm545_vm6, %v18768_v12, %v18767_v47  ;;  %v18777_v20 = vld [vmem:[#allocation67_spill] sm:$0xff]  ;;  %v18782_v14 = vld [vmem:[#allocation69_spill] sm:$0xff] }
 0x7fc   : > { %7308 = vadd.xlane.f32.xlu0 %v17006_v33  ;;  %v7176_v33 = vmul.f32 %v16698_v54, %v7047_v36  ;;  %v6748_v16 = vpop.permute.xlu0 %6747  ;;  %v7361_v0 = vadd.f32 %v7360_v52, %v7172_v7  ;;  %v7181_v4 = vmul.f32 %v16698_v54, %v7048_v55  ;;  %v7018_v21 = vsel %vm545_vm6, %v18771_v3, %v18770_v35  ;;  %v18776_v36 = vld [vmem:[#allocation43_spill] sm:$0xff] }
 0x7fd   : > { %v6988_v9 = vsel %vm545_vm6, %v11075_v39, %v18772_v17  ;;  %v7373_v53 = vadd.f32 %v7180_v43, %v7179_v13  ;;  %v7184_v60 = vmul.f32 %v16651_v41, %v6985_v5  ;;  %v7177_v42 = vmul.f32 %v16665_v25, %v6987_v50  ;;  %v18775_v5 = vld [vmem:[#allocation63_spill] sm:$0xff]  ;;  %v18779_v43 = vld [vmem:[#allocation68_spill] sm:$0xff] }
 0x7fe   : > { %7315 = vadd.xlane.f32.xlu1 %v7314_v38  ;;  %v7342_v38 = vadd.f32 %v18769_v57, %v7340_v34  ;;  %v7189_v37 = vmul.f32 %v16651_v41, %v6986_v44  ;;  %v7367_v62 = vadd.f32 %v7366_v63, %v7176_v33  ;;  %v7185_v32 = vmul.f32 %v16683_v2, %v7017_v46 }
 0x7ff   : > { %v7049_v34 = vsel %vm545_vm6, %v18774_v58, %v16972_v59  ;;  %v7190_v11 = vmul.f32 %v16683_v2, %v7018_v21  ;;  %v7182_v56 = vmul.f32 %v16665_v25, %v6988_v9  ;;  %v7019_v44 = vsel %vm545_vm6, %v18776_v36, %v17012_v31  ;;  %v18781_v31 = vld [vmem:[#allocation65_spill] sm:$0xff]  ;;  %v18785_v21 = vld [vmem:[#allocation75_spill] sm:$0xff] }
 0x800   : > { %v6750_v49 = vpop.permute.xlu1 %6749  ;;  %7322 = vadd.xlane.f32.xlu0 %v17024_v40  ;;  %v18773_v40 = vld [vmem:[#allocation79_spill] sm:$0xff]  ;;  %v7374_v10 = vadd.f32 %v7373_v53, %v7181_v4  ;;  %v6989_v7 = vsel %vm545_vm6, %v18777_v20, %v17037_v15  ;;  %v7363_v26 = vadd.f32 %v18779_v43, %v7361_v0  ;;  %v7368_v55 = vadd.f32 %v7367_v62, %v7177_v42  ;;  %v18792_v43 = vld [vmem:[#allocation70_spill] sm:$0xff] }
 0x801   : > { %v7349_v19 = vadd.f32 %v18773_v40, %v7347_v6  ;;  %v18778_v6 = vld [vmem:[#allocation49_spill] sm:$0xff]  ;;  %v7186_v13 = vmul.f32 %v16698_v54, %v7049_v34  ;;  %v7380_v33 = vadd.f32 %v7185_v32, %v7184_v60  ;;  %v7195_v27 = vmul.f32 %v16683_v2, %v7019_v44  ;;  %v18784_v4 = vld [vmem:[#allocation71_spill] sm:$0xff]  ;;  %v18787_v40 = vld [vmem:[#allocation28_spill] sm:$0xff] }
 0x802   : > { %7329 = vadd.xlane.f32.xlu1 %v7328_v18  ;;  %v7050_v18 = vsel %vm545_vm6, %v18775_v5, %v16975_v23  ;;  %v7356_v48 = vadd.f32 %v18778_v6, %v7354_v51  ;;  %v18780_v23 = vld [vmem:[#allocation64_spill] sm:$0xff]  ;;  %v7051_v63 = vsel %vm545_vm6, %v18782_v14, %v6883_v28  ;;  %v7387_v51 = vadd.f32 %v7190_v11, %v7189_v37  ;;  %v18786_v60 = vld [vmem:[#allocation77_spill] sm:$0xff] }
 0x803   : > { %v6542_v45 = vpop.permute.xlu0 %6541  ;;  %v7020_v52 = vsel %vm545_vm6, %v18780_v23, %v17001_v22  ;;  %v7191_v15 = vmul.f32 %v16698_v54, %v7050_v18  ;;  %v7194_v47 = vmul.f32 %v16651_v41, %v6987_v50  ;;  %v7375_v12 = vadd.f32 %v7374_v10, %v7182_v56  ;;  %v18789_v11 = vld [vmem:[#allocation53_spill] sm:$0xff]  ;;  %v18790_v56 = vld [vmem:[#allocation48_spill] sm:$0xff] }
 0x804   : > { %7336 = vadd.xlane.f32.xlu0 %v7335_v1  ;;  %v6544_v59 = vpop.permute.xlu1 %6543  ;;  %v6990_v1 = vsel %vm545_vm6, %v18781_v31, %v17043_v29  ;;  %v7187_v46 = vmul.f32 %v16665_v25, %v6989_v7  ;;  %v7200_v57 = vmul.f32 %v16683_v2, %v7020_v52  ;;  %v17144_v35 = vsel %vm545_vm6, %v18784_v4, %v6542_v45  ;;  %v18791_v10 = vld [vmem:[#allocation88_spill] sm:$0xff]  ;;  %v18793_v31 = vld [vmem:[#allocation91_spill] sm:$0xff] }
 0x805   : > { %v7192_v29 = vmul.f32 %v16665_v25, %v6990_v1  ;;  %v7199_v28 = vmul.f32 %v16651_v41, %v6988_v9  ;;  %v7381_v50 = vadd.f32 %v7380_v33, %v7186_v13  ;;  %v7196_v3 = vmul.f32 %v16698_v54, %v7051_v63  ;;  %v18788_v9 = vld [vmem:[#allocation78_spill] sm:$0xff] }
 0x806   : > { %7343 = vadd.xlane.f32.xlu1 %v7342_v38  ;;  %v18783_v38 = vld [vmem:[#allocation74_spill] sm:$0xff]  ;;  %v7370_v39 = vadd.f32 %v18785_v21, %v7368_v55  ;;  %v7388_v17 = vadd.f32 %v7387_v51, %v7191_v15  ;;  %v7394_v53 = vadd.f32 %v7195_v27, %v7194_v47  ;;  %v7021_v42 = vsel %vm545_vm6, %v18786_v60, %v6748_v16  ;;  %v18798_v21 = vld [vmem:[#allocation96_spill] sm:$0xff] }
 0x807   : > { %v6887_v22 = vpop.permute.xlu0 %6886  ;;  %v7052_v0 = vsel %vm545_vm6, %v18783_v38, %v17078_v30  ;;  %v17153_v30 = vsel %vm545_vm6, %v18787_v40, %v6544_v59  ;;  %v7382_v37 = vadd.f32 %v7381_v50, %v7187_v46  ;;  %v7022_v32 = vsel %vm545_vm6, %v18788_v9, %v6750_v49 }
 0x808   : > { %7350 = vadd.xlane.f32.xlu0 %v7349_v19  ;;  %v6889_v19 = vpop.permute.xlu1 %6888  ;;  %v7201_v62 = vmul.f32 %v16698_v54, %v7052_v0  ;;  %v7197_v58 = vmul.f32 %v16665_v25, %v17144_v35  ;;  %v7401_v34 = vadd.f32 %v7200_v57, %v7199_v28  ;;  %v7389_v45 = vadd.f32 %v7388_v17, %v7192_v29  ;;  %v18796_v29 = vld [vmem:[#allocation102_spill] sm:$0xff]  ;;  %v18797_v0 = vld [vmem:[#allocation93_spill] sm:$0xff] }
 0x809   : > { %v7053_v16 = vsel %vm545_vm6, %v18789_v11, %v6887_v22  ;;  %v7377_v5 = vadd.f32 %v18790_v56, %v7375_v12  ;;  %v7395_v18 = vadd.f32 %v7394_v53, %v7196_v3  ;;  %v7205_v36 = vmul.f32 %v16683_v2, %v7021_v42  ;;  %v18795_v22 = vld [vmem:[#allocation101_spill] sm:$0xff] }
 0x80a   : > { %7357 = vadd.xlane.f32.xlu1 %v7356_v48  ;;  %v7202_v44 = vmul.f32 %v16665_v25, %v17153_v30  ;;  %v7054_v49 = vsel %vm545_vm6, %v18791_v10, %v6889_v19  ;;  %v7204_v59 = vmul.f32 %v16651_v41, %v6989_v7  ;;  %v7210_v6 = vmul.f32 %v16683_v2, %v7022_v32  ;;  %v18794_v7 = vld [vmem:[#allocation73_spill] sm:$0xff] }
 0x80b   : > { %v6752_v20 = vpop.permute.xlu0 %6751  ;;  %v7402_v55 = vadd.f32 %v7401_v34, %v7201_v62  ;;  %v7396_v13 = vadd.f32 %v7395_v18, %v7197_v58  ;;  %v7206_v23 = vmul.f32 %v16698_v54, %v7053_v16  ;;  %v7203_v33 = vmul.f32 %v16654_v8, %v18793_v31  ;;  %v18799_v16 = vld [vmem:[#allocation97_spill] sm:$0xff]  ;;  %v18800_v18 = vld [vmem:[#allocation99_spill] sm:$0xff] }
 0x80c   : > { %7364 = vadd.xlane.f32.xlu0 %v7363_v26  ;;  %v7383_v26 = vsel %vm545_vm6, %v18792_v43, 0.0  ;;  %v7209_v15 = vmul.f32 %v16651_v41, %v6990_v1  ;;  %v7211_v27 = vmul.f32 %v16698_v54, %v7054_v49  ;;  %v7390_v14 = vsel %vm545_vm6, %v18794_v7, 0.0 }
 0x80d   : > { %v7384_v52 = vadd.f32 %v7383_v26, %v7382_v37  ;;  %v7408_v63 = vadd.f32 %v7205_v36, %v7204_v59  ;;  %v7403_v51 = vadd.f32 %v7402_v55, %v7202_v44  ;;  %v7391_v12 = vadd.f32 %v7390_v14, %v7389_v45  ;;  %v18801_v26 = vld [vmem:[#allocation113_spill] sm:$0xff] }
 0x80e   : > { %7371 = vadd.xlane.f32.xlu1 %v7370_v39  ;;  %v7397_v46 = vsel %vm545_vm6, %v16985_v61, 0.0  ;;  %v7208_v57 = vmul.f32 %v16654_v8, %v18795_v22  ;;  %v7213_v38 = vmul.f32 %v16654_v8, %v18796_v29  ;;  %v7415_v1 = vadd.f32 %v7210_v6, %v7209_v15 }
 0x80f   : > { %v6754_v48 = vpop.permute.xlu1 %6753  ;;  %v7409_v50 = vadd.f32 %v7408_v63, %v7206_v23  ;;  %v7398_v61 = vadd.f32 %v7397_v46, %v7396_v13  ;;  %v7404_v60 = vsel %vm545_vm6, %v7203_v33, 0.0  ;;  %v7023_v34 = vsel %vm545_vm6, %v18747_v24, %v6752_v20  ;;  %v18802_v23 = vld [vmem:[#allocation105_spill] sm:$0xff]  ;;  %v18803_v33 = vld [vmem:[#allocation115_spill] sm:$0xff] }
 0x810   : > { %7378 = vadd.xlane.f32.xlu0 %v7377_v5  ;;  %v7416_v17 = vadd.f32 %v7415_v1, %v7211_v27  ;;  %v7405_v40 = vadd.f32 %v7404_v60, %v7403_v51  ;;  %v7411_v37 = vsel %vm545_vm6, %v7208_v57, 0.0  ;;  %v7418_v9 = vsel %vm545_vm6, %v7213_v38, 0.0  ;;  %v18804_v27 = vld [vmem:[#allocation108_spill] sm:$0xff] }
 0x811   : > { %v7024_v11 = vsel %vm545_vm6, %v18793_v31, %v6754_v48  ;;  %v7215_v5 = vmul.f32 %v16683_v2, %v7023_v34  ;;  %v7214_v24 = vmul.f32 %v16651_v41, %v17144_v35  ;;  %v7219_v59 = vmul.f32 %v16651_v41, %v17153_v30 }
 0x812   : > { %7385 = vadd.xlane.f32.xlu1 %v7384_v52  ;;  %v6546_v47 = vpop.permute.xlu0 %6545  ;;  %v7220_v10 = vmul.f32 %v16683_v2, %v7024_v11  ;;  %v7218_v55 = vmul.f32 %v16654_v8, %v18801_v26  ;;  %v7223_v35 = vmul.f32 %v16654_v8, %v18803_v33 }
 0x813   : > { %v17187_v4 = vsel %vm545_vm6, %v18797_v0, %v6546_v47  ;;  %v6548_v28 = vpop.permute.xlu1 %6547  ;;  %v7422_v48 = vadd.f32 %v7215_v5, %v7214_v24 }
 0x814   : > { %v7207_v3 = vmul.f32 %v16665_v25, %v17187_v4  ;;  %v17193_v39 = vsel %vm545_vm6, %v18798_v21, %v6548_v28  ;;  %7392 = vadd.xlane.f32.xlu0 %v7391_v12  ;;  %v7429_v13 = vadd.f32 %v7220_v10, %v7219_v59  ;;  %v7425_v38 = vsel %vm545_vm6, %v7218_v55, 0.0 }
 0x815   : > { %v7212_v53 = vmul.f32 %v16665_v25, %v17193_v39  ;;  %v7432_v28 = vsel %vm545_vm6, %v7223_v35, 0.0 }
 0x816   : > { %v7410_v42 = vadd.f32 %v7409_v50, %v7207_v3  ;;  %7399 = vadd.xlane.f32.xlu1 %v7398_v61  ;;  %v6891_v58 = vpop.permute.xlu0 %6890  ;;  %v18805_v50 = vld [vmem:[#allocation110_spill] sm:$0xff] }
 0x817   : > { %v7417_v19 = vadd.f32 %v7416_v17, %v7212_v53  ;;  %v6893_v45 = vpop.permute.xlu1 %6892  ;;  %v7055_v56 = vsel %vm545_vm6, %v18799_v16, %v6891_v58  ;;  %v18806_v17 = vld [vmem:[#allocation111_spill] sm:$0xff] }
 0x818   : > { %7406 = vadd.xlane.f32.xlu0 %v7405_v40  ;;  %v7412_v62 = vadd.f32 %v7411_v37, %v7410_v42  ;;  %v7056_v36 = vsel %vm545_vm6, %v18800_v18, %v6893_v45  ;;  %v7216_v20 = vmul.f32 %v16698_v54, %v7055_v56  ;;  %v18808_v45 = vld [vmem:[#allocation117_spill] sm:$0xff]  ;;  %v18809_v56 = vld [vmem:[#allocation126_spill] sm:$0xff] }
 0x819   : > { %v7419_v32 = vadd.f32 %v7418_v9, %v7417_v19  ;;  %v7221_v6 = vmul.f32 %v16698_v54, %v7056_v36  ;;  %v7229_v19 = vmul.f32 %v16651_v41, %v17193_v39  ;;  %v18810_v36 = vld [vmem:[#allocation118_spill] sm:$0xff] }
 0x81a   : > { %7413 = vadd.xlane.f32.xlu1 %v7412_v62  ;;  %v7423_v15 = vadd.f32 %v7422_v48, %v7216_v20 }
 0x81b   : > { %v7430_v14 = vadd.f32 %v7429_v13, %v7221_v6 }
 0x81c   : > { %7420 = vadd.xlane.f32.xlu0 %v7419_v32  ;;  %v6756_v44 = vpop.permute.xlu0 %6755  ;;  %v18807_v32 = vld [vmem:[#allocation124_spill] sm:$0xff] }
 0x81d   : > { %v7025_v12 = vsel %vm545_vm6, %v18795_v22, %v6756_v44  ;;  %v7228_v58 = vmul.f32 %v16654_v8, %v18807_v32 }
 0x81e   : > { %v7225_v61 = vmul.f32 %v16683_v2, %v7025_v12  ;;  %v11078_v12 = vld [vmem:[#allocation3 + $0x198] sm:$0xff] }
 0x81f   : > { %v7439_v6 = vsel %vm545_vm6, %v7228_v58, 0.0 }
 0x820   : > { %v6758_v49 = vpop.permute.xlu1 %6757 }
 0x821   : > { %v7026_v1 = vsel %vm545_vm6, %v18796_v29, %v6758_v49  ;;  %v7224_v29 = vmul.f32 %v16651_v41, %v17187_v4  ;;  %v7233_v4 = vmul.f32 %v16654_v8, %v18809_v56 }
 0x822   : > { %v7230_v60 = vmul.f32 %v16683_v2, %v7026_v1  ;;  %v18814_v1 = vld [vmem:[#allocation121_spill] sm:$0xff] }
 0x823   : > { %v6550_v43 = vpop.permute.xlu0 %6549  ;;  %v7436_v62 = vadd.f32 %v7225_v61, %v7224_v29 }
 0x824   : > { %v17220_v52 = vsel %vm545_vm6, %v18802_v23, %v6550_v43  ;;  %v6552_v31 = vpop.permute.xlu1 %6551  ;;  %v7443_v34 = vadd.f32 %v7230_v60, %v7229_v19  ;;  %v7446_v43 = vsel %vm545_vm6, %v7233_v4, 0.0 }
 0x825   : > { %v7217_v30 = vmul.f32 %v16665_v25, %v17220_v52  ;;  %v17228_v7 = vsel %vm545_vm6, %v18804_v27, %v6552_v31  ;;  %v11077_v27 = vld [vmem:[#allocation3 + $0x1a0] sm:$0xff] }
 0x826   : > { %v7222_v63 = vmul.f32 %v16665_v25, %v17228_v7 }
 0x827   : > { %v7424_v51 = vadd.f32 %v7423_v15, %v7217_v30  ;;  %v6895_v47 = vpop.permute.xlu0 %6894  ;;  %v11076_v15 = vld [vmem:[#allocation3 + $0x1a8] sm:$0x3] }
 0x828   : > { %v7431_v46 = vadd.f32 %v7430_v14, %v7222_v63  ;;  %v6897_v57 = vpop.permute.xlu1 %6896  ;;  %v7057_v3 = vsel %vm545_vm6, %v18805_v50, %v6895_v47  ;;  %v6961_v30 = vrot.slane %v11076_v15, 2  ;;  %v18811_v14 = vld [vmem:[#allocation17_spill] sm:$0xff] }
 0x829   : > { %v7426_v0 = vadd.f32 %v7425_v38, %v7424_v51  ;;  %v7058_v53 = vsel %vm545_vm6, %v18806_v17, %v6897_v57  ;;  %v7226_v40 = vmul.f32 %v16698_v54, %v7057_v3  ;;  %v7066_v63 = vsel %vm545_vm6, %v11077_v27, %v18811_v14  ;;  %v18813_v57 = vld [vmem:[#allocation130_spill] sm:$0xff] }
 0x82a   : > { %v7433_v21 = vadd.f32 %v7432_v28, %v7431_v46  ;;  %v7231_v37 = vmul.f32 %v16698_v54, %v7058_v53  ;;  %v18812_v46 = vld [vmem:[#allocation80_spill] sm:$0xff]  ;;  %v7238_v38 = vmul.f32 %v16654_v8, %v18813_v57  ;;  %v6958_v28 = vrot.slane %v11078_v12, 2  ;;  %v18815_v3 = vld [vmem:[#allocation122_spill] sm:$0xff] }
 0x82b   : > { %7427 = vadd.xlane.f32.xlu1 %v7426_v0  ;;  %v6760_v22 = vpop.permute.xlu0 %6759  ;;  %v7437_v5 = vadd.f32 %v7436_v62, %v7226_v40  ;;  %v6959_v17 = vrot.slane %v11077_v27, 2  ;;  %v7234_v53 = vmul.f32 %v16651_v41, %v17220_v52  ;;  %v7239_v52 = vmul.f32 %v16651_v41, %v17228_v7 }
 0x82c   : > { %v6762_v42 = vpop.permute.xlu1 %6761  ;;  %7434 = vadd.xlane.f32.xlu0 %v7433_v21  ;;  %v7444_v44 = vadd.f32 %v7443_v34, %v7231_v37  ;;  %v7027_v23 = vsel %vm545_vm6, %v18801_v26, %v6760_v22  ;;  %v7065_v26 = vsel %vm545_vm6, %v11078_v12, %v18812_v46  ;;  %v7453_v15 = vsel %vm545_vm6, %v7238_v38, 0.0  ;;  %v18820_v38 = vld [vmem:[#allocation81_spill] sm:$0xff] }
 0x82d   : > { %v7028_v51 = vsel %vm545_vm6, %v18803_v33, %v6762_v42  ;;  %v7235_v50 = vmul.f32 %v16683_v2, %v7027_v23  ;;  %v18816_v42 = vld [vmem:[#allocation132_spill] sm:$0xff] }
 0x82e   : > { %v7240_v22 = vmul.f32 %v16683_v2, %v7028_v51 }
 0x82f   : > { %v6554_v9 = vpop.permute.xlu0 %6553 }
 0x830   : > { %v6997_v11 = vsel %vm545_vm6, %v18808_v45, %v6554_v9  ;;  %v6556_v16 = vpop.permute.xlu1 %6555  ;;  %v18817_v9 = vld [vmem:[#allocation133_spill] sm:$0xff]  ;;  %v18818_v45 = vld [vmem:[#allocation131_spill] sm:$0xff] }
 0x831   : > { %v7227_v18 = vmul.f32 %v16665_v25, %v6997_v11  ;;  %v6998_v39 = vsel %vm545_vm6, %v18810_v36, %v6556_v16  ;;  %v7244_v19 = vmul.f32 %v16651_v41, %v6997_v11  ;;  %v7243_v16 = vmul.f32 %v16654_v8, %v18818_v45 }
 0x832   : > { %v7232_v10 = vmul.f32 %v16665_v25, %v6998_v39  ;;  %v7249_v58 = vmul.f32 %v16651_v41, %v6998_v39  ;;  %v7450_v11 = vadd.f32 %v7235_v50, %v7234_v53  ;;  %v6962_v41 = vsel %vm1175_vm4, %v6959_v17, %v6961_v30 }
 0x833   : > { %v7438_v49 = vadd.f32 %v7437_v5, %v7227_v18  ;;  %v6899_v24 = vpop.permute.xlu0 %6898  ;;  %v6960_v5 = vsel %vm1175_vm4, %v6958_v28, %v6959_v17  ;;  %v7457_v18 = vadd.f32 %v7240_v22, %v7239_v52  ;;  %v7253_v23 = vmul.f32 %v16654_v8, %v6962_v41  ;;  %v18822_v22 = vld [vmem:[#allocation83_spill] sm:$0xff] }
 0x834   : > { %v7445_v20 = vadd.f32 %v7444_v44, %v7232_v10  ;;  %v6901_v59 = vpop.permute.xlu1 %6900  ;;  %v7059_v0 = vsel %vm545_vm6, %v18814_v1, %v6899_v24  ;;  %v18819_v44 = vld [vmem:[#allocation127_spill] sm:$0xff]  ;;  %v11079_v24 = vld [vmem:[#allocation3 + $0x188] sm:$0xff]  ;;  %v7460_v27 = vsel %vm545_vm6, %v7243_v16, 0.0  ;;  %vm604_vm4 = vcmask 140288  }
 0x835   : > { %v7440_v48 = vadd.f32 %v7439_v6, %v7438_v49  ;;  %v7060_v21 = vsel %vm545_vm6, %v18815_v3, %v6901_v59  ;;  %v7236_v37 = vmul.f32 %v16698_v54, %v7059_v0  ;;  %v7474_v46 = vsel %vm545_vm6, %v7253_v23, 0.0 }
 0x836   : > { %v7447_v55 = vadd.f32 %v7446_v43, %v7445_v20  ;;  %v7248_v43 = vmul.f32 %v16654_v8, %v6960_v5  ;;  %v17315_v8 = vstv %s7478_s25  ;;  %v18827_v5 = vld [vmem:[#allocation34_spill] sm:$0xff]  ;;  %s8803_s25 = sld [smem:[#allocation7 + $0x103]] }
 0x837   : > { %7441 = vadd.xlane.f32.xlu1 %v7440_v48  ;;  %v6764_v13 = vpop.permute.xlu0 %6763  ;;  %v7451_v39 = vadd.f32 %v7450_v11, %v7236_v37  ;;  %v18826_v11 = vld [vmem:[#allocation37_spill] sm:$0xff] }
 0x838   : > { %v7029_v31 = vsel %vm545_vm6, %v18807_v32, %v6764_v13  ;;  %v6766_v35 = vpop.permute.xlu1 %6765  ;;  %7448 = vadd.xlane.f32.xlu0 %v7447_v55  ;;  %v7247_v55 = vmul.f32 %v16665_v25, %v7065_v26 }
 0x839   : > { %v7030_v47 = vsel %vm545_vm6, %v18809_v56, %v6766_v35  ;;  %v7245_v33 = vmul.f32 %v16683_v2, %v7029_v31  ;;  %v7252_v31 = vmul.f32 %v16665_v25, %v7066_v63 }
 0x83a   : > { %v7250_v60 = vmul.f32 %v16683_v2, %v7030_v47  ;;  %v7241_v2 = vmul.f32 %v16698_v54, %v7060_v21  ;;  %v7467_v47 = vsel %vm545_vm6, %v7248_v43, 0.0 }
 0x83b   : > { %v6903_v61 = vpop.permute.xlu0 %6902  ;;  %v7464_v56 = vadd.f32 %v7245_v33, %v7244_v19  ;;  %v18821_v33 = vld [vmem:[#allocation82_spill] sm:$0xff] }
 0x83c   : > { %v7061_v29 = vsel %vm545_vm6, %v18816_v42, %v6903_v61  ;;  %v6905_v40 = vpop.permute.xlu1 %6904  ;;  %v7471_v36 = vadd.f32 %v7250_v60, %v7249_v58  ;;  %v7458_v59 = vadd.f32 %v7457_v18, %v7241_v2  ;;  %v18825_v58 = vld [vmem:[#allocation50_spill] sm:$0xff] }
 0x83d   : > { %v7246_v62 = vmul.f32 %v16698_v54, %v7061_v29  ;;  %v7062_v32 = vsel %vm545_vm6, %v18817_v9, %v6905_v40  ;;  %v18823_v29 = vld [vmem:[#allocation35_spill] sm:$0xff] }
 0x83e   : > { %v7251_v34 = vmul.f32 %v16698_v54, %v7062_v32  ;;  %v18824_v9 = vld [vmem:[#allocation87_spill] sm:$0xff] }
 0x83f   : > { %v6947_v4 = vpop.permute.xlu0 %6946  ;;  %v7465_v49 = vadd.f32 %v7464_v56, %v7246_v62 }
 0x840   : > { %v7063_v10 = vsel %vm545_vm6, %v18819_v44, %v6947_v4  ;;  %v6949_v7 = vpop.permute.xlu1 %6948  ;;  %v7472_v6 = vadd.f32 %v7471_v36, %v7251_v34 }
 0x841   : > { %v7237_v54 = vmul.f32 %v16665_v25, %v7063_v10  ;;  %v7064_v20 = vsel %vm545_vm6, %v11079_v24, %v6949_v7  ;;  %v7466_v14 = vadd.f32 %v7465_v49, %v7247_v55  ;;  %v18828_v7 = vld [vmem:[#allocation56_spill] sm:$0xff]  ;;  %vm8066_vm6 = vcmask 138312  }
 0x842   : > { %v7242_v48 = vmul.f32 %v16665_v25, %v7064_v20  ;;  %v7473_v12 = vadd.f32 %v7472_v6, %v7252_v31  ;;  %v18829_v49 = vld [vmem:[#allocation44_spill] sm:$0xff] }
 0x843   : > { %v7452_v13 = vadd.f32 %v7451_v39, %v7237_v54  ;;  %v7468_v26 = vadd.f32 %v7467_v47, %v7466_v14  ;;  %v18830_v6 = vld [vmem:[#allocation60_spill] sm:$0xff]  ;;  %v18833_v14 = vld [vmem:[#allocation29_spill] sm:$0xff] }
 0x844   : > { %v7459_v35 = vadd.f32 %v7458_v59, %v7242_v48  ;;  %v7475_v57 = vadd.f32 %v7474_v46, %v7473_v12  ;;  %v18831_v55 = vld [vmem:[#allocation20_spill] sm:$0xff] }
 0x845   : > { %v7454_v30 = vadd.f32 %v7453_v15, %v7452_v13  ;;  %v18832_v15 = vld [vmem:[#allocation24_spill] sm:$0xff] }
 0x846   : > { %v7461_v51 = vadd.f32 %v7460_v27, %v7459_v35 }
 0x847   : > { %7455 = vadd.xlane.f32.xlu1 %v7454_v30 }
 0x848   : > { %7462 = vadd.xlane.f32.xlu0 %v7461_v51 }
 0x84b   : > { %7469 = vadd.xlane.f32.xlu1 %v7468_v26  ;;  %v18834_v26 = vld [vmem:[#allocation36_spill] sm:$0xff] }
 0x84c   : > { %7476 = vadd.xlane.f32.xlu0 %v7475_v57 }
 0x875   : > { %v7260_v25 = vpop.xlane.xlu0 %7259 }
 0x876   : > { %v7480_v63 = vadd.f32 %v17315_v8, %v7260_v25  ;;  %v18835_v25 = vmov 0.0  }
 0x877   : > { %602 = vst.msk [vmem:[#allocation4] sm:$0xff] %vm601_vm2, %v18835_v25  ;;  %603 = vst.msk [vmem:[#allocation4 + $0x8] sm:$0xff] %vm601_vm2, %v18835_v25 }
 0x878   : > { %v7724_v1 = vadd.f32 %v18820_v38, %v7480_v63  ;;  %v18836_v38 = vld [vmem:[#allocation18_spill] sm:$0xff]  ;;  %605 = vst.msk [vmem:[#allocation4 + $0x10] sm:$0x3] %vm604_vm4, %v18835_v25 }
 0x879   : > { %v7274_v0 = vpop.xlane.xlu0 %7273 }
 0x87a   : > { %7789 = vperm.xlu0 %10987, %v7724_v1   ;;  %v7482_v21 = vadd.f32 %v17315_v8, %v7274_v0 }
 0x87b   : > { %v7267_v28 = vpop.xlane.xlu1 %7266 }
 0x87c   : > { %v7481_v50 = vadd.f32 %v17315_v8, %v7267_v28  ;;  %v7726_v40 = vadd.f32 %v18823_v29, %v7482_v21 }
 0x87d   : > { %v7281_v3 = vpop.xlane.xlu0 %7280 }
 0x87e   : > { %v7725_v61 = vadd.f32 %v18821_v33, %v7481_v50  ;;  %v7483_v17 = vadd.f32 %v17315_v8, %v7281_v3  ;;  %v18837_v3 = vld [vmem:[#allocation84_spill] sm:$0xff] }
 0x87f   : > { %v7288_v53 = vpop.xlane.xlu1 %7287 }
 0x880   : > { %v7727_v60 = vadd.f32 %v18822_v22, %v7483_v17  ;;  %7792 = vperm.xlu1 %10988, %v7725_v61   ;;  %v7484_v19 = vadd.f32 %v17315_v8, %v7288_v53  ;;  %v18838_v61 = vld [vmem:[#allocation85_spill] sm:$0xff] }
 0x881   : > { %v7295_v42 = vpop.xlane.xlu0 %7294 }
 0x882   : > { %v7485_v37 = vadd.f32 %v17315_v8, %v7295_v42  ;;  %7798 = vperm.xlu0 %10987, %v7727_v60   ;;  %v7728_v2 = vadd.f32 %v18825_v58, %v7484_v19  ;;  %v18839_v42 = vld [vmem:[#allocation40_spill] sm:$0xff]  ;;  %v18840_v19 = vld [vmem:[#allocation86_spill] sm:$0xff] }
 0x883   : > { %v7302_v62 = vpop.xlane.xlu1 %7301 }
 0x884   : > { %v7729_v32 = vadd.f32 %v18824_v9, %v7485_v37  ;;  %7795 = vperm.xlu1 %10988, %v7726_v40   ;;  %v7486_v34 = vadd.f32 %v17315_v8, %v7302_v62 }
 0x885   : > { %v7309_v52 = vpop.xlane.xlu0 %7308 }
 0x886   : > { %v7487_v45 = vadd.f32 %v17315_v8, %v7309_v52  ;;  %7804 = vperm.xlu0 %10987, %v7729_v32   ;;  %v7730_v18 = vadd.f32 %v18827_v5, %v7486_v34  ;;  %v18841_v52 = vld [vmem:[#allocation42_spill] sm:$0xff]  ;;  %v18844_v5 = vld [vmem:[#allocation13_spill] sm:$0xff] }
 0x887   : > { %v7316_v16 = vpop.xlane.xlu1 %7315  ;;  %v18842_v34 = vld [vmem:[#allocation14_spill] sm:$0xff] }
 0x888   : > { %v7731_v56 = vadd.f32 %v18826_v11, %v7487_v45  ;;  %7801 = vperm.xlu1 %10988, %v7728_v2   ;;  %v7488_v36 = vadd.f32 %v17315_v8, %v7316_v16 }
 0x889   : > { %v7323_v4 = vpop.xlane.xlu0 %7322 }
 0x88a   : > { %v7489_v44 = vadd.f32 %v17315_v8, %v7323_v4  ;;  %7810 = vperm.xlu0 %10987, %v7731_v56   ;;  %v7732_v54 = vadd.f32 %v18829_v49, %v7488_v36  ;;  %v18843_v56 = vld [vmem:[#allocation16_spill] sm:$0xff]  ;;  %v18846_v49 = vld [vmem:[#allocation30_spill] sm:$0xff] }
 0x88b   : > { %v7330_v10 = vpop.xlane.xlu1 %7329 }
 0x88c   : > { %v7733_v41 = vadd.f32 %v18828_v7, %v7489_v44  ;;  %7807 = vperm.xlu1 %10988, %v7730_v18   ;;  %v7490_v24 = vadd.f32 %v17315_v8, %v7330_v10 }
 0x88d   : > { %v7337_v39 = vpop.xlane.xlu0 %7336 }
 0x88e   : > { %v7491_v20 = vadd.f32 %v17315_v8, %v7337_v39  ;;  %7816 = vperm.xlu0 %10987, %v7733_v41   ;;  %v7734_v13 = vadd.f32 %v18831_v55, %v7490_v24  ;;  %v18845_v41 = vld [vmem:[#allocation25_spill] sm:$0xff]  ;;  %v18848_v55 = vld [vmem:[#allocation76_spill] sm:$0xff] }
 0x88f   : > { %v7344_v59 = vpop.xlane.xlu1 %7343 }
 0x890   : > { %v7735_v48 = vadd.f32 %v18830_v6, %v7491_v20  ;;  %7813 = vperm.xlu1 %10988, %v7732_v54   ;;  %v7492_v23 = vadd.f32 %v17315_v8, %v7344_v59 }
 0x891   : > { %v7351_v43 = vpop.xlane.xlu0 %7350 }
 0x892   : > { %v7493_v31 = vadd.f32 %v17315_v8, %v7351_v43  ;;  %7822 = vperm.xlu0 %10987, %v7735_v48   ;;  %v7736_v51 = vadd.f32 %v18833_v14, %v7492_v23  ;;  %v18847_v48 = vld [vmem:[#allocation27_spill] sm:$0xff] }
 0x893   : > { %v7358_v35 = vpop.xlane.xlu1 %7357  ;;  %v18850_v14 = vld [vmem:[#allocation47_spill] sm:$0xff] }
 0x894   : > { %v7737_v30 = vadd.f32 %v18832_v15, %v7493_v31  ;;  %7819 = vperm.xlu1 %10988, %v7734_v13   ;;  %v7494_v47 = vadd.f32 %v17315_v8, %v7358_v35 }
 0x895   : > { %v7365_v27 = vpop.xlane.xlu0 %7364 }
 0x896   : > { %v7495_v12 = vadd.f32 %v17315_v8, %v7365_v27  ;;  %7828 = vperm.xlu0 %10987, %v7737_v30   ;;  %v7738_v1 = vadd.f32 %v18836_v38, %v7494_v47  ;;  %v18849_v30 = vld [vmem:[#allocation31_spill] sm:$0xff]  ;;  %v18852_v38 = vld [vmem:[#allocation52_spill] sm:$0xff] }
 0x897   : > { %v7372_v46 = vpop.xlane.xlu1 %7371 }
 0x898   : > { %v7739_v57 = vadd.f32 %v18834_v26, %v7495_v12  ;;  %7825 = vperm.xlu1 %10988, %v7736_v51   ;;  %v7496_v0 = vadd.f32 %v17315_v8, %v7372_v46 }
 0x899   : > { %v7379_v63 = vpop.xlane.xlu0 %7378 }
 0x89a   : > { %v7497_v28 = vadd.f32 %v17315_v8, %v7379_v63  ;;  %7834 = vperm.xlu0 %10987, %v7739_v57   ;;  %v7740_v17 = vadd.f32 %v18838_v61, %v7496_v0  ;;  %v18851_v57 = vld [vmem:[#allocation45_spill] sm:$0xff] }
 0x89b   : > { %v7386_v50 = vpop.xlane.xlu1 %7385 }
 0x89c   : > { %v7741_v21 = vadd.f32 %v18837_v3, %v7497_v28  ;;  %7831 = vperm.xlu1 %10988, %v7738_v1   ;;  %v7498_v53 = vadd.f32 %v17315_v8, %v7386_v50  ;;  %v18853_v3 = vlaneseq }
 0x89d   : > { %v7393_v33 = vpop.xlane.xlu0 %7392 }
 0x89e   : > { %v7499_v22 = vadd.f32 %v17315_v8, %v7393_v33  ;;  %7840 = vperm.xlu0 %10987, %v7741_v21   ;;  %v7742_v37 = vadd.f32 %v18840_v19, %v7498_v53  ;;  %v7885_v21 = vand.u32 127, %v18853_v3 }
 0x89f   : > { %v7400_v60 = vpop.xlane.xlu1 %7399 }
 0x8a0   : > { %v7743_v29 = vadd.f32 %v18839_v42, %v7499_v22  ;;  %7837 = vperm.xlu1 %10988, %v7740_v17   ;;  %v7500_v62 = vadd.f32 %v17315_v8, %v7400_v60  ;;  %v7890_v17 = vadd.s32 4294967288, %v7885_v21  ;;  %v8061_v53 = vadd.s32 4294967287, %v7885_v21  ;;  %v18854_v42 = vld [vmem:[#allocation51_spill] sm:$0xff] }
 0x8a1   : > { %v7407_v40 = vpop.xlane.xlu0 %7406  ;;  %v8056_v22 = vadd.s32 4294967295, %v7885_v21 }
 0x8a2   : > { %v7501_v9 = vadd.f32 %v17315_v8, %v7407_v40  ;;  %7846 = vperm.xlu0 %10987, %v7743_v29   ;;  %v7744_v45 = vadd.f32 %v18842_v34, %v7500_v62  ;;  %v17386_v25 = vsub.s32 %v7890_v17, %v18854_v42  ;;  %v17389_v29 = vsub.s32 %v8061_v53, %v18854_v42 }
 0x8a3   : > { %v7414_v32 = vpop.xlane.xlu1 %7413  ;;  %v17392_v40 = vsub.s32 %v7885_v21, %v18854_v42  ;;  %v17395_v19 = vsub.s32 %v8056_v22, %v18854_v42 }
 0x8a4   : > { %v7745_v58 = vadd.f32 %v18841_v52, %v7501_v9  ;;  %7843 = vperm.xlu1 %10988, %v7742_v37   ;;  %v7502_v16 = vadd.f32 %v17315_v8, %v7414_v32 }
 0x8a5   : > { %v7421_v2 = vpop.xlane.xlu0 %7420 }
 0x8a6   : > { %v7503_v11 = vadd.f32 %v17315_v8, %v7421_v2  ;;  %7852 = vperm.xlu0 %10987, %v7745_v58   ;;  %v7746_v18 = vadd.f32 %v18844_v5, %v7502_v16 }
 0x8a8   : > { %v7747_v4 = vadd.f32 %v18843_v56, %v7503_v11  ;;  %7849 = vperm.xlu1 %10988, %v7744_v45  }
 0x8aa   : > { %7858 = vperm.xlu0 %10987, %v7747_v4  }
 0x8ac   : > { %7855 = vperm.xlu1 %10988, %v7746_v18  }
 0x8b4   : > { %v7428_v36 = vpop.xlane.xlu1 %7427 }
 0x8b5   : > { %v7504_v44 = vadd.f32 %v17315_v8, %v7428_v36  ;;  %v7435_v10 = vpop.xlane.xlu0 %7434 }
 0x8b6   : > { %v7505_v7 = vadd.f32 %v17315_v8, %v7435_v10 }
 0x8b7   : > { %v7748_v39 = vadd.f32 %v18845_v41, %v7504_v44 }
 0x8b8   : > { %v7749_v54 = vadd.f32 %v18846_v49, %v7505_v7 }
 0x8b9   : > { %7861 = vperm.xlu1 %10988, %v7748_v39  }
 0x8ba   : > { %7864 = vperm.xlu0 %10987, %v7749_v54  }
 0x8c0   : > { %v7442_v24 = vpop.xlane.xlu1 %7441 }
 0x8c1   : > { %v7506_v20 = vadd.f32 %v17315_v8, %v7442_v24  ;;  %v7449_v59 = vpop.xlane.xlu0 %7448 }
 0x8c2   : > { %v7507_v6 = vadd.f32 %v17315_v8, %v7449_v59 }
 0x8c3   : > { %v7750_v43 = vadd.f32 %v18847_v48, %v7506_v20 }
 0x8c4   : > { %v7751_v13 = vadd.f32 %v18848_v55, %v7507_v6 }
 0x8c5   : > { %7867 = vperm.xlu1 %10988, %v7750_v43  }
 0x8c6   : > { %7870 = vperm.xlu0 %10987, %v7751_v13  }
 0x8d0   : > { %v7456_v23 = vpop.xlane.xlu1 %7455 }
 0x8d1   : > { %v7508_v31 = vadd.f32 %v17315_v8, %v7456_v23  ;;  %v7463_v35 = vpop.xlane.xlu0 %7462 }
 0x8d2   : > { %v7509_v15 = vadd.f32 %v17315_v8, %v7463_v35 }
 0x8d3   : > { %v7752_v27 = vadd.f32 %v18849_v30, %v7508_v31 }
 0x8d4   : > { %v7753_v51 = vadd.f32 %v18850_v14, %v7509_v15  ;;  %v7470_v47 = vpop.xlane.xlu1 %7469 }
 0x8d5   : > { %v7510_v12 = vadd.f32 %v17315_v8, %v7470_v47  ;;  %7873 = vperm.xlu1 %10988, %v7752_v27   ;;  %v7477_v46 = vpop.xlane.xlu0 %7476 }
 0x8d6   : > { %v7511_v26 = vadd.f32 %v17315_v8, %v7477_v46  ;;  %7876 = vperm.xlu0 %10987, %v7753_v51  }
 0x8d7   : > { %v7754_v63 = vadd.f32 %v18851_v57, %v7510_v12 }
 0x8d8   : > { %v7755_v1 = vadd.f32 %v18852_v38, %v7511_v26 }
 0x8d9   : > { %7879 = vperm.xlu1 %10988, %v7754_v63  }
 0x8da   : > { %7882 = vperm.xlu0 %10987, %v7755_v1  }
 0x8f5   : > { %v7790_v0 = vpop.permute.xlu0 %7789 }
 0x8f6   : > { %v7889_v16 = vrot.slane %v7790_v0, %v17392_v40  ;;  %v8060_v11 = vrot.slane %v7790_v0, %v17395_v19 }
 0x8fb   : > { %v7793_v28 = vpop.permute.xlu1 %7792 }
 0x8fc   : > { %v7894_v52 = vrot.slane %v7793_v28, %v17386_v25  ;;  %v8065_v58 = vrot.slane %v7793_v28, %v17389_v29 }
 0x8fd   : > { %v7799_v50 = vpop.permute.xlu0 %7798 }
 0x8fe   : > { %v7903_v2 = vrot.slane %v7799_v50, %v17386_v25  ;;  %v8075_v34 = vrot.slane %v7799_v50, %v17389_v29  ;;  %v7895_v18 = vsel %vm2649_vm1, %v7894_v52, %v7889_v16  ;;  %v8067_v36 = vsel %vm8066_vm6, %v8065_v58, %v8060_v11 }
 0x8ff   : > { %v7796_v33 = vpop.permute.xlu1 %7795 }
 0x900   : > { %v7899_v62 = vrot.slane %v7796_v33, %v17392_v40  ;;  %v8071_v9 = vrot.slane %v7796_v33, %v17395_v19 }
 0x901   : > { %v7805_v61 = vpop.permute.xlu0 %7804 }
 0x902   : > { %v7904_v56 = vsel %vm2649_vm1, %v7903_v2, %v7899_v62  ;;  %v8076_v4 = vsel %vm8066_vm6, %v8075_v34, %v8071_v9  ;;  %v7912_v59 = vrot.slane %v7805_v61, %v17386_v25  ;;  %v8084_v6 = vrot.slane %v7805_v61, %v17389_v29 }
 0x903   : > { %v7802_v8 = vpop.permute.xlu1 %7801  ;;  %v8032_v24 = vsel %vm8031_vm12, %v7904_v56, %v7895_v18  ;;  %v8203_v20 = vsel %vm8031_vm12, %v8076_v4, %v8067_v36  ;;  %v17471_v56 = vstv %s8797_s11  ;;  %v17473_v4 = vstv %s8793_s18  ;;  %s8792_s11 = sld [smem:[#allocation7 + $0x81]] }
 0x904   : > { %v7908_v44 = vrot.slane %v7802_v8, %v17392_v40  ;;  %v8080_v10 = vrot.slane %v7802_v8, %v17395_v19  ;;  %s17589_s18 = sld [smem:[#allocation7 + $0x181]] }
 0x905   : > { %v7811_v60 = vpop.permute.xlu0 %7810 }
 0x906   : > { %v7921_v48 = vrot.slane %v7811_v60, %v17386_v25  ;;  %v8093_v43 = vrot.slane %v7811_v60, %v17389_v29  ;;  %v7913_v31 = vsel %vm2649_vm1, %v7912_v59, %v7908_v44  ;;  %v8085_v35 = vsel %vm8066_vm6, %v8084_v6, %v8080_v10 }
 0x907   : > { %v7808_v37 = vpop.permute.xlu1 %7807  ;;  %v8034_v38 = vsel %vm8033_vm9, %v7913_v31, %v8032_v24  ;;  %v8204_v1 = vsel %vm8033_vm9, %v8085_v35, %v8203_v20  ;;  %v17481_v44 = vstv %s8804_s0  ;;  %v8333_v10 = vstv %s17467_s23  ;;  %s17595_s0 = sld [smem:[#allocation7 + $0x180]] }
 0x908   : > { %v7917_v7 = vrot.slane %v7808_v37, %v17392_v40  ;;  %v8089_v41 = vrot.slane %v7808_v37, %v17395_v19  ;;  %v17503_v20 = vstv %s8806_s24  ;;  %v17506_v59 = vstv %s8803_s25  ;;  %s8802_s24 = sld [smem:[#allocation7 + $0x101]] }
 0x909   : > { %v7817_v32 = vpop.permute.xlu0 %7816  ;;  %s8805_s25 = sld [smem:[#allocation7 + $0x100]] }
 0x90a   : > { %v7930_v55 = vrot.slane %v7817_v32, %v17386_v25  ;;  %v8102_v13 = vrot.slane %v7817_v32, %v17389_v29  ;;  %v7922_v27 = vsel %vm2649_vm1, %v7921_v48, %v7917_v7  ;;  %v8094_v14 = vsel %vm8066_vm6, %v8093_v43, %v8089_v41  ;;  %s8428_s23 = sld [smem:[#allocation7]] }
 0x90b   : > { %v7814_v45 = vpop.permute.xlu1 %7813  ;;  %v8036_v3 = vsel %vm8035_vm3, %v7922_v27, %v8034_v38  ;;  %v8205_v21 = vsel %vm8035_vm3, %v8094_v14, %v8204_v1  ;;  %v17485_v7 = vstv %s8801_s27  ;;  %v8268_v41 = vstv %s17469_s17  ;;  %s8796_s27 = sld [smem:[#allocation7 + $0x80]] }
 0x90c   : > { %v7926_v39 = vrot.slane %v7814_v45, %v17392_v40  ;;  %v8098_v49 = vrot.slane %v7814_v45, %v17395_v19  ;;  %s8800_s17 = sld [smem:[#allocation7 + $0x1]] }
 0x90d   : > { %v7823_v5 = vpop.permute.xlu0 %7822 }
 0x90e   : > { %v7931_v51 = vsel %vm2649_vm1, %v7930_v55, %v7926_v39  ;;  %v8103_v47 = vsel %vm8066_vm6, %v8102_v13, %v8098_v49  ;;  %v7939_v46 = vrot.slane %v7823_v5, %v17386_v25  ;;  %v8111_v26 = vrot.slane %v7823_v5, %v17389_v29 }
 0x90f   : > { %v7820_v54 = vpop.permute.xlu1 %7819  ;;  %v8038_v17 = vsel %vm8037_vm5, %v7931_v51, %v8036_v3  ;;  %v8206_v53 = vsel %vm8037_vm5, %v8103_v47, %v8205_v21 }
 0x910   : > { %v7935_v15 = vrot.slane %v7820_v54, %v17392_v40  ;;  %v8107_v30 = vrot.slane %v7820_v54, %v17395_v19 }
 0x911   : > { %v7829_v23 = vpop.permute.xlu0 %7828 }
 0x912   : > { %v7948_v0 = vrot.slane %v7829_v23, %v17386_v25  ;;  %v8120_v28 = vrot.slane %v7829_v23, %v17389_v29  ;;  %v7940_v33 = vsel %vm2649_vm1, %v7939_v46, %v7935_v15  ;;  %v8112_v61 = vsel %vm8066_vm6, %v8111_v26, %v8107_v30 }
 0x913   : > { %v7826_v12 = vpop.permute.xlu1 %7825  ;;  %v8040_v32 = vsel %vm8039_vm15, %v7940_v33, %v8038_v17  ;;  %v8207_v52 = vsel %vm8039_vm15, %v8112_v61, %v8206_v53 }
 0x914   : > { %v7944_v57 = vrot.slane %v7826_v12, %v17392_v40  ;;  %v8116_v63 = vrot.slane %v7826_v12, %v17395_v19 }
 0x915   : > { %v7835_v50 = vpop.permute.xlu0 %7834 }
 0x916   : > { %v7949_v22 = vsel %vm2649_vm1, %v7948_v0, %v7944_v57  ;;  %v8121_v8 = vsel %vm8066_vm6, %v8120_v28, %v8116_v63  ;;  %v7957_v42 = vrot.slane %v7835_v50, %v17386_v25  ;;  %v8129_v37 = vrot.slane %v7835_v50, %v17389_v29 }
 0x917   : > { %v7832_v60 = vpop.permute.xlu1 %7831  ;;  %v8042_v58 = vsel %vm8041_vm7, %v7949_v22, %v8040_v32  ;;  %v8208_v2 = vsel %vm8041_vm7, %v8121_v8, %v8207_v52 }
 0x918   : > { %v7953_v62 = vrot.slane %v7832_v60, %v17392_v40  ;;  %v8125_v9 = vrot.slane %v7832_v60, %v17395_v19 }
 0x919   : > { %v7841_v35 = vpop.permute.xlu0 %7840 }
 0x91a   : > { %v7958_v34 = vsel %vm2649_vm1, %v7957_v42, %v7953_v62  ;;  %v8130_v45 = vsel %vm8066_vm6, %v8129_v37, %v8125_v9  ;;  %v7966_v1 = vrot.slane %v7841_v35, %v17386_v25  ;;  %v8138_v0 = vrot.slane %v7841_v35, %v17389_v29 }
 0x91b   : > { %v8044_v16 = vsel %vm8043_vm14, %v7958_v34, %v8042_v58  ;;  %v8209_v11 = vsel %vm8043_vm14, %v8130_v45, %v8208_v2  ;;  %v7838_v31 = vpop.permute.xlu1 %7837 }
 0x91c   : > { %8054 = vst.msk [vmem:[%s17462_s1] sm:$0xff] %vm1923_vm8, %v8044_v16  ;;  %v7962_v12 = vrot.slane %v7838_v31, %v17392_v40  ;;  %v8134_v46 = vrot.slane %v7838_v31, %v17395_v19 }
 0x91d   : > { %8220 = vst.msk [vmem:[#allocation4 + $0x1] sm:$0xff] %vm8219_vm0, %v8209_v11  ;;  %v7847_v30 = vpop.permute.xlu0 %7846 }
 0x91e   : > { %v7975_v3 = vrot.slane %v7847_v30, %v17386_v25  ;;  %v8147_v21 = vrot.slane %v7847_v30, %v17389_v29  ;;  %v7967_v33 = vsel %vm2649_vm1, %v7966_v1, %v7962_v12  ;;  %v8139_v61 = vsel %vm8066_vm6, %v8138_v0, %v8134_v46 }
 0x91f   : > { %v7844_v15 = vpop.permute.xlu1 %7843 }
 0x920   : > { %v7971_v57 = vrot.slane %v7844_v15, %v17392_v40  ;;  %v8143_v63 = vrot.slane %v7844_v15, %v17395_v19 }
 0x921   : > { %v7853_v14 = vpop.permute.xlu0 %7852 }
 0x922   : > { %v7984_v17 = vrot.slane %v7853_v14, %v17386_v25  ;;  %v8156_v53 = vrot.slane %v7853_v14, %v17389_v29  ;;  %v7976_v8 = vsel %vm2649_vm1, %v7975_v3, %v7971_v57  ;;  %v8148_v60 = vsel %vm8066_vm6, %v8147_v21, %v8143_v63 }
 0x923   : > { %v7850_v27 = vpop.permute.xlu1 %7849  ;;  %v8045_v14 = vsel %vm8031_vm12, %v7976_v8, %v7967_v33 }
 0x924   : > { %v17475_v5 = vld [vmem:[#allocation4] sm:$0xff]  ;;  %v7980_v28 = vrot.slane %v7850_v27, %v17392_v40  ;;  %v8152_v50 = vrot.slane %v7850_v27, %v17395_v19 }
 0x925   : > { %v8299_v18 = vmul.f32 %v17471_v56, %v17475_v5  ;;  %v8233_v36 = vmul.f32 %v17473_v4, %v17475_v5  ;;  %v8435_v39 = vmul.f32 %v17481_v44, %v17475_v5  ;;  %v17494_v49 = vmul.f32 %v8333_v10, %v17475_v5  ;;  %v7859_v47 = vpop.permute.xlu0 %7858 }
 0x926   : > { %v8363_v54 = vmul.f32 %v17485_v7, %v17475_v5  ;;  %v17501_v24 = vmul.f32 %v8268_v41, %v17475_v5  ;;  %v17512_v48 = vmul.f32 %v17503_v20, %v17475_v5  ;;  %v17517_v55 = vmul.f32 %v17506_v59, %v17475_v5 }
 0x927   : > { %8305 = vrot.lane.b32.xlu0 %v8299_v18, %s11178_s26  ;;  %8239 = vrot.lane.b32.xlu1 %v8233_v36, %s11178_s26  ;;  %v8338_v6 = vrot.slane %v17494_v49, 7  ;;  %v7856_v51 = vpop.permute.xlu1 %7855  ;;  %v7985_v9 = vsel %vm2649_vm1, %v7984_v17, %v7980_v28  ;;  %v8157_v32 = vsel %vm8066_vm6, %v8156_v53, %v8152_v50  ;;  %v7993_v52 = vrot.slane %v7859_v47, %v17386_v25 }
 0x928   : > { %v8273_v43 = vrot.slane %v17501_v24, 7  ;;  %v8480_v13 = vrot.slane %v17512_v48, 7  ;;  %v8408_v23 = vrot.slane %v17517_v55, 7  ;;  %v7989_v42 = vrot.slane %v7856_v51, %v17392_v40 }
 0x929   : > { %v8161_v37 = vrot.slane %v7856_v51, %v17395_v19  ;;  %v8165_v58 = vrot.slane %v7859_v47, %v17389_v29  ;;  %v8210_v51 = vsel %vm8031_vm12, %v8148_v60, %v8139_v61  ;;  %v8046_v46 = vsel %vm8033_vm9, %v7985_v9, %v8045_v14 }
 0x92a   : > { %v7994_v31 = vsel %vm2649_vm1, %v7993_v52, %v7989_v42  ;;  %v8318_v52 = vstv %s17595_s0  ;;  %s8824_s0 = sshll.u32 %s11280_s9, 8  ;;  %s17791_s9 = scalar_lea.sflag [#allocation8], %s463_s22 }
 0x92b   : > { %8441 = vrot.lane.b32.xlu0 %v8435_v39, %s11178_s26  ;;  %8369 = vrot.lane.b32.xlu1 %v8363_v54, %s11178_s26  ;;  %v8166_v35 = vsel %vm8066_vm6, %v8165_v58, %v8161_v37 }
 0x92f   : > { %8341 = vrot.lane.b32.xlu0 %v8338_v6, %s11178_s26  ;;  %8276 = vrot.lane.b32.xlu1 %v8273_v43, %s11178_s26 }
 0x933   : > { %8485 = vrot.lane.b32.xlu0 %v8480_v13, %s11178_s26  ;;  %8413 = vrot.lane.b32.xlu1 %v8408_v23, %s11178_s26 }
 0x934   : > { %v7862_v26 = vpop.permute.xlu1 %7861 }
 0x935   : > { %v7865_v38 = vpop.permute.xlu0 %7864  ;;  %v7998_v2 = vrot.slane %v7862_v26, %v17392_v40  ;;  %v8170_v34 = vrot.slane %v7862_v26, %v17395_v19  ;;  %v8211_v26 = vsel %vm8033_vm9, %v8157_v32, %v8210_v51  ;;  %v8252_v32 = vstv %s17589_s18  ;;  %s18146_s18 = smov 127  }
 0x936   : > { %v8002_v45 = vrot.slane %v7865_v38, %v17386_v25  ;;  %v8174_v16 = vrot.slane %v7865_v38, %v17389_v29  ;;  %v8047_v38 = vsel %vm8035_vm3, %v7994_v31, %v8046_v46  ;;  %v8212_v1 = vsel %vm8035_vm3, %v8166_v35, %v8211_v26 }
 0x938   : > { %v8003_v57 = vsel %vm2649_vm1, %v8002_v45, %v7998_v2  ;;  %v8175_v63 = vsel %vm8066_vm6, %v8174_v16, %v8170_v34  ;;  %v17612_v16 = vstv %s8792_s11  ;;  %s8225_s11 = sld [smem:[#allocation6]] }
 0x939   : > { %v8048_v53 = vsel %vm8037_vm5, %v8003_v57, %v8047_v38 }
 0x940   : > { %v7868_v22 = vpop.permute.xlu1 %7867 }
 0x941   : > { %v7871_v62 = vpop.permute.xlu0 %7870  ;;  %v8007_v11 = vrot.slane %v7868_v22, %v17392_v40  ;;  %v8179_v18 = vrot.slane %v7868_v22, %v17395_v19  ;;  %v8213_v22 = vsel %vm8037_vm5, %v8175_v63, %v8212_v1 }
 0x942   : > { %v8011_v36 = vrot.slane %v7871_v62, %v17386_v25  ;;  %v8183_v39 = vrot.slane %v7871_v62, %v17389_v29 }
 0x944   : > { %v8012_v0 = vsel %vm2649_vm1, %v8011_v36, %v8007_v11  ;;  %v8184_v28 = vsel %vm8066_vm6, %v8183_v39, %v8179_v18  ;;  %v17614_v11 = vstv %s8796_s27  ;;  %v17617_v18 = vmul.f32 %v8252_v32, %v17475_v5 }
 0x945   : > { %v8049_v42 = vsel %vm8039_vm15, %v8012_v0, %v8048_v53  ;;  %v8214_v37 = vsel %vm8039_vm15, %v8184_v28, %v8213_v22  ;;  %v17620_v36 = vmul.f32 %v8318_v52, %v17475_v5  ;;  %v8382_v39 = vstv %s8802_s24 }
 0x946   : > { %v17647_v46 = vmul.f32 %v8382_v39, %v17475_v5 }
 0x950   : > { %v7874_v54 = vpop.permute.xlu1 %7873 }
 0x951   : > { %v8016_v15 = vrot.slane %v7874_v54, %v17392_v40  ;;  %v8188_v30 = vrot.slane %v7874_v54, %v17395_v19  ;;  %v7877_v27 = vpop.permute.xlu0 %7876  ;;  %v8454_v54 = vstv %s8805_s25  ;;  %s17782_s25 = scalar_lea.hbm %s17860_s12, %s8824_s0 }
 0x952   : > { %v8020_v47 = vrot.slane %v7877_v27, %v17386_v25  ;;  %v8192_v12 = vrot.slane %v7877_v27, %v17389_v29 }
 0x954   : > { %v7880_v50 = vpop.permute.xlu1 %7879  ;;  %v8021_v3 = vsel %vm2649_vm1, %v8020_v47, %v8016_v15  ;;  %v8193_v21 = vsel %vm8066_vm6, %v8192_v12, %v8188_v30 }
 0x955   : > { %v8025_v33 = vrot.slane %v7880_v50, %v17392_v40  ;;  %v8197_v61 = vrot.slane %v7880_v50, %v17395_v19  ;;  %v7883_v17 = vpop.permute.xlu0 %7882  ;;  %v8050_v40 = vsel %vm8041_vm7, %v8021_v3, %v8049_v42  ;;  %v8215_v19 = vsel %vm8041_vm7, %v8193_v21, %v8214_v37 }
 0x956   : > { %v8029_v8 = vrot.slane %v7883_v17, %v17386_v25  ;;  %v8201_v60 = vrot.slane %v7883_v17, %v17389_v29 }
 0x958   : > { %v8030_v62 = vsel %vm2649_vm1, %v8029_v8, %v8025_v33  ;;  %v8202_v9 = vsel %vm8066_vm6, %v8201_v60, %v8197_v61  ;;  %vm8257_vm1 = vcmask 1040384  }
 0x959   : > { %v8051_v25 = vsel %vm8043_vm14, %v8030_v62, %v8050_v40  ;;  %v8216_v29 = vsel %vm8043_vm14, %v8202_v9, %v8215_v19 }
 0x95a   : > { %8055 = vst.msk [vmem:[%s17462_s1 + $0x8] sm:$0xff] %vm1923_vm8, %v8051_v25 }
 0x95b   : > { %8221 = vst.msk [vmem:[#allocation4 + $0x9] sm:$0xff] %vm8219_vm0, %v8216_v29 }
 0x962   : > { %v17604_v58 = vld [vmem:[#allocation4 + $0x8] sm:$0xff]  ;;  %v17606_v2 = vld [vmem:[#allocation4 + $0x10] sm:$0x3] }
 0x963   : > { %v8235_v34 = vmul.f32 %v17473_v4, %v17606_v2  ;;  %v8234_v45 = vmul.f32 %v17473_v4, %v17604_v58  ;;  %v8270_v31 = vmul.f32 %v8268_v41, %v17604_v58  ;;  %v8335_v4 = vmul.f32 %v8333_v10, %v17604_v58 }
 0x964   : > { %v8403_v35 = vmul.f32 %v17506_v59, %v17604_v58  ;;  %v8300_v15 = vmul.f32 %v17471_v56, %v17604_v58  ;;  %v8301_v30 = vmul.f32 %v17471_v56, %v17606_v2  ;;  %v8475_v27 = vmul.f32 %v17503_v20, %v17604_v58 }
 0x965   : > { %8243 = vrot.lane.b32.xlu1 %v8235_v34, %s11178_s26  ;;  %8241 = vrot.lane.b32.xlu0 %v8234_v45, %s11178_s26  ;;  %v17640_v14 = vmul.f32 %v17612_v16, %v17606_v2  ;;  %v8274_v41 = vrot.slane %v8270_v31, 7  ;;  %v8339_v51 = vrot.slane %v8335_v4, 7  ;;  %v17644_v47 = vmul.f32 %v17612_v16, %v17604_v58 }
 0x966   : > { %v8409_v10 = vrot.slane %v8403_v35, 7  ;;  %v8481_v12 = vrot.slane %v8475_v27, 7  ;;  %v17650_v56 = vmul.f32 %v8454_v54, %v17475_v5  ;;  %v17654_v26 = vmul.f32 %v17614_v11, %v17604_v58 }
 0x967   : > { %v8340_v57 = vsel %vm8257_vm1, %v8338_v6, %v8339_v51  ;;  %v8275_v63 = vsel %vm8257_vm1, %v8273_v43, %v8274_v41  ;;  %v17672_v0 = vmul.f32 %v17614_v11, %v17606_v2  ;;  %v8365_v49 = vmul.f32 %v17485_v7, %v17606_v2 }
 0x968   : > { %v8410_v38 = vsel %vm8257_vm1, %v8408_v23, %v8409_v10  ;;  %v8482_v1 = vsel %vm8257_vm1, %v8480_v13, %v8481_v12  ;;  %v8364_v24 = vmul.f32 %v17485_v7, %v17604_v58  ;;  %v8258_v6 = vrot.slane %v17617_v18, 7 }
 0x969   : > { %8307 = vrot.lane.b32.xlu1 %v8300_v15, %s11178_s26  ;;  %8309 = vrot.lane.b32.xlu0 %v8301_v30, %s11178_s26  ;;  %v8323_v43 = vrot.slane %v17620_v36, 7  ;;  %v17681_v55 = vmul.f32 %v8252_v32, %v17604_v58  ;;  %v17684_v48 = vmul.f32 %v8318_v52, %v17604_v58  ;;  %v8384_v13 = vmul.f32 %v8382_v39, %v17604_v58 }
 0x96a   : > { %v8385_v23 = vmul.f32 %v8382_v39, %v17606_v2  ;;  %v8389_v7 = vrot.slane %v17647_v46, 7  ;;  %v8461_v28 = vrot.slane %v17650_v56, 7  ;;  %v8456_v50 = vmul.f32 %v8454_v54, %v17604_v58 }
 0x96b   : > { %v8457_v3 = vmul.f32 %v8454_v54, %v17606_v2  ;;  %v8259_v21 = vrot.slane %v17681_v55, 7  ;;  %v8324_v33 = vrot.slane %v17684_v48, 7  ;;  %v8390_v61 = vrot.slane %v8384_v13, 7 }
 0x96c   : > { %v8392_v17 = vrot.slane %v8385_v23, 7  ;;  %v8436_v53 = vmul.f32 %v17481_v44, %v17604_v58  ;;  %v8437_v22 = vmul.f32 %v17481_v44, %v17606_v2  ;;  %v8462_v8 = vrot.slane %v8456_v50, 7 }
 0x96d   : > { %8373 = vrot.lane.b32.xlu1 %v8365_v49, %s11178_s26  ;;  %8371 = vrot.lane.b32.xlu0 %v8364_v24, %s11178_s26  ;;  %v8464_v60 = vrot.slane %v8457_v3, 7  ;;  %v17703_v42 = vsel %vm8257_vm1, %v8323_v43, %v8324_v33  ;;  %v17708_v37 = vsel %vm8257_vm1, %v8258_v6, %v8259_v21  ;;  %v17714_v19 = vsel %vm8257_vm1, %v8389_v7, %v8390_v61 }
 0x96e   : > { %v17711_v40 = vsel %vm8257_vm1, %v8390_v61, %v8392_v17  ;;  %v17719_v44 = vsel %vm8257_vm1, %v8461_v28, %v8462_v8  ;;  %v8404_v9 = vmul.f32 %v17506_v59, %v17606_v2  ;;  %v8476_v29 = vmul.f32 %v17503_v20, %v17606_v2 }
 0x96f   : > { %v17722_v62 = vsel %vm8257_vm1, %v8462_v8, %v8464_v60  ;;  %v8294_v45 = vmul.f32 %v17614_v11, %v17475_v5  ;;  %v8228_v18 = vmul.f32 %v17612_v16, %v17475_v5  ;;  %v8429_v36 = vstv %s8428_s23  ;;  %s8586_s23 = sshll.u32 %s17462_s1, 4  ;;  %s17785_s23 = int_to_ptr.vmem [resolvable:$true] %s8586_s23 }
 0x970   : > { %v8411_v25 = vrot.slane %v8404_v9, 7  ;;  %v8483_v52 = vrot.slane %v8476_v29, 7  ;;  %v8357_v54 = vstv %s8800_s17  ;;  %v8430_v15 = vmul.f32 %v8429_v36, %v17475_v5  ;;  %s11095_s17 = scalar_lea.vmem %s17785_s23, 256 }
 0x971   : > { %8443 = vrot.lane.b32.xlu1 %v8436_v53, %s11178_s26  ;;  %8445 = vrot.lane.b32.xlu0 %v8437_v22, %s11178_s26  ;;  %v8358_v30 = vmul.f32 %v8357_v54, %v17475_v5  ;;  %v8360_v60 = vmul.f32 %v8357_v54, %v17606_v2  ;;  %v8359_v9 = vmul.f32 %v8357_v54, %v17604_v58  ;;  %p11096_p9 = scmp.ne.s32.totalorder %s17785_s23, %s11095_s17 }
 0x972   : > { %v8412_v32 = vsel %vm8257_vm1, %v8409_v10, %v8411_v25  ;;  %v8484_v59 = vsel %vm8257_vm1, %v8481_v12, %v8483_v52  ;;  %v17744_v10 = vstv %s8225_s11  ;;  %s11181_s11 = smov [#allocation10]  }
 0x973   : > { %p11097_p10 = pnand %p11096_p9, %p11297_p5  ;;  %s11099_s1 = sshll.u32 %s11181_s11, 4  ;;  %s11100_s1 = int_to_ptr.vmem [resolvable:$false] %s11099_s1 }
 0x974   : > { %s11101_s0 = scalar_lea.vmem %s11100_s1, 512  ;;  %p11102_p13 = scmp.lt.s32.totalorder %s17785_s23, %s11100_s1 }
 0x975   : > { %8280 = vrot.lane.b32.xlu1 %v8274_v41, %s11178_s26  ;;  %8345 = vrot.lane.b32.xlu0 %v8339_v51, %s11178_s26  ;;  %p11098_p12 = pneg %p11097_p10  ;;  %p11103_p0 = scmp.lt.s32.totalorder %s11101_s0, %s11095_s17 }
 0x977   : > { %p11104_p1 = por %p11103_p0, %p11102_p13 }
 0x979   : > { %8343 = vrot.lane.b32.xlu1 %v8340_v57, %s11178_s26  ;;  %8278 = vrot.lane.b32.xlu0 %v8275_v63, %s11178_s26  ;;  %p11105_p2 = pnand %p11104_p1, %p11098_p12 }
 0x97d   : > { %8417 = vrot.lane.b32.xlu1 %v8412_v32, %s11178_s26  ;;  %8415 = vrot.lane.b32.xlu0 %v8410_v38, %s11178_s26  ;;  %v8432_v32 = vmul.f32 %v8429_v36, %v17606_v2 }
 0x981   : > { %8487 = vrot.lane.b32.xlu1 %v8482_v1, %s11178_s26  ;;  %8489 = vrot.lane.b32.xlu0 %v8484_v59, %s11178_s26  ;;  %s18144_s26 = smov 126  }
 0x999   : > { %v8306_v20 = vpop.permute.xlu0 %8305  ;;  %v8240_v34 = vpop.permute.xlu1 %8239 }
 0x99a   : > { %v8314_v39 = vadd.f32 %v8306_v20, %v8294_v45  ;;  %v8248_v31 = vadd.f32 %v8240_v34, %v8228_v18 }
 0x99c   : > { %v8329_v41 = vadd.f32 %v8323_v43, %v8314_v39  ;;  %v8264_v12 = vadd.f32 %v8258_v6, %v8248_v31 }
 0x99d   : > { %v8442_v4 = vpop.permute.xlu0 %8441  ;;  %v8370_v35 = vpop.permute.xlu1 %8369 }
 0x99e   : > { %v8450_v27 = vadd.f32 %v8442_v4, %v8430_v15  ;;  %v8378_v51 = vadd.f32 %v8370_v35, %v8358_v30 }
 0x9a0   : > { %v8469_v63 = vadd.f32 %v8461_v28, %v8450_v27  ;;  %v8397_v1 = vadd.f32 %v8389_v7, %v8378_v51 }
 0x9a1   : > { %v8342_v11 = vpop.permute.xlu0 %8341  ;;  %v8277_v46 = vpop.permute.xlu1 %8276 }
 0x9a2   : > { %v8350_v56 = vadd.f32 %v8342_v11, %v8329_v41  ;;  %v8285_v16 = vadd.f32 %v8277_v46, %v8264_v12 }
 0x9a4   : > { %v8353_v57 = vadd.f32 %v8350_v56, %v17744_v10  ;;  %v8289_v38 = vadd.f32 %v17744_v10, %v8285_v16 }
 0x9a5   : > { %v8486_v49 = vpop.permute.xlu0 %8485  ;;  %v8414_v24 = vpop.permute.xlu1 %8413 }
 0x9a6   : > { %v8494_v13 = vadd.f32 %v8486_v49, %v8469_v63  ;;  %8520 = vrot.lane.b32.xlu0 %v8353_v57, %s18144_s26  ;;  %v8422_v5 = vadd.f32 %v8414_v24, %v8397_v1  ;;  %8503 = vrot.lane.b32.xlu1 %v8289_v38, %s18146_s18 }
 0x9a8   : > { %v8497_v6 = vadd.f32 %v8494_v13, %v17744_v10  ;;  %v8425_v43 = vadd.f32 %v8422_v5, %v17744_v10 }
 0x9aa   : > { %8554 = vrot.lane.b32.xlu0 %v8497_v6, %s18144_s26  ;;  %8536 = vrot.lane.b32.xlu1 %v8425_v43, %s18146_s18 }
 0x9d7   : > { %v8244_v23 = vpop.permute.xlu1 %8243  ;;  %v8242_v7 = vpop.permute.xlu0 %8241 }
 0x9d8   : > { %v8250_v28 = vadd.f32 %v8244_v23, %v17640_v14  ;;  %v8249_v50 = vadd.f32 %v8242_v7, %v17644_v47 }
 0x9da   : > { %v8266_v3 = vadd.f32 %v8259_v21, %v8250_v28  ;;  %v8265_v61 = vadd.f32 %v17708_v37, %v8249_v50  ;;  %v8431_v37 = vmul.f32 %v8429_v36, %v17604_v58 }
 0x9db   : > { %v8308_v17 = vpop.permute.xlu1 %8307  ;;  %v8310_v53 = vpop.permute.xlu0 %8309 }
 0x9dc   : > { %v8315_v22 = vadd.f32 %v8308_v17, %v17654_v26  ;;  %v8316_v8 = vadd.f32 %v8310_v53, %v17672_v0 }
 0x9de   : > { %v8331_v14 = vadd.f32 %v8324_v33, %v8316_v8  ;;  %v8330_v47 = vadd.f32 %v17703_v42, %v8315_v22 }
 0x9df   : > { %v8374_v25 = vpop.permute.xlu1 %8373  ;;  %v8372_v55 = vpop.permute.xlu0 %8371 }
 0x9e0   : > { %v8380_v21 = vadd.f32 %v8374_v25, %v8360_v60  ;;  %v8379_v29 = vadd.f32 %v8372_v55, %v8359_v9 }
 0x9e2   : > { %v8399_v26 = vadd.f32 %v17711_v40, %v8380_v21  ;;  %v8398_v0 = vadd.f32 %v17714_v19, %v8379_v29 }
 0x9e3   : > { %v8444_v52 = vpop.permute.xlu1 %8443  ;;  %v8446_v59 = vpop.permute.xlu0 %8445 }
 0x9e4   : > { %v8451_v20 = vadd.f32 %v8444_v52, %v8431_v37  ;;  %v8452_v34 = vadd.f32 %v8446_v59, %v8432_v32 }
 0x9e6   : > { %v8470_v48 = vadd.f32 %v17719_v44, %v8451_v20  ;;  %v8471_v33 = vadd.f32 %v17722_v62, %v8452_v34 }
 0x9e7   : > { %v8281_v42 = vpop.permute.xlu1 %8280  ;;  %v8346_v45 = vpop.permute.xlu0 %8345 }
 0x9e8   : > { %v8287_v18 = vadd.f32 %v8281_v42, %v8266_v3  ;;  %v8352_v19 = vadd.f32 %v8346_v45, %v8331_v14 }
 0x9ea   : > { %v8291_v58 = vadd.f32 %v17744_v10, %v8287_v18  ;;  %v8355_v35 = vadd.f32 %v8352_v19, %v17744_v10 }
 0x9eb   : > { %v8344_v2 = vpop.permute.xlu1 %8343  ;;  %v8279_v36 = vpop.permute.xlu0 %8278 }
 0x9ec   : > { %v8351_v40 = vadd.f32 %v8344_v2, %v8330_v47  ;;  %v8286_v39 = vadd.f32 %v8279_v36, %v8265_v61  ;;  %8507 = vrot.lane.b32.xlu1 %v8291_v58, %s18146_s18 }
 0x9ee   : > { %v8354_v54 = vadd.f32 %v8351_v40, %v17744_v10  ;;  %v8290_v44 = vadd.f32 %v17744_v10, %v8286_v39 }
 0x9ef   : > { %v8418_v62 = vpop.permute.xlu1 %8417  ;;  %v8416_v31 = vpop.permute.xlu0 %8415 }
 0x9f0   : > { %v8424_v4 = vadd.f32 %v8418_v62, %v8399_v26  ;;  %8522 = vrot.lane.b32.xlu1 %v8354_v54, %s18144_s26  ;;  %8505 = vrot.lane.b32.xlu0 %v8290_v44, %s18146_s18  ;;  %v8423_v30 = vadd.f32 %v8416_v31, %v8398_v0 }
 0x9f2   : > { %v8427_v15 = vadd.f32 %v8424_v4, %v17744_v10 }
 0x9f3   : > { %11108 = shalt.err (!%p11105_p2)
}
 0x9f4   : > { %s11109_s22 = scalar_lea.hbm %s17782_s25, 256  ;;  %s11113_s11 = scalar_lea.hbm %s17860_s12, 512 }
 0x9f5   : > { %p11110_p3 = scmp.ne.s32.totalorder %s17782_s25, %s11109_s22  ;;  %p11114_p8 = scmp.lt.s32.totalorder %s17782_s25, %s17860_s12 }
 0x9f6   : > { %p11115_p11 = scmp.lt.s32.totalorder %s11113_s11, %s11109_s22 }
 0x9f7   : > { %p11111_p4 = pnand %p11110_p3, %p11297_p5 }
 0x9f8   : > { %p11116_p9 = por %p11115_p11, %p11114_p8 }
 0x9f9   : > { %p11112_p7 = pneg %p11111_p4 }
 0x9fb   : > { %p11117_p10 = pnand %p11116_p9, %p11112_p7 }
 0x9fd   : > { %11120 = shalt.err (!%p11117_p10)
}
 0x9fe   : > { %s11182_s17 = smov 128   ;;  %s18855_s1 = smov 8   ;;  %v8488_v27 = vpop.permute.xlu1 %8487  ;;  %v8490_v41 = vpop.permute.xlu0 %8489  ;;  %v8426_v12 = vadd.f32 %v8423_v30, %v17744_v10  ;;  %vm8512_vm10 = vcmask 130049   ;;  %vm8546_vm11 = vcmask 130050   ;;  %vm8515_vm13 = vcmask 122880  }
 0x9ff   : > { %8921 = dma.vmem_to_hbm [thread:$0]  (%p11297_p5), %s17785_s23, 256, %s17782_s25, %s17791_s9, %s11182_s17, %s11182_s17, %s18855_s1   ;;  %v8495_v51 = vadd.f32 %v8488_v27, %v8470_v48  ;;  %v8496_v46 = vadd.f32 %v8490_v41, %v8471_v33  ;;  %vm8549_vm2 = vcmask 123904  }
 0xa00   : > { %s18856_s0 = smov 127   ;;  %s18857_s26 = smov 126  }
 0xa01   : > { %8540 = vrot.lane.b32.xlu1 %v8427_v15, %s18856_s0  ;;  %8524 = vrot.lane.b32.xlu0 %v8355_v35, %s18857_s26  ;;  %v8498_v11 = vadd.f32 %v8495_v51, %v17744_v10  ;;  %v8499_v56 = vadd.f32 %v8496_v46, %v17744_v10  ;;  %s8823_s20 = sshll.u32 %s11437_s28, 6 }
 0xa02   : > { %s487_s23 = scalar_lea.vmem %s17861_s13, %s8823_s20 }
 0xa05   : > { %8556 = vrot.lane.b32.xlu1 %v8498_v11, %s18857_s26  ;;  %8538 = vrot.lane.b32.xlu0 %v8426_v12, %s18856_s0 }
 0xa09   : > { %8558 = vrot.lane.b32.xlu0 %v8499_v56, %s18857_s26 }
 0xa18   : > { %v8521_v16 = vpop.permute.xlu0 %8520  ;;  %v8504_v57 = vpop.permute.xlu1 %8503 }
 0xa19   : > { %8807 = vst.msk [vmem:[%s487_s23 + $0xf] sm:$0xfe] %vm8512_vm10, %v8521_v16  ;;  %8513 = vst.msk [vmem:[%s487_s23 - $0x1] sm:$0xfe] %vm8512_vm10, %v8504_v57 }
 0xa1c   : > { %v8555_v63 = vpop.permute.xlu0 %8554  ;;  %v8537_v38 = vpop.permute.xlu1 %8536 }
 0xa1d   : > { %8813 = vst.msk [vmem:[%s487_s23 + $0x2e] sm:$0xfc] %vm8546_vm11, %v8555_v63  ;;  %8810 = vst.msk [vmem:[%s487_s23 + $0x1e] sm:$0xfc] %vm8546_vm11, %v8537_v38 }
 0xa5e   : > { %v8508_v1 = vpop.permute.xlu1 %8507 }
 0xa5f   : > { %8516 = vst.msk [vmem:[%s487_s23 + $0xf] sm:$0x1] %vm8515_vm13, %v8508_v1 }
 0xa62   : > { %v8523_v10 = vpop.permute.xlu1 %8522  ;;  %v8506_v49 = vpop.permute.xlu0 %8505 }
 0xa63   : > { %8808 = vst.msk [vmem:[%s487_s23 + $0x17] sm:$0xff] %vm1923_vm8, %v8523_v10  ;;  %8514 = vst.msk [vmem:[%s487_s23 + $0x7] sm:$0xff] %vm1923_vm8, %v8506_v49 }
 0xa73   : > { %v8541_v24 = vpop.permute.xlu1 %8540  ;;  %v8525_v13 = vpop.permute.xlu0 %8524 }
 0xa74   : > { %8812 = vst.msk [vmem:[%s487_s23 + $0x2e] sm:$0x3] %vm8549_vm2, %v8541_v24 }
 0xa75   : > { %8809 = vst.msk [vmem:[%s487_s23 + $0x1f] sm:$0x1] %vm8515_vm13, %v8525_v13 }
 0xa77   : > { %v8557_v5 = vpop.permute.xlu1 %8556  ;;  %v8539_v6 = vpop.permute.xlu0 %8538 }
 0xa78   : > { %8814 = vst.msk [vmem:[%s487_s23 + $0x36] sm:$0xff] %vm1923_vm8, %v8557_v5  ;;  %8811 = vst.msk [vmem:[%s487_s23 + $0x26] sm:$0xff] %vm1923_vm8, %v8539_v6 }
 0xa7b   : > { %v8559_v43 = vpop.permute.xlu0 %8558 }
 0xa7c   : > { %8815 = vst.msk [vmem:[%s487_s23 + $0x3e] sm:$0x3] %vm8549_vm2, %v8559_v43 }
 0xa7d PF: > { %p8933_p5 = scmp.ge.s32.totalorder %s11159_s15, 2  ;;  %s8604_s28 = sand.u32 1, %s11147_s29  }
 0xa7e   : > { %s8605_s9 = scalar_lea.sflag [#allocation8], %s8604_s28 }
 0xa7f   : > { %p8928_p12 = pnand %p8933_p5, %p11301_p6 }
 0xa81   : > { %p8929_p13 = pneg %p8928_p12 }
 0xa83   : > { %11142 = dma.done.wait (%p8929_p13), %s8605_s9, 256  }
 0xa84   : > { %11144 = vsyncadd (%p8929_p13), %s8605_s9, 4294967040  ;;  %p27_p0 = scmp.ge.s32.totalorder %s11284_s16, 4   ;;  %s18858_s29 = smov %s11151_s30 }
 0xa85   : > { %s18859_s30 = smov %s11155_s14  ;;  %s18860_s14 = smov %s11295_s19 }
 0xa86   : > { %s18861_s15 = smov %s11284_s16  ;;  %29 = sbr.rel (!%p27_p0) target bundleno = 9 (0x9), region = 128 }
 0xa8b   :  { %8618 = vsyncpa [#allocation8], 1 }
 0xa8c   :  { %8620 = vsyncpa [#allocation8 + $0x1], 1 }
 0xa8d   :  { %8621 = vsyncpa [#allocation9], 1 }
 0xa8e   :  { %8623 = vsyncpa [#allocation9 + $0x1], 1 }

</bundles_post_ra>
